<compile_context>
chip_gen: v5e
topology: v5e:2x2
jax: 0.10.0
libtpu: 0.0.40
codegen_flags: <defaults>
</compile_context>

<pallas_src>
import functools

import jax
import jax.numpy as jnp
from jax import lax
from jax.experimental import pallas as pl
from jax.experimental.pallas import tpu as pltpu

# ----------------------------- model config (dinov2_vits14) -----------------------------
PATCH = 14
IN_CHANS = 3
EMBED_DIM = 384
DEPTH = 12
NUM_HEADS = 6
HEAD_DIM = EMBED_DIM // NUM_HEADS          # 64
MLP_HIDDEN = EMBED_DIM * 4                 # 1536
LN_EPS = 1e-6
CLS_HIDDEN = 256
NUM_CLASSES = 3

PATCH_DIM = IN_CHANS * PATCH * PATCH       # 588
PATCH_DIM_PAD = 640                        # padded to a multiple of 128 (lane-dense K)

VMEM_LIMIT = 32 * 1024 * 1024              # headroom on v7x (64 MiB physical), fine on v5e/v6e


def _round_up(x, m):
    return (x + m - 1) // m * m


# ----------------------------- in-kernel helpers (f32 math) -----------------------------
def _erf(x):
    # Abramowitz & Stegun 7.1.26 polynomial erf (|err| < 1.5e-7, fp32-exact).
    # TODO(synk): if Mosaic gains a native erf lowering, switch to jax.lax.erf.
    a1, a2, a3, a4, a5 = 0.254829592, -0.284496736, 1.421413741, -1.453152027, 1.061405429
    p = 0.3275911
    sgn = jnp.where(x >= 0.0, 1.0, -1.0)
    ax = jnp.abs(x)
    t = 1.0 / (1.0 + p * ax)
    poly = ((((a5 * t + a4) * t + a3) * t + a2) * t + a1) * t
    return sgn * (1.0 - poly * jnp.exp(-ax * ax))


def _gelu_exact(x):
    # nn.GELU default (erf-based), not the tanh approximation.
    return 0.5 * x * (1.0 + _erf(x * 0.7071067811865476))


def _ln_rows(x, g, b):
    # Per-row LayerNorm with biased variance (matches nn.LayerNorm). g, b: (1, D).
    mean = jnp.mean(x, axis=-1, keepdims=True)
    xc = x - mean
    var = jnp.mean(xc * xc, axis=-1, keepdims=True)
    return (xc * lax.rsqrt(var + LN_EPS)) * g + b


# ----------------------------- fused 12-layer transformer stack + head -----------------------------
def _stack_kernel(x_ref, ln1g, ln1b, wqkv, bqkv, wproj, bproj, ls1,
                  ln2g, ln2b, wfc1, bfc1, wfc2, bfc2, ls2,
                  ng, nb, w1, b1, w2, b2,
                  o_ref, xs, *, valid_t):
    """One grid step = one transformer block for one batch item (grid = (B, DEPTH)).

    The (Tp, D) residual stream lives in the f32 VMEM scratch `xs` across all DEPTH
    steps; at the last layer the CLS row is LayerNorm'd and pushed through the
    classifier head, writing (1, NUM_CLASSES) logits.
    """
    l = pl.program_id(1)
    D = EMBED_DIM
    bf16 = jnp.bfloat16

    @pl.when(l == 0)
    def _():
        xs[...] = x_ref[0].astype(jnp.float32)

    x = xs[...]                                           # (Tp, D) f32
    Tp = x.shape[0]

    # --- attention branch: LN1 -> QKV -> per-head softmax(QK^T/sqrt(d)) V -> proj ---
    h = _ln_rows(x, ln1g[0], ln1b[0]).astype(bf16)
    qkv = jnp.dot(h, wqkv[0], preferred_element_type=jnp.float32) + bqkv[0]   # (Tp, 3D) f32

    scale = float(HEAD_DIM) ** -0.5
    mask = None
    if valid_t < Tp:                                      # static: pad KEYS masked out
        col = lax.broadcasted_iota(jnp.int32, (Tp, Tp), 1)
        mask = col < valid_t

    # TODO(synk): the 64-lane per-head slices are not 128-aligned (Mosaic relayout);
    # a head-batched dot_general would remove them but risks reshape lowering issues.
    heads = []
    for hd in range(NUM_HEADS):
        lo = hd * HEAD_DIM
        qh = qkv[:, lo:lo + HEAD_DIM].astype(bf16)
        kh = qkv[:, D + lo:D + lo + HEAD_DIM].astype(bf16)
        vh = qkv[:, 2 * D + lo:2 * D + lo + HEAD_DIM].astype(bf16)
        s = lax.dot_general(qh, kh, (((1,), (1,)), ((), ())),
                            preferred_element_type=jnp.float32) * scale
        if mask is not None:
            s = jnp.where(mask, s, -1e30)
        s = s - jnp.max(s, axis=-1, keepdims=True)
        p = jnp.exp(s)
        p = p * pl.reciprocal(jnp.sum(p, axis=-1, keepdims=True), approx=True)
        heads.append(jnp.dot(p.astype(bf16), vh, preferred_element_type=jnp.float32))
    ctx = jnp.concatenate(heads, axis=-1).astype(bf16)    # (Tp, D) context slab
    a = jnp.dot(ctx, wproj[0], preferred_element_type=jnp.float32) + bproj[0]  # one K=384 proj
    x = x + a * ls1[0]                                    # LayerScale + residual (f32)

    # --- MLP branch: LN2 -> fc1 -> GELU -> fc2 (hidden never leaves VMEM) ---
    h = _ln_rows(x, ln2g[0], ln2b[0]).astype(bf16)
    h = jnp.dot(h, wfc1[0], preferred_element_type=jnp.float32) + bfc1[0]
    h = _gelu_exact(h).astype(bf16)
    h = jnp.dot(h, wfc2[0], preferred_element_type=jnp.float32) + bfc2[0]
    x = x + h * ls2[0]

    xs[...] = x

    # --- final LayerNorm (CLS row only) + classifier head, fused at the last layer ---
    @pl.when(l == DEPTH - 1)
    def _():
        cls = _ln_rows(x[0:1, :], ng[...], nb[...])                         # (1, D)
        hh = jnp.dot(cls.astype(bf16), w1[...],
                     preferred_element_type=jnp.float32) + b1[...]
        hh = jnp.maximum(hh, 0.0)
        logits = jnp.dot(hh.astype(bf16), w2[...],
                         preferred_element_type=jnp.float32) + b2[...]      # (1, 3)
        o_ref[0] = logits.astype(o_ref.dtype)


def _layer_spec(*dims):
    # Per-layer stacked param (DEPTH, *dims): block indexed by the layer grid coord.
    return pl.BlockSpec((1,) + dims, lambda b, l: (l,) + (0,) * len(dims))


def _const_spec(*dims):
    return pl.BlockSpec(dims, lambda b, l: (0,) * len(dims))


def transformer_stack(h, params, valid_t):
    """h: (B, Tp, D) bf16 -> logits (B, 1, NUM_CLASSES) f32. One fused pallas_call."""
    B, Tp, D = h.shape
    bp = params["blocks"]
    MH = MLP_HIDDEN

    in_specs = [
        pl.BlockSpec((1, Tp, D), lambda b, l: (b, 0, 0)),   # tokens (read at l==0 only)
        _layer_spec(1, D), _layer_spec(1, D),               # ln1 gamma/beta
        _layer_spec(D, 3 * D), _layer_spec(1, 3 * D),       # qkv
        _layer_spec(D, D), _layer_spec(1, D),               # proj
        _layer_spec(1, D),                                  # ls1
        _layer_spec(1, D), _layer_spec(1, D),               # ln2 gamma/beta
        _layer_spec(D, MH), _layer_spec(1, MH),             # fc1
        _layer_spec(MH, D), _layer_spec(1, D),              # fc2
        _layer_spec(1, D),                                  # ls2
        _const_spec(1, D), _const_spec(1, D),               # final norm gamma/beta
        _const_spec(D, CLS_HIDDEN), _const_spec(1, CLS_HIDDEN),
        _const_spec(CLS_HIDDEN, NUM_CLASSES), _const_spec(1, NUM_CLASSES),
    ]
    return pl.pallas_call(
        functools.partial(_stack_kernel, valid_t=valid_t),
        out_shape=jax.ShapeDtypeStruct((B, 1, NUM_CLASSES), jnp.float32),
        grid=(B, DEPTH),
        in_specs=in_specs,
        out_specs=pl.BlockSpec((1, 1, NUM_CLASSES), lambda b, l: (b, 0, 0)),
        scratch_shapes=[pltpu.VMEM((Tp, D), jnp.float32)],
        compiler_params=pltpu.CompilerParams(
            dimension_semantics=("parallel", "arbitrary"),
            vmem_limit_bytes=VMEM_LIMIT),
    )(h,
      bp["ln1_g"], bp["ln1_b"],
      bp["w_qkv"], bp["b_qkv"],
      bp["w_proj"], bp["b_proj"],
      bp["ls1"],
      bp["ln2_g"], bp["ln2_b"],
      bp["w_fc1"], bp["b_fc1"],
      bp["w_fc2"], bp["b_fc2"],
      bp["ls2"],
      params["norm_g"], params["norm_b"],
      params["cls1_w"], params["cls1_b"],
      params["cls2_w"], params["cls2_b"])


# ----------------------------- row-tiled linear (patch embedding) -----------------------------
def _linear_kernel(x_ref, w_ref, b_ref, o_ref):
    y = jnp.dot(x_ref[...], w_ref[...], preferred_element_type=jnp.float32) + b_ref[...]
    o_ref[...] = y.astype(o_ref.dtype)


def linear_rows(x, w, b, row_tile=256):
    """y = x @ w + b (bf16 operands, f32 out), row-tiled; weight block stays VMEM-resident."""
    M, K = x.shape
    N = w.shape[1]
    tm = min(row_tile, _round_up(M, 8))
    Mp = _round_up(M, tm)
    if Mp != M:
        x = jnp.pad(x, ((0, Mp - M), (0, 0)))
    out = pl.pallas_call(
        _linear_kernel,
        out_shape=jax.ShapeDtypeStruct((Mp, N), jnp.float32),
        grid=(Mp // tm,),
        in_specs=[
            pl.BlockSpec((tm, K), lambda i: (i, 0)),
            pl.BlockSpec((K, N), lambda i: (0, 0)),
            pl.BlockSpec((1, N), lambda i: (0, 0)),
        ],
        out_specs=pl.BlockSpec((tm, N), lambda i: (i, 0)),
        compiler_params=pltpu.CompilerParams(
            dimension_semantics=("parallel",),
            vmem_limit_bytes=VMEM_LIMIT),
    )(x, w, b)
    return out[:M] if Mp != M else out


# ----------------------------- parameter init (deterministic, synthetic) -----------------------------
def init_params(key, num_patches):
    # TODO(synk): weights are synthetic (no torch.hub dinov2_vits14 checkpoint load).
    f32, bf16 = jnp.float32, jnp.bfloat16
    D, H3, MH = EMBED_DIM, 3 * EMBED_DIM, MLP_HIDDEN

    def nrm(k, shape, s=0.02, dtype=bf16):
        return (s * jax.random.normal(k, shape, f32)).astype(dtype)

    keys = jax.random.split(key, 10)

    # Patch-embed weight: conv (D, C, 14, 14) flattened to (C*14*14, D), zero-padded to 640 rows.
    pw = nrm(keys[0], (PATCH_DIM, D), dtype=f32)
    pw = jnp.pad(pw, ((0, PATCH_DIM_PAD - PATCH_DIM), (0, 0))).astype(bf16)

    params = dict(
        patch_w=pw,
        patch_b=jnp.zeros((1, D), f32),
        cls_token=nrm(keys[1], (1, 1, D), dtype=f32),
        pos_embed=nrm(keys[2], (1, num_patches + 1, D), dtype=f32),
        norm_g=jnp.ones((1, D), f32),
        norm_b=jnp.zeros((1, D), f32),
        cls1_w=nrm(keys[3], (D, CLS_HIDDEN)),
        cls1_b=jnp.zeros((1, CLS_HIDDEN), f32),
        cls2_w=nrm(keys[4], (CLS_HIDDEN, NUM_CLASSES)),
        cls2_b=jnp.zeros((1, NUM_CLASSES), f32),
    )

    # Per-layer params stacked along a leading DEPTH axis (indexed by the layer grid coord).
    params["blocks"] = dict(
        ln1_g=jnp.ones((DEPTH, 1, D), f32), ln1_b=jnp.zeros((DEPTH, 1, D), f32),
        w_qkv=nrm(keys[5], (DEPTH, D, H3)), b_qkv=jnp.zeros((DEPTH, 1, H3), f32),
        w_proj=nrm(keys[6], (DEPTH, D, D)), b_proj=jnp.zeros((DEPTH, 1, D), f32),
        ls1=jnp.ones((DEPTH, 1, D), f32),                  # LayerScale init_values=1.0
        ln2_g=jnp.ones((DEPTH, 1, D), f32), ln2_b=jnp.zeros((DEPTH, 1, D), f32),
        w_fc1=nrm(keys[7], (DEPTH, D, MH)), b_fc1=jnp.zeros((DEPTH, 1, MH), f32),
        w_fc2=nrm(keys[8], (DEPTH, MH, D)), b_fc2=jnp.zeros((DEPTH, 1, D), f32),
        ls2=jnp.ones((DEPTH, 1, D), f32),
    )
    return params


# ----------------------------- forward pass -----------------------------
def patchify(x):
    """NCHW image -> (B, num_patches, C*14*14) with conv-compatible (c, kh, kw) flattening."""
    B, C, H, W = x.shape
    nh, nw = H // PATCH, W // PATCH
    x = x.reshape(B, C, nh, PATCH, nw, PATCH)
    x = x.transpose(0, 2, 4, 1, 3, 5)                     # (B, nh, nw, C, ph, pw)
    return x.reshape(B, nh * nw, C * PATCH * PATCH)


@jax.jit
def forward(params, x):
    """x: (B, 3, H, W) NCHW float32 -> logits (B, 3)."""
    B = x.shape[0]
    patches = patchify(x)                                 # (B, N, 588)
    N = patches.shape[1]
    T = N + 1
    Tp = _round_up(T, 8)                                  # pad token rows to sublane multiple

    # Lane-dense contraction dim (588 -> 640) + bf16 operands for the patch-embed matmul.
    patches = jnp.pad(patches, ((0, 0), (0, 0), (0, PATCH_DIM_PAD - PATCH_DIM)))
    patches = patches.astype(jnp.bfloat16)
    tok = linear_rows(patches.reshape(B * N, PATCH_DIM_PAD), params["patch_w"], params["patch_b"])
    tok = tok.reshape(B, N, EMBED_DIM)                    # f32

    cls = jnp.broadcast_to(params["cls_token"], (B, 1, EMBED_DIM))
    h = jnp.concatenate([cls, tok], axis=1) + params["pos_embed"]        # (B, T, D) f32
    if Tp != T:
        h = jnp.pad(h, ((0, 0), (0, Tp - T), (0, 0)))                    # pad keys masked in-kernel
    h = h.astype(jnp.bfloat16)

    # 12 blocks + final LN (CLS row) + Linear(384,256)->ReLU->Linear(256,3), one pallas_call.
    logits = transformer_stack(h, params, valid_t=T)      # (B, 1, 3)
    return logits[:, 0, :]


# ----------------------------- main -----------------------------
if __name__ == "__main__":
    key = jax.random.PRNGKey(0)
    k_params, k_x = jax.random.split(key)

    # Small image consistent with the module: H, W multiples of patch size 14.
    B, H, W = 2, 28, 28
    num_patches = (H // PATCH) * (W // PATCH)             # 4 patches -> 5 tokens w/ CLS

    params = init_params(k_params, num_patches)
    x = jax.random.normal(k_x, (B, IN_CHANS, H, W), jnp.float32)          # NCHW like PyTorch

    out = forward(params, x)
    out = jax.block_until_ready(out)
    assert out.shape == (B, NUM_CLASSES) and out.dtype == jnp.float32
    assert bool(jnp.all(jnp.isfinite(out)))
    print("KERNEL_OK")
</pallas_src>

<mosaic_0001>
module attributes {stable_mosaic.version = 11 : i64} {
  func.func @_linear_kernel(%arg0: i32, %arg1: memref<8x640xbf16, #tpu.memory_space<vmem>>, %arg2: memref<640x384xbf16, #tpu.memory_space<vmem>>, %arg3: memref<1x384xf32, #tpu.memory_space<vmem>>, %arg4: memref<8x384xf32, #tpu.memory_space<vmem>>) attributes {dimension_semantics = [#tpu.dimension_semantics<parallel>], iteration_bounds = array<i64: 1>, scalar_prefetch = 0 : i64, scratch_operands = 0 : i64, tpu.core_type = #tpu.core_type<tc>, window_params = [{transform_indices = @transform_0, window_bounds = array<i64: 8, 640>}, {pipeline_mode = #tpu.pipeline_mode<synchronous>, transform_indices = @transform_1, window_bounds = array<i64: 640, 384>}, {pipeline_mode = #tpu.pipeline_mode<synchronous>, transform_indices = @transform_2, window_bounds = array<i64: 1, 384>}, {transform_indices = @transform_3, window_bounds = array<i64: 8, 384>}]} {
    %c0 = arith.constant 0 : index
    %c0_0 = arith.constant 0 : index
    %0 = vector.load %arg1[%c0, %c0_0] : memref<8x640xbf16, #tpu.memory_space<vmem>>, vector<8x640xbf16>
    %c0_1 = arith.constant 0 : index
    %c0_2 = arith.constant 0 : index
    %1 = vector.load %arg2[%c0_1, %c0_2] : memref<640x384xbf16, #tpu.memory_space<vmem>>, vector<640x384xbf16>
    %cst = arith.constant dense<0.000000e+00> : vector<8x384xf32>
    %2 = tpu.matmul %0, %1, %cst {dimension_numbers = #tpu.dot_dimension_numbers<[1], [0], [0], [1], [0, 0, 1, 1], [], []>} : vector<8x640xbf16>, vector<640x384xbf16>, vector<8x384xf32> -> vector<8x384xf32>
    %c0_3 = arith.constant 0 : index
    %c0_4 = arith.constant 0 : index
    %3 = vector.load %arg3[%c0_3, %c0_4] : memref<1x384xf32, #tpu.memory_space<vmem>>, vector<1x384xf32>
    %4 = vector.broadcast %3 : vector<1x384xf32> to vector<8x384xf32>
    %5 = arith.addf %2, %4 : vector<8x384xf32>
    %c0_5 = arith.constant 0 : index
    %c0_6 = arith.constant 0 : index
    %6 = vector.load %arg4[%c0_5, %c0_6] : memref<8x384xf32, #tpu.memory_space<vmem>>, vector<8x384xf32>
    tpu.vector_store %arg4[%c0_5, %c0_6], %5 {strides = array<i32>} : memref<8x384xf32, #tpu.memory_space<vmem>>, vector<8x384xf32>,
    return
  }
  func.func @transform_0(%arg0: i32) -> (i32, i32) {
    %c0_i32 = arith.constant 0 : i32
    %c0_i32_0 = arith.constant 0 : i32
    return %arg0, %c0_i32 : i32, i32
  }
  func.func @transform_1(%arg0: i32) -> (i32, i32) {
    %c0_i32 = arith.constant 0 : i32
    %c0_i32_0 = arith.constant 0 : i32
    %c0_i32_1 = arith.constant 0 : i32
    return %c0_i32, %c0_i32_0 : i32, i32
  }
  func.func @transform_2(%arg0: i32) -> (i32, i32) {
    %c0_i32 = arith.constant 0 : i32
    %c0_i32_0 = arith.constant 0 : i32
    %c0_i32_1 = arith.constant 0 : i32
    return %c0_i32, %c0_i32_0 : i32, i32
  }
  func.func @transform_3(%arg0: i32) -> (i32, i32) {
    %c0_i32 = arith.constant 0 : i32
    %c0_i32_0 = arith.constant 0 : i32
    return %arg0, %c0_i32 : i32, i32
  }
}

module attributes {stable_mosaic.version = 11 : i64} {
  func.func @_stack_kernel(%arg0: i32, %arg1: i32, %arg2: memref<1x8x384xbf16, #tpu.memory_space<vmem>>, %arg3: memref<1x1x384xf32, #tpu.memory_space<vmem>>, %arg4: memref<1x1x384xf32, #tpu.memory_space<vmem>>, %arg5: memref<1x384x1152xbf16, #tpu.memory_space<vmem>>, %arg6: memref<1x1x1152xf32, #tpu.memory_space<vmem>>, %arg7: memref<1x384x384xbf16, #tpu.memory_space<vmem>>, %arg8: memref<1x1x384xf32, #tpu.memory_space<vmem>>, %arg9: memref<1x1x384xf32, #tpu.memory_space<vmem>>, %arg10: memref<1x1x384xf32, #tpu.memory_space<vmem>>, %arg11: memref<1x1x384xf32, #tpu.memory_space<vmem>>, %arg12: memref<1x384x1536xbf16, #tpu.memory_space<vmem>>, %arg13: memref<1x1x1536xf32, #tpu.memory_space<vmem>>, %arg14: memref<1x1536x384xbf16, #tpu.memory_space<vmem>>, %arg15: memref<1x1x384xf32, #tpu.memory_space<vmem>>, %arg16: memref<1x1x384xf32, #tpu.memory_space<vmem>>, %arg17: memref<1x384xf32, #tpu.memory_space<vmem>>, %arg18: memref<1x384xf32, #tpu.memory_space<vmem>>, %arg19: memref<384x256xbf16, #tpu.memory_space<vmem>>, %arg20: memref<1x256xf32, #tpu.memory_space<vmem>>, %arg21: memref<256x3xbf16, #tpu.memory_space<vmem>>, %arg22: memref<1x3xf32, #tpu.memory_space<vmem>>, %arg23: memref<1x1x3xf32, #tpu.memory_space<vmem>>, %arg24: memref<8x384xf32, #tpu.memory_space<vmem>>) attributes {dimension_semantics = [#tpu.dimension_semantics<parallel>, #tpu.dimension_semantics<arbitrary>], iteration_bounds = array<i64: 2, 12>, scalar_prefetch = 0 : i64, scratch_operands = 1 : i64, tpu.core_type = #tpu.core_type<tc>, window_params = [{transform_indices = @transform_0, window_bounds = array<i64: 1, 8, 384>}, {transform_indices = @transform_1, window_bounds = array<i64: 1, 1, 384>}, {transform_indices = @transform_2, window_bounds = array<i64: 1, 1, 384>}, {transform_indices = @transform_3, window_bounds = array<i64: 1, 384, 1152>}, {transform_indices = @transform_4, window_bounds = array<i64: 1, 1, 1152>}, {transform_indices = @transform_5, window_bounds = array<i64: 1, 384, 384>}, {transform_indices = @transform_6, window_bounds = array<i64: 1, 1, 384>}, {transform_indices = @transform_7, window_bounds = array<i64: 1, 1, 384>}, {transform_indices = @transform_8, window_bounds = array<i64: 1, 1, 384>}, {transform_indices = @transform_9, window_bounds = array<i64: 1, 1, 384>}, {transform_indices = @transform_10, window_bounds = array<i64: 1, 384, 1536>}, {transform_indices = @transform_11, window_bounds = array<i64: 1, 1, 1536>}, {transform_indices = @transform_12, window_bounds = array<i64: 1, 1536, 384>}, {transform_indices = @transform_13, window_bounds = array<i64: 1, 1, 384>}, {transform_indices = @transform_14, window_bounds = array<i64: 1, 1, 384>}, {pipeline_mode = #tpu.pipeline_mode<synchronous>, transform_indices = @transform_15, window_bounds = array<i64: 1, 384>}, {pipeline_mode = #tpu.pipeline_mode<synchronous>, transform_indices = @transform_16, window_bounds = array<i64: 1, 384>}, {pipeline_mode = #tpu.pipeline_mode<synchronous>, transform_indices = @transform_17, window_bounds = array<i64: 384, 256>}, {pipeline_mode = #tpu.pipeline_mode<synchronous>, transform_indices = @transform_18, window_bounds = array<i64: 1, 256>}, {pipeline_mode = #tpu.pipeline_mode<synchronous>, transform_indices = @transform_19, window_bounds = array<i64: 256, 3>}, {pipeline_mode = #tpu.pipeline_mode<synchronous>, transform_indices = @transform_20, window_bounds = array<i64: 1, 3>}, {transform_indices = @transform_21, window_bounds = array<i64: 1, 1, 3>}]} {
    %c0_i32 = arith.constant 0 : i32
    %0 = arith.cmpi eq, %arg1, %c0_i32 : i32
    %1 = arith.extui %0 : i1 to i32
    %c0_i32_0 = arith.constant 0 : i32
    %2 = arith.cmpi ne, %1, %c0_i32_0 : i32
    scf.if %2 {
      %c0_112 = arith.constant 0 : index
      %c0_113 = arith.constant 0 : index
      %c0_114 = arith.constant 0 : index
      %281 = vector.load %arg2[%c0_112, %c0_113, %c0_114] : memref<1x8x384xbf16, #tpu.memory_space<vmem>>, vector<1x8x384xbf16>
      %282 = vector.shape_cast %281 : vector<1x8x384xbf16> to vector<8x384xbf16>
      %283 = arith.extf %282 : vector<8x384xbf16> to vector<8x384xf32>
      %c0_115 = arith.constant 0 : index
      %c0_116 = arith.constant 0 : index
      %284 = vector.load %arg24[%c0_115, %c0_116] : memref<8x384xf32, #tpu.memory_space<vmem>>, vector<8x384xf32>
      tpu.vector_store %arg24[%c0_115, %c0_116], %283 {strides = array<i32>} : memref<8x384xf32, #tpu.memory_space<vmem>>, vector<8x384xf32>,
    } else {
    }
    %c0 = arith.constant 0 : index
    %c0_1 = arith.constant 0 : index
    %3 = vector.load %arg24[%c0, %c0_1] : memref<8x384xf32, #tpu.memory_space<vmem>>, vector<8x384xf32>
    %c0_2 = arith.constant 0 : index
    %c0_3 = arith.constant 0 : index
    %c0_4 = arith.constant 0 : index
    %4 = vector.load %arg3[%c0_2, %c0_3, %c0_4] : memref<1x1x384xf32, #tpu.memory_space<vmem>>, vector<1x1x384xf32>
    %5 = vector.shape_cast %4 : vector<1x1x384xf32> to vector<1x384xf32>
    %c0_5 = arith.constant 0 : index
    %c0_6 = arith.constant 0 : index
    %c0_7 = arith.constant 0 : index
    %6 = vector.load %arg4[%c0_5, %c0_6, %c0_7] : memref<1x1x384xf32, #tpu.memory_space<vmem>>, vector<1x1x384xf32>
    %7 = vector.shape_cast %6 : vector<1x1x384xf32> to vector<1x384xf32>
    %cst = arith.constant dense<0.000000e+00> : vector<8xf32>
    %8 = vector.multi_reduction <add>, %3, %cst [1] : vector<8x384xf32> to vector<8xf32>
    %9 = vector.shape_cast %8 : vector<8xf32> to vector<8x1xf32>
    %cst_8 = arith.constant 3.840000e+02 : f32
    %10 = vector.broadcast %cst_8 : f32 to vector<8x1xf32>
    %11 = arith.divf %9, %10 : vector<8x1xf32>
    %12 = vector.broadcast %11 : vector<8x1xf32> to vector<8x384xf32>
    %13 = arith.subf %3, %12 : vector<8x384xf32>
    %14 = arith.mulf %13, %13 : vector<8x384xf32>
    %cst_9 = arith.constant dense<0.000000e+00> : vector<8xf32>
    %15 = vector.multi_reduction <add>, %14, %cst_9 [1] : vector<8x384xf32> to vector<8xf32>
    %16 = vector.shape_cast %15 : vector<8xf32> to vector<8x1xf32>
    %cst_10 = arith.constant 3.840000e+02 : f32
    %17 = vector.broadcast %cst_10 : f32 to vector<8x1xf32>
    %18 = arith.divf %16, %17 : vector<8x1xf32>
    %cst_11 = arith.constant 9.99999997E-7 : f32
    %19 = vector.broadcast %cst_11 : f32 to vector<8x1xf32>
    %20 = arith.addf %18, %19 : vector<8x1xf32>
    %21 = math.rsqrt %20 : vector<8x1xf32>
    %22 = vector.broadcast %21 : vector<8x1xf32> to vector<8x384xf32>
    %23 = arith.mulf %13, %22 : vector<8x384xf32>
    %24 = vector.broadcast %5 : vector<1x384xf32> to vector<8x384xf32>
    %25 = arith.mulf %23, %24 : vector<8x384xf32>
    %26 = vector.broadcast %7 : vector<1x384xf32> to vector<8x384xf32>
    %27 = arith.addf %25, %26 : vector<8x384xf32>
    %28 = arith.truncf %27 : vector<8x384xf32> to vector<8x384xbf16>
    %c0_12 = arith.constant 0 : index
    %c0_13 = arith.constant 0 : index
    %c0_14 = arith.constant 0 : index
    %29 = vector.load %arg5[%c0_12, %c0_13, %c0_14] : memref<1x384x1152xbf16, #tpu.memory_space<vmem>>, vector<1x384x1152xbf16>
    %30 = vector.shape_cast %29 : vector<1x384x1152xbf16> to vector<384x1152xbf16>
    %cst_15 = arith.constant dense<0.000000e+00> : vector<8x1152xf32>
    %31 = tpu.matmul %28, %30, %cst_15 {dimension_numbers = #tpu.dot_dimension_numbers<[1], [0], [0], [1], [0, 0, 1, 1], [], []>} : vector<8x384xbf16>, vector<384x1152xbf16>, vector<8x1152xf32> -> vector<8x1152xf32>
    %c0_16 = arith.constant 0 : index
    %c0_17 = arith.constant 0 : index
    %c0_18 = arith.constant 0 : index
    %32 = vector.load %arg6[%c0_16, %c0_17, %c0_18] : memref<1x1x1152xf32, #tpu.memory_space<vmem>>, vector<1x1x1152xf32>
    %33 = vector.shape_cast %32 : vector<1x1x1152xf32> to vector<1x1152xf32>
    %34 = vector.broadcast %33 : vector<1x1152xf32> to vector<8x1152xf32>
    %35 = arith.addf %31, %34 : vector<8x1152xf32>
    %36 = tpu.iota {dimensions = array<i32: 1>} : vector<8x8xi32>
    %c5_i32 = arith.constant 5 : i32
    %37 = vector.broadcast %c5_i32 : i32 to vector<8x8xi32>
    %38 = arith.cmpi slt, %36, %37 : vector<8x8xi32>
    %39 = vector.extract_strided_slice %35 {offsets = [0, 0], sizes = [8, 64], strides = [1, 1]} : vector<8x1152xf32> to vector<8x64xf32>
    %40 = arith.truncf %39 : vector<8x64xf32> to vector<8x64xbf16>
    %41 = vector.extract_strided_slice %35 {offsets = [0, 384], sizes = [8, 64], strides = [1, 1]} : vector<8x1152xf32> to vector<8x64xf32>
    %42 = arith.truncf %41 : vector<8x64xf32> to vector<8x64xbf16>
    %43 = vector.extract_strided_slice %35 {offsets = [0, 768], sizes = [8, 64], strides = [1, 1]} : vector<8x1152xf32> to vector<8x64xf32>
    %44 = arith.truncf %43 : vector<8x64xf32> to vector<8x64xbf16>
    %cst_19 = arith.constant dense<0.000000e+00> : vector<8x8xf32>
    %45 = tpu.matmul %40, %42, %cst_19 {dimension_numbers = #tpu.dot_dimension_numbers<[1], [1], [0], [0], [0, 0, 1, 0], [], []>} : vector<8x64xbf16>, vector<8x64xbf16>, vector<8x8xf32> -> vector<8x8xf32>
    %cst_20 = arith.constant 1.250000e-01 : f32
    %46 = vector.broadcast %cst_20 : f32 to vector<8x8xf32>
    %47 = arith.mulf %45, %46 : vector<8x8xf32>
    %cst_21 = arith.constant -1.000000e+30 : f32
    %48 = vector.broadcast %cst_21 : f32 to vector<8x8xf32>
    %49 = arith.select %38, %47, %48 : vector<8x8xi1>, vector<8x8xf32>
    %cst_22 = arith.constant dense<0xFF800000> : vector<8xf32>
    %50 = vector.multi_reduction <maximumf>, %49, %cst_22 [1] : vector<8x8xf32> to vector<8xf32>
    %51 = vector.shape_cast %50 : vector<8xf32> to vector<8x1xf32>
    %52 = vector.broadcast %51 : vector<8x1xf32> to vector<8x8xf32>
    %53 = arith.subf %49, %52 : vector<8x8xf32>
    %54 = math.exp %53 : vector<8x8xf32>
    %cst_23 = arith.constant dense<0.000000e+00> : vector<8xf32>
    %55 = vector.multi_reduction <add>, %54, %cst_23 [1] : vector<8x8xf32> to vector<8xf32>
    %56 = vector.shape_cast %55 : vector<8xf32> to vector<8x1xf32>
    %57 = tpu.reciprocal %56 {approx = true} : vector<8x1xf32> -> vector<8x1xf32>
    %58 = vector.broadcast %57 : vector<8x1xf32> to vector<8x8xf32>
    %59 = arith.mulf %54, %58 : vector<8x8xf32>
    %60 = arith.truncf %59 : vector<8x8xf32> to vector<8x8xbf16>
    %cst_24 = arith.constant dense<0.000000e+00> : vector<8x64xf32>
    %61 = tpu.matmul %60, %44, %cst_24 {dimension_numbers = #tpu.dot_dimension_numbers<[1], [0], [0], [1], [0, 0, 1, 1], [], []>} : vector<8x8xbf16>, vector<8x64xbf16>, vector<8x64xf32> -> vector<8x64xf32>
    %62 = vector.extract_strided_slice %35 {offsets = [0, 64], sizes = [8, 64], strides = [1, 1]} : vector<8x1152xf32> to vector<8x64xf32>
    %63 = arith.truncf %62 : vector<8x64xf32> to vector<8x64xbf16>
    %64 = vector.extract_strided_slice %35 {offsets = [0, 448], sizes = [8, 64], strides = [1, 1]} : vector<8x1152xf32> to vector<8x64xf32>
    %65 = arith.truncf %64 : vector<8x64xf32> to vector<8x64xbf16>
    %66 = vector.extract_strided_slice %35 {offsets = [0, 832], sizes = [8, 64], strides = [1, 1]} : vector<8x1152xf32> to vector<8x64xf32>
    %67 = arith.truncf %66 : vector<8x64xf32> to vector<8x64xbf16>
    %cst_25 = arith.constant dense<0.000000e+00> : vector<8x8xf32>
    %68 = tpu.matmul %63, %65, %cst_25 {dimension_numbers = #tpu.dot_dimension_numbers<[1], [1], [0], [0], [0, 0, 1, 0], [], []>} : vector<8x64xbf16>, vector<8x64xbf16>, vector<8x8xf32> -> vector<8x8xf32>
    %cst_26 = arith.constant 1.250000e-01 : f32
    %69 = vector.broadcast %cst_26 : f32 to vector<8x8xf32>
    %70 = arith.mulf %68, %69 : vector<8x8xf32>
    %cst_27 = arith.constant -1.000000e+30 : f32
    %71 = vector.broadcast %cst_27 : f32 to vector<8x8xf32>
    %72 = arith.select %38, %70, %71 : vector<8x8xi1>, vector<8x8xf32>
    %cst_28 = arith.constant dense<0xFF800000> : vector<8xf32>
    %73 = vector.multi_reduction <maximumf>, %72, %cst_28 [1] : vector<8x8xf32> to vector<8xf32>
    %74 = vector.shape_cast %73 : vector<8xf32> to vector<8x1xf32>
    %75 = vector.broadcast %74 : vector<8x1xf32> to vector<8x8xf32>
    %76 = arith.subf %72, %75 : vector<8x8xf32>
    %77 = math.exp %76 : vector<8x8xf32>
    %cst_29 = arith.constant dense<0.000000e+00> : vector<8xf32>
    %78 = vector.multi_reduction <add>, %77, %cst_29 [1] : vector<8x8xf32> to vector<8xf32>
    %79 = vector.shape_cast %78 : vector<8xf32> to vector<8x1xf32>
    %80 = tpu.reciprocal %79 {approx = true} : vector<8x1xf32> -> vector<8x1xf32>
    %81 = vector.broadcast %80 : vector<8x1xf32> to vector<8x8xf32>
    %82 = arith.mulf %77, %81 : vector<8x8xf32>
    %83 = arith.truncf %82 : vector<8x8xf32> to vector<8x8xbf16>
    %cst_30 = arith.constant dense<0.000000e+00> : vector<8x64xf32>
    %84 = tpu.matmul %83, %67, %cst_30 {dimension_numbers = #tpu.dot_dimension_numbers<[1], [0], [0], [1], [0, 0, 1, 1], [], []>} : vector<8x8xbf16>, vector<8x64xbf16>, vector<8x64xf32> -> vector<8x64xf32>
    %85 = vector.extract_strided_slice %35 {offsets = [0, 128], sizes = [8, 64], strides = [1, 1]} : vector<8x1152xf32> to vector<8x64xf32>
    %86 = arith.truncf %85 : vector<8x64xf32> to vector<8x64xbf16>
    %87 = vector.extract_strided_slice %35 {offsets = [0, 512], sizes = [8, 64], strides = [1, 1]} : vector<8x1152xf32> to vector<8x64xf32>
    %88 = arith.truncf %87 : vector<8x64xf32> to vector<8x64xbf16>
    %89 = vector.extract_strided_slice %35 {offsets = [0, 896], sizes = [8, 64], strides = [1, 1]} : vector<8x1152xf32> to vector<8x64xf32>
    %90 = arith.truncf %89 : vector<8x64xf32> to vector<8x64xbf16>
    %cst_31 = arith.constant dense<0.000000e+00> : vector<8x8xf32>
    %91 = tpu.matmul %86, %88, %cst_31 {dimension_numbers = #tpu.dot_dimension_numbers<[1], [1], [0], [0], [0, 0, 1, 0], [], []>} : vector<8x64xbf16>, vector<8x64xbf16>, vector<8x8xf32> -> vector<8x8xf32>
    %cst_32 = arith.constant 1.250000e-01 : f32
    %92 = vector.broadcast %cst_32 : f32 to vector<8x8xf32>
    %93 = arith.mulf %91, %92 : vector<8x8xf32>
    %cst_33 = arith.constant -1.000000e+30 : f32
    %94 = vector.broadcast %cst_33 : f32 to vector<8x8xf32>
    %95 = arith.select %38, %93, %94 : vector<8x8xi1>, vector<8x8xf32>
    %cst_34 = arith.constant dense<0xFF800000> : vector<8xf32>
    %96 = vector.multi_reduction <maximumf>, %95, %cst_34 [1] : vector<8x8xf32> to vector<8xf32>
    %97 = vector.shape_cast %96 : vector<8xf32> to vector<8x1xf32>
    %98 = vector.broadcast %97 : vector<8x1xf32> to vector<8x8xf32>
    %99 = arith.subf %95, %98 : vector<8x8xf32>
    %100 = math.exp %99 : vector<8x8xf32>
    %cst_35 = arith.constant dense<0.000000e+00> : vector<8xf32>
    %101 = vector.multi_reduction <add>, %100, %cst_35 [1] : vector<8x8xf32> to vector<8xf32>
    %102 = vector.shape_cast %101 : vector<8xf32> to vector<8x1xf32>
    %103 = tpu.reciprocal %102 {approx = true} : vector<8x1xf32> -> vector<8x1xf32>
    %104 = vector.broadcast %103 : vector<8x1xf32> to vector<8x8xf32>
    %105 = arith.mulf %100, %104 : vector<8x8xf32>
    %106 = arith.truncf %105 : vector<8x8xf32> to vector<8x8xbf16>
    %cst_36 = arith.constant dense<0.000000e+00> : vector<8x64xf32>
    %107 = tpu.matmul %106, %90, %cst_36 {dimension_numbers = #tpu.dot_dimension_numbers<[1], [0], [0], [1], [0, 0, 1, 1], [], []>} : vector<8x8xbf16>, vector<8x64xbf16>, vector<8x64xf32> -> vector<8x64xf32>
    %108 = vector.extract_strided_slice %35 {offsets = [0, 192], sizes = [8, 64], strides = [1, 1]} : vector<8x1152xf32> to vector<8x64xf32>
    %109 = arith.truncf %108 : vector<8x64xf32> to vector<8x64xbf16>
    %110 = vector.extract_strided_slice %35 {offsets = [0, 576], sizes = [8, 64], strides = [1, 1]} : vector<8x1152xf32> to vector<8x64xf32>
    %111 = arith.truncf %110 : vector<8x64xf32> to vector<8x64xbf16>
    %112 = vector.extract_strided_slice %35 {offsets = [0, 960], sizes = [8, 64], strides = [1, 1]} : vector<8x1152xf32> to vector<8x64xf32>
    %113 = arith.truncf %112 : vector<8x64xf32> to vector<8x64xbf16>
    %cst_37 = arith.constant dense<0.000000e+00> : vector<8x8xf32>
    %114 = tpu.matmul %109, %111, %cst_37 {dimension_numbers = #tpu.dot_dimension_numbers<[1], [1], [0], [0], [0, 0, 1, 0], [], []>} : vector<8x64xbf16>, vector<8x64xbf16>, vector<8x8xf32> -> vector<8x8xf32>
    %cst_38 = arith.constant 1.250000e-01 : f32
    %115 = vector.broadcast %cst_38 : f32 to vector<8x8xf32>
    %116 = arith.mulf %114, %115 : vector<8x8xf32>
    %cst_39 = arith.constant -1.000000e+30 : f32
    %117 = vector.broadcast %cst_39 : f32 to vector<8x8xf32>
    %118 = arith.select %38, %116, %117 : vector<8x8xi1>, vector<8x8xf32>
    %cst_40 = arith.constant dense<0xFF800000> : vector<8xf32>
    %119 = vector.multi_reduction <maximumf>, %118, %cst_40 [1] : vector<8x8xf32> to vector<8xf32>
    %120 = vector.shape_cast %119 : vector<8xf32> to vector<8x1xf32>
    %121 = vector.broadcast %120 : vector<8x1xf32> to vector<8x8xf32>
    %122 = arith.subf %118, %121 : vector<8x8xf32>
    %123 = math.exp %122 : vector<8x8xf32>
    %cst_41 = arith.constant dense<0.000000e+00> : vector<8xf32>
    %124 = vector.multi_reduction <add>, %123, %cst_41 [1] : vector<8x8xf32> to vector<8xf32>
    %125 = vector.shape_cast %124 : vector<8xf32> to vector<8x1xf32>
    %126 = tpu.reciprocal %125 {approx = true} : vector<8x1xf32> -> vector<8x1xf32>
    %127 = vector.broadcast %126 : vector<8x1xf32> to vector<8x8xf32>
    %128 = arith.mulf %123, %127 : vector<8x8xf32>
    %129 = arith.truncf %128 : vector<8x8xf32> to vector<8x8xbf16>
    %cst_42 = arith.constant dense<0.000000e+00> : vector<8x64xf32>
    %130 = tpu.matmul %129, %113, %cst_42 {dimension_numbers = #tpu.dot_dimension_numbers<[1], [0], [0], [1], [0, 0, 1, 1], [], []>} : vector<8x8xbf16>, vector<8x64xbf16>, vector<8x64xf32> -> vector<8x64xf32>
    %131 = vector.extract_strided_slice %35 {offsets = [0, 256], sizes = [8, 64], strides = [1, 1]} : vector<8x1152xf32> to vector<8x64xf32>
    %132 = arith.truncf %131 : vector<8x64xf32> to vector<8x64xbf16>
    %133 = vector.extract_strided_slice %35 {offsets = [0, 640], sizes = [8, 64], strides = [1, 1]} : vector<8x1152xf32> to vector<8x64xf32>
    %134 = arith.truncf %133 : vector<8x64xf32> to vector<8x64xbf16>
    %135 = vector.extract_strided_slice %35 {offsets = [0, 1024], sizes = [8, 64], strides = [1, 1]} : vector<8x1152xf32> to vector<8x64xf32>
    %136 = arith.truncf %135 : vector<8x64xf32> to vector<8x64xbf16>
    %cst_43 = arith.constant dense<0.000000e+00> : vector<8x8xf32>
    %137 = tpu.matmul %132, %134, %cst_43 {dimension_numbers = #tpu.dot_dimension_numbers<[1], [1], [0], [0], [0, 0, 1, 0], [], []>} : vector<8x64xbf16>, vector<8x64xbf16>, vector<8x8xf32> -> vector<8x8xf32>
    %cst_44 = arith.constant 1.250000e-01 : f32
    %138 = vector.broadcast %cst_44 : f32 to vector<8x8xf32>
    %139 = arith.mulf %137, %138 : vector<8x8xf32>
    %cst_45 = arith.constant -1.000000e+30 : f32
    %140 = vector.broadcast %cst_45 : f32 to vector<8x8xf32>
    %141 = arith.select %38, %139, %140 : vector<8x8xi1>, vector<8x8xf32>
    %cst_46 = arith.constant dense<0xFF800000> : vector<8xf32>
    %142 = vector.multi_reduction <maximumf>, %141, %cst_46 [1] : vector<8x8xf32> to vector<8xf32>
    %143 = vector.shape_cast %142 : vector<8xf32> to vector<8x1xf32>
    %144 = vector.broadcast %143 : vector<8x1xf32> to vector<8x8xf32>
    %145 = arith.subf %141, %144 : vector<8x8xf32>
    %146 = math.exp %145 : vector<8x8xf32>
    %cst_47 = arith.constant dense<0.000000e+00> : vector<8xf32>
    %147 = vector.multi_reduction <add>, %146, %cst_47 [1] : vector<8x8xf32> to vector<8xf32>
    %148 = vector.shape_cast %147 : vector<8xf32> to vector<8x1xf32>
    %149 = tpu.reciprocal %148 {approx = true} : vector<8x1xf32> -> vector<8x1xf32>
    %150 = vector.broadcast %149 : vector<8x1xf32> to vector<8x8xf32>
    %151 = arith.mulf %146, %150 : vector<8x8xf32>
    %152 = arith.truncf %151 : vector<8x8xf32> to vector<8x8xbf16>
    %cst_48 = arith.constant dense<0.000000e+00> : vector<8x64xf32>
    %153 = tpu.matmul %152, %136, %cst_48 {dimension_numbers = #tpu.dot_dimension_numbers<[1], [0], [0], [1], [0, 0, 1, 1], [], []>} : vector<8x8xbf16>, vector<8x64xbf16>, vector<8x64xf32> -> vector<8x64xf32>
    %154 = vector.extract_strided_slice %35 {offsets = [0, 320], sizes = [8, 64], strides = [1, 1]} : vector<8x1152xf32> to vector<8x64xf32>
    %155 = arith.truncf %154 : vector<8x64xf32> to vector<8x64xbf16>
    %156 = vector.extract_strided_slice %35 {offsets = [0, 704], sizes = [8, 64], strides = [1, 1]} : vector<8x1152xf32> to vector<8x64xf32>
    %157 = arith.truncf %156 : vector<8x64xf32> to vector<8x64xbf16>
    %158 = vector.extract_strided_slice %35 {offsets = [0, 1088], sizes = [8, 64], strides = [1, 1]} : vector<8x1152xf32> to vector<8x64xf32>
    %159 = arith.truncf %158 : vector<8x64xf32> to vector<8x64xbf16>
    %cst_49 = arith.constant dense<0.000000e+00> : vector<8x8xf32>
    %160 = tpu.matmul %155, %157, %cst_49 {dimension_numbers = #tpu.dot_dimension_numbers<[1], [1], [0], [0], [0, 0, 1, 0], [], []>} : vector<8x64xbf16>, vector<8x64xbf16>, vector<8x8xf32> -> vector<8x8xf32>
    %cst_50 = arith.constant 1.250000e-01 : f32
    %161 = vector.broadcast %cst_50 : f32 to vector<8x8xf32>
    %162 = arith.mulf %160, %161 : vector<8x8xf32>
    %cst_51 = arith.constant -1.000000e+30 : f32
    %163 = vector.broadcast %cst_51 : f32 to vector<8x8xf32>
    %164 = arith.select %38, %162, %163 : vector<8x8xi1>, vector<8x8xf32>
    %cst_52 = arith.constant dense<0xFF800000> : vector<8xf32>
    %165 = vector.multi_reduction <maximumf>, %164, %cst_52 [1] : vector<8x8xf32> to vector<8xf32>
    %166 = vector.shape_cast %165 : vector<8xf32> to vector<8x1xf32>
    %167 = vector.broadcast %166 : vector<8x1xf32> to vector<8x8xf32>
    %168 = arith.subf %164, %167 : vector<8x8xf32>
    %169 = math.exp %168 : vector<8x8xf32>
    %cst_53 = arith.constant dense<0.000000e+00> : vector<8xf32>
    %170 = vector.multi_reduction <add>, %169, %cst_53 [1] : vector<8x8xf32> to vector<8xf32>
    %171 = vector.shape_cast %170 : vector<8xf32> to vector<8x1xf32>
    %172 = tpu.reciprocal %171 {approx = true} : vector<8x1xf32> -> vector<8x1xf32>
    %173 = vector.broadcast %172 : vector<8x1xf32> to vector<8x8xf32>
    %174 = arith.mulf %169, %173 : vector<8x8xf32>
    %175 = arith.truncf %174 : vector<8x8xf32> to vector<8x8xbf16>
    %cst_54 = arith.constant dense<0.000000e+00> : vector<8x64xf32>
    %176 = tpu.matmul %175, %159, %cst_54 {dimension_numbers = #tpu.dot_dimension_numbers<[1], [0], [0], [1], [0, 0, 1, 1], [], []>} : vector<8x8xbf16>, vector<8x64xbf16>, vector<8x64xf32> -> vector<8x64xf32>
    %177 = tpu.concatenate %61, %84, %107, %130, %153, %176 in 1 : vector<8x64xf32>, vector<8x64xf32>, vector<8x64xf32>, vector<8x64xf32>, vector<8x64xf32>, vector<8x64xf32> -> vector<8x384xf32>
    %178 = arith.truncf %177 : vector<8x384xf32> to vector<8x384xbf16>
    %c0_55 = arith.constant 0 : index
    %c0_56 = arith.constant 0 : index
    %c0_57 = arith.constant 0 : index
    %179 = vector.load %arg7[%c0_55, %c0_56, %c0_57] : memref<1x384x384xbf16, #tpu.memory_space<vmem>>, vector<1x384x384xbf16>
    %180 = vector.shape_cast %179 : vector<1x384x384xbf16> to vector<384x384xbf16>
    %cst_58 = arith.constant dense<0.000000e+00> : vector<8x384xf32>
    %181 = tpu.matmul %178, %180, %cst_58 {dimension_numbers = #tpu.dot_dimension_numbers<[1], [0], [0], [1], [0, 0, 1, 1], [], []>} : vector<8x384xbf16>, vector<384x384xbf16>, vector<8x384xf32> -> vector<8x384xf32>
    %c0_59 = arith.constant 0 : index
    %c0_60 = arith.constant 0 : index
    %c0_61 = arith.constant 0 : index
    %182 = vector.load %arg8[%c0_59, %c0_60, %c0_61] : memref<1x1x384xf32, #tpu.memory_space<vmem>>, vector<1x1x384xf32>
    %183 = vector.shape_cast %182 : vector<1x1x384xf32> to vector<1x384xf32>
    %184 = vector.broadcast %183 : vector<1x384xf32> to vector<8x384xf32>
    %185 = arith.addf %181, %184 : vector<8x384xf32>
    %c0_62 = arith.constant 0 : index
    %c0_63 = arith.constant 0 : index
    %c0_64 = arith.constant 0 : index
    %186 = vector.load %arg9[%c0_62, %c0_63, %c0_64] : memref<1x1x384xf32, #tpu.memory_space<vmem>>, vector<1x1x384xf32>
    %187 = vector.shape_cast %186 : vector<1x1x384xf32> to vector<1x384xf32>
    %188 = vector.broadcast %187 : vector<1x384xf32> to vector<8x384xf32>
    %189 = arith.mulf %185, %188 : vector<8x384xf32>
    %190 = arith.addf %3, %189 : vector<8x384xf32>
    %c0_65 = arith.constant 0 : index
    %c0_66 = arith.constant 0 : index
    %c0_67 = arith.constant 0 : index
    %191 = vector.load %arg10[%c0_65, %c0_66, %c0_67] : memref<1x1x384xf32, #tpu.memory_space<vmem>>, vector<1x1x384xf32>
    %192 = vector.shape_cast %191 : vector<1x1x384xf32> to vector<1x384xf32>
    %c0_68 = arith.constant 0 : index
    %c0_69 = arith.constant 0 : index
    %c0_70 = arith.constant 0 : index
    %193 = vector.load %arg11[%c0_68, %c0_69, %c0_70] : memref<1x1x384xf32, #tpu.memory_space<vmem>>, vector<1x1x384xf32>
    %194 = vector.shape_cast %193 : vector<1x1x384xf32> to vector<1x384xf32>
    %cst_71 = arith.constant dense<0.000000e+00> : vector<8xf32>
    %195 = vector.multi_reduction <add>, %190, %cst_71 [1] : vector<8x384xf32> to vector<8xf32>
    %196 = vector.shape_cast %195 : vector<8xf32> to vector<8x1xf32>
    %cst_72 = arith.constant 3.840000e+02 : f32
    %197 = vector.broadcast %cst_72 : f32 to vector<8x1xf32>
    %198 = arith.divf %196, %197 : vector<8x1xf32>
    %199 = vector.broadcast %198 : vector<8x1xf32> to vector<8x384xf32>
    %200 = arith.subf %190, %199 : vector<8x384xf32>
    %201 = arith.mulf %200, %200 : vector<8x384xf32>
    %cst_73 = arith.constant dense<0.000000e+00> : vector<8xf32>
    %202 = vector.multi_reduction <add>, %201, %cst_73 [1] : vector<8x384xf32> to vector<8xf32>
    %203 = vector.shape_cast %202 : vector<8xf32> to vector<8x1xf32>
    %cst_74 = arith.constant 3.840000e+02 : f32
    %204 = vector.broadcast %cst_74 : f32 to vector<8x1xf32>
    %205 = arith.divf %203, %204 : vector<8x1xf32>
    %cst_75 = arith.constant 9.99999997E-7 : f32
    %206 = vector.broadcast %cst_75 : f32 to vector<8x1xf32>
    %207 = arith.addf %205, %206 : vector<8x1xf32>
    %208 = math.rsqrt %207 : vector<8x1xf32>
    %209 = vector.broadcast %208 : vector<8x1xf32> to vector<8x384xf32>
    %210 = arith.mulf %200, %209 : vector<8x384xf32>
    %211 = vector.broadcast %192 : vector<1x384xf32> to vector<8x384xf32>
    %212 = arith.mulf %210, %211 : vector<8x384xf32>
    %213 = vector.broadcast %194 : vector<1x384xf32> to vector<8x384xf32>
    %214 = arith.addf %212, %213 : vector<8x384xf32>
    %215 = arith.truncf %214 : vector<8x384xf32> to vector<8x384xbf16>
    %c0_76 = arith.constant 0 : index
    %c0_77 = arith.constant 0 : index
    %c0_78 = arith.constant 0 : index
    %216 = vector.load %arg12[%c0_76, %c0_77, %c0_78] : memref<1x384x1536xbf16, #tpu.memory_space<vmem>>, vector<1x384x1536xbf16>
    %217 = vector.shape_cast %216 : vector<1x384x1536xbf16> to vector<384x1536xbf16>
    %cst_79 = arith.constant dense<0.000000e+00> : vector<8x1536xf32>
    %218 = tpu.matmul %215, %217, %cst_79 {dimension_numbers = #tpu.dot_dimension_numbers<[1], [0], [0], [1], [0, 0, 1, 1], [], []>} : vector<8x384xbf16>, vector<384x1536xbf16>, vector<8x1536xf32> -> vector<8x1536xf32>
    %c0_80 = arith.constant 0 : index
    %c0_81 = arith.constant 0 : index
    %c0_82 = arith.constant 0 : index
    %219 = vector.load %arg13[%c0_80, %c0_81, %c0_82] : memref<1x1x1536xf32, #tpu.memory_space<vmem>>, vector<1x1x1536xf32>
    %220 = vector.shape_cast %219 : vector<1x1x1536xf32> to vector<1x1536xf32>
    %221 = vector.broadcast %220 : vector<1x1536xf32> to vector<8x1536xf32>
    %222 = arith.addf %218, %221 : vector<8x1536xf32>
    %cst_83 = arith.constant 5.000000e-01 : f32
    %223 = vector.broadcast %cst_83 : f32 to vector<8x1536xf32>
    %224 = arith.mulf %223, %222 : vector<8x1536xf32>
    %cst_84 = arith.constant 0.707106769 : f32
    %225 = vector.broadcast %cst_84 : f32 to vector<8x1536xf32>
    %226 = arith.mulf %222, %225 : vector<8x1536xf32>
    %cst_85 = arith.constant 0.000000e+00 : f32
    %227 = vector.broadcast %cst_85 : f32 to vector<8x1536xf32>
    %228 = arith.cmpf oge, %226, %227 : vector<8x1536xf32>
    %cst_86 = arith.constant 1.000000e+00 : f32
    %cst_87 = arith.constant -1.000000e+00 : f32
    %229 = vector.broadcast %cst_86 : f32 to vector<8x1536xf32>
    %230 = vector.broadcast %cst_87 : f32 to vector<8x1536xf32>
    %231 = arith.select %228, %229, %230 : vector<8x1536xi1>, vector<8x1536xf32>
    %232 = math.absf %226 : vector<8x1536xf32>
    %cst_88 = arith.constant 0.327591091 : f32
    %233 = vector.broadcast %cst_88 : f32 to vector<8x1536xf32>
    %234 = arith.mulf %233, %232 : vector<8x1536xf32>
    %cst_89 = arith.constant 1.000000e+00 : f32
    %235 = vector.broadcast %cst_89 : f32 to vector<8x1536xf32>
    %236 = arith.addf %235, %234 : vector<8x1536xf32>
    %cst_90 = arith.constant 1.000000e+00 : f32
    %237 = vector.broadcast %cst_90 : f32 to vector<8x1536xf32>
    %238 = arith.divf %237, %236 : vector<8x1536xf32>
    %cst_91 = arith.constant 1.06140542 : f32
    %239 = vector.broadcast %cst_91 : f32 to vector<8x1536xf32>
    %240 = arith.mulf %239, %238 : vector<8x1536xf32>
    %cst_92 = arith.constant -1.45315206 : f32
    %241 = vector.broadcast %cst_92 : f32 to vector<8x1536xf32>
    %242 = arith.addf %240, %241 : vector<8x1536xf32>
    %243 = arith.mulf %242, %238 : vector<8x1536xf32>
    %cst_93 = arith.constant 1.42141378 : f32
    %244 = vector.broadcast %cst_93 : f32 to vector<8x1536xf32>
    %245 = arith.addf %243, %244 : vector<8x1536xf32>
    %246 = arith.mulf %245, %238 : vector<8x1536xf32>
    %cst_94 = arith.constant -0.284496725 : f32
    %247 = vector.broadcast %cst_94 : f32 to vector<8x1536xf32>
    %248 = arith.addf %246, %247 : vector<8x1536xf32>
    %249 = arith.mulf %248, %238 : vector<8x1536xf32>
    %cst_95 = arith.constant 0.254829586 : f32
    %250 = vector.broadcast %cst_95 : f32 to vector<8x1536xf32>
    %251 = arith.addf %249, %250 : vector<8x1536xf32>
    %252 = arith.mulf %251, %238 : vector<8x1536xf32>
    %cst_96 = arith.constant 0.000000e+00 : f32
    %253 = vector.broadcast %cst_96 : f32 to vector<8x1536xf32>
    %254 = arith.subf %253, %232 : vector<8x1536xf32>
    %255 = arith.mulf %254, %232 : vector<8x1536xf32>
    %256 = math.exp %255 : vector<8x1536xf32>
    %257 = arith.mulf %252, %256 : vector<8x1536xf32>
    %cst_97 = arith.constant 1.000000e+00 : f32
    %258 = vector.broadcast %cst_97 : f32 to vector<8x1536xf32>
    %259 = arith.subf %258, %257 : vector<8x1536xf32>
    %260 = arith.mulf %231, %259 : vector<8x1536xf32>
    %cst_98 = arith.constant 1.000000e+00 : f32
    %261 = vector.broadcast %cst_98 : f32 to vector<8x1536xf32>
    %262 = arith.addf %261, %260 : vector<8x1536xf32>
    %263 = arith.mulf %224, %262 : vector<8x1536xf32>
    %264 = arith.truncf %263 : vector<8x1536xf32> to vector<8x1536xbf16>
    %c0_99 = arith.constant 0 : index
    %c0_100 = arith.constant 0 : index
    %c0_101 = arith.constant 0 : index
    %265 = vector.load %arg14[%c0_99, %c0_100, %c0_101] : memref<1x1536x384xbf16, #tpu.memory_space<vmem>>, vector<1x1536x384xbf16>
    %266 = vector.shape_cast %265 : vector<1x1536x384xbf16> to vector<1536x384xbf16>
    %cst_102 = arith.constant dense<0.000000e+00> : vector<8x384xf32>
    %267 = tpu.matmul %264, %266, %cst_102 {dimension_numbers = #tpu.dot_dimension_numbers<[1], [0], [0], [1], [0, 0, 1, 1], [], []>} : vector<8x1536xbf16>, vector<1536x384xbf16>, vector<8x384xf32> -> vector<8x384xf32>
    %c0_103 = arith.constant 0 : index
    %c0_104 = arith.constant 0 : index
    %c0_105 = arith.constant 0 : index
    %268 = vector.load %arg15[%c0_103, %c0_104, %c0_105] : memref<1x1x384xf32, #tpu.memory_space<vmem>>, vector<1x1x384xf32>
    %269 = vector.shape_cast %268 : vector<1x1x384xf32> to vector<1x384xf32>
    %270 = vector.broadcast %269 : vector<1x384xf32> to vector<8x384xf32>
    %271 = arith.addf %267, %270 : vector<8x384xf32>
    %c0_106 = arith.constant 0 : index
    %c0_107 = arith.constant 0 : index
    %c0_108 = arith.constant 0 : index
    %272 = vector.load %arg16[%c0_106, %c0_107, %c0_108] : memref<1x1x384xf32, #tpu.memory_space<vmem>>, vector<1x1x384xf32>
    %273 = vector.shape_cast %272 : vector<1x1x384xf32> to vector<1x384xf32>
    %274 = vector.broadcast %273 : vector<1x384xf32> to vector<8x384xf32>
    %275 = arith.mulf %271, %274 : vector<8x384xf32>
    %276 = arith.addf %190, %275 : vector<8x384xf32>
    %c0_109 = arith.constant 0 : index
    %c0_110 = arith.constant 0 : index
    %277 = vector.load %arg24[%c0_109, %c0_110] : memref<8x384xf32, #tpu.memory_space<vmem>>, vector<8x384xf32>
    tpu.vector_store %arg24[%c0_109, %c0_110], %276 {strides = array<i32>} : memref<8x384xf32, #tpu.memory_space<vmem>>, vector<8x384xf32>,
    %c11_i32 = arith.constant 11 : i32
    %278 = arith.cmpi eq, %arg1, %c11_i32 : i32
    %279 = arith.extui %278 : i1 to i32
    %c0_i32_111 = arith.constant 0 : i32
    %280 = arith.cmpi ne, %279, %c0_i32_111 : i32
    scf.if %280 {
      %281 = vector.extract_strided_slice %276 {offsets = [0, 0], sizes = [1, 384], strides = [1, 1]} : vector<8x384xf32> to vector<1x384xf32>
      %c0_112 = arith.constant 0 : index
      %c0_113 = arith.constant 0 : index
      %282 = vector.load %arg17[%c0_112, %c0_113] : memref<1x384xf32, #tpu.memory_space<vmem>>, vector<1x384xf32>
      %c0_114 = arith.constant 0 : index
      %c0_115 = arith.constant 0 : index
      %283 = vector.load %arg18[%c0_114, %c0_115] : memref<1x384xf32, #tpu.memory_space<vmem>>, vector<1x384xf32>
      %cst_116 = arith.constant dense<0.000000e+00> : vector<1xf32>
      %284 = vector.multi_reduction <add>, %281, %cst_116 [1] : vector<1x384xf32> to vector<1xf32>
      %285 = vector.shape_cast %284 : vector<1xf32> to vector<1x1xf32>
      %cst_117 = arith.constant 3.840000e+02 : f32
      %286 = vector.broadcast %cst_117 : f32 to vector<1x1xf32>
      %287 = arith.divf %285, %286 : vector<1x1xf32>
      %288 = vector.broadcast %287 : vector<1x1xf32> to vector<1x384xf32>
      %289 = arith.subf %281, %288 : vector<1x384xf32>
      %290 = arith.mulf %289, %289 : vector<1x384xf32>
      %cst_118 = arith.constant dense<0.000000e+00> : vector<1xf32>
      %291 = vector.multi_reduction <add>, %290, %cst_118 [1] : vector<1x384xf32> to vector<1xf32>
      %292 = vector.shape_cast %291 : vector<1xf32> to vector<1x1xf32>
      %cst_119 = arith.constant 3.840000e+02 : f32
      %293 = vector.broadcast %cst_119 : f32 to vector<1x1xf32>
      %294 = arith.divf %292, %293 : vector<1x1xf32>
      %cst_120 = arith.constant 9.99999997E-7 : f32
      %295 = vector.broadcast %cst_120 : f32 to vector<1x1xf32>
      %296 = arith.addf %294, %295 : vector<1x1xf32>
      %297 = math.rsqrt %296 : vector<1x1xf32>
      %298 = vector.broadcast %297 : vector<1x1xf32> to vector<1x384xf32>
      %299 = arith.mulf %289, %298 : vector<1x384xf32>
      %300 = arith.mulf %299, %282 : vector<1x384xf32>
      %301 = arith.addf %300, %283 : vector<1x384xf32>
      %302 = arith.truncf %301 : vector<1x384xf32> to vector<1x384xbf16>
      %c0_121 = arith.constant 0 : index
      %c0_122 = arith.constant 0 : index
      %303 = vector.load %arg19[%c0_121, %c0_122] : memref<384x256xbf16, #tpu.memory_space<vmem>>, vector<384x256xbf16>
      %cst_123 = arith.constant dense<0.000000e+00> : vector<1x256xf32>
      %304 = tpu.matmul %302, %303, %cst_123 {dimension_numbers = #tpu.dot_dimension_numbers<[1], [0], [0], [1], [0, 0, 1, 1], [], []>} : vector<1x384xbf16>, vector<384x256xbf16>, vector<1x256xf32> -> vector<1x256xf32>
      %c0_124 = arith.constant 0 : index
      %c0_125 = arith.constant 0 : index
      %305 = vector.load %arg20[%c0_124, %c0_125] : memref<1x256xf32, #tpu.memory_space<vmem>>, vector<1x256xf32>
      %306 = arith.addf %304, %305 : vector<1x256xf32>
      %cst_126 = arith.constant 0.000000e+00 : f32
      %307 = vector.broadcast %cst_126 : f32 to vector<1x256xf32>
      %308 = arith.maximumf %306, %307 : vector<1x256xf32>
      %309 = arith.truncf %308 : vector<1x256xf32> to vector<1x256xbf16>
      %c0_127 = arith.constant 0 : index
      %c0_128 = arith.constant 0 : index
      %310 = vector.load %arg21[%c0_127, %c0_128] : memref<256x3xbf16, #tpu.memory_space<vmem>>, vector<256x3xbf16>
      %cst_129 = arith.constant dense<0.000000e+00> : vector<1x3xf32>
      %311 = tpu.matmul %309, %310, %cst_129 {dimension_numbers = #tpu.dot_dimension_numbers<[1], [0], [0], [1], [0, 0, 1, 1], [], []>} : vector<1x256xbf16>, vector<256x3xbf16>, vector<1x3xf32> -> vector<1x3xf32>
      %c0_130 = arith.constant 0 : index
      %c0_131 = arith.constant 0 : index
      %312 = vector.load %arg22[%c0_130, %c0_131] : memref<1x3xf32, #tpu.memory_space<vmem>>, vector<1x3xf32>
      %313 = arith.addf %311, %312 : vector<1x3xf32>
      %c0_132 = arith.constant 0 : index
      %c0_133 = arith.constant 0 : index
      %c0_134 = arith.constant 0 : index
      %314 = vector.load %arg23[%c0_132, %c0_133, %c0_134] : memref<1x1x3xf32, #tpu.memory_space<vmem>>, vector<1x1x3xf32>
      %315 = vector.shape_cast %314 : vector<1x1x3xf32> to vector<1x3xf32>
      %316 = vector.shape_cast %313 : vector<1x3xf32> to vector<1x1x3xf32>
      tpu.vector_store %arg23[%c0_132, %c0_133, %c0_134], %316 {strides = array<i32>} : memref<1x1x3xf32, #tpu.memory_space<vmem>>, vector<1x1x3xf32>,
    } else {
    }
    return
  }
  func.func @transform_0(%arg0: i32, %arg1: i32) -> (i32, i32, i32) {
    %c0_i32 = arith.constant 0 : i32
    %c0_i32_0 = arith.constant 0 : i32
    %c0_i32_1 = arith.constant 0 : i32
    return %arg0, %c0_i32, %c0_i32_0 : i32, i32, i32
  }
  func.func @transform_1(%arg0: i32, %arg1: i32) -> (i32, i32, i32) {
    %c0_i32 = arith.constant 0 : i32
    %c0_i32_0 = arith.constant 0 : i32
    %c0_i32_1 = arith.constant 0 : i32
    return %arg1, %c0_i32, %c0_i32_0 : i32, i32, i32
  }
  func.func @transform_2(%arg0: i32, %arg1: i32) -> (i32, i32, i32) {
    %c0_i32 = arith.constant 0 : i32
    %c0_i32_0 = arith.constant 0 : i32
    %c0_i32_1 = arith.constant 0 : i32
    return %arg1, %c0_i32, %c0_i32_0 : i32, i32, i32
  }
  func.func @transform_3(%arg0: i32, %arg1: i32) -> (i32, i32, i32) {
    %c0_i32 = arith.constant 0 : i32
    %c0_i32_0 = arith.constant 0 : i32
    %c0_i32_1 = arith.constant 0 : i32
    return %arg1, %c0_i32, %c0_i32_0 : i32, i32, i32
  }
  func.func @transform_4(%arg0: i32, %arg1: i32) -> (i32, i32, i32) {
    %c0_i32 = arith.constant 0 : i32
    %c0_i32_0 = arith.constant 0 : i32
    %c0_i32_1 = arith.constant 0 : i32
    return %arg1, %c0_i32, %c0_i32_0 : i32, i32, i32
  }
  func.func @transform_5(%arg0: i32, %arg1: i32) -> (i32, i32, i32) {
    %c0_i32 = arith.constant 0 : i32
    %c0_i32_0 = arith.constant 0 : i32
    %c0_i32_1 = arith.constant 0 : i32
    return %arg1, %c0_i32, %c0_i32_0 : i32, i32, i32
  }
  func.func @transform_6(%arg0: i32, %arg1: i32) -> (i32, i32, i32) {
    %c0_i32 = arith.constant 0 : i32
    %c0_i32_0 = arith.constant 0 : i32
    %c0_i32_1 = arith.constant 0 : i32
    return %arg1, %c0_i32, %c0_i32_0 : i32, i32, i32
  }
  func.func @transform_7(%arg0: i32, %arg1: i32) -> (i32, i32, i32) {
    %c0_i32 = arith.constant 0 : i32
    %c0_i32_0 = arith.constant 0 : i32
    %c0_i32_1 = arith.constant 0 : i32
    return %arg1, %c0_i32, %c0_i32_0 : i32, i32, i32
  }
  func.func @transform_8(%arg0: i32, %arg1: i32) -> (i32, i32, i32) {
    %c0_i32 = arith.constant 0 : i32
    %c0_i32_0 = arith.constant 0 : i32
    %c0_i32_1 = arith.constant 0 : i32
    return %arg1, %c0_i32, %c0_i32_0 : i32, i32, i32
  }
  func.func @transform_9(%arg0: i32, %arg1: i32) -> (i32, i32, i32) {
    %c0_i32 = arith.constant 0 : i32
    %c0_i32_0 = arith.constant 0 : i32
    %c0_i32_1 = arith.constant 0 : i32
    return %arg1, %c0_i32, %c0_i32_0 : i32, i32, i32
  }
  func.func @transform_10(%arg0: i32, %arg1: i32) -> (i32, i32, i32) {
    %c0_i32 = arith.constant 0 : i32
    %c0_i32_0 = arith.constant 0 : i32
    %c0_i32_1 = arith.constant 0 : i32
    return %arg1, %c0_i32, %c0_i32_0 : i32, i32, i32
  }
  func.func @transform_11(%arg0: i32, %arg1: i32) -> (i32, i32, i32) {
    %c0_i32 = arith.constant 0 : i32
    %c0_i32_0 = arith.constant 0 : i32
    %c0_i32_1 = arith.constant 0 : i32
    return %arg1, %c0_i32, %c0_i32_0 : i32, i32, i32
  }
  func.func @transform_12(%arg0: i32, %arg1: i32) -> (i32, i32, i32) {
    %c0_i32 = arith.constant 0 : i32
    %c0_i32_0 = arith.constant 0 : i32
    %c0_i32_1 = arith.constant 0 : i32
    return %arg1, %c0_i32, %c0_i32_0 : i32, i32, i32
  }
  func.func @transform_13(%arg0: i32, %arg1: i32) -> (i32, i32, i32) {
    %c0_i32 = arith.constant 0 : i32
    %c0_i32_0 = arith.constant 0 : i32
    %c0_i32_1 = arith.constant 0 : i32
    return %arg1, %c0_i32, %c0_i32_0 : i32, i32, i32
  }
  func.func @transform_14(%arg0: i32, %arg1: i32) -> (i32, i32, i32) {
    %c0_i32 = arith.constant 0 : i32
    %c0_i32_0 = arith.constant 0 : i32
    %c0_i32_1 = arith.constant 0 : i32
    return %arg1, %c0_i32, %c0_i32_0 : i32, i32, i32
  }
  func.func @transform_15(%arg0: i32, %arg1: i32) -> (i32, i32) {
    %c0_i32 = arith.constant 0 : i32
    %c0_i32_0 = arith.constant 0 : i32
    %c0_i32_1 = arith.constant 0 : i32
    return %c0_i32, %c0_i32_0 : i32, i32
  }
  func.func @transform_16(%arg0: i32, %arg1: i32) -> (i32, i32) {
    %c0_i32 = arith.constant 0 : i32
    %c0_i32_0 = arith.constant 0 : i32
    %c0_i32_1 = arith.constant 0 : i32
    return %c0_i32, %c0_i32_0 : i32, i32
  }
  func.func @transform_17(%arg0: i32, %arg1: i32) -> (i32, i32) {
    %c0_i32 = arith.constant 0 : i32
    %c0_i32_0 = arith.constant 0 : i32
    %c0_i32_1 = arith.constant 0 : i32
    return %c0_i32, %c0_i32_0 : i32, i32
  }
  func.func @transform_18(%arg0: i32, %arg1: i32) -> (i32, i32) {
    %c0_i32 = arith.constant 0 : i32
    %c0_i32_0 = arith.constant 0 : i32
    %c0_i32_1 = arith.constant 0 : i32
    return %c0_i32, %c0_i32_0 : i32, i32
  }
  func.func @transform_19(%arg0: i32, %arg1: i32) -> (i32, i32) {
    %c0_i32 = arith.constant 0 : i32
    %c0_i32_0 = arith.constant 0 : i32
    %c0_i32_1 = arith.constant 0 : i32
    return %c0_i32, %c0_i32_0 : i32, i32
  }
  func.func @transform_20(%arg0: i32, %arg1: i32) -> (i32, i32) {
    %c0_i32 = arith.constant 0 : i32
    %c0_i32_0 = arith.constant 0 : i32
    %c0_i32_1 = arith.constant 0 : i32
    return %c0_i32, %c0_i32_0 : i32, i32
  }
  func.func @transform_21(%arg0: i32, %arg1: i32) -> (i32, i32, i32) {
    %c0_i32 = arith.constant 0 : i32
    %c0_i32_0 = arith.constant 0 : i32
    %c0_i32_1 = arith.constant 0 : i32
    return %arg0, %c0_i32, %c0_i32_0 : i32, i32, i32
  }
}

</mosaic_0001>

<bundles_post_ra>
// kernel: forward.2
= control target key start
LH: loop header
LB: loop body
LE: loop exit
PB: predicated region body
PF: predicated region fallthrough
CT: control target
= control target key end

     0   :  { %8 = vsyncpa [#allocation3], 0  ;;  %s1806_s0 = inlined_call_operand.vmem [shape: bf16[8,640], index: 0, kind: input, shape index: {}]   ;;  %s1807_s1 = inlined_call_operand.hbm [shape: bf16[640,384], index: 1, kind: input, shape index: {}]   ;;  %s1808_s2 = inlined_call_operand.hbm [shape: f32[1,384], index: 2, kind: input, shape index: {}]   ;;  %s1809_s3 = inlined_call_operand.vmem [shape: f32[8,384], index: 3, kind: output, shape index: {}]  }
   0x1   :  { %s16_s14 = sshll.u32 %s1807_s1, 4  ;;  %s17_s14 = int_to_ptr.hbm [resolvable:$true] %s16_s14 }
   0x2   :  { %9 = vsyncpa [#allocation5], 0  ;;  %s1733_s15 = smov [#allocation2]   ;;  %s30_s19 = sshll.u32 %s1808_s2, 4  ;;  %s31_s19 = int_to_ptr.hbm [resolvable:$true] %s30_s19 }
   0x3   :  { %s18_s16 = sshll.u32 %s1733_s15, 4  ;;  %s1734_s20 = smov 192   ;;  %s19_s16 = int_to_ptr.vmem [resolvable:$true] %s18_s16 }
   0x4   :  { %s1735_s21 = smov 12   ;;  %s1736_s22 = smov [#allocation4]  }
   0x5   :  { %24 = dma.hbm_to_vmem [thread:$0]  %s17_s14, 15360, %s19_s16, [#allocation3], %s1734_s20, %s1734_s20, %s1735_s21  }
   0x6   :  { %s32_s23 = sshll.u32 %s1736_s22, 4  ;;  %s33_s23 = int_to_ptr.vmem [resolvable:$true] %s32_s23 }
   0x7   :  { %35 = dma.hbm_to_vmem [thread:$0]  %s31_s19, 48, %s33_s23, [#allocation5]  }
   0x8   :  { %1729 = dma.done.wait [#allocation3], 15360  }
   0x9   :  { %1730 = vsyncadd [#allocation3], 4294951936 }
   0xa   :  { %1731 = dma.done.wait [#allocation5], 48  }
   0xb   :  { %1732 = vsyncadd [#allocation5], 4294967248  ;;  %v1163_v0 = vld [vmem:[#allocation2 + $0xa8] sm:$0xf]  ;;  %v1579_v1 = vld [vmem:[#allocation2 + $0xb0] sm:$0xf0] }
   0xc   :  { %v1259_v2 = vld [vmem:[#allocation2 + $0x168] sm:$0xf]  ;;  %v1164_v3 = vor.u32 %v1579_v1, %v1163_v0  ;;  %v1603_v4 = vld [vmem:[#allocation2 + $0x170] sm:$0xf0]  ;;  %v1151_v9 = vld [vmem:[#allocation2 + $0x90] sm:$0xf] }
   0xd   :  { %v1355_v5 = vld [vmem:[#allocation2 + $0x228] sm:$0xf]  ;;  %v1627_v6 = vld [vmem:[#allocation2 + $0x230] sm:$0xf0]  ;;  %v1260_v7 = vor.u32 %v1603_v4, %v1259_v2  ;;  %v1576_v10 = vld [vmem:[#allocation2 + $0x98] sm:$0xf0] }
   0xe   :  { %v1356_v8 = vor.u32 %v1627_v6, %v1355_v5  ;;  %v1247_v11 = vld [vmem:[#allocation2 + $0x150] sm:$0xf]  ;;  %873 = vmatpush.bf16.msra.mxu0 %v1164_v3  ;;  %v1152_v12 = vor.u32 %v1576_v10, %v1151_v9  ;;  %v1600_v13 = vld [vmem:[#allocation2 + $0x158] sm:$0xf0]  ;;  %v1139_v18 = vld [vmem:[#allocation2 + $0x78] sm:$0xf] }
   0xf   :  { %v1343_v14 = vld [vmem:[#allocation2 + $0x210] sm:$0xf]  ;;  %v1624_v15 = vld [vmem:[#allocation2 + $0x218] sm:$0xf0]  ;;  %886 = vmatpush.bf16.msra.mxu1 %v1260_v7  ;;  %v1248_v16 = vor.u32 %v1600_v13, %v1247_v11  ;;  %v1573_v19 = vld [vmem:[#allocation2 + $0x80] sm:$0xf0] }
  0x10   :  { %899 = vmatpush.bf16.msra.mxu2 %v1356_v8  ;;  %v1344_v17 = vor.u32 %v1624_v15, %v1343_v14  ;;  %v1235_v20 = vld [vmem:[#allocation2 + $0x138] sm:$0xf]  ;;  %v1597_v21 = vld [vmem:[#allocation2 + $0x140] sm:$0xf0]  ;;  %v1140_v24 = vor.u32 %v1573_v19, %v1139_v18  ;;  %v1127_v25 = vld [vmem:[#allocation2 + $0x60] sm:$0xf] }
  0x11   :  { %v1331_v22 = vld [vmem:[#allocation2 + $0x1f8] sm:$0xf]  ;;  %v1621_v23 = vld [vmem:[#allocation2 + $0x200] sm:$0xf0]  ;;  %v1570_v26 = vld [vmem:[#allocation2 + $0x68] sm:$0xf0]  ;;  %v1236_v27 = vor.u32 %v1597_v21, %v1235_v20 }
  0x12   :  { %874 = vmatpush.bf16.msra.mxu0 %v1152_v12  ;;  %v1332_v28 = vor.u32 %v1621_v23, %v1331_v22  ;;  %v1223_v29 = vld [vmem:[#allocation2 + $0x120] sm:$0xf]  ;;  %v1451_v30 = vld [vmem:[#allocation2 + $0x2e8] sm:$0xf]  ;;  %v1651_v31 = vld [vmem:[#allocation2 + $0x2f0] sm:$0xf0]  ;;  %v1128_v37 = vor.u32 %v1570_v26, %v1127_v25 }
  0x13   :  { %887 = vmatpush.bf16.msra.mxu1 %v1248_v16  ;;  %v1594_v32 = vld [vmem:[#allocation2 + $0x128] sm:$0xf0]  ;;  %v1319_v33 = vld [vmem:[#allocation2 + $0x1e0] sm:$0xf]  ;;  %v1452_v35 = vor.u32 %v1651_v31, %v1451_v30  ;;  %v1439_v36 = vld [vmem:[#allocation2 + $0x2d0] sm:$0xf] }
  0x14   :  { %900 = vmatpush.bf16.msra.mxu2 %v1344_v17  ;;  %v1618_v34 = vld [vmem:[#allocation2 + $0x1e8] sm:$0xf0]  ;;  %v1115_v38 = vld [vmem:[#allocation2 + $0x48] sm:$0xf]  ;;  %v1567_v39 = vld [vmem:[#allocation2 + $0x50] sm:$0xf0]  ;;  %v1224_v41 = vor.u32 %v1594_v32, %v1223_v29 }
  0x15   :  { %912 = vmatpush.bf16.msra.mxu3 %v1452_v35  ;;  %v1648_v40 = vld [vmem:[#allocation2 + $0x2d8] sm:$0xf0]  ;;  %v1320_v42 = vor.u32 %v1618_v34, %v1319_v33  ;;  %v1211_v43 = vld [vmem:[#allocation2 + $0x108] sm:$0xf]  ;;  %v1591_v44 = vld [vmem:[#allocation2 + $0x110] sm:$0xf0]  ;;  %v1116_v50 = vor.u32 %v1567_v39, %v1115_v38 }
  0x16   :  { %875 = vmatpush.bf16.msra.mxu0 %v1140_v24  ;;  %v1307_v45 = vld [vmem:[#allocation2 + $0x1c8] sm:$0xf]  ;;  %v1440_v46 = vor.u32 %v1648_v40, %v1439_v36  ;;  %v1615_v47 = vld [vmem:[#allocation2 + $0x1d0] sm:$0xf0]  ;;  %v1427_v48 = vld [vmem:[#allocation2 + $0x2b8] sm:$0xf]  ;;  %v1212_v54 = vor.u32 %v1591_v44, %v1211_v43 }
  0x17   :  { %888 = vmatpush.bf16.msra.mxu1 %v1236_v27  ;;  %v1645_v49 = vld [vmem:[#allocation2 + $0x2c0] sm:$0xf0]  ;;  %v1103_v51 = vld [vmem:[#allocation2 + $0x30] sm:$0xf]  ;;  %v1564_v52 = vld [vmem:[#allocation2 + $0x38] sm:$0xf0]  ;;  %v1308_v55 = vor.u32 %v1615_v47, %v1307_v45 }
  0x18   :  { %901 = vmatpush.bf16.msra.mxu2 %v1332_v28  ;;  %v1428_v53 = vor.u32 %v1645_v49, %v1427_v48  ;;  %v1199_v56 = vld [vmem:[#allocation2 + $0xf0] sm:$0xf]  ;;  %v1415_v57 = vld [vmem:[#allocation2 + $0x2a0] sm:$0xf]  ;;  %v1642_v58 = vld [vmem:[#allocation2 + $0x2a8] sm:$0xf0]  ;;  %v1104_v62 = vor.u32 %v1564_v52, %v1103_v51 }
  0x19   :  { %913 = vmatpush.bf16.msra.mxu3 %v1440_v46  ;;  %v1588_v59 = vld [vmem:[#allocation2 + $0xf8] sm:$0xf0]  ;;  %v1295_v60 = vld [vmem:[#allocation2 + $0x1b0] sm:$0xf]  ;;  %v1091_v63 = vld [vmem:[#allocation2 + $0x18] sm:$0xf]  ;;  %v1416_v1 = vor.u32 %v1642_v58, %v1415_v57 }
  0x1a   :  { %876 = vmatpush.bf16.msra.mxu0 %v1128_v37  ;;  %v1612_v61 = vld [vmem:[#allocation2 + $0x1b8] sm:$0xf0]  ;;  %v1561_v0 = vld [vmem:[#allocation2 + $0x20] sm:$0xf0]  ;;  %v1200_v2 = vor.u32 %v1588_v59, %v1199_v56  ;;  %v1187_v4 = vld [vmem:[#allocation2 + $0xd8] sm:$0xf] }
  0x1b   :  { %889 = vmatpush.bf16.msra.mxu1 %v1224_v41  ;;  %v1296_v3 = vor.u32 %v1612_v61, %v1295_v60  ;;  %v1585_v5 = vld [vmem:[#allocation2 + $0xe0] sm:$0xf0]  ;;  %v1403_v6 = vld [vmem:[#allocation2 + $0x288] sm:$0xf]  ;;  %v1283_v7 = vld [vmem:[#allocation2 + $0x198] sm:$0xf]  ;;  %v1092_v10 = vor.u32 %v1561_v0, %v1091_v63 }
  0x1c   :  { %902 = vmatpush.bf16.msra.mxu2 %v1320_v42  ;;  %v1609_v8 = vld [vmem:[#allocation2 + $0x1a0] sm:$0xf0]  ;;  %v1639_v9 = vld [vmem:[#allocation2 + $0x290] sm:$0xf0]  ;;  %v1079_v11 = vld [vmem:[#allocation2] sm:$0xf]  ;;  %v1188_v15 = vor.u32 %v1585_v5, %v1187_v4 }
  0x1d   :  { %914 = vmatpush.bf16.msra.mxu3 %v1428_v53  ;;  %v1558_v12 = vld [vmem:[#allocation2 + $0x8] sm:$0xf0]  ;;  %v1175_v13 = vld [vmem:[#allocation2 + $0xc0] sm:$0xf]  ;;  %v1404_v14 = vor.u32 %v1639_v9, %v1403_v6  ;;  %v1284_v16 = vor.u32 %v1609_v8, %v1283_v7  ;;  %v1391_v18 = vld [vmem:[#allocation2 + $0x270] sm:$0xf] }
  0x1e   :  { %877 = vmatpush.bf16.msra.mxu0 %v1116_v50  ;;  %v1582_v17 = vld [vmem:[#allocation2 + $0xc8] sm:$0xf0]  ;;  %v1636_v19 = vld [vmem:[#allocation2 + $0x278] sm:$0xf0]  ;;  %v1271_v20 = vld [vmem:[#allocation2 + $0x180] sm:$0xf]  ;;  %v1080_v26 = vor.u32 %v1558_v12, %v1079_v11 }
  0x1f   :  { %890 = vmatpush.bf16.msra.mxu1 %v1212_v54  ;;  %v1606_v21 = vld [vmem:[#allocation2 + $0x188] sm:$0xf0]  ;;  %v1547_v22 = vld [vmem:[#allocation2 + $0x3a8] sm:$0xf]  ;;  %v1675_v23 = vld [vmem:[#allocation2 + $0x3b0] sm:$0xf0]  ;;  %v1392_v29 = vor.u32 %v1636_v19, %v1391_v18  ;;  %v1176_v30 = vor.u32 %v1582_v17, %v1175_v13 }
  0x20   :  { %903 = vmatpush.bf16.msra.mxu2 %v1308_v55  ;;  %v1578_v24 = vld [vmem:[#allocation2 + $0xac] sm:$0xf]  ;;  %v1165_v25 = vld [vmem:[#allocation2 + $0xb4] sm:$0xf0]  ;;  %v1272_v31 = vor.u32 %v1606_v21, %v1271_v20  ;;  %v1633_v33 = vld [vmem:[#allocation2 + $0x260] sm:$0xf0]  ;;  %v1548_v34 = vor.u32 %v1675_v23, %v1547_v22 }
  0x21   :  { %915 = vmatpush.bf16.msra.mxu3 %v1416_v1  ;;  %v1602_v27 = vld [vmem:[#allocation2 + $0x16c] sm:$0xf]  ;;  %v1261_v28 = vld [vmem:[#allocation2 + $0x174] sm:$0xf0]  ;;  %v1168_v35 = vor.u32 %v1578_v24, %v1165_v25  ;;  %v1535_v36 = vld [vmem:[#allocation2 + $0x390] sm:$0xf] }
  0x22   :  { %878 = vmatpush.bf16.msra.mxu0 %v1104_v62  ;;  %v1379_v32 = vld [vmem:[#allocation2 + $0x258] sm:$0xf]  ;;  %v1264_v37 = vor.u32 %v1602_v27, %v1261_v28  ;;  %v1672_v38 = vld [vmem:[#allocation2 + $0x398] sm:$0xf0]  ;;  %v1575_v39 = vld [vmem:[#allocation2 + $0x94] sm:$0xf] }
  0x23   :  { %891 = vmatpush.bf16.msra.mxu1 %v1200_v2  ;;  %v1153_v40 = vld [vmem:[#allocation2 + $0x9c] sm:$0xf0]  ;;  %v1599_v41 = vld [vmem:[#allocation2 + $0x154] sm:$0xf]  ;;  %v1380_v43 = vor.u32 %v1633_v33, %v1379_v32  ;;  %v1523_v44 = vld [vmem:[#allocation2 + $0x378] sm:$0xf]  ;;  %v1536_v47 = vor.u32 %v1672_v38, %v1535_v36 }
  0x24   :  { %904 = vmatpush.bf16.msra.mxu2 %v1296_v3  ;;  %v1249_v42 = vld [vmem:[#allocation2 + $0x15c] sm:$0xf0]  ;;  %v1630_v46 = vld [vmem:[#allocation2 + $0x248] sm:$0xf0]  ;;  %v1156_v48 = vor.u32 %v1575_v39, %v1153_v40  ;;  %v1669_v49 = vld [vmem:[#allocation2 + $0x380] sm:$0xf0] }
  0x25   :  { %916 = vmatpush.bf16.msra.mxu3 %v1404_v14  ;;  %v1367_v45 = vld [vmem:[#allocation2 + $0x240] sm:$0xf]  ;;  %v1626_v50 = vld [vmem:[#allocation2 + $0x22c] sm:$0xf]  ;;  %v1357_v51 = vld [vmem:[#allocation2 + $0x234] sm:$0xf0]  ;;  %v1252_v52 = vor.u32 %v1599_v41, %v1249_v42  ;;  %v1524_v1 = vor.u32 %v1669_v49, %v1523_v44 }
  0x26   :  { %879 = vmatpush.bf16.msra.mxu0 %v1092_v10  ;;  %v1572_v53 = vld [vmem:[#allocation2 + $0x7c] sm:$0xf]  ;;  %v1141_v54 = vld [vmem:[#allocation2 + $0x84] sm:$0xf0]  ;;  %v1368_v58 = vor.u32 %v1630_v46, %v1367_v45  ;;  %v44_v60 = vld [vmem:[%s1806_s0] sm:$0xff]  ;;  %v1360_v62 = vor.u32 %v1626_v50, %v1357_v51 }
  0x27   :  { %892 = vmatpush.bf16.msra.mxu1 %v1188_v15  ;;  %v45_v55 = vld [vmem:[%s1806_s0 + $0x8] sm:$0xff]  ;;  %v1596_v56 = vld [vmem:[#allocation2 + $0x13c] sm:$0xf]  ;;  %v218_v63 = vunpack.c.l.b16 %v44_v60  ;;  %v219_v0 = vunpack.c.h.b16 %v44_v60  ;;  %v1144_v2 = vor.u32 %v1572_v53, %v1141_v54  ;;  %v1511_v3 = vld [vmem:[#allocation2 + $0x360] sm:$0xf] }
  0x28   :  { %905 = vmatpush.bf16.msra.mxu2 %v1284_v16  ;;  %v1237_v57 = vld [vmem:[#allocation2 + $0x144] sm:$0xf0]  ;;  %v220_v59 = vunpack.c.l.b16 %v45_v55  ;;  %v221_v61 = vunpack.c.h.b16 %v45_v55  ;;  %v1623_v4 = vld [vmem:[#allocation2 + $0x214] sm:$0xf]  ;;  %v1345_v5 = vld [vmem:[#allocation2 + $0x21c] sm:$0xf0] }
  0x29   :  { %917 = vmatpush.bf16.msra.mxu3 %v1392_v29  ;;  %v1240_v7 = vor.u32 %v1596_v56, %v1237_v57  ;;  %v1666_v8 = vld [vmem:[#allocation2 + $0x368] sm:$0xf0]  ;;  %v1569_v9 = vld [vmem:[#allocation2 + $0x64] sm:$0xf]  ;;  %v1129_v10 = vld [vmem:[#allocation2 + $0x6c] sm:$0xf0]  ;;  %v1771_v11 = vpack.c.b16 %v218_v63, %v218_v63  ;;  %v1773_v12 = vpack.c.b16 %v219_v0, %v219_v0  ;;  %v1348_v16 = vor.u32 %v1623_v4, %v1345_v5 }
  0x2a   :  { %880 = vmatpush.bf16.msra.mxu0 %v1080_v26  ;;  %v1769_v6 = vpack.c.b16 %v220_v59, %v220_v59  ;;  %v1593_v13 = vld [vmem:[#allocation2 + $0x124] sm:$0xf]  ;;  %v1225_v14 = vld [vmem:[#allocation2 + $0x12c] sm:$0xf0]  ;;  %v1776_v15 = vpack.c.b16 %v221_v61, %v221_v61  ;;  %v1512_v17 = vor.u32 %v1666_v8, %v1511_v3  ;;  %v1132_v18 = vor.u32 %v1569_v9, %v1129_v10  ;;  %v1499_v19 = vld [vmem:[#allocation2 + $0x348] sm:$0xf] }
  0x2b   :  { %893 = vmatpush.bf16.msra.mxu1 %v1176_v30  ;;  %v1620_v20 = vld [vmem:[#allocation2 + $0x1fc] sm:$0xf]  ;;  %v1333_v21 = vld [vmem:[#allocation2 + $0x204] sm:$0xf0]  ;;  %v1228_v22 = vor.u32 %v1593_v13, %v1225_v14  ;;  %v1663_v23 = vld [vmem:[#allocation2 + $0x350] sm:$0xf0] }
  0x2c   :  { %906 = vmatpush.bf16.msra.mxu2 %v1272_v31  ;;  %v1566_v24 = vld [vmem:[#allocation2 + $0x4c] sm:$0xf]  ;;  %v1117_v25 = vld [vmem:[#allocation2 + $0x54] sm:$0xf0]  ;;  %v1336_v28 = vor.u32 %v1620_v20, %v1333_v21  ;;  %v1500_v29 = vor.u32 %v1663_v23, %v1499_v19  ;;  %v1487_v31 = vld [vmem:[#allocation2 + $0x330] sm:$0xf] }
  0x2d   :  { %918 = vmatpush.bf16.msra.mxu3 %v1380_v43  ;;  %881 = vmatmul.bf16.vlgmr.msra.gmra.mxu0 %v1771_v11  ;;  %v1590_v26 = vld [vmem:[#allocation2 + $0x10c] sm:$0xf]  ;;  %v1213_v27 = vld [vmem:[#allocation2 + $0x114] sm:$0xf0]  ;;  %v1120_v30 = vor.u32 %v1566_v24, %v1117_v25  ;;  %v1617_v32 = vld [vmem:[#allocation2 + $0x1e4] sm:$0xf] }
  0x2e   :  { %925 = vmatpush.bf16.msrb.mxu0 %v1548_v34  ;;  %894 = vmatmul.bf16.vlgmr.msra.gmra.mxu1 %v1773_v12  ;;  %v1321_v33 = vld [vmem:[#allocation2 + $0x1ec] sm:$0xf0]  ;;  %v1216_v34 = vor.u32 %v1590_v26, %v1213_v27  ;;  %v1563_v36 = vld [vmem:[#allocation2 + $0x34] sm:$0xf]  ;;  %v1201_v39 = vld [vmem:[#allocation2 + $0xfc] sm:$0xf0] }
  0x2f   :  { %938 = vmatpush.bf16.msrb.mxu1 %v1168_v35  ;;  %907 = vmatmul.bf16.vlgmr.msra.gmra.mxu2 %v1769_v6  ;;  %v1660_v35 = vld [vmem:[#allocation2 + $0x338] sm:$0xf0]  ;;  %v1587_v38 = vld [vmem:[#allocation2 + $0xf4] sm:$0xf]  ;;  %v1324_v40 = vor.u32 %v1617_v32, %v1321_v33  ;;  %v1475_v43 = vld [vmem:[#allocation2 + $0x318] sm:$0xf] }
  0x30   :  { %951 = vmatpush.bf16.msrb.mxu2 %v1264_v37  ;;  %v1105_v37 = vld [vmem:[#allocation2 + $0x3c] sm:$0xf0]  ;;  %v1488_v41 = vor.u32 %v1660_v35, %v1487_v31  ;;  %v1614_v44 = vld [vmem:[#allocation2 + $0x1cc] sm:$0xf]  ;;  %v1309_v45 = vld [vmem:[#allocation2 + $0x1d4] sm:$0xf0]  ;;  %v1204_v46 = vor.u32 %v1587_v38, %v1201_v39 }
  0x31   :  { %919 = vmatpush.bf16.msra.mxu3 %v1368_v58  ;;  %v1108_v42 = vor.u32 %v1563_v36, %v1105_v37  ;;  %v1093_v49 = vld [vmem:[#allocation2 + $0x24] sm:$0xf0]  ;;  %v1584_v50 = vld [vmem:[#allocation2 + $0xdc] sm:$0xf]  ;;  %v1654_v53 = vld [vmem:[#allocation2 + $0x308] sm:$0xf0]  ;;  %v1312_v55 = vor.u32 %v1614_v44, %v1309_v45 }
  0x32   :  { %926 = vmatpush.bf16.msrb.mxu0 %v1536_v47  ;;  %v1657_v47 = vld [vmem:[#allocation2 + $0x320] sm:$0xf0]  ;;  %v1189_v51 = vld [vmem:[#allocation2 + $0xe4] sm:$0xf0]  ;;  %v1611_v58 = vld [vmem:[#allocation2 + $0x1b4] sm:$0xf] }
  0x33   :  { %939 = vmatpush.bf16.msrb.mxu1 %v1156_v48  ;;  %v1560_v48 = vld [vmem:[#allocation2 + $0x1c] sm:$0xf]  ;;  %v1557_v54 = vld [vmem:[#allocation2 + $0x4] sm:$0xf]  ;;  %v1476_v56 = vor.u32 %v1657_v47, %v1475_v43  ;;  %v1297_v59 = vld [vmem:[#allocation2 + $0x1bc] sm:$0xf0]  ;;  %v1192_v61 = vor.u32 %v1584_v50, %v1189_v51 }
  0x34   :  { %952 = vmatpush.bf16.msrb.mxu2 %v1252_v52  ;;  %920 = vmatmul.bf16.vlgmr.msra.gmra.mxu3 %v1776_v15  ;;  %v1463_v52 = vld [vmem:[#allocation2 + $0x300] sm:$0xf]  ;;  %v1096_v57 = vor.u32 %v1560_v48, %v1093_v49  ;;  %v46_v60 = vld [vmem:[%s1806_s0 + $0x10] sm:$0xf]  ;;  %v1581_v63 = vld [vmem:[#allocation2 + $0xc4] sm:$0xf]  ;;  %v1300_v8 = vor.u32 %v1611_v58, %v1297_v59 }
  0x35   :  { %964 = vmatpush.bf16.msrb.mxu3 %v1360_v62  ;;  %v1081_v62 = vld [vmem:[#allocation2 + $0xc] sm:$0xf0]  ;;  %v1674_v3 = vld [vmem:[#allocation2 + $0x3ac] sm:$0xf]  ;;  %v1549_v4 = vld [vmem:[#allocation2 + $0x3b4] sm:$0xf0]  ;;  %v222_v9 = vunpack.c.l.b16 %v46_v60  ;;  %v1464_v10 = vor.u32 %v1654_v53, %v1463_v52 }
  0x36   :  { %927 = vmatpush.bf16.msrb.mxu0 %v1524_v1  ;;  %v1177_v0 = vld [vmem:[#allocation2 + $0xcc] sm:$0xf0]  ;;  %v1650_v1 = vld [vmem:[#allocation2 + $0x2ec] sm:$0xf]  ;;  %v1084_v13 = vor.u32 %v1557_v54, %v1081_v62  ;;  %v1608_v14 = vld [vmem:[#allocation2 + $0x19c] sm:$0xf]  ;;  %v1552_v19 = vor.u32 %v1674_v3, %v1549_v4 }
  0x37   :  { %940 = vmatpush.bf16.msrb.mxu1 %v1144_v2  ;;  %v1453_v2 = vld [vmem:[#allocation2 + $0x2f4] sm:$0xf0]  ;;  %v1171_v5 = vld [vmem:[#allocation2 + $0xb0] sm:$0xf]  ;;  %v1647_v21 = vld [vmem:[#allocation2 + $0x2d4] sm:$0xf]  ;;  %v1784_v27 = vpack.c.b16 %v222_v9, %v222_v9 }
  0x38   :  { %953 = vmatpush.bf16.msrb.mxu2 %v1240_v7  ;;  %v1580_v7 = vld [vmem:[#allocation2 + $0xb8] sm:$0xf0]  ;;  %v1671_v23 = vld [vmem:[#allocation2 + $0x394] sm:$0xf]  ;;  %v1537_v24 = vld [vmem:[#allocation2 + $0x39c] sm:$0xf0] }
  0x39   :  { %965 = vmatpush.bf16.msrb.mxu3 %v1348_v16  ;;  %v1285_v16 = vld [vmem:[#allocation2 + $0x1a4] sm:$0xf0]  ;;  %v1172_v20 = vor.u32 %v1580_v7, %v1171_v5  ;;  %v1159_v25 = vld [vmem:[#allocation2 + $0x98] sm:$0xf]  ;;  %v1577_v26 = vld [vmem:[#allocation2 + $0xa0] sm:$0xf0] }
  0x3a   :  { %928 = vmatpush.bf16.msrb.mxu0 %v1512_v17  ;;  %v1180_v17 = vor.u32 %v1581_v63, %v1177_v0  ;;  %v1267_v32 = vld [vmem:[#allocation2 + $0x170] sm:$0xf]  ;;  %v1604_v33 = vld [vmem:[#allocation2 + $0x178] sm:$0xf0]  ;;  %v1160_v35 = vor.u32 %v1577_v26, %v1159_v25  ;;  %v1429_v37 = vld [vmem:[#allocation2 + $0x2c4] sm:$0xf0] }
  0x3b   :  { %941 = vmatpush.bf16.msrb.mxu1 %v1132_v18  ;;  %v1456_v18 = vor.u32 %v1650_v1, %v1453_v2  ;;  %v1644_v36 = vld [vmem:[#allocation2 + $0x2bc] sm:$0xf]  ;;  %v1525_v39 = vld [vmem:[#allocation2 + $0x384] sm:$0xf0]  ;;  %v1268_v43 = vor.u32 %v1604_v33, %v1267_v32  ;;  %v1255_v45 = vld [vmem:[#allocation2 + $0x158] sm:$0xf] }
  0x3c   :  { %954 = vmatpush.bf16.msrb.mxu2 %v1228_v22  ;;  %v1441_v22 = vld [vmem:[#allocation2 + $0x2dc] sm:$0xf0]  ;;  %v1668_v38 = vld [vmem:[#allocation2 + $0x37c] sm:$0xf]  ;;  %v1432_v44 = vor.u32 %v1644_v36, %v1429_v37  ;;  %v1641_v49 = vld [vmem:[#allocation2 + $0x2a4] sm:$0xf] }
  0x3d   :  { %966 = vmatpush.bf16.msrb.mxu3 %v1336_v28  ;;  %v1288_v28 = vor.u32 %v1608_v14, %v1285_v16  ;;  %v1444_v31 = vor.u32 %v1647_v21, %v1441_v22  ;;  %v1528_v47 = vor.u32 %v1668_v38, %v1525_v39  ;;  %v1417_v50 = vld [vmem:[#allocation2 + $0x2ac] sm:$0xf0]  ;;  %v1665_v51 = vld [vmem:[#allocation2 + $0x364] sm:$0xf]  ;;  %v1135_v53 = vld [vmem:[#allocation2 + $0x68] sm:$0xf] }
  0x3e   :  { %929 = vmatpush.bf16.msrb.mxu0 %v1500_v29  ;;  %v1605_v29 = vld [vmem:[#allocation2 + $0x184] sm:$0xf]  ;;  %v1513_v52 = vld [vmem:[#allocation2 + $0x36c] sm:$0xf0]  ;;  %v1571_v54 = vld [vmem:[#allocation2 + $0x70] sm:$0xf0] }
  0x3f   :  { %942 = vmatpush.bf16.msrb.mxu1 %v1120_v30  ;;  %v1273_v30 = vld [vmem:[#allocation2 + $0x18c] sm:$0xf0]  ;;  %v1598_v58 = vld [vmem:[#allocation2 + $0x148] sm:$0xf0]  ;;  %v1516_v59 = vor.u32 %v1665_v51, %v1513_v52  ;;  %v1136_v60 = vor.u32 %v1571_v54, %v1135_v53  ;;  %v1405_v62 = vld [vmem:[#allocation2 + $0x294] sm:$0xf0] }
  0x40   :  { %955 = vmatpush.bf16.msrb.mxu2 %v1216_v34  ;;  %v1540_v34 = vor.u32 %v1671_v23, %v1537_v24  ;;  %v1662_v63 = vld [vmem:[#allocation2 + $0x34c] sm:$0xf]  ;;  %v1501_v0 = vld [vmem:[#allocation2 + $0x354] sm:$0xf0]  ;;  %v1123_v1 = vld [vmem:[#allocation2 + $0x50] sm:$0xf] }
  0x41   :  { %967 = vmatpush.bf16.msrb.mxu3 %v1324_v40  ;;  %v1147_v40 = vld [vmem:[#allocation2 + $0x80] sm:$0xf]  ;;  %v1568_v2 = vld [vmem:[#allocation2 + $0x58] sm:$0xf0]  ;;  %v1231_v5 = vld [vmem:[#allocation2 + $0x128] sm:$0xf] }
  0x42   :  { %930 = vmatpush.bf16.msrb.mxu0 %v1488_v41  ;;  %v1574_v41 = vld [vmem:[#allocation2 + $0x88] sm:$0xf0]  ;;  %v1595_v7 = vld [vmem:[#allocation2 + $0x130] sm:$0xf0]  ;;  %v1124_v9 = vor.u32 %v1568_v2, %v1123_v1  ;;  %v1489_v16 = vld [vmem:[#allocation2 + $0x33c] sm:$0xf0] }
  0x43   :  { %943 = vmatpush.bf16.msrb.mxu1 %v1108_v42  ;;  %v1276_v42 = vor.u32 %v1605_v29, %v1273_v30  ;;  %v1148_v48 = vor.u32 %v1574_v41, %v1147_v40  ;;  %v1659_v14 = vld [vmem:[#allocation2 + $0x334] sm:$0xf]  ;;  %v1219_v21 = vld [vmem:[#allocation2 + $0x110] sm:$0xf]  ;;  %v1592_v22 = vld [vmem:[#allocation2 + $0x118] sm:$0xf0] }
  0x44   :  { %956 = vmatpush.bf16.msrb.mxu2 %v1204_v46  ;;  %v1601_v46 = vld [vmem:[#allocation2 + $0x160] sm:$0xf0]  ;;  %v1492_v23 = vor.u32 %v1659_v14, %v1489_v16  ;;  %v1632_v25 = vld [vmem:[#allocation2 + $0x25c] sm:$0xf]  ;;  %v1381_v26 = vld [vmem:[#allocation2 + $0x264] sm:$0xf0]  ;;  %v1220_v32 = vor.u32 %v1592_v22, %v1219_v21 }
  0x45   :  { %968 = vmatpush.bf16.msrb.mxu3 %v1312_v55  ;;  %v1256_v55 = vor.u32 %v1601_v46, %v1255_v45  ;;  %v1477_v29 = vld [vmem:[#allocation2 + $0x324] sm:$0xf0]  ;;  %v1099_v30 = vld [vmem:[#allocation2 + $0x20] sm:$0xf]  ;;  %v1384_v33 = vor.u32 %v1632_v25, %v1381_v26  ;;  %v1589_v36 = vld [vmem:[#allocation2 + $0x100] sm:$0xf0] }
  0x46   :  { %931 = vmatpush.bf16.msrb.mxu0 %v1476_v56  ;;  %v1420_v56 = vor.u32 %v1641_v49, %v1417_v50  ;;  %v1369_v39 = vld [vmem:[#allocation2 + $0x24c] sm:$0xf0]  ;;  %v1653_v40 = vld [vmem:[#allocation2 + $0x304] sm:$0xf]  ;;  %v1628_v45 = vld [vmem:[#allocation2 + $0x238] sm:$0xf0] }
  0x47   :  { %944 = vmatpush.bf16.msrb.mxu1 %v1096_v57  ;;  %v1243_v57 = vld [vmem:[#allocation2 + $0x140] sm:$0xf]  ;;  %v1465_v41 = vld [vmem:[#allocation2 + $0x30c] sm:$0xf0]  ;;  %v1676_v51 = vld [vmem:[#allocation2 + $0x3b8] sm:$0xf0] }
  0x48   :  { %957 = vmatpush.bf16.msrb.mxu2 %v1192_v61  ;;  %v1638_v61 = vld [vmem:[#allocation2 + $0x28c] sm:$0xf]  ;;  %v1244_v3 = vor.u32 %v1598_v58, %v1243_v57  ;;  %v1459_v46 = vld [vmem:[#allocation2 + $0x2f0] sm:$0xf]  ;;  %v1468_v52 = vor.u32 %v1653_v40, %v1465_v41  ;;  %v1195_v54 = vld [vmem:[#allocation2 + $0xe0] sm:$0xf] }
  0x49   :  { %969 = vmatpush.bf16.msrb.mxu3 %v1300_v8  ;;  %v1408_v4 = vor.u32 %v1638_v61, %v1405_v62  ;;  %v1504_v8 = vor.u32 %v1662_v63, %v1501_v0  ;;  %v1555_v50 = vld [vmem:[#allocation2 + $0x3b0] sm:$0xf]  ;;  %v1351_v58 = vld [vmem:[#allocation2 + $0x218] sm:$0xf]  ;;  %v1649_v62 = vld [vmem:[#allocation2 + $0x2e0] sm:$0xf0] }
  0x4a   :  { %932 = vmatpush.bf16.msrb.mxu0 %v1464_v10  ;;  %v1635_v10 = vld [vmem:[#allocation2 + $0x274] sm:$0xf]  ;;  %v1447_v61 = vld [vmem:[#allocation2 + $0x2d8] sm:$0xf]  ;;  %v1673_v0 = vld [vmem:[#allocation2 + $0x3a0] sm:$0xf0] }
  0x4b   :  { %945 = vmatpush.bf16.msrb.mxu1 %v1084_v13  ;;  %v1393_v13 = vld [vmem:[#allocation2 + $0x27c] sm:$0xf0]  ;;  %v1543_v63 = vld [vmem:[#allocation2 + $0x398] sm:$0xf]  ;;  %v1183_v2 = vld [vmem:[#allocation2 + $0xc8] sm:$0xf] }
  0x4c   :  { %958 = vmatpush.bf16.msrb.mxu2 %v1180_v17  ;;  %v1111_v17 = vld [vmem:[#allocation2 + $0x38] sm:$0xf]  ;;  %v1531_v14 = vld [vmem:[#allocation2 + $0x380] sm:$0xf]  ;;  %v1670_v16 = vld [vmem:[#allocation2 + $0x388] sm:$0xf0] }
  0x4d   :  { %933 = vmatmul.bf16.vlgmr.msrb.gmra.mxu0 %v1784_v27  ;;  %970 = vmatpush.bf16.msrb.mxu3 %v1288_v28  ;;  %v1656_v28 = vld [vmem:[#allocation2 + $0x31c] sm:$0xf]  ;;  %v1532_v21 = vor.u32 %v1670_v16, %v1531_v14  ;;  %v1619_v22 = vld [vmem:[#allocation2 + $0x1f0] sm:$0xf0]  ;;  %v1519_v25 = vld [vmem:[#allocation2 + $0x368] sm:$0xf] }
  0x4e   :  { %977 = vmatpush.bf16.msra.mxu0 %v1456_v18  ;;  %946 = vmatmul.bf16.vlgmr.msrb.gmra.mxu1 %v1771_v11  ;;  %v1565_v18 = vld [vmem:[#allocation2 + $0x40] sm:$0xf0]  ;;  %v1480_v37 = vor.u32 %v1656_v28, %v1477_v29  ;;  %v1667_v26 = vld [vmem:[#allocation2 + $0x370] sm:$0xf0]  ;;  %v1315_v29 = vld [vmem:[#allocation2 + $0x1d0] sm:$0xf] }
  0x4f   :  { %990 = vmatpush.bf16.msra.mxu1 %v1552_v19  ;;  %959 = vmatmul.bf16.vlgmr.msrb.gmra.mxu2 %v1773_v12  ;;  %v1232_v19 = vor.u32 %v1595_v7, %v1231_v5  ;;  %v1112_v24 = vor.u32 %v1565_v18, %v1111_v17  ;;  %v1448_v5 = vor.u32 %v1649_v62, %v1447_v61  ;;  %v1339_v7 = vld [vmem:[#allocation2 + $0x200] sm:$0xf]  ;;  %v1613_v40 = vld [vmem:[#allocation2 + $0x1c0] sm:$0xf0]  ;;  %v1399_v41 = vld [vmem:[#allocation2 + $0x278] sm:$0xf] }
  0x50   :  { %1003 = vmatpush.bf16.msra.mxu2 %v1172_v20  ;;  %v1396_v20 = vor.u32 %v1635_v10, %v1393_v13  ;;  %v1435_v10 = vld [vmem:[#allocation2 + $0x2c0] sm:$0xf]  ;;  %v1646_v13 = vld [vmem:[#allocation2 + $0x2c8] sm:$0xf0]  ;;  %v1655_v61 = vld [vmem:[#allocation2 + $0x310] sm:$0xf0] }
  0x51   :  { %971 = vmatpush.bf16.msrb.mxu3 %v1276_v42  ;;  %v1087_v42 = vld [vmem:[#allocation2 + $0x8] sm:$0xf] }
  0x52   :  { %978 = vmatpush.bf16.msra.mxu0 %v1444_v31  ;;  %v1562_v31 = vld [vmem:[#allocation2 + $0x28] sm:$0xf0] }
  0x53   :  { %991 = vmatpush.bf16.msra.mxu1 %v1540_v34  ;;  %v1629_v34 = vld [vmem:[#allocation2 + $0x244] sm:$0xf]  ;;  %v1100_v38 = vor.u32 %v1562_v31, %v1099_v30  ;;  %v1520_v30 = vor.u32 %v1667_v26, %v1519_v25  ;;  %v1616_v31 = vld [vmem:[#allocation2 + $0x1d8] sm:$0xf0] }
  0x54   :  { %1004 = vmatpush.bf16.msra.mxu2 %v1160_v35  ;;  %972 = vmatmul.bf16.vlgmr.msrb.gmra.mxu3 %v1769_v6  ;;  %v1207_v35 = vld [vmem:[#allocation2 + $0xf8] sm:$0xf]  ;;  %v1372_v49 = vor.u32 %v1629_v34, %v1369_v39  ;;  %v1507_v34 = vld [vmem:[#allocation2 + $0x350] sm:$0xf] }
  0x55   :  { %1016 = vmatpush.bf16.msra.mxu3 %v1268_v43  ;;  %v1559_v43 = vld [vmem:[#allocation2 + $0x10] sm:$0xf0] }
  0x56   :  { %979 = vmatpush.bf16.msra.mxu0 %v1432_v44  ;;  %v1363_v44 = vld [vmem:[#allocation2 + $0x230] sm:$0xf]  ;;  %v1088_v53 = vor.u32 %v1559_v43, %v1087_v42  ;;  %v1637_v42 = vld [vmem:[#allocation2 + $0x280] sm:$0xf0]  ;;  %v1495_v43 = vld [vmem:[#allocation2 + $0x338] sm:$0xf] }
  0x57   :  { %992 = vmatpush.bf16.msra.mxu1 %v1528_v47  ;;  %v1652_v47 = vld [vmem:[#allocation2 + $0x2f8] sm:$0xf0] }
  0x58   :  { %1005 = vmatpush.bf16.msra.mxu2 %v1148_v48  ;;  %v1208_v48 = vor.u32 %v1589_v36, %v1207_v35  ;;  %v1460_v57 = vor.u32 %v1652_v47, %v1459_v46  ;;  %v1664_v35 = vld [vmem:[#allocation2 + $0x358] sm:$0xf0]  ;;  %v1316_v36 = vor.u32 %v1616_v31, %v1315_v29  ;;  %v1400_v46 = vor.u32 %v1637_v42, %v1399_v41  ;;  %v1291_v47 = vld [vmem:[#allocation2 + $0x1a0] sm:$0xf] }
  0x59   :  { %1017 = vmatpush.bf16.msra.mxu3 %v1256_v55  ;;  %v1586_v55 = vld [vmem:[#allocation2 + $0xe8] sm:$0xf0]  ;;  %v1508_v39 = vor.u32 %v1664_v35, %v1507_v34 }
  0x5a   :  { %980 = vmatpush.bf16.msra.mxu0 %v1420_v56  ;;  %v1364_v56 = vor.u32 %v1628_v45, %v1363_v44  ;;  %v1196_v1 = vor.u32 %v1586_v55, %v1195_v54  ;;  %v1661_v44 = vld [vmem:[#allocation2 + $0x340] sm:$0xf0]  ;;  %v1279_v55 = vld [vmem:[#allocation2 + $0x188] sm:$0xf] }
  0x5b   :  { %993 = vmatpush.bf16.msra.mxu1 %v1516_v59  ;;  %v1556_v59 = vor.u32 %v1676_v51, %v1555_v50  ;;  %v1634_v50 = vld [vmem:[#allocation2 + $0x268] sm:$0xf0]  ;;  %v1483_v51 = vld [vmem:[#allocation2 + $0x320] sm:$0xf] }
  0x5c   :  { %1006 = vmatpush.bf16.msra.mxu2 %v1136_v60  ;;  %v1625_v60 = vld [vmem:[#allocation2 + $0x220] sm:$0xf0] }
  0x5d   :  { %1018 = vmatpush.bf16.msra.mxu3 %v1244_v3  ;;  %v1583_v3 = vld [vmem:[#allocation2 + $0xd0] sm:$0xf0] }
  0x5e   :  { %981 = vmatpush.bf16.msra.mxu0 %v1408_v4  ;;  %v1352_v4 = vor.u32 %v1625_v60, %v1351_v58  ;;  %v1184_v17 = vor.u32 %v1583_v3, %v1183_v2  ;;  %v1375_v58 = vld [vmem:[#allocation2 + $0x248] sm:$0xf]  ;;  %v207_v2 = vld [vmem:[#allocation4] sm:$0x7] }
  0x5f   :  { %994 = vmatpush.bf16.msra.mxu1 %v1504_v8  ;;  %v1544_v8 = vor.u32 %v1673_v0, %v1543_v63  ;;  %v1471_v60 = vld [vmem:[#allocation2 + $0x308] sm:$0xf] }
  0x60   :  { %1007 = vmatpush.bf16.msra.mxu2 %v1124_v9  ;;  %v1622_v9 = vld [vmem:[#allocation2 + $0x208] sm:$0xf0]  ;;  %v1472_v0 = vor.u32 %v1655_v61, %v1471_v60 }
  0x61   :  { %1019 = vmatpush.bf16.msra.mxu3 %v1232_v19  ;;  %v1340_v18 = vor.u32 %v1622_v9, %v1339_v7  ;;  %v1436_v19 = vor.u32 %v1646_v13, %v1435_v10 }
  0x62   :  { %982 = vmatpush.bf16.msra.mxu0 %v1396_v20  ;;  %v1327_v20 = vld [vmem:[#allocation2 + $0x1e8] sm:$0xf] }
  0x63   :  { %995 = vmatpush.bf16.msra.mxu1 %v1492_v23  ;;  %v1423_v23 = vld [vmem:[#allocation2 + $0x2a8] sm:$0xf] }
  0x64   :  { %1008 = vmatpush.bf16.msra.mxu2 %v1112_v24  ;;  %v1643_v24 = vld [vmem:[#allocation2 + $0x2b0] sm:$0xf0] }
  0x65   :  { %1020 = vmatpush.bf16.msra.mxu3 %v1220_v32  ;;  %v1424_v28 = vor.u32 %v1643_v24, %v1423_v23  ;;  %v1411_v32 = vld [vmem:[#allocation2 + $0x290] sm:$0xf] }
  0x66   :  { %983 = vmatpush.bf16.msra.mxu0 %v1384_v33  ;;  %v1640_v33 = vld [vmem:[#allocation2 + $0x298] sm:$0xf0] }
  0x67   :  { %996 = vmatpush.bf16.msra.mxu1 %v1480_v37  ;;  %v1412_v37 = vor.u32 %v1640_v33, %v1411_v32 }
  0x68   :  { %1009 = vmatpush.bf16.msra.mxu2 %v1100_v38  ;;  %v1303_v38 = vld [vmem:[#allocation2 + $0x1b8] sm:$0xf] }
  0x69   :  { %1021 = vmatpush.bf16.msra.mxu3 %v1208_v48  ;;  %v1304_v45 = vor.u32 %v1613_v40, %v1303_v38  ;;  %v1610_v48 = vld [vmem:[#allocation2 + $0x1a8] sm:$0xf0]  ;;  %v211_v38 = vperm.slane %v207_v2, 2 }
  0x6a   :  { %984 = vmatpush.bf16.msra.mxu0 %v1372_v49  ;;  %v1387_v49 = vld [vmem:[#allocation2 + $0x260] sm:$0xf] }
  0x6b   :  { %997 = vmatpush.bf16.msra.mxu1 %v1468_v52  ;;  %v1658_v52 = vld [vmem:[#allocation2 + $0x328] sm:$0xf0]  ;;  %v1388_v54 = vor.u32 %v1634_v50, %v1387_v49 }
  0x6c   :  { %1010 = vmatpush.bf16.msra.mxu2 %v1088_v53  ;;  %v1292_v53 = vor.u32 %v1610_v48, %v1291_v47 }
  0x6d   :  { %985 = vmatmul.bf16.vlgmr.msra.gmra.mxu0 %v1776_v15  ;;  %1022 = vmatpush.bf16.msra.mxu3 %v1196_v1 }
  0x6e   :  { %1029 = vmatpush.bf16.msrb.mxu0 %v1364_v56  ;;  %998 = vmatmul.bf16.vlgmr.msra.gmra.mxu1 %v1784_v27  ;;  %v1484_v56 = vor.u32 %v1658_v52, %v1483_v51 }
  0x6f   :  { %1042 = vmatpush.bf16.msrb.mxu1 %v1460_v57  ;;  %1011 = vmatmul.bf16.vlgmr.msra.gmra.mxu2 %v1771_v11  ;;  %v1328_v11 = vor.u32 %v1619_v22, %v1327_v20  ;;  %v1607_v57 = vld [vmem:[#allocation2 + $0x190] sm:$0xf0]  ;;  %v210_v22 = vperm.slane %v207_v2, 1 }
  0x70   :  { %1055 = vmatpush.bf16.msrb.mxu2 %v1556_v59  ;;  %v1631_v59 = vld [vmem:[#allocation2 + $0x250] sm:$0xf0]  ;;  %v1280_v62 = vor.u32 %v1607_v57, %v1279_v55 }
  0x71   :  { %1023 = vmatpush.bf16.msra.mxu3 %v1184_v17  ;;  %v1376_v63 = vor.u32 %v1631_v59, %v1375_v58 }
  0x72   :  { %1030 = vmatpush.bf16.msrb.mxu0 %v1352_v4  ;;  %v209_v4 = vperm.slane %v207_v2, 0 }
  0x73   :  { %1043 = vmatpush.bf16.msrb.mxu1 %v1448_v5 }
  0x74   :  { %1056 = vmatpush.bf16.msrb.mxu2 %v1544_v8  ;;  %1024 = vmatmul.bf16.vlgmr.msra.gmra.mxu3 %v1773_v12  ;;  %v1496_v12 = vor.u32 %v1661_v44, %v1495_v43 }
  0x76   :  { %1031 = vmatpush.bf16.msrb.mxu0 %v1340_v18 }
  0x77   :  { %1044 = vmatpush.bf16.msrb.mxu1 %v1436_v19 }
  0x78   :  { %1057 = vmatpush.bf16.msrb.mxu2 %v1532_v21 }
  0x7a   :  { %1032 = vmatpush.bf16.msrb.mxu0 %v1328_v11 }
  0x7b   :  { %1045 = vmatpush.bf16.msrb.mxu1 %v1424_v28 }
  0x7c   :  { %1058 = vmatpush.bf16.msrb.mxu2 %v1520_v30 }
  0x7e   :  { %1033 = vmatpush.bf16.msrb.mxu0 %v1316_v36 }
  0x7f   :  { %1046 = vmatpush.bf16.msrb.mxu1 %v1412_v37 }
  0x80   :  { %1059 = vmatpush.bf16.msrb.mxu2 %v1508_v39 }
  0x82   :  { %1034 = vmatpush.bf16.msrb.mxu0 %v1304_v45 }
  0x83   :  { %1047 = vmatpush.bf16.msrb.mxu1 %v1400_v46 }
  0x84   :  { %1060 = vmatpush.bf16.msrb.mxu2 %v1496_v12 }
  0x86   :  { %1035 = vmatpush.bf16.msrb.mxu0 %v1292_v53 }
  0x87   :  { %1048 = vmatpush.bf16.msrb.mxu1 %v1388_v54 }
  0x88   :  { %1061 = vmatpush.bf16.msrb.mxu2 %v1484_v56 }
  0x8a   :  { %1036 = vmatpush.bf16.msrb.mxu0 %v1280_v62 }
  0x8b   :  { %1049 = vmatpush.bf16.msrb.mxu1 %v1376_v63 }
  0x8c   :  { %1062 = vmatpush.bf16.msrb.mxu2 %v1472_v0 }
  0x8d   :  { %1037 = vmatmul.bf16.vlgmr.msrb.gmra.mxu0 %v1769_v6 }
  0x8e   :  { %1050 = vmatmul.bf16.vlgmr.msrb.gmra.mxu1 %v1776_v15 }
  0x8f   :  { %1063 = vmatmul.bf16.vlgmr.msrb.gmra.mxu2 %v1784_v27 }
  0xaa   :  { %v882_v1 = vpop.f32.mrf.mxu0 }
  0xab   :  { %v895_v3 = vpop.f32.mrf.mxu1  ;;  %v883_v8 = vadd.f32 %v882_v1, %v209_v4 }
  0xad   :  { %v896_v13 = vadd.f32 %v895_v3, %v883_v8 }
  0xb2   :  { %v908_v5 = vpop.f32.mrf.mxu2  ;;  %v884_v7 = vpop.f32.mrf.mxu0 }
  0xb3   :  { %v897_v10 = vpop.f32.mrf.mxu1  ;;  %v909_v16 = vadd.f32 %v908_v5, %v896_v13 }
  0xb7   :  { %v921_v9 = vpop.f32.mrf.mxu3 }
  0xb8   :  { %v922_v18 = vadd.f32 %v921_v9, %v909_v16 }
  0xba   :  { %v910_v14 = vpop.f32.mrf.mxu2 }
  0xbf   :  { %v923_v17 = vpop.f32.mrf.mxu3 }
  0xca   :  { %v934_v19 = vpop.f32.mrf.mxu0 }
  0xcb   :  { %v935_v6 = vadd.f32 %v934_v19, %v922_v18  ;;  %v947_v20 = vpop.f32.mrf.mxu1 }
  0xcc   :  { %v948_v25 = vadd.f32 %v947_v20, %v210_v22 }
  0xcd   :  { %1068 = vst [vmem:[%s1809_s3] sm:$0xff] %v935_v6 }
  0xd2   :  { %v960_v15 = vpop.f32.mrf.mxu2  ;;  %v936_v27 = vpop.f32.mrf.mxu0 }
  0xd3   :  { %v949_v21 = vpop.f32.mrf.mxu1  ;;  %v961_v26 = vadd.f32 %v960_v15, %v948_v25 }
  0xd7   :  { %v973_v23 = vpop.f32.mrf.mxu3 }
  0xd8   :  { %v974_v28 = vadd.f32 %v973_v23, %v961_v26 }
  0xda   :  { %v962_v24 = vpop.f32.mrf.mxu2 }
  0xdf   :  { %v975_v11 = vpop.f32.mrf.mxu3 }
  0xea   :  { %v986_v29 = vpop.f32.mrf.mxu0 }
  0xeb   :  { %v987_v30 = vadd.f32 %v986_v29, %v974_v28  ;;  %v999_v31 = vpop.f32.mrf.mxu1 }
  0xed   :  { %v1000_v32 = vadd.f32 %v999_v31, %v987_v30 }
  0xef   :  { %1069 = vst [vmem:[%s1809_s3 + $0x8] sm:$0xff] %v1000_v32 }
  0xf2   :  { %v1012_v33 = vpop.f32.mrf.mxu2  ;;  %v988_v34 = vpop.f32.mrf.mxu0 }
  0xf3   :  { %v1001_v35 = vpop.f32.mrf.mxu1  ;;  %v1013_v40 = vadd.f32 %v1012_v33, %v211_v38 }
  0xf7   :  { %v1025_v36 = vpop.f32.mrf.mxu3 }
  0xf8   :  { %v1026_v41 = vadd.f32 %v1025_v36, %v1013_v40 }
  0xfa   :  { %v1014_v37 = vpop.f32.mrf.mxu2 }
  0xff   :  { %v1027_v39 = vpop.f32.mrf.mxu3 }
 0x10a   :  { %v1038_v42 = vpop.f32.mrf.mxu0 }
 0x10b   :  { %v1051_v43 = vpop.f32.mrf.mxu1  ;;  %v1039_v44 = vadd.f32 %v1038_v42, %v1026_v41 }
 0x10d   :  { %v1052_v45 = vadd.f32 %v1051_v43, %v1039_v44 }
 0x112   :  { %v1064_v46 = vpop.f32.mrf.mxu2  ;;  %v1040_v12 = vpop.f32.mrf.mxu0 }
 0x113   :  { %v1065_v47 = vadd.f32 %v1064_v46, %v1052_v45  ;;  %v1053_v48 = vpop.f32.mrf.mxu1 }
 0x115   :  { %1070 = vst [vmem:[%s1809_s3 + $0x10] sm:$0xff] %v1065_v47 }
 0x11a   :  { %v1066_v49 = vpop.f32.mrf.mxu2 }
 0x11b   :  { %1075 = vsyncpa [#allocation3], 1 }
 0x11c   :  { %1076 = vsyncpa [#allocation5], 1 }

// kernel: forward.3
= control target key start
LH: loop header
LB: loop body
LE: loop exit
PB: predicated region body
PF: predicated region fallthrough
CT: control target
= control target key end

     0   :  { %s19537_s0 = inlined_call_operand.vmem [shape: bf16[2,8,384], index: 0, kind: input, shape index: {}]   ;;  %s19538_s1 = inlined_call_operand.hbm [shape: f32[12,1,384], index: 1, kind: input, shape index: {}]   ;;  %s19539_s2 = inlined_call_operand.hbm [shape: f32[12,1,384], index: 2, kind: input, shape index: {}]   ;;  %s19540_s3 = inlined_call_operand.hbm [shape: bf16[12,384,1152], index: 3, kind: input, shape index: {}]   ;;  %s19541_s4 = inlined_call_operand.hbm [shape: f32[12,1,1152], index: 4, kind: input, shape index: {}]   ;;  %s19542_s5 = inlined_call_operand.hbm [shape: bf16[12,384,384], index: 5, kind: input, shape index: {}]   ;;  %s19543_s6 = inlined_call_operand.hbm [shape: f32[12,1,384], index: 6, kind: input, shape index: {}]   ;;  %s19544_s7 = inlined_call_operand.hbm [shape: f32[12,1,384], index: 7, kind: input, shape index: {}]   ;;  %s19545_s8 = inlined_call_operand.hbm [shape: f32[12,1,384], index: 8, kind: input, shape index: {}]   ;;  %s19546_s9 = inlined_call_operand.hbm [shape: f32[12,1,384], index: 9, kind: input, shape index: {}]   ;;  %s19547_s10 = inlined_call_operand.hbm [shape: bf16[12,384,1536], index: 10, kind: input, shape index: {}]   ;;  %s19548_s11 = inlined_call_operand.hbm [shape: f32[12,1,1536], index: 11, kind: input, shape index: {}]   ;;  %s19549_s12 = inlined_call_operand.hbm [shape: bf16[12,1536,384], index: 12, kind: input, shape index: {}]   ;;  %s19550_s13 = inlined_call_operand.hbm [shape: f32[12,1,384], index: 13, kind: input, shape index: {}]   ;;  %s19551_s14 = inlined_call_operand.hbm [shape: f32[12,1,384], index: 14, kind: input, shape index: {}]   ;;  %s19552_s15 = inlined_call_operand.hbm [shape: f32[1,384], index: 15, kind: input, shape index: {}]   ;;  %s19553_s16 = inlined_call_operand.hbm [shape: f32[1,384], index: 16, kind: input, shape index: {}]   ;;  %s19554_s17 = inlined_call_operand.hbm [shape: bf16[384,256], index: 17, kind: input, shape index: {}]   ;;  %s19555_s18 = inlined_call_operand.hbm [shape: f32[1,256], index: 18, kind: input, shape index: {}]   ;;  %s19556_s19 = inlined_call_operand.vmem [shape: bf16[256,3], index: 19, kind: input, shape index: {}]   ;;  %s19557_s20 = inlined_call_operand.hbm [shape: f32[1,3], index: 20, kind: input, shape index: {}]   ;;  %s19558_s21 = inlined_call_operand.hbm [shape: f32[2,1,3], index: 21, kind: output, shape index: {}]  }
   0x1   :  { %19583 = sst [smem:[#allocation60_spill]] %s19537_s0 }
   0x2   :  { %19584 = sst [smem:[#allocation61_spill]] %s19538_s1 }
   0x3   :  { %19585 = sst [smem:[#allocation62_spill]] %s19539_s2 }
   0x4   :  { %19586 = sst [smem:[#allocation63_spill]] %s19540_s3 }
   0x5   :  { %19587 = sst [smem:[#allocation64_spill]] %s19541_s4 }
   0x6   :  { %19588 = sst [smem:[#allocation65_spill]] %s19542_s5 }
   0x7   :  { %19589 = sst [smem:[#allocation66_spill]] %s19543_s6 }
   0x8   :  { %19590 = sst [smem:[#allocation67_spill]] %s19545_s8 }
   0x9   :  { %19591 = sst [smem:[#allocation68_spill]] %s19548_s11 }
   0xa   :  { %19592 = sst [smem:[#allocation69_spill]] %s19550_s13 }
   0xb   :  { %19593 = sst [smem:[#allocation70_spill]] %s19551_s14 }
   0xc   :  { %19594 = sst [smem:[#allocation71_spill]] %s19552_s15 }
   0xd   :  { %19595 = sst [smem:[#allocation72_spill]] %s19553_s16 }
   0xe   :  { %19596 = sst [smem:[#allocation73_spill]] %s19554_s17 }
   0xf   :  { %19597 = sst [smem:[#allocation74_spill]] %s19555_s18 }
  0x10   :  { %19598 = sst [smem:[#allocation75_spill]] %s19556_s19 }
  0x11   :  { %19599 = sst [smem:[#allocation76_spill]] %s19557_s20 }
  0x12   :  { %19600 = sst [smem:[#allocation77_spill]] %s19558_s21 }
  0x13   :  { %26 = vsyncpa [#allocation4], 0 }
  0x14   :  { %28 = vsyncpa [#allocation4 + $0x1], 0 }
  0x15   :  { %29 = vsyncpa [#allocation7], 0 }
  0x16   :  { %31 = vsyncpa [#allocation7 + $0x1], 0 }
  0x17   :  { %32 = vsyncpa [#allocation10], 0 }
  0x18   :  { %34 = vsyncpa [#allocation10 + $0x1], 0 }
  0x19   :  { %35 = vsyncpa [#allocation13], 0 }
  0x1a   :  { %37 = vsyncpa [#allocation13 + $0x1], 0 }
  0x1b   :  { %38 = vsyncpa [#allocation16], 0 }
  0x1c   :  { %40 = vsyncpa [#allocation16 + $0x1], 0 }
  0x1d   :  { %41 = vsyncpa [#allocation19], 0 }
  0x1e   :  { %43 = vsyncpa [#allocation19 + $0x1], 0 }
  0x1f   :  { %44 = vsyncpa [#allocation22], 0 }
  0x20   :  { %46 = vsyncpa [#allocation22 + $0x1], 0 }
  0x21   :  { %47 = vsyncpa [#allocation25], 0 }
  0x22   :  { %49 = vsyncpa [#allocation25 + $0x1], 0 }
  0x23   :  { %50 = vsyncpa [#allocation28], 0 }
  0x24   :  { %51 = vsyncpa [#allocation31], 0 }
  0x25   :  { %52 = vsyncpa [#allocation5], 0 }
  0x26   :  { %54 = vsyncpa [#allocation5 + $0x1], 0  ;;  %s16093_s2 = smov 0   ;;  %s16095_s25 = smov 0  }
  0x27   :  { %s16097_s26 = smov 0   ;;  %s16099_s27 = smov 0  }
  0x28   :  { %s16101_s3 = smov 0   ;;  %s16103_s28 = smov 0  }
  0x29   :  { %s16105_s29 = smov 0   ;;  %s16107_s0 = smov 0  }
  0x2a   :  { %s16109_s4 = smov 0   ;;  %s16111_s30 = smov 0  }
  0x2b   :  { %s16113_s5 = smov 0  }
  0x2c LB: > { %19601 = sst [smem:[#allocation46_spill]] %s15925_s2  ;;  %s16147_s22 = sadd.s32 4294967295, %s15965_s5   ;;  %s15965_s5 = sphi %s16113_s5, %s60_s5   ;;  %s15961_s30 = sphi %s16111_s30, %s19684_s30   ;;  %s15957_s4 = sphi %s16109_s4, %s19688_s4   ;;  %s15953_s0 = sphi %s16107_s0, %s19682_s0   ;;  %s15949_s29 = sphi %s16105_s29, %s19687_s29   ;;  %s15945_s28 = sphi %s16103_s28, %s19681_s28   ;;  %s15941_s3 = sphi %s16101_s3, %s19686_s3   ;;  %s15937_s27 = sphi %s16099_s27, %s19685_s27   ;;  %s15933_s26 = sphi %s16097_s26, %s19679_s26   ;;  %s15929_s25 = sphi %s16095_s25, %s19678_s25   ;;  %s15925_s2 = sphi %s16093_s2, %s19677_s2  }
  0x2d   : > { %19602 = sst [smem:[#allocation47_spill]] %s15929_s25  ;;  %s10280_s23 = sadd.s32 4294967294, %s15965_s5  }
  0x2e   : > { %19603 = sst [smem:[#allocation48_spill]] %s15933_s26  ;;  %s69_s1 = sadd.s32 1, %s15957_s4 }
  0x2f   : > { %19604 = sst [smem:[#allocation49_spill]] %s15945_s28  ;;  %s72_s24 = sadd.s32 1, %s15961_s30 }
  0x30   : > { %19605 = sst [smem:[#allocation50_spill]] %s15949_s29  ;;  %p70_p0 = scmp.ge.s32.totalorder %s69_s1, 12 }
  0x31   : > { %19606 = sst [smem:[#allocation51_spill]] %s15953_s0  ;;  %s105_s21 = sadd.s32 1, %s15945_s28 }
  0x32   : > { %19607 = sst [smem:[#allocation52_spill]] %s15961_s30  ;;  %p112_p1 = scmp.ne.s32.totalorder %s15945_s28, %s15941_s3 }
  0x33   : > { %19608 = sst [smem:[#allocation53_spill]] %s15965_s5  ;;  %p113_p2 = scmp.eq.s32.totalorder %s15965_s5, 0 }
  0x34   : > { %s19690_s1 = smov (%p70_p0, %s69_s1), 0  ;;  %s19692_s24 = smov (!%p70_p0, %s72_s24), %s15961_s30 }
  0x35   : > { %19609 = sst [smem:[#allocation54_spill]] %s19690_s1  ;;  %s102_s19 = ssub.s32 %s15957_s4, %s19690_s1 }
  0x36   : > { %p16161_p3 = por %p113_p2, %p112_p1  ;;  %p74_p4 = scmp.ge.s32.totalorder %s19692_s24, 2 }
  0x37   : > { %p103_p5 = scmp.eq.s32.totalorder %s102_s19, 0  ;;  %p118_p6 = scmp.ne.s32.totalorder %s15941_s3, %s15937_s27 }
  0x38   : > { %p119_p7 = scmp.eq.s32.totalorder %s16147_s22, 0  ;;  %s19694_s24 = smov (%p74_p4, %s19692_s24), 0 }
  0x39   : > { %19611 = sst [smem:[#allocation55_spill]] %s19694_s24  ;;  %s592_s14 = ssub.s32 %s15961_s30, %s19694_s24 }
  0x3a   : > { %s16170_s0 = scalar_select %p103_p5, %s15945_s28, %s105_s21  }
  0x3b   : > { %p16174_p8 = por %p119_p7, %p118_p6  ;;  %p593_p9 = scmp.eq.s32.totalorder %s592_s14, 0 }
  0x3c   : > { %19612 = sst [smem:[#allocation56_spill]] %s16170_s0  ;;  %s595_s13 = sadd.s32 1, %s15933_s26 }
  0x3d   : > { %p605_p10 = scmp.ne.s32.totalorder %s15933_s26, %s15929_s25  ;;  %p606_p11 = scmp.eq.s32.totalorder %s16147_s22, 23 }
  0x3e   : > { %s16185_s11 = scalar_select %p593_p9, %s15933_s26, %s595_s13  }
  0x3f   : > { %p16187_p12 = por %p606_p11, %p605_p10  ;;  %p611_p13 = scmp.ne.s32.totalorder %s15929_s25, %s15925_s2 }
  0x40   : > { %19614 = sst [smem:[#allocation57_spill]] %s16185_s11  ;;  %p612_p0 = scmp.eq.s32.totalorder %s10280_s23, 23 }
  0x41   : > { %s19615_s19 = scalar_select %p16187_p12, 1, 0 }
  0x42   : > { %p10281_p1 = scmp.ge.s32.totalorder %s15965_s5, 1  ;;  %p619_p2 = scmp.lt.s32.totalorder %s15965_s5, 25 }
  0x43   : > { %19616 = sst [smem:[#allocation58_spill]] %s19615_s19  ;;  %p16195_p4 = por %p612_p0, %p611_p13 }
  0x44   : > { %s19619_s16 = sld [smem:[#allocation72_spill]]  ;;  %p16202_p5 = pnand %p10281_p1, %p619_p2 }
  0x45   : > { %s19617_s21 = scalar_select %p16195_p4, 1, 0 }
  0x46   : > { %s19621_s18 = sld [smem:[#allocation74_spill]]  ;;  %p15040_p6 = pneg %p16202_p5 }
  0x47   : > { %19618 = sst [smem:[#allocation59_spill]] %s19617_s21  ;;  %s15967_s11 = smov [#allocation27]  }
  0x48   : > { %s645_s26 = sshll.u32 %s15967_s11, 4  ;;  %p16213_p9 = pnand %p15040_p6, %p119_p7  ;;  %s646_s26 = int_to_ptr.vmem [resolvable:$true] %s645_s26 }
  0x49   : > { %s15968_s14 = smov [#allocation30]   ;;  %s19623_s15 = sld [smem:[#allocation71_spill]] }
  0x4a   : > { %s643_s24 = sshll.u32 %s19619_s16, 4  ;;  %s671_s16 = sshll.u32 %s15968_s14, 4  ;;  %s644_s24 = int_to_ptr.hbm [resolvable:$true] %s643_s24  ;;  %s672_s16 = int_to_ptr.vmem [resolvable:$true] %s671_s16 }
  0x4b   : > { %15046 = dma.hbm_to_vmem [thread:$0]  (!%p16213_p9), %s644_s24, 48, %s646_s26, [#allocation28]  }
  0x4c   : > { %s669_s23 = sshll.u32 %s19621_s18, 4  ;;  %s15969_s18 = smov [#allocation26]   ;;  %s670_s23 = int_to_ptr.hbm [resolvable:$true] %s669_s23 }
  0x4d   : > { %15052 = dma.hbm_to_vmem [thread:$0]  (!%p16213_p9), %s670_s23, 32, %s672_s16, [#allocation31]  }
  0x4e   : > { %s633_s21 = sshll.u32 %s15969_s18, 4  ;;  %s19624_s17 = sld [smem:[#allocation73_spill]]  ;;  %s634_s21 = int_to_ptr.vmem [resolvable:$true] %s633_s21 }
  0x4f   : > { %s631_s30 = sshll.u32 %s19623_s15, 4  ;;  %s15970_s26 = smov [#allocation29]   ;;  %s632_s30 = int_to_ptr.hbm [resolvable:$true] %s631_s30 }
  0x50   : > { %15043 = dma.hbm_to_vmem [thread:$0]  (!%p16213_p9), %s632_s30, 48, %s634_s21, [#allocation25]  }
  0x51   : > { %s656_s24 = sshll.u32 %s15970_s26, 4  ;;  %s19625_s20 = sld [smem:[#allocation76_spill]]  ;;  %s657_s24 = int_to_ptr.vmem [resolvable:$true] %s656_s24 }
  0x52   : > { %s15971_s0 = smov 128   ;;  %s15972_s11 = smov 8  }
  0x53   : > { %s15973_s18 = smov [#allocation32]   ;;  %p10287_p10 = scmp.ge.s32.totalorder %s15965_s5, 24 }
  0x54   : > { %s654_s25 = sshll.u32 %s19624_s17, 4  ;;  %s686_s2 = sshll.u32 %s15973_s18, 4  ;;  %s655_s25 = int_to_ptr.hbm [resolvable:$true] %s654_s25  ;;  %s687_s2 = int_to_ptr.vmem [resolvable:$true] %s686_s2 }
  0x55   : > { %15049 = dma.hbm_to_vmem [thread:$0]  (!%p16213_p9), %s655_s25, 6144, %s657_s24, [#allocation28], %s15971_s0, %s15971_s0, %s15972_s11  }
  0x56   : > { %693 = sbr.rel (%p10287_p10) target bundleno = 156 (0x9c), region = 40  ;;  %s16238_s19 = sand.u32 (!%p10287_p10), 1, %s15945_s28  }
  0x57   : > { %s684_s14 = sshll.u32 %s19625_s20, 4  ;;  %s16241_s21 = smul.u32 (!%p10287_p10), 3, %s15957_s4  ;;  %s685_s14 = int_to_ptr.hbm [resolvable:$true] %s684_s14 }
  0x58   : > { %15055 = dma.hbm_to_vmem [thread:$0]  (!%p16213_p9), %s685_s14, 16, %s687_s2, [#allocation31]  }
  0x59   : > { %s16244_s25 = smul.u32 (!%p10287_p10), 3, %s16238_s19  ;;  %s16247_s27 = sand.u32 (!%p10287_p10), 1, %s15965_s5  }
  0x5a   : > { %s19626_s24 = sld [smem:[#allocation62_spill]] (!%p10287_p10)  ;;  %s19578_s11 = scalar_lea.sflag (!%p10287_p10), [#allocation7], %s16247_s27 }
  0x5b   : > { %s728_s14 = scalar_lea.vmem [#allocation6], %s16244_s25  ;;  %s14961_s18 = smul.u32 9, %s16238_s19 }
  0x5c   : > { %s736_s0 = sshll.u32 %s728_s14, 4  ;;  %s14962_s2 = smul.u32 9, %s15957_s4  ;;  %s737_s0 = int_to_ptr.vmem [resolvable:$true] %s736_s0 }
  0x5d   : > { %s19627_s6 = sld [smem:[#allocation66_spill]]  ;;  %s769_s20 = scalar_lea.vmem [#allocation9], %s14961_s18 }
  0x5e   : > { %s19628_s17 = sld [smem:[#allocation64_spill]]  ;;  %s777_s28 = sshll.u32 %s769_s20, 4  ;;  %s778_s28 = int_to_ptr.vmem [resolvable:$true] %s777_s28 }
  0x5f   : > { %s810_s15 = scalar_lea.vmem [#allocation12], %s16244_s25  ;;  %s19629_s8 = sld [smem:[#allocation67_spill]] }
  0x60   : > { %s732_s16 = scalar_lea.hbm %s19626_s24, %s16241_s21  ;;  %s818_s30 = sshll.u32 %s810_s15, 4  ;;  %s819_s30 = int_to_ptr.vmem [resolvable:$true] %s818_s30 }
  0x61   : > { %s734_s23 = sshll.u32 %s732_s16, 4  ;;  %s735_s23 = int_to_ptr.hbm [resolvable:$true] %s734_s23 }
  0x62   : > { %15001 = dma.hbm_to_vmem [thread:$0]  (%p16161_p3), %s735_s23, 48, %s737_s0, %s19578_s11  }
  0x63   : > { %s814_s24 = scalar_lea.hbm %s19627_s6, %s16241_s21  ;;  %s19576_s0 = scalar_lea.sflag [#allocation10], %s16247_s27 }
  0x64   : > { %s773_s14 = scalar_lea.hbm %s19628_s17, %s14962_s2  ;;  %s816_s23 = sshll.u32 %s814_s24, 4  ;;  %s817_s23 = int_to_ptr.hbm [resolvable:$true] %s816_s23 }
  0x65   : > { %s775_s5 = sshll.u32 %s773_s14, 4  ;;  %s19575_s17 = scalar_lea.sflag [#allocation13], %s16247_s27  ;;  %s776_s5 = int_to_ptr.hbm [resolvable:$true] %s775_s5 }
  0x66   : > { %15003 = dma.hbm_to_vmem [thread:$0]  (%p16161_p3), %s776_s5, 144, %s778_s28, %s19576_s0  }
  0x67   : > { %15005 = dma.hbm_to_vmem [thread:$0]  (%p16161_p3), %s817_s23, 48, %s819_s30, %s19575_s17  }
  0x68   : > { %s852_s2 = scalar_lea.hbm %s19629_s8, %s16241_s21  ;;  %s848_s24 = scalar_lea.vmem [#allocation15], %s16244_s25 }
  0x69   : > { %s854_s26 = sshll.u32 %s852_s2, 4  ;;  %s856_s16 = sshll.u32 %s848_s24, 4  ;;  %s855_s26 = int_to_ptr.hbm [resolvable:$true] %s854_s26  ;;  %s857_s16 = int_to_ptr.vmem [resolvable:$true] %s856_s16 }
  0x6a   : > { %s19577_s28 = scalar_lea.sflag [#allocation16], %s16247_s27  ;;  %s14973_s5 = smul.u32 2304, %s16238_s19 }
  0x6b   : > { %15007 = dma.hbm_to_vmem [thread:$0]  (%p16161_p3), %s855_s26, 48, %s857_s16, %s19577_s28  }
  0x6c   : > { %s14974_s14 = smul.u32 2304, %s15957_s4  ;;  %s886_s20 = scalar_lea.vmem [#allocation18], %s14973_s5 }
  0x6d   : > { %s894_s18 = sshll.u32 %s886_s20, 4  ;;  %s19579_s24 = scalar_lea.sflag [#allocation19], %s16247_s27  ;;  %s895_s18 = int_to_ptr.vmem [resolvable:$true] %s894_s18 }
  0x6e   : > { %s891_s30 = scalar_lea.hbm %s19547_s10, %s14974_s14  ;;  %s15974_s17 = smov 768  }
  0x6f   : > { %s892_s2 = sshll.u32 %s891_s30, 4  ;;  %s15975_s0 = smov 48   ;;  %s893_s2 = int_to_ptr.hbm [resolvable:$true] %s892_s2 }
  0x70   : > { %15009 = dma.hbm_to_vmem [thread:$0]  (%p16161_p3), %s893_s2, 36864, %s895_s18, %s19579_s24, %s15974_s17, %s15974_s17, %s15975_s0  }
  0x71   : > { %s932_s15 = scalar_lea.hbm %s19549_s12, %s14974_s14  ;;  %s927_s30 = scalar_lea.vmem [#allocation21], %s14973_s5 }
  0x72   : > { %s933_s23 = sshll.u32 %s932_s15, 4  ;;  %s935_s20 = sshll.u32 %s927_s30, 4  ;;  %s934_s23 = int_to_ptr.hbm [resolvable:$true] %s933_s23  ;;  %s936_s20 = int_to_ptr.vmem [resolvable:$true] %s935_s20 }
  0x73   : > { %s19580_s28 = scalar_lea.sflag [#allocation22], %s16247_s27  ;;  %s19581_s11 = smov 192  }
  0x74   : > { %s19582_s6 = smov 12   ;;  %s19630_s14 = sld [smem:[#allocation61_spill]] }
  0x75   : > { %15011 = dma.hbm_to_vmem [thread:$0]  (%p16161_p3), %s934_s23, 36864, %s936_s20, %s19580_s28, %s19581_s11, %s19581_s11, %s19582_s6  }
  0x76   : > { %s709_s5 = scalar_lea.vmem [#allocation3], %s16244_s25  ;;  %s14959_s16 = smul.u32 1728, %s16238_s19 }
  0x77   : > { %s717_s2 = sshll.u32 %s709_s5, 4  ;;  %s706_s15 = scalar_lea.sflag [#allocation4], %s16238_s19  ;;  %s718_s2 = int_to_ptr.vmem [resolvable:$true] %s717_s2 }
  0x78   : > { %s14960_s30 = smul.u32 1728, %s15957_s4  ;;  %s747_s24 = scalar_lea.vmem [#allocation8], %s14959_s16 }
  0x79   : > { %s755_s23 = sshll.u32 %s747_s24, 4  ;;  %s19631_s17 = sld [smem:[#allocation63_spill]]  ;;  %s756_s23 = int_to_ptr.vmem [resolvable:$true] %s755_s23 }
  0x7a   : > { %s713_s18 = scalar_lea.hbm %s19630_s14, %s16241_s21  ;;  %s14963_s5 = smul.u32 576, %s16238_s19 }
  0x7b   : > { %s715_s26 = sshll.u32 %s713_s18, 4  ;;  %s15978_s28 = smov 576   ;;  %s716_s26 = int_to_ptr.hbm [resolvable:$true] %s715_s26 }
  0x7c   : > { %15000 = dma.hbm_to_vmem [thread:$0]  (%p16161_p3), %s716_s26, 48, %s718_s2, %s706_s15  }
  0x7d   : > { %s15979_s11 = smov 36   ;;  %s19632_s6 = scalar_lea.sflag [#allocation7], %s16247_s27 }
  0x7e   : > { %s14964_s24 = smul.u32 576, %s15957_s4  ;;  %s788_s2 = scalar_lea.vmem [#allocation11], %s14963_s5 }
  0x7f   : > { %s752_s14 = scalar_lea.hbm %s19631_s17, %s14960_s30  ;;  %s796_s26 = sshll.u32 %s788_s2, 4  ;;  %s797_s26 = int_to_ptr.vmem [resolvable:$true] %s796_s26 }
  0x80   : > { %s753_s18 = sshll.u32 %s752_s14, 4  ;;  %s19633_s30 = sld [smem:[#allocation65_spill]]  ;;  %s754_s18 = int_to_ptr.hbm [resolvable:$true] %s753_s18 }
  0x81   : > { %15002 = dma.hbm_to_vmem [thread:$0]  (%p16161_p3), %s754_s18, 27648, %s756_s23, %s19632_s6, %s15978_s28, %s15978_s28, %s15979_s11  }
  0x82   : > { %s833_s8 = scalar_lea.hbm %s19544_s7, %s16241_s21  ;;  %s19634_s11 = smov 12  }
  0x83   : > { %s835_s6 = sshll.u32 %s833_s8, 4  ;;  %s19635_s28 = smov 192   ;;  %s836_s6 = int_to_ptr.hbm [resolvable:$true] %s835_s6 }
  0x84   : > { %s19636_s23 = scalar_lea.sflag [#allocation10], %s16247_s27  ;;  %s829_s18 = scalar_lea.vmem [#allocation14], %s16244_s25 }
  0x85   : > { %s837_s5 = sshll.u32 %s829_s18, 4  ;;  %s871_s15 = scalar_lea.hbm %s19546_s9, %s16241_s21  ;;  %s838_s5 = int_to_ptr.vmem [resolvable:$true] %s837_s5 }
  0x86   : > { %s793_s20 = scalar_lea.hbm %s19633_s30, %s14964_s24  ;;  %s19637_s24 = scalar_lea.sflag [#allocation13], %s16247_s27 }
  0x87   : > { %s794_s0 = sshll.u32 %s793_s20, 4  ;;  %s867_s30 = scalar_lea.vmem [#allocation17], %s16244_s25  ;;  %s795_s0 = int_to_ptr.hbm [resolvable:$true] %s794_s0 }
  0x88   : > { %15004 = dma.hbm_to_vmem [thread:$0]  (%p16161_p3), %s795_s0, 9216, %s797_s26, %s19636_s23, %s19635_s28, %s19635_s28, %s19634_s11  }
  0x89   : > { %15006 = dma.hbm_to_vmem [thread:$0]  (%p16161_p3), %s836_s6, 48, %s838_s5, %s19637_s24  }
  0x8a   : > { %s875_s8 = sshll.u32 %s867_s30, 4  ;;  %s873_s20 = sshll.u32 %s871_s15, 4  ;;  %s876_s8 = int_to_ptr.vmem [resolvable:$true] %s875_s8  ;;  %s874_s20 = int_to_ptr.hbm [resolvable:$true] %s873_s20 }
  0x8b   : > { %s14975_s26 = smul.u32 12, %s16238_s19  ;;  %s19638_s0 = scalar_lea.sflag [#allocation16], %s16247_s27 }
  0x8c   : > { %15008 = dma.hbm_to_vmem [thread:$0]  (%p16161_p3), %s874_s20, 48, %s876_s8, %s19638_s0  }
  0x8d   : > { %s14976_s17 = smul.u32 12, %s15957_s4  ;;  %s908_s14 = scalar_lea.vmem [#allocation20], %s14975_s26 }
  0x8e   : > { %s916_s6 = sshll.u32 %s908_s14, 4  ;;  %s19639_s23 = sld [smem:[#allocation68_spill]]  ;;  %s917_s6 = int_to_ptr.vmem [resolvable:$true] %s916_s6 }
  0x8f   : > { %s19640_s16 = sld [smem:[#allocation69_spill]]  ;;  %s19641_s30 = scalar_lea.sflag [#allocation19], %s16247_s27 }
  0x90   : > { %s949_s8 = scalar_lea.vmem [#allocation23], %s16244_s25  ;;  %s19642_s26 = scalar_lea.sflag [#allocation22], %s16247_s27 }
  0x91   : > { %s957_s20 = sshll.u32 %s949_s8, 4  ;;  %s19643_s14 = sld [smem:[#allocation70_spill]]  ;;  %s958_s20 = int_to_ptr.vmem [resolvable:$true] %s957_s20 }
  0x92   : > { %s965_s24 = scalar_lea.sflag [#allocation25], %s16247_s27 }
  0x94   : > { %s912_s18 = scalar_lea.hbm %s19639_s23, %s14976_s17  ;;  %s968_s23 = scalar_lea.vmem [#allocation24], %s16244_s25 }
  0x95   : > { %s914_s5 = sshll.u32 %s912_s18, 4  ;;  %s953_s19 = scalar_lea.hbm %s19640_s16, %s16241_s21  ;;  %s915_s5 = int_to_ptr.hbm [resolvable:$true] %s914_s5 }
  0x96   : > { %s955_s15 = sshll.u32 %s953_s19, 4  ;;  %s976_s18 = sshll.u32 %s968_s23, 4  ;;  %s956_s15 = int_to_ptr.hbm [resolvable:$true] %s955_s15  ;;  %s977_s18 = int_to_ptr.vmem [resolvable:$true] %s976_s18 }
  0x97   : > { %15010 = dma.hbm_to_vmem [thread:$0]  (%p16161_p3), %s915_s5, 192, %s917_s6, %s19641_s30  }
  0x98   : > { %15012 = dma.hbm_to_vmem [thread:$0]  (%p16161_p3), %s956_s15, 48, %s958_s20, %s19642_s26  }
  0x99   : > { %s972_s11 = scalar_lea.hbm %s19643_s14, %s16241_s21 }
  0x9a   : > { %s974_s28 = sshll.u32 %s972_s11, 4  ;;  %s975_s28 = int_to_ptr.hbm [resolvable:$true] %s974_s28 }
  0x9b   : > { %15013 = dma.hbm_to_vmem [thread:$0]  (%p16161_p3), %s975_s28, 48, %s977_s18, %s965_s24  }
  0x9c PF: > { %985 = sbr.rel (%p16202_p5) target bundleno = 3460 (0xd84), region = 104  ;;  %s16386_s6 = sand.u32 (!%p16202_p5), 1, %s15941_s3  }
  0x9d   : > { %s16389_s5 = smul.u32 (!%p16202_p5), 3, %s16386_s6  ;;  %s988_s21 = scalar_lea.sflag (!%p16202_p5), [#allocation4], %s16386_s6 }
  0x9f   : > { %s991_s25 = scalar_lea.vmem (!%p16202_p5), [#allocation3], %s16389_s5 }
  0xa1   : > { %15876 = dma.done.wait (%p16174_p8), %s988_s21, 48  }
  0xa2   : > { %15878 = vsyncadd (%p16174_p8), %s988_s21, 4294967248  ;;  %s16398_s29 = sand.u32 1, %s16147_s22   ;;  %s1001_s27 = scalar_lea.vmem [#allocation6], %s16389_s5 }
  0xa3   : > { %s998_s13 = scalar_lea.sflag [#allocation7], %s16398_s29 }
  0xa4   : > { %15880 = dma.done.wait (%p16174_p8), %s998_s13, 27696  }
  0xa5   : > { %15882 = vsyncadd (%p16174_p8), %s998_s13, 4294939600  ;;  %s14984_s2 = smul.u32 1728, %s16386_s6  ;;  %s1018_s15 = scalar_lea.sflag [#allocation10], %s16398_s29 }
  0xa6   : > { %s14985_s16 = smul.u32 9, %s16386_s6 }
  0xa7   : > { %s16408_s19 = scalar_lea.vmem [#allocation8], %s14984_s2 }
  0xa8   : > { %s16411_s30 = scalar_lea.vmem [#allocation9], %s14985_s16 }
  0xa9   : > { %15884 = dma.done.wait (%p16174_p8), %s1018_s15, 9360  }
  0xaa   : > { %15886 = vsyncadd (%p16174_p8), %s1018_s15, 4294957936  ;;  %s14986_s8 = smul.u32 576, %s16386_s6  ;;  %s1038_s26 = scalar_lea.sflag [#allocation13], %s16398_s29 }
  0xab   : > { %s1041_s0 = scalar_lea.vmem [#allocation12], %s16389_s5 }
  0xac   : > { %s16418_s20 = scalar_lea.vmem [#allocation11], %s14986_s8 }
  0xad   : > { %15888 = dma.done.wait (%p16174_p8), %s1038_s26, 96  }
  0xae   : > { %15890 = vsyncadd (%p16174_p8), %s1038_s26, 4294967200  ;;  %s1051_s17 = scalar_lea.vmem [#allocation14], %s16389_s5  ;;  %s1058_s14 = scalar_lea.sflag [#allocation16], %s16398_s29 }
  0xaf   : > { %s1061_s11 = scalar_lea.vmem [#allocation15], %s16389_s5 }
  0xb0   : > { %15892 = dma.done.wait (%p16174_p8), %s1058_s14, 96  }
  0xb1   : > { %15894 = vsyncadd (%p16174_p8), %s1058_s14, 4294967200  ;;  %s14987_s28 = smul.u32 2304, %s16386_s6  ;;  %s1071_s23 = scalar_lea.vmem [#allocation17], %s16389_s5 }
  0xb2   : > { %s1078_s18 = scalar_lea.sflag [#allocation19], %s16398_s29 }
  0xb3   : > { %s16436_s24 = scalar_lea.vmem [#allocation18], %s14987_s28 }
  0xb4   : > { %15896 = dma.done.wait (%p16174_p8), %s1078_s18, 37056  }
  0xb5   : > { %15898 = vsyncadd (%p16174_p8), %s1078_s18, 4294930240  ;;  %s14988_s21 = smul.u32 12, %s16386_s6  ;;  %s1098_s2 = scalar_lea.sflag [#allocation22], %s16398_s29 }
  0xb6   : > { %s16446_s16 = scalar_lea.vmem [#allocation21], %s14987_s28 }
  0xb7   : > { %s16443_s13 = scalar_lea.vmem [#allocation20], %s14988_s21 }
  0xb8   : > { %15900 = dma.done.wait (%p16174_p8), %s1098_s2, 36912  }
  0xb9   : > { %15902 = vsyncadd (%p16174_p8), %s1098_s2, 4294930384  ;;  %s1111_s15 = scalar_lea.vmem [#allocation23], %s16389_s5  ;;  %s1118_s8 = scalar_lea.sflag [#allocation25], %s16398_s29 }
  0xba   : > { %15904 = dma.done.wait (%p16174_p8), %s1118_s8, 48  }
  0xbb   : > { %15906 = vsyncadd (%p16174_p8), %s1118_s8, 4294967248 }
  0xbc   : > { %15908 = dma.done.wait (%p119_p7), [#allocation25], 48  }
  0xbd   : > { %15910 = vsyncadd (%p119_p7), [#allocation25], 4294967248 }
  0xbe   : > { %15912 = dma.done.wait (%p119_p7), [#allocation28], 6192  }
  0xbf   : > { %15914 = vsyncadd (%p119_p7), [#allocation28], 4294961104 }
  0xc0   : > { %15916 = dma.done.wait (%p119_p7), [#allocation31], 48  }
  0xc1   : > { %15918 = vsyncadd (%p119_p7), [#allocation31], 4294967248  ;;  %s19644_s1 = sld [smem:[#allocation47_spill]] }
  0xc2   : > { %s19645_s6 = sld [smem:[#allocation51_spill]] }
  0xc3   : > { %s19646_s21 = sld [smem:[#allocation60_spill]] }
  0xc4   : > { %s19647_s26 = sld [smem:[#allocation50_spill]] }
  0xc7   : > { %s1273_s29 = sand.u32 1, %s19644_s1  }
  0xc8   : > { %p1275_p3 = scmp.lt.s32.totalorder %s19645_s6, 1  ;;  %s16479_s8 = scalar_lea.vmem [#allocation33], %s1273_s29 }
  0xca   : > { %s19696_s6 = smov (!%p1275_p3, %s19645_s6), 1  ;;  %p10299_p8 = scmp.ne.s32.totalorder %s19647_s26, 0 }
  0xcb   : > { %s14989_s14 = smul.u32 12, %s19696_s6 }
  0xcc   : > { %1284 = sbr.rel (%p10299_p8) target bundleno = 215 (0xd7), region = 184 }
  0xcd   : > { %s1279_s2 = scalar_lea.vmem %s19646_s21, %s14989_s14 }
  0xd1   : > { %v1285_v0 = vld [vmem:[%s1279_s2] sm:$0xff]  ;;  %v1286_v1 = vld [vmem:[%s1279_s2 + $0x8] sm:$0xf] }
  0xd2   : > { %v1287_v2 = vunpack.c.l.bf16 %v1285_v0  ;;  %v1288_v3 = vunpack.c.h.bf16 %v1285_v0  ;;  %v1289_v4 = vunpack.c.l.bf16 %v1286_v1 }
  0xd4   : > { %1290 = vst [vmem:[#allocation2 + $0x10] sm:$0xff] %v1287_v2 }
  0xd5   : > { %1291 = vst [vmem:[#allocation2] sm:$0xff] %v1288_v3 }
  0xd6   : > { %1292 = vst [vmem:[#allocation2 + $0x8] sm:$0xff] %v1289_v4 }
  0xd7 PF: > { %v15980_v10 = vmov 384.0   ;;  %v10554_v14 = vld [vmem:[%s16408_s19 + $0x1f8] sm:$0xf]  ;;  %v14094_v15 = vld [vmem:[%s16408_s19 + $0x218] sm:$0xf0]  ;;  %s15981_s22 = smov 64  }
  0xd8   : > { %15176 = vrcp.f32 %v15980_v10  ;;  %v10842_v16 = vld [vmem:[%s16408_s19 + $0x438] sm:$0xf]  ;;  %v10555_v17 = vor.u32 %v14094_v15, %v10554_v14  ;;  %v14166_v18 = vld [vmem:[%s16408_s19 + $0x458] sm:$0xf0]  ;;  %v10556_v24 = vld [vmem:[%s16408_s19 + $0x21c] sm:$0xf0] }
  0xd9   : > { %v11130_v19 = vld [vmem:[%s16408_s19 + $0x678] sm:$0xf]  ;;  %v14238_v20 = vld [vmem:[%s16408_s19 + $0x698] sm:$0xf0]  ;;  %v10843_v21 = vor.u32 %v14166_v18, %v10842_v16  ;;  %v10518_v25 = vld [vmem:[%s16408_s19 + $0x1b0] sm:$0xf] }
  0xda   : > { %v11131_v22 = vor.u32 %v14238_v20, %v11130_v19  ;;  %v14090_v23 = vld [vmem:[%s16408_s19 + $0x1fc] sm:$0xf]  ;;  %2724 = vmatpush.bf16.msra.mxu0 %v10555_v17  ;;  %v14085_v27 = vld [vmem:[%s16408_s19 + $0x1d0] sm:$0xf0]  ;;  %v10806_v28 = vld [vmem:[%s16408_s19 + $0x3f0] sm:$0xf] }
  0xdb   : > { %v16482_v5 = vld [vmem:[#allocation2 + $0x10] sm:$0xff]  ;;  %v10559_v26 = vor.u32 %v14090_v23, %v10556_v24  ;;  %v14157_v29 = vld [vmem:[%s16408_s19 + $0x410] sm:$0xf0]  ;;  %2737 = vmatpush.bf16.msra.mxu1 %v10843_v21  ;;  %v10519_v30 = vor.u32 %v14085_v27, %v10518_v25  ;;  %v10520_v36 = vld [vmem:[%s16408_s19 + $0x1d4] sm:$0xf0]  ;;  %vm3081_vm4 = vcmask 523264  }
  0xdc   : > { %v16484_v6 = vld [vmem:[#allocation2] sm:$0xff]  ;;  %2750 = vmatpush.bf16.msra.mxu2 %v11131_v22  ;;  %v10807_v31 = vor.u32 %v14157_v29, %v10806_v28  ;;  %v11094_v32 = vld [vmem:[%s16408_s19 + $0x630] sm:$0xf]  ;;  %v14229_v33 = vld [vmem:[%s16408_s19 + $0x650] sm:$0xf0]  ;;  %vm3119_vm5 = vcmask 1043456  }
  0xdd   : > { %v16486_v7 = vld [vmem:[#allocation2 + $0x8] sm:$0xff]  ;;  %v1298_v8 = vadd.f32 %v16484_v6, %v16482_v5  ;;  %v14081_v34 = vld [vmem:[%s16408_s19 + $0x1b4] sm:$0xf]  ;;  %2763 = vmatpush.bf16.msra.mxu3 %v10559_v26  ;;  %v11095_v35 = vor.u32 %v14229_v33, %v11094_v32  ;;  %v14076_v38 = vld [vmem:[%s16408_s19 + $0x188] sm:$0xf0]  ;;  %vm3103_vm7 = vcmask 64512  }
  0xde   : > { %v16491_v11 = vpop.eup %15176  ;;  %v10482_v37 = vld [vmem:[%s16408_s19 + $0x168] sm:$0xf]  ;;  %v10523_v39 = vor.u32 %v14081_v34, %v10520_v36  ;;  %v14148_v41 = vld [vmem:[%s16408_s19 + $0x3c8] sm:$0xf0]  ;;  %2725 = vmatpush.bf16.msra.mxu0 %v10519_v30  ;;  %v10484_v46 = vld [vmem:[%s16408_s19 + $0x18c] sm:$0xf0] }
  0xdf   : > { %v1299_v9 = vadd.f32 %v1298_v8, %v16486_v7  ;;  %v1303_v12 = vmul.f32 384.0, %v16491_v11  ;;  %v10770_v40 = vld [vmem:[%s16408_s19 + $0x3a8] sm:$0xf]  ;;  %v10483_v43 = vor.u32 %v14076_v38, %v10482_v37  ;;  %v14220_v44 = vld [vmem:[%s16408_s19 + $0x608] sm:$0xf0]  ;;  %2738 = vmatpush.bf16.msra.mxu1 %v10807_v31  ;;  %vm1307_vm0 = vweird.f32 %v16491_v11 }
  0xe0   : > { %v11058_v42 = vld [vmem:[%s16408_s19 + $0x5e8] sm:$0xf]  ;;  %v14072_v45 = vld [vmem:[%s16408_s19 + $0x16c] sm:$0xf]  ;;  %2751 = vmatpush.bf16.msra.mxu2 %v11095_v35  ;;  %v10771_v47 = vor.u32 %v14148_v41, %v10770_v40  ;;  %v10446_v49 = vld [vmem:[%s16408_s19 + $0x120] sm:$0xf] }
  0xe1   : > { %1300 = vadd.xlane.f32.xlu0 %v1299_v9  ;;  %v1304_v13 = vsub.f32 1.0, %v1303_v12  ;;  %v11059_v48 = vor.u32 %v14220_v44, %v11058_v42  ;;  %v14067_v50 = vld [vmem:[%s16408_s19 + $0x140] sm:$0xf0]  ;;  %v10734_v51 = vld [vmem:[%s16408_s19 + $0x360] sm:$0xf]  ;;  %2764 = vmatpush.bf16.msra.mxu3 %v10523_v39  ;;  %v10487_v52 = vor.u32 %v14072_v45, %v10484_v46 }
  0xe2   : > { %v14139_v53 = vld [vmem:[%s16408_s19 + $0x380] sm:$0xf0]  ;;  %v11022_v54 = vld [vmem:[%s16408_s19 + $0x5a0] sm:$0xf]  ;;  %v10448_v57 = vld [vmem:[%s16408_s19 + $0x144] sm:$0xf0]  ;;  %2726 = vmatpush.bf16.msra.mxu0 %v10483_v43  ;;  %v10447_v59 = vor.u32 %v14067_v50, %v10446_v49 }
  0xe3   : > { %v14211_v55 = vld [vmem:[%s16408_s19 + $0x5c0] sm:$0xf0]  ;;  %v1305_v58 = vmul.f32 %v16491_v11, %v1304_v13  ;;  %2739 = vmatpush.bf16.msra.mxu1 %v10771_v47  ;;  %v10735_v60 = vor.u32 %v14139_v53, %v10734_v51  ;;  %v10410_v62 = vld [vmem:[%s16408_s19 + $0xd8] sm:$0xf]  ;;  %v14058_v63 = vld [vmem:[%s16408_s19 + $0xf8] sm:$0xf0] }
  0xe4   : > { %v14063_v56 = vld [vmem:[%s16408_s19 + $0x124] sm:$0xf]  ;;  %2752 = vmatpush.bf16.msra.mxu2 %v11059_v48  ;;  %v11023_v61 = vor.u32 %v14211_v55, %v11022_v54  ;;  %v10698_v0 = vld [vmem:[%s16408_s19 + $0x318] sm:$0xf]  ;;  %v14130_v2 = vld [vmem:[%s16408_s19 + $0x338] sm:$0xf0]  ;;  %v10411_v12 = vor.u32 %v14058_v63, %v10410_v62 }
  0xe5   : > { %2765 = vmatpush.bf16.msra.mxu3 %v10487_v52  ;;  %v10451_v1 = vor.u32 %v14063_v56, %v10448_v57  ;;  %v10986_v3 = vld [vmem:[%s16408_s19 + $0x558] sm:$0xf]  ;;  %v14202_v4 = vld [vmem:[%s16408_s19 + $0x578] sm:$0xf0]  ;;  %v10412_v9 = vld [vmem:[%s16408_s19 + $0xfc] sm:$0xf0]  ;;  %v1306_v10 = vadd.f32 %v16491_v11, %v1305_v58  ;;  %v10699_v13 = vor.u32 %v14130_v2, %v10698_v0 }
  0xe6   : > { %v14054_v8 = vld [vmem:[%s16408_s19 + $0xdc] sm:$0xf]  ;;  %2727 = vmatpush.bf16.msra.mxu0 %v10447_v59  ;;  %v10987_v14 = vor.u32 %v14202_v4, %v10986_v3  ;;  %v10374_v15 = vld [vmem:[%s16408_s19 + $0x90] sm:$0xf]  ;;  %v14049_v16 = vld [vmem:[%s16408_s19 + $0xb0] sm:$0xf0] }
  0xe7   : > { %2740 = vmatpush.bf16.msra.mxu1 %v10735_v60  ;;  %v10662_v17 = vld [vmem:[%s16408_s19 + $0x2d0] sm:$0xf]  ;;  %v10415_v18 = vor.u32 %v14054_v8, %v10412_v9  ;;  %v14121_v19 = vld [vmem:[%s16408_s19 + $0x2f0] sm:$0xf0]  ;;  %v10376_v23 = vld [vmem:[%s16408_s19 + $0xb4] sm:$0xf0]  ;;  %v16546_v24 = vsel %vm1307_vm0, %v16491_v11, %v1306_v10  ;;  %v10375_v25 = vor.u32 %v14049_v16, %v10374_v15 }
  0xe8   : > { %2753 = vmatpush.bf16.msra.mxu2 %v11023_v61  ;;  %v10950_v20 = vld [vmem:[%s16408_s19 + $0x510] sm:$0xf]  ;;  %v14193_v21 = vld [vmem:[%s16408_s19 + $0x530] sm:$0xf0]  ;;  %v10338_v26 = vld [vmem:[%s16408_s19 + $0x48] sm:$0xf]  ;;  %v10663_v29 = vor.u32 %v14121_v19, %v10662_v17 }
  0xe9   : > { %2766 = vmatpush.bf16.msra.mxu3 %v10451_v1  ;;  %v14045_v22 = vld [vmem:[%s16408_s19 + $0x94] sm:$0xf]  ;;  %v14040_v27 = vld [vmem:[%s16408_s19 + $0x68] sm:$0xf0]  ;;  %v10626_v28 = vld [vmem:[%s16408_s19 + $0x288] sm:$0xf]  ;;  %v10951_v30 = vor.u32 %v14193_v21, %v10950_v20 }
  0xea   : > { %2728 = vmatpush.bf16.msra.mxu0 %v10411_v12  ;;  %v14112_v31 = vld [vmem:[%s16408_s19 + $0x2a8] sm:$0xf0]  ;;  %v10914_v32 = vld [vmem:[%s16408_s19 + $0x4c8] sm:$0xf]  ;;  %v10379_v35 = vor.u32 %v14045_v22, %v10376_v23  ;;  %v10340_v37 = vld [vmem:[%s16408_s19 + $0x6c] sm:$0xf0]  ;;  %v10339_v38 = vor.u32 %v14040_v27, %v10338_v26 }
  0xeb   : > { %2741 = vmatpush.bf16.msra.mxu1 %v10699_v13  ;;  %v14184_v33 = vld [vmem:[%s16408_s19 + $0x4e8] sm:$0xf0]  ;;  %v10627_v39 = vor.u32 %v14112_v31, %v10626_v28  ;;  %v10302_v47 = vld [vmem:[%s16408_s19] sm:$0xf]  ;;  %v14031_v48 = vld [vmem:[%s16408_s19 + $0x20] sm:$0xf0] }
  0xec   : > { %2754 = vmatpush.bf16.msra.mxu2 %v10987_v14  ;;  %v14036_v36 = vld [vmem:[%s16408_s19 + $0x4c] sm:$0xf]  ;;  %v10915_v40 = vor.u32 %v14184_v33, %v10914_v32  ;;  %v10590_v49 = vld [vmem:[%s16408_s19 + $0x240] sm:$0xf]  ;;  %v10303_v50 = vor.u32 %v14031_v48, %v10302_v47  ;;  %v14103_v51 = vld [vmem:[%s16408_s19 + $0x260] sm:$0xf0] }
  0xed   : > { %2767 = vmatpush.bf16.msra.mxu3 %v10415_v18  ;;  %v10343_v44 = vor.u32 %v14036_v36, %v10340_v37  ;;  %v10878_v52 = vld [vmem:[%s16408_s19 + $0x480] sm:$0xf]  ;;  %v14175_v53 = vld [vmem:[%s16408_s19 + $0x4a0] sm:$0xf0]  ;;  %v10591_v54 = vor.u32 %v14103_v51, %v10590_v49  ;;  %v10304_v57 = vld [vmem:[%s16408_s19 + $0x24] sm:$0xf0] }
  0xee   : > { %2729 = vmatpush.bf16.msra.mxu0 %v10375_v25  ;;  %v10879_v55 = vor.u32 %v14175_v53, %v10878_v52  ;;  %v14027_v56 = vld [vmem:[%s16408_s19 + $0x4] sm:$0xf]  ;;  %v14162_v58 = vld [vmem:[%s16408_s19 + $0x43c] sm:$0xf]  ;;  %v10844_v60 = vld [vmem:[%s16408_s19 + $0x45c] sm:$0xf0] }
  0xef   : > { %2742 = vmatpush.bf16.msra.mxu1 %v10663_v29  ;;  %v10307_v59 = vor.u32 %v14027_v56, %v10304_v57  ;;  %v14234_v61 = vld [vmem:[%s16408_s19 + $0x67c] sm:$0xf]  ;;  %v11132_v62 = vld [vmem:[%s16408_s19 + $0x69c] sm:$0xf0]  ;;  %v10847_v63 = vor.u32 %v14162_v58, %v10844_v60  ;;  %v14095_v2 = vld [vmem:[%s16408_s19 + $0x220] sm:$0xf0] }
  0xf0   : > { %2755 = vmatpush.bf16.msra.mxu2 %v10951_v30  ;;  %v11135_v0 = vor.u32 %v14234_v61, %v11132_v62  ;;  %v10562_v1 = vld [vmem:[%s16408_s19 + $0x200] sm:$0xf]  ;;  %v14167_v8 = vld [vmem:[%s16408_s19 + $0x460] sm:$0xf0]  ;;  %v14153_v9 = vld [vmem:[%s16408_s19 + $0x3f4] sm:$0xf] }
  0xf1   : > { %2768 = vmatpush.bf16.msra.mxu3 %v10379_v35  ;;  %v10850_v3 = vld [vmem:[%s16408_s19 + $0x440] sm:$0xf]  ;;  %v10563_v4 = vor.u32 %v14095_v2, %v10562_v1  ;;  %v10808_v10 = vld [vmem:[%s16408_s19 + $0x414] sm:$0xf0]  ;;  %v14225_v14 = vld [vmem:[%s16408_s19 + $0x634] sm:$0xf] }
  0xf2   : > { %2730 = vmatpush.bf16.msra.mxu0 %v10339_v38  ;;  %v10851_v12 = vor.u32 %v14167_v8, %v10850_v3  ;;  %v10811_v13 = vor.u32 %v14153_v9, %v10808_v10  ;;  %v11096_v15 = vld [vmem:[%s16408_s19 + $0x654] sm:$0xf0]  ;;  %v14086_v18 = vld [vmem:[%s16408_s19 + $0x1d8] sm:$0xf0]  ;;  %v14144_v23 = vld [vmem:[%s16408_s19 + $0x3ac] sm:$0xf] }
  0xf3   : > { %2743 = vmatpush.bf16.msra.mxu1 %v10627_v39  ;;  %v10526_v16 = vld [vmem:[%s16408_s19 + $0x1b8] sm:$0xf]  ;;  %v11099_v17 = vor.u32 %v14225_v14, %v11096_v15  ;;  %v14158_v20 = vld [vmem:[%s16408_s19 + $0x418] sm:$0xf0]  ;;  %v10772_v25 = vld [vmem:[%s16408_s19 + $0x3cc] sm:$0xf0] }
  0xf4   : > { %2756 = vmatpush.bf16.msra.mxu2 %v10915_v40  ;;  %v10814_v19 = vld [vmem:[%s16408_s19 + $0x3f8] sm:$0xf]  ;;  %v10527_v21 = vor.u32 %v14086_v18, %v10526_v16  ;;  %v14216_v26 = vld [vmem:[%s16408_s19 + $0x5ec] sm:$0xf]  ;;  %v10775_v27 = vor.u32 %v14144_v23, %v10772_v25  ;;  %v11060_v28 = vld [vmem:[%s16408_s19 + $0x60c] sm:$0xf0] }
  0xf5   : > { %2769 = vmatpush.bf16.msra.mxu3 %v10343_v44  ;;  %v10815_v22 = vor.u32 %v14158_v20, %v10814_v19  ;;  %v10490_v29 = vld [vmem:[%s16408_s19 + $0x170] sm:$0xf]  ;;  %v14077_v30 = vld [vmem:[%s16408_s19 + $0x190] sm:$0xf0]  ;;  %v11063_v31 = vor.u32 %v14216_v26, %v11060_v28  ;;  %v10736_v36 = vld [vmem:[%s16408_s19 + $0x384] sm:$0xf0] }
  0xf6   : > { %2731 = vmatpush.bf16.msra.mxu0 %v10303_v50  ;;  %v10491_v32 = vor.u32 %v14077_v30, %v10490_v29  ;;  %v10778_v33 = vld [vmem:[%s16408_s19 + $0x3b0] sm:$0xf]  ;;  %v14207_v37 = vld [vmem:[%s16408_s19 + $0x5a4] sm:$0xf]  ;;  %v11024_v39 = vld [vmem:[%s16408_s19 + $0x5c4] sm:$0xf0] }
  0xf7   : > { %2744 = vmatpush.bf16.msra.mxu1 %v10591_v54  ;;  %v10454_v40 = vld [vmem:[%s16408_s19 + $0x128] sm:$0xf]  ;;  %v14068_v44 = vld [vmem:[%s16408_s19 + $0x148] sm:$0xf0]  ;;  %v14126_v47 = vld [vmem:[%s16408_s19 + $0x31c] sm:$0xf] }
  0xf8   : > { %2757 = vmatpush.bf16.msra.mxu2 %v10879_v55  ;;  %v10700_v48 = vld [vmem:[%s16408_s19 + $0x33c] sm:$0xf0]  ;;  %v14198_v49 = vld [vmem:[%s16408_s19 + $0x55c] sm:$0xf]  ;;  %v14059_v53 = vld [vmem:[%s16408_s19 + $0x100] sm:$0xf0] }
  0xf9   : > { %2770 = vmatpush.bf16.msra.mxu3 %v10307_v59  ;;  %v10703_v50 = vor.u32 %v14126_v47, %v10700_v48  ;;  %v10988_v51 = vld [vmem:[%s16408_s19 + $0x57c] sm:$0xf0]  ;;  %v14131_v57 = vld [vmem:[%s16408_s19 + $0x340] sm:$0xf0]  ;;  %v14117_v59 = vld [vmem:[%s16408_s19 + $0x2d4] sm:$0xf] }
  0xfa   : > { %2776 = vmatpush.bf16.msrb.mxu0 %v10847_v63  ;;  %v10418_v52 = vld [vmem:[%s16408_s19 + $0xe0] sm:$0xf]  ;;  %v10991_v54 = vor.u32 %v14198_v49, %v10988_v51  ;;  %v10664_v60 = vld [vmem:[%s16408_s19 + $0x2f4] sm:$0xf0]  ;;  %v14189_v61 = vld [vmem:[%s16408_s19 + $0x514] sm:$0xf] }
  0xfb   : > { %2789 = vmatpush.bf16.msrb.mxu1 %v11135_v0  ;;  %v10419_v55 = vor.u32 %v14059_v53, %v10418_v52  ;;  %v10706_v56 = vld [vmem:[%s16408_s19 + $0x320] sm:$0xf]  ;;  %v10667_v62 = vor.u32 %v14117_v59, %v10664_v60  ;;  %v10952_v63 = vld [vmem:[%s16408_s19 + $0x534] sm:$0xf0]  ;;  %v14050_v1 = vld [vmem:[%s16408_s19 + $0xb8] sm:$0xf0] }
  0xfc   : > { %2802 = vmatpush.bf16.msrb.mxu2 %v10563_v4  ;;  %v10707_v58 = vor.u32 %v14131_v57, %v10706_v56  ;;  %v10382_v0 = vld [vmem:[%s16408_s19 + $0x98] sm:$0xf]  ;;  %v10955_v2 = vor.u32 %v14189_v61, %v10952_v63  ;;  %v14122_v8 = vld [vmem:[%s16408_s19 + $0x2f8] sm:$0xf0]  ;;  %v14108_v10 = vld [vmem:[%s16408_s19 + $0x28c] sm:$0xf] }
  0xfd   : > { %2815 = vmatpush.bf16.msrb.mxu3 %v10851_v12  ;;  %v10383_v3 = vor.u32 %v14050_v1, %v10382_v0  ;;  %v10670_v4 = vld [vmem:[%s16408_s19 + $0x2d8] sm:$0xf]  ;;  %v10628_v12 = vld [vmem:[%s16408_s19 + $0x2ac] sm:$0xf0]  ;;  %v14099_v23 = vld [vmem:[%s16408_s19 + $0x244] sm:$0xf] }
  0xfe   : > { %2777 = vmatpush.bf16.msrb.mxu0 %v10811_v13  ;;  %v10671_v9 = vor.u32 %v14122_v8, %v10670_v4  ;;  %v14180_v13 = vld [vmem:[%s16408_s19 + $0x4cc] sm:$0xf]  ;;  %v10631_v14 = vor.u32 %v14108_v10, %v10628_v12  ;;  %v10916_v15 = vld [vmem:[%s16408_s19 + $0x4ec] sm:$0xf0]  ;;  %v10592_v25 = vld [vmem:[%s16408_s19 + $0x264] sm:$0xf0] }
  0xff   : > { %2790 = vmatpush.bf16.msrb.mxu1 %v11099_v17  ;;  %v10346_v16 = vld [vmem:[%s16408_s19 + $0x50] sm:$0xf]  ;;  %v14041_v17 = vld [vmem:[%s16408_s19 + $0x70] sm:$0xf0]  ;;  %v10919_v18 = vor.u32 %v14180_v13, %v10916_v15  ;;  %v14171_v26 = vld [vmem:[%s16408_s19 + $0x484] sm:$0xf] }
 0x100   : > { %2803 = vmatpush.bf16.msrb.mxu2 %v10527_v21  ;;  %v10347_v19 = vor.u32 %v14041_v17, %v10346_v16  ;;  %v10634_v20 = vld [vmem:[%s16408_s19 + $0x290] sm:$0xf]  ;;  %v14113_v21 = vld [vmem:[%s16408_s19 + $0x2b0] sm:$0xf0]  ;;  %v10880_v28 = vld [vmem:[%s16408_s19 + $0x4a4] sm:$0xf0] }
 0x101   : > { %2816 = vmatpush.bf16.msrb.mxu3 %v10815_v22  ;;  %v10635_v22 = vor.u32 %v14113_v21, %v10634_v20  ;;  %v10310_v29 = vld [vmem:[%s16408_s19 + $0x8] sm:$0xf]  ;;  %v14032_v30 = vld [vmem:[%s16408_s19 + $0x28] sm:$0xf0]  ;;  %v11138_v59 = vld [vmem:[%s16408_s19 + $0x680] sm:$0xf] }
 0x102   : > { %2778 = vmatpush.bf16.msrb.mxu0 %v10775_v27  ;;  %v10595_v27 = vor.u32 %v14099_v23, %v10592_v25  ;;  %v14239_v60 = vld [vmem:[%s16408_s19 + $0x6a0] sm:$0xf0]  ;;  %v11102_v12 = vld [vmem:[%s16408_s19 + $0x638] sm:$0xf]  ;;  %v14230_v13 = vld [vmem:[%s16408_s19 + $0x658] sm:$0xf0] }
 0x103   : > { %2791 = vmatpush.bf16.msrb.mxu1 %v11063_v31  ;;  %v10883_v31 = vor.u32 %v14171_v26, %v10880_v28  ;;  %v14091_v61 = vld [vmem:[%s16408_s19 + $0x204] sm:$0xf]  ;;  %v14082_v16 = vld [vmem:[%s16408_s19 + $0x1bc] sm:$0xf]  ;;  %v10528_v17 = vld [vmem:[%s16408_s19 + $0x1dc] sm:$0xf0] }
 0x104   : > { %2804 = vmatpush.bf16.msrb.mxu2 %v10491_v32  ;;  %v10311_v32 = vor.u32 %v14032_v30, %v10310_v29  ;;  %v14163_v63 = vld [vmem:[%s16408_s19 + $0x444] sm:$0xf]  ;;  %v14226_v20 = vld [vmem:[%s16408_s19 + $0x63c] sm:$0xf]  ;;  %v11104_v21 = vld [vmem:[%s16408_s19 + $0x65c] sm:$0xf0]  ;;  %v10531_v23 = vor.u32 %v14082_v16, %v10528_v17 }
 0x105   : > { %v11066_v25 = vld [vmem:[%s16408_s19 + $0x5f0] sm:$0xf]  ;;  %v14221_v26 = vld [vmem:[%s16408_s19 + $0x610] sm:$0xf0]  ;;  %v11107_v28 = vor.u32 %v14226_v20, %v11104_v21  ;;  %v10492_v30 = vld [vmem:[%s16408_s19 + $0x194] sm:$0xf0] }
 0x106   : > { %v14073_v29 = vld [vmem:[%s16408_s19 + $0x174] sm:$0xf]  ;;  %v10348_v17 = vld [vmem:[%s16408_s19 + $0x74] sm:$0xf0] }
 0x107   : > { %v14037_v16 = vld [vmem:[%s16408_s19 + $0x54] sm:$0xf]  ;;  %v10924_v21 = vld [vmem:[%s16408_s19 + $0x4f4] sm:$0xf0] }
 0x108   : > { %v14181_v20 = vld [vmem:[%s16408_s19 + $0x4d4] sm:$0xf] }
 0x154   : > { %v1301_v34 = vpop.xlane.xlu0 %1300 }
 0x155   : > { %v1309_v11 = vmul.f32 %v16546_v24, %v1301_v34  ;;  %v14149_v34 = vld [vmem:[%s16408_s19 + $0x3d0] sm:$0xf0] }
 0x156   : > { %v10779_v35 = vor.u32 %v14149_v34, %v10778_v33  ;;  %v10598_v33 = vld [vmem:[%s16408_s19 + $0x248] sm:$0xf]  ;;  %v14104_v34 = vld [vmem:[%s16408_s19 + $0x268] sm:$0xf0] }
 0x157   : > { %v16558_v41 = vsub.f32 %v16482_v5, %v1309_v11  ;;  %v16561_v42 = vsub.f32 %v16484_v6, %v1309_v11  ;;  %v16564_v43 = vsub.f32 %v16486_v7, %v1309_v11  ;;  %v14135_v11 = vld [vmem:[%s16408_s19 + $0x364] sm:$0xf] }
 0x158   : > { %v10739_v38 = vor.u32 %v14135_v11, %v10736_v36  ;;  %2817 = vmatpush.bf16.msrb.mxu3 %v10779_v35  ;;  %v10599_v35 = vor.u32 %v14104_v34, %v10598_v33  ;;  %v14217_v33 = vld [vmem:[%s16408_s19 + $0x5f4] sm:$0xf]  ;;  %v11068_v34 = vld [vmem:[%s16408_s19 + $0x614] sm:$0xf0] }
 0x159   : > { %v1313_v45 = vmul.f32 %v16558_v41, %v16558_v41  ;;  %v1314_v5 = vmul.f32 %v16561_v42, %v16561_v42  ;;  %v1315_v6 = vmul.f32 %v16564_v43, %v16564_v43 }
 0x15a   : > { %2779 = vmatpush.bf16.msrb.mxu0 %v10739_v38 }
 0x15b   : > { %v1316_v7 = vadd.f32 %v1314_v5, %v1313_v45  ;;  %v11027_v45 = vor.u32 %v14207_v37, %v11024_v39  ;;  %v10455_v5 = vor.u32 %v14068_v44, %v10454_v40 }
 0x15d   : > { %v1317_v46 = vadd.f32 %v1316_v7, %v1315_v6  ;;  %v10742_v6 = vld [vmem:[%s16408_s19 + $0x368] sm:$0xf]  ;;  %v14140_v7 = vld [vmem:[%s16408_s19 + $0x388] sm:$0xf0]  ;;  %2792 = vmatpush.bf16.msrb.mxu1 %v11027_v45  ;;  %2805 = vmatpush.bf16.msrb.mxu2 %v10455_v5  ;;  %v1296_v45 = vld [vmem:[%s991_s25] sm:$0x7] }
 0x15e   : > { %2780 = vmatpush.bf16.msrb.mxu0 %v10703_v50  ;;  %v1337_v47 = vperm.slane %v1296_v45, 1  ;;  %v1338_v48 = vperm.slane %v1296_v45, 2  ;;  %s19666_s25 = scalar_lea.vmem [#allocation24], %s16389_s5  ;;  %s19667_s5 = sld [smem:[#allocation50_spill]] }
 0x15f   : > { %1318 = vadd.xlane.f32.xlu0 %v1317_v46  ;;  %v10743_v46 = vor.u32 %v14140_v7, %v10742_v6  ;;  %v1297_v6 = vld [vmem:[%s1001_s27] sm:$0x7] }
 0x160   : > { %v1346_v49 = vperm.slane %v1297_v6, 0  ;;  %v1347_v50 = vperm.slane %v1297_v6, 1  ;;  %v1348_v52 = vperm.slane %v1297_v6, 2  ;;  %v14208_v6 = vld [vmem:[%s16408_s19 + $0x5ac] sm:$0xf] }
 0x161   : > { %2818 = vmatpush.bf16.msrb.mxu3 %v10743_v46  ;;  %2793 = vmatpush.bf16.msrb.mxu1 %v10991_v54  ;;  %v1336_v46 = vperm.slane %v1296_v45, 0  ;;  %v14136_v45 = vld [vmem:[%s16408_s19 + $0x36c] sm:$0xf] }
 0x162   : > { %2806 = vmatpush.bf16.msrb.mxu2 %v10419_v55  ;;  %2781 = vmatpush.bf16.msrb.mxu0 %v10667_v62  ;;  %v10564_v62 = vld [vmem:[%s16408_s19 + $0x224] sm:$0xf0] }
 0x163   : > { %v10567_v10 = vor.u32 %v14091_v61, %v10564_v62  ;;  %v14194_v61 = vld [vmem:[%s16408_s19 + $0x538] sm:$0xf0] }
 0x164   : > { %p13768_p7 = scmp.ne.s32.totalorder %s19667_s5, 11 }
 0x165   : > { %2819 = vmatpush.bf16.msrb.mxu3 %v10707_v58  ;;  %2794 = vmatpush.bf16.msrb.mxu1 %v10955_v2  ;;  %v10852_v2 = vld [vmem:[%s16408_s19 + $0x464] sm:$0xf0] }
 0x166   : > { %2807 = vmatpush.bf16.msrb.mxu2 %v10383_v3  ;;  %2782 = vmatpush.bf16.msrb.mxu0 %v10631_v14  ;;  %v11139_v3 = vor.u32 %v14239_v60, %v11138_v59  ;;  %v10855_v14 = vor.u32 %v14163_v63, %v10852_v2  ;;  %v10958_v60 = vld [vmem:[%s16408_s19 + $0x518] sm:$0xf]  ;;  %v10672_v2 = vld [vmem:[%s16408_s19 + $0x2fc] sm:$0xf0] }
 0x169   : > { %2820 = vmatpush.bf16.msrb.mxu3 %v10671_v9  ;;  %2795 = vmatpush.bf16.msrb.mxu1 %v10919_v18  ;;  %v14154_v18 = vld [vmem:[%s16408_s19 + $0x3fc] sm:$0xf] }
 0x16a   : > { %2808 = vmatpush.bf16.msrb.mxu2 %v10347_v19  ;;  %2783 = vmatpush.bf16.msrb.mxu0 %v10595_v27  ;;  %v10816_v19 = vld [vmem:[%s16408_s19 + $0x41c] sm:$0xf0] }
 0x16b   : > { %v10819_v27 = vor.u32 %v14154_v18, %v10816_v19  ;;  %v14109_v18 = vld [vmem:[%s16408_s19 + $0x294] sm:$0xf]  ;;  %v10636_v19 = vld [vmem:[%s16408_s19 + $0x2b4] sm:$0xf0] }
 0x16d   : > { %2821 = vmatpush.bf16.msrb.mxu3 %v10635_v22  ;;  %2796 = vmatpush.bf16.msrb.mxu1 %v10883_v31  ;;  %v11103_v22 = vor.u32 %v14230_v13, %v11102_v12  ;;  %v14145_v31 = vld [vmem:[%s16408_s19 + $0x3b4] sm:$0xf]  ;;  %v10922_v12 = vld [vmem:[%s16408_s19 + $0x4d0] sm:$0xf] }
 0x16e   : > { %2809 = vmatpush.bf16.msrb.mxu2 %v10311_v32  ;;  %v10780_v32 = vld [vmem:[%s16408_s19 + $0x3d4] sm:$0xf0]  ;;  %v14185_v13 = vld [vmem:[%s16408_s19 + $0x4f0] sm:$0xf0] }
 0x171   : > { %2822 = vmatpush.bf16.msrb.mxu3 %v10599_v35  ;;  %v11067_v35 = vor.u32 %v14221_v26, %v11066_v25  ;;  %v10351_v25 = vor.u32 %v14037_v16, %v10348_v17  ;;  %v14176_v26 = vld [vmem:[%s16408_s19 + $0x4a8] sm:$0xf0]  ;;  %v10750_v16 = vld [vmem:[%s16408_s19 + $0x370] sm:$0xf]  ;;  %v14141_v17 = vld [vmem:[%s16408_s19 + $0x390] sm:$0xf0] }
 0x1d2   : > { %v1319_v11 = vpop.xlane.xlu0 %1318 }
 0x1d3   : > { %v1320_v36 = vmul.f32 %v1319_v11, %v16546_v24  ;;  %v10495_v11 = vor.u32 %v14073_v29, %v10492_v30  ;;  %v10639_v29 = vor.u32 %v14109_v18, %v10636_v19  ;;  %v10927_v30 = vor.u32 %v14181_v20, %v10924_v21  ;;  %v11038_v18 = vld [vmem:[%s16408_s19 + $0x5b0] sm:$0xf]  ;;  %v14213_v19 = vld [vmem:[%s16408_s19 + $0x5d0] sm:$0xf0]  ;;  %v10464_v21 = vld [vmem:[%s16408_s19 + $0x154] sm:$0xf0] }
 0x1d4   : > { %v14065_v20 = vld [vmem:[%s16408_s19 + $0x134] sm:$0xf] }
 0x1d5   : > { %v1321_v37 = vadd.f32 1e-06, %v1320_v36  ;;  %v11030_v36 = vld [vmem:[%s16408_s19 + $0x5a8] sm:$0xf] }
 0x1d7   : > { %15178 = vrsqrt.f32 %v1321_v37  ;;  %vm1328_vm2 = vweird.f32 %v1321_v37 }
 0x1dd   : > { %v15179_v38 = vpop.eup %15178 }
 0x1de   : > { %v1323_v39 = vmul.f32 %v15179_v38, %v1321_v37  ;;  %vm1329_vm1 = vweird.f32 %v15179_v38  ;;  %v14212_v37 = vld [vmem:[%s16408_s19 + $0x5c8] sm:$0xf0] }
 0x1df   : > { %vm1330_vm3 = vmor %vm1328_vm2, %vm1329_vm1 }
 0x1e0   : > { %v1324_v40 = vmul.f32 %v15179_v38, %v1323_v39  ;;  %v11071_v39 = vor.u32 %v14217_v33, %v11068_v34  ;;  %v14172_v33 = vld [vmem:[%s16408_s19 + $0x48c] sm:$0xf]  ;;  %v10888_v34 = vld [vmem:[%s16408_s19 + $0x4ac] sm:$0xf0] }
 0x1e2   : > { %v1325_v44 = vmul.f32 0.5, %v1324_v40  ;;  %v14064_v40 = vld [vmem:[%s16408_s19 + $0x12c] sm:$0xf] }
 0x1e4   : > { %v1326_v5 = vsub.f32 1.5, %v1325_v44  ;;  %v10456_v44 = vld [vmem:[%s16408_s19 + $0x14c] sm:$0xf0] }
 0x1e6   : > { %v1327_v7 = vmul.f32 %v15179_v38, %v1326_v5  ;;  %v10744_v5 = vld [vmem:[%s16408_s19 + $0x38c] sm:$0xf0] }
 0x1e8   : > { %v1331_v51 = vsel %vm1330_vm3, %v15179_v38, %v1327_v7  ;;  %v10783_v38 = vor.u32 %v14145_v31, %v10780_v32  ;;  %v11032_v7 = vld [vmem:[%s16408_s19 + $0x5cc] sm:$0xf0]  ;;  %v14100_v31 = vld [vmem:[%s16408_s19 + $0x24c] sm:$0xf] }
 0x1e9   : > { %v1332_v53 = vmul.f32 %v1331_v51, %v16558_v41  ;;  %v1333_v54 = vmul.f32 %v1331_v51, %v16561_v42  ;;  %v1334_v55 = vmul.f32 %v1331_v51, %v16564_v43  ;;  %v14235_v42 = vld [vmem:[%s16408_s19 + $0x684] sm:$0xf]  ;;  %v11140_v43 = vld [vmem:[%s16408_s19 + $0x6a4] sm:$0xf0]  ;;  %v11035_v51 = vor.u32 %v14208_v6, %v11032_v7  ;;  %v10600_v32 = vld [vmem:[%s16408_s19 + $0x26c] sm:$0xf0] }
 0x1ea   : > { %v11143_v15 = vor.u32 %v14235_v42, %v11140_v43  ;;  %v14190_v42 = vld [vmem:[%s16408_s19 + $0x51c] sm:$0xf]  ;;  %v10960_v43 = vld [vmem:[%s16408_s19 + $0x53c] sm:$0xf0]  ;;  %v10603_v6 = vor.u32 %v14100_v31, %v10600_v32  ;;  %v10891_v7 = vor.u32 %v14172_v33, %v10888_v34  ;;  %v11002_v31 = vld [vmem:[%s16408_s19 + $0x568] sm:$0xf] }
 0x1eb   : > { %v1342_v56 = vmul.f32 %v1336_v46, %v1332_v53  ;;  %v1343_v57 = vmul.f32 %v1337_v47, %v1333_v54  ;;  %v1344_v58 = vmul.f32 %v1338_v48, %v1334_v55  ;;  %v11031_v46 = vor.u32 %v14212_v37, %v11030_v36  ;;  %v10994_v48 = vld [vmem:[%s16408_s19 + $0x560] sm:$0xf]  ;;  %v10420_v53 = vld [vmem:[%s16408_s19 + $0x104] sm:$0xf0]  ;;  %v14127_v54 = vld [vmem:[%s16408_s19 + $0x324] sm:$0xf] }
 0x1ec   : > { %v10459_v47 = vor.u32 %v14064_v40, %v10456_v44  ;;  %v10708_v55 = vld [vmem:[%s16408_s19 + $0x344] sm:$0xf0]  ;;  %v14168_v37 = vld [vmem:[%s16408_s19 + $0x468] sm:$0xf0]  ;;  %v10428_v34 = vld [vmem:[%s16408_s19 + $0x10c] sm:$0xf0] }
 0x1ed   : > { %v1352_v0 = vadd.f32 %v1346_v49, %v1342_v56  ;;  %v1353_v1 = vadd.f32 %v1347_v50, %v1343_v57  ;;  %v1354_v41 = vadd.f32 %v1348_v52, %v1344_v58  ;;  %v14203_v49 = vld [vmem:[%s16408_s19 + $0x580] sm:$0xf0]  ;;  %v10747_v50 = vor.u32 %v14136_v45, %v10744_v5  ;;  %v10996_v57 = vld [vmem:[%s16408_s19 + $0x584] sm:$0xf0]  ;;  %v14240_v44 = vld [vmem:[%s16408_s19 + $0x6a8] sm:$0xf0] }
 0x1ee   : > { %v14055_v52 = vld [vmem:[%s16408_s19 + $0xe4] sm:$0xf]  ;;  %v10995_v58 = vor.u32 %v14203_v49, %v10994_v48  ;;  %v10711_v62 = vor.u32 %v14127_v54, %v10708_v55  ;;  %v10858_v36 = vld [vmem:[%s16408_s19 + $0x448] sm:$0xf]  ;;  %v14092_v45 = vld [vmem:[%s16408_s19 + $0x20c] sm:$0xf] }
 0x1ef   : > { %v16660_v4 = vpack.c.bf16 %v1352_v0, %v1352_v0  ;;  %v16662_v8 = vpack.c.bf16 %v1353_v1, %v1353_v1  ;;  %v16664_v9 = vpack.c.bf16 %v1354_v41, %v1354_v41  ;;  %v14199_v56 = vld [vmem:[%s16408_s19 + $0x564] sm:$0xf]  ;;  %v10423_v59 = vor.u32 %v14055_v52, %v10420_v53  ;;  %v14046_v0 = vld [vmem:[%s16408_s19 + $0x9c] sm:$0xf]  ;;  %v10384_v1 = vld [vmem:[%s16408_s19 + $0xbc] sm:$0xf0] }
 0x1f0   : > { %v10999_v63 = vor.u32 %v14199_v56, %v10996_v57  ;;  %v14118_v41 = vld [vmem:[%s16408_s19 + $0x2dc] sm:$0xf]  ;;  %v10572_v5 = vld [vmem:[%s16408_s19 + $0x22c] sm:$0xf0]  ;;  %v10534_v48 = vld [vmem:[%s16408_s19 + $0x1c0] sm:$0xf] }
 0x1f1   : > { %2732 = vmatmul.bf16.vlgmr.msra.gmra.mxu0 %v16660_v4  ;;  %2745 = vmatmul.bf16.vlgmr.msra.gmra.mxu1 %v16662_v8  ;;  %v14087_v49 = vld [vmem:[%s16408_s19 + $0x1e0] sm:$0xf0]  ;;  %v10822_v52 = vld [vmem:[%s16408_s19 + $0x400] sm:$0xf]  ;;  %v10536_v57 = vld [vmem:[%s16408_s19 + $0x1e4] sm:$0xf0] }
 0x1f2   : > { %2758 = vmatmul.bf16.vlgmr.msra.gmra.mxu2 %v16664_v9  ;;  %2771 = vmatmul.bf16.vlgmr.msra.gmra.mxu3 %v16660_v4  ;;  %v14159_v53 = vld [vmem:[%s16408_s19 + $0x420] sm:$0xf0]  ;;  %v11110_v54 = vld [vmem:[%s16408_s19 + $0x640] sm:$0xf]  ;;  %v14204_v32 = vld [vmem:[%s16408_s19 + $0x588] sm:$0xf0] }
 0x1f3   : > { %2828 = vmatpush.bf16.msra.mxu0 %v11139_v3  ;;  %2841 = vmatpush.bf16.msra.mxu1 %v10567_v10  ;;  %v10959_v3 = vor.u32 %v14194_v61, %v10958_v60  ;;  %v10387_v10 = vor.u32 %v14046_v0, %v10384_v1  ;;  %v14231_v55 = vld [vmem:[%s16408_s19 + $0x660] sm:$0xf0]  ;;  %v10498_v60 = vld [vmem:[%s16408_s19 + $0x178] sm:$0xf]  ;;  %v14078_v61 = vld [vmem:[%s16408_s19 + $0x198] sm:$0xf0] }
 0x1f4   : > { %2854 = vmatpush.bf16.msra.mxu2 %v10855_v14  ;;  %2867 = vmatpush.bf16.msra.mxu3 %v11143_v15  ;;  %v10675_v14 = vor.u32 %v14118_v41, %v10672_v2  ;;  %v10963_v15 = vor.u32 %v14190_v42, %v10960_v43  ;;  %v14083_v56 = vld [vmem:[%s16408_s19 + $0x1c4] sm:$0xf]  ;;  %v10786_v0 = vld [vmem:[%s16408_s19 + $0x3b8] sm:$0xf]  ;;  %v14150_v1 = vld [vmem:[%s16408_s19 + $0x3d8] sm:$0xf0] }
 0x1f5   : > { %v11074_v41 = vld [vmem:[%s16408_s19 + $0x5f8] sm:$0xf]  ;;  %v14222_v2 = vld [vmem:[%s16408_s19 + $0x618] sm:$0xf0]  ;;  %v10500_v43 = vld [vmem:[%s16408_s19 + $0x19c] sm:$0xf0] }
 0x1f6   : > { %v14074_v42 = vld [vmem:[%s16408_s19 + $0x17c] sm:$0xf]  ;;  %v14056_v33 = vld [vmem:[%s16408_s19 + $0xec] sm:$0xf] }
 0x1f7   : > { %2829 = vmatpush.bf16.msra.mxu0 %v11103_v22  ;;  %2842 = vmatpush.bf16.msra.mxu1 %v10531_v23  ;;  %v10886_v22 = vld [vmem:[%s16408_s19 + $0x488] sm:$0xf]  ;;  %v10923_v23 = vor.u32 %v14185_v13, %v10922_v12  ;;  %v10462_v12 = vld [vmem:[%s16408_s19 + $0x130] sm:$0xf]  ;;  %v14069_v13 = vld [vmem:[%s16408_s19 + $0x150] sm:$0xf0] }
 0x1f8   : > { %2855 = vmatpush.bf16.msra.mxu2 %v10819_v27  ;;  %2868 = vmatpush.bf16.msra.mxu3 %v11107_v28  ;;  %v14028_v27 = vld [vmem:[%s16408_s19 + $0xc] sm:$0xf]  ;;  %v10312_v28 = vld [vmem:[%s16408_s19 + $0x2c] sm:$0xf0] }
 0x1f9   : > { %v10315_v40 = vor.u32 %v14028_v27, %v10312_v28  ;;  %v11039_v27 = vor.u32 %v14213_v19, %v11038_v18  ;;  %v10467_v28 = vor.u32 %v14065_v20, %v10464_v21  ;;  %v10866_v18 = vld [vmem:[%s16408_s19 + $0x450] sm:$0xf]  ;;  %v14169_v19 = vld [vmem:[%s16408_s19 + $0x470] sm:$0xf0] }
 0x1fb   : > { %2830 = vmatpush.bf16.msra.mxu0 %v11067_v35  ;;  %2843 = vmatpush.bf16.msra.mxu1 %v10495_v11  ;;  %v10570_v35 = vld [vmem:[%s16408_s19 + $0x208] sm:$0xf]  ;;  %v14096_v11 = vld [vmem:[%s16408_s19 + $0x228] sm:$0xf0] }
 0x1fc   : > { %2856 = vmatpush.bf16.msra.mxu2 %v10783_v38  ;;  %2869 = vmatpush.bf16.msra.mxu3 %v11071_v39  ;;  %v11146_v38 = vld [vmem:[%s16408_s19 + $0x688] sm:$0xf]  ;;  %v10887_v39 = vor.u32 %v14176_v26, %v10886_v22  ;;  %v10463_v22 = vor.u32 %v14069_v13, %v10462_v12  ;;  %v14060_v26 = vld [vmem:[%s16408_s19 + $0x108] sm:$0xf0]  ;;  %v11148_v13 = vld [vmem:[%s16408_s19 + $0x6ac] sm:$0xf0] }
 0x1fd   : > { %v14236_v12 = vld [vmem:[%s16408_s19 + $0x68c] sm:$0xf] }
 0x1ff   : > { %2831 = vmatpush.bf16.msra.mxu0 %v11031_v46  ;;  %2844 = vmatpush.bf16.msra.mxu1 %v10459_v47  ;;  %v10571_v46 = vor.u32 %v14096_v11, %v10570_v35  ;;  %v10859_v47 = vor.u32 %v14168_v37, %v10858_v36  ;;  %v10390_v36 = vld [vmem:[%s16408_s19 + $0xa0] sm:$0xf]  ;;  %v14051_v37 = vld [vmem:[%s16408_s19 + $0xc0] sm:$0xf0] }
 0x200   : > { %2857 = vmatpush.bf16.msra.mxu2 %v10747_v50  ;;  %2870 = vmatpush.bf16.msra.mxu3 %v11035_v51  ;;  %v11147_v50 = vor.u32 %v14240_v44, %v11146_v38  ;;  %v10575_v51 = vor.u32 %v14092_v45, %v10572_v5  ;;  %v11003_v38 = vor.u32 %v14204_v32, %v11002_v31  ;;  %v14123_v44 = vld [vmem:[%s16408_s19 + $0x300] sm:$0xf0]  ;;  %v10966_v45 = vld [vmem:[%s16408_s19 + $0x520] sm:$0xf]  ;;  %v10542_v31 = vld [vmem:[%s16408_s19 + $0x1c8] sm:$0xf] }
 0x201   : > { %2784 = vmatmul.bf16.vlgmr.msrb.gmra.mxu0 %v16662_v8  ;;  %2797 = vmatmul.bf16.vlgmr.msrb.gmra.mxu1 %v16664_v9  ;;  %v14195_v5 = vld [vmem:[%s16408_s19 + $0x540] sm:$0xf0]  ;;  %v14088_v32 = vld [vmem:[%s16408_s19 + $0x1e8] sm:$0xf0] }
 0x202   : > { %2810 = vmatmul.bf16.vlgmr.msrb.gmra.mxu2 %v16660_v4  ;;  %2823 = vmatmul.bf16.vlgmr.msrb.gmra.mxu3 %v16662_v8 }
 0x203   : > { %2832 = vmatpush.bf16.msra.mxu0 %v10995_v58  ;;  %2845 = vmatpush.bf16.msra.mxu1 %v10423_v59  ;;  %v10535_v58 = vor.u32 %v14087_v49, %v10534_v48  ;;  %v10823_v59 = vor.u32 %v14159_v53, %v10822_v52  ;;  %v10354_v48 = vld [vmem:[%s16408_s19 + $0x58] sm:$0xf]  ;;  %v14042_v49 = vld [vmem:[%s16408_s19 + $0x78] sm:$0xf0] }
 0x204   : > { %2858 = vmatpush.bf16.msra.mxu2 %v10711_v62  ;;  %2871 = vmatpush.bf16.msra.mxu3 %v10999_v63  ;;  %v11111_v62 = vor.u32 %v14231_v55, %v11110_v54  ;;  %v10539_v63 = vor.u32 %v14083_v56, %v10536_v57  ;;  %v10642_v52 = vld [vmem:[%s16408_s19 + $0x298] sm:$0xf]  ;;  %v14114_v53 = vld [vmem:[%s16408_s19 + $0x2b8] sm:$0xf0]  ;;  %v10356_v57 = vld [vmem:[%s16408_s19 + $0x7c] sm:$0xf0] }
 0x205   : > { %v10930_v54 = vld [vmem:[%s16408_s19 + $0x4d8] sm:$0xf]  ;;  %v14186_v55 = vld [vmem:[%s16408_s19 + $0x4f8] sm:$0xf0] }
 0x206   : > { %v14038_v56 = vld [vmem:[%s16408_s19 + $0x5c] sm:$0xf] }
 0x207   : > { %2833 = vmatpush.bf16.msra.mxu0 %v10959_v3  ;;  %2846 = vmatpush.bf16.msra.mxu1 %v10387_v10  ;;  %v10499_v3 = vor.u32 %v14078_v61, %v10498_v60  ;;  %v10787_v10 = vor.u32 %v14150_v1, %v10786_v0  ;;  %v10643_v60 = vor.u32 %v14114_v53, %v10642_v52  ;;  %v14033_v61 = vld [vmem:[%s16408_s19 + $0x30] sm:$0xf0]  ;;  %v11040_v53 = vld [vmem:[%s16408_s19 + $0x5d4] sm:$0xf0] }
 0x208   : > { %2859 = vmatpush.bf16.msra.mxu2 %v10675_v14  ;;  %2872 = vmatpush.bf16.msra.mxu3 %v10963_v15  ;;  %v11075_v14 = vor.u32 %v14222_v2, %v11074_v41  ;;  %v10503_v15 = vor.u32 %v14074_v42, %v10500_v43  ;;  %v10931_v0 = vor.u32 %v14186_v55, %v10930_v54  ;;  %v10894_v41 = vld [vmem:[%s16408_s19 + $0x490] sm:$0xf]  ;;  %v14177_v2 = vld [vmem:[%s16408_s19 + $0x4b0] sm:$0xf0]  ;;  %v10320_v43 = vld [vmem:[%s16408_s19 + $0x34] sm:$0xf0] }
 0x209   : > { %v10359_v1 = vor.u32 %v14038_v56, %v10356_v57  ;;  %v14029_v42 = vld [vmem:[%s16408_s19 + $0x14] sm:$0xf]  ;;  %v10895_v20 = vor.u32 %v14177_v2, %v10894_v41  ;;  %v10470_v54 = vld [vmem:[%s16408_s19 + $0x138] sm:$0xf]  ;;  %v14070_v55 = vld [vmem:[%s16408_s19 + $0x158] sm:$0xf0] }
 0x20a   : > { %v10323_v21 = vor.u32 %v14029_v42, %v10320_v43  ;;  %v14209_v52 = vld [vmem:[%s16408_s19 + $0x5b4] sm:$0xf]  ;;  %v10758_v56 = vld [vmem:[%s16408_s19 + $0x378] sm:$0xf]  ;;  %v14142_v57 = vld [vmem:[%s16408_s19 + $0x398] sm:$0xf0] }
 0x20b   : > { %2834 = vmatpush.bf16.msra.mxu0 %v10923_v23  ;;  %2847 = vmatpush.bf16.msra.mxu1 %v10351_v25  ;;  %v10751_v23 = vor.u32 %v14141_v17, %v10750_v16  ;;  %v10426_v25 = vld [vmem:[%s16408_s19 + $0xe8] sm:$0xf]  ;;  %v14097_v17 = vld [vmem:[%s16408_s19 + $0x230] sm:$0xf0]  ;;  %v10434_v41 = vld [vmem:[%s16408_s19 + $0xf0] sm:$0xf] }
 0x20c   : > { %2860 = vmatpush.bf16.msra.mxu2 %v10639_v29  ;;  %2873 = vmatpush.bf16.msra.mxu3 %v10927_v30  ;;  %v10714_v29 = vld [vmem:[%s16408_s19 + $0x328] sm:$0xf]  ;;  %v14132_v30 = vld [vmem:[%s16408_s19 + $0x348] sm:$0xf0]  ;;  %v10427_v35 = vor.u32 %v14060_v26, %v10426_v25  ;;  %v14155_v25 = vld [vmem:[%s16408_s19 + $0x404] sm:$0xf] }
 0x20d   : > { %v10715_v11 = vor.u32 %v14132_v30, %v10714_v29  ;;  %v10824_v26 = vld [vmem:[%s16408_s19 + $0x424] sm:$0xf0]  ;;  %v14227_v29 = vld [vmem:[%s16408_s19 + $0x644] sm:$0xf]  ;;  %v14061_v2 = vld [vmem:[%s16408_s19 + $0x110] sm:$0xf0] }
 0x20e   : > { %v11112_v30 = vld [vmem:[%s16408_s19 + $0x664] sm:$0xf0]  ;;  %v10722_v42 = vld [vmem:[%s16408_s19 + $0x330] sm:$0xf]  ;;  %v14133_v43 = vld [vmem:[%s16408_s19 + $0x350] sm:$0xf0] }
 0x20f   : > { %2835 = vmatpush.bf16.msra.mxu0 %v10887_v39  ;;  %2848 = vmatpush.bf16.msra.mxu1 %v10315_v40  ;;  %v10431_v39 = vor.u32 %v14056_v33, %v10428_v34  ;;  %v10678_v40 = vld [vmem:[%s16408_s19 + $0x2e0] sm:$0xf]  ;;  %v10830_v33 = vld [vmem:[%s16408_s19 + $0x408] sm:$0xf]  ;;  %v14160_v34 = vld [vmem:[%s16408_s19 + $0x428] sm:$0xf0] }
 0x210   : > { %2861 = vmatpush.bf16.msra.mxu2 %v10603_v6  ;;  %2874 = vmatpush.bf16.msra.mxu3 %v10891_v7  ;;  %v14047_v6 = vld [vmem:[%s16408_s19 + $0xa4] sm:$0xf]  ;;  %v10392_v7 = vld [vmem:[%s16408_s19 + $0xc4] sm:$0xf0] }
 0x212   : > { %2836 = vmatmul.bf16.vlgmr.msra.gmra.mxu0 %v16664_v9  ;;  %2849 = vmatmul.bf16.vlgmr.msra.gmra.mxu1 %v16660_v4 }
 0x213   : > { %2880 = vmatpush.bf16.msrb.mxu0 %v10571_v46  ;;  %2893 = vmatpush.bf16.msrb.mxu1 %v10859_v47  ;;  %v10391_v46 = vor.u32 %v14051_v37, %v10390_v36  ;;  %v10679_v47 = vor.u32 %v14123_v44, %v10678_v40  ;;  %v14146_v36 = vld [vmem:[%s16408_s19 + $0x3bc] sm:$0xf]  ;;  %v10788_v37 = vld [vmem:[%s16408_s19 + $0x3dc] sm:$0xf0] }
 0x214   : > { %2906 = vmatpush.bf16.msrb.mxu2 %v11147_v50  ;;  %2919 = vmatpush.bf16.msrb.mxu3 %v10575_v51  ;;  %v10967_v50 = vor.u32 %v14195_v5, %v10966_v45  ;;  %v10395_v51 = vor.u32 %v14047_v6, %v10392_v7  ;;  %v14218_v40 = vld [vmem:[%s16408_s19 + $0x5fc] sm:$0xf]  ;;  %v11076_v44 = vld [vmem:[%s16408_s19 + $0x61c] sm:$0xf0]  ;;  %v14079_v5 = vld [vmem:[%s16408_s19 + $0x1a0] sm:$0xf0] }
 0x215   : > { %2862 = vmatmul.bf16.vlgmr.msra.gmra.mxu2 %v16662_v8  ;;  %2875 = vmatmul.bf16.vlgmr.msra.gmra.mxu3 %v16664_v9  ;;  %v10506_v45 = vld [vmem:[%s16408_s19 + $0x180] sm:$0xf]  ;;  %v14151_v7 = vld [vmem:[%s16408_s19 + $0x3e0] sm:$0xf0] }
 0x216   : > { %v10794_v6 = vld [vmem:[%s16408_s19 + $0x3c0] sm:$0xf] }
 0x217   : > { %2881 = vmatpush.bf16.msrb.mxu0 %v10535_v58  ;;  %2894 = vmatpush.bf16.msrb.mxu1 %v10823_v59  ;;  %v10318_v58 = vld [vmem:[%s16408_s19 + $0x10] sm:$0xf]  ;;  %v10355_v59 = vor.u32 %v14042_v49, %v10354_v48  ;;  %v14137_v48 = vld [vmem:[%s16408_s19 + $0x374] sm:$0xf]  ;;  %v10752_v49 = vld [vmem:[%s16408_s19 + $0x394] sm:$0xf0] }
 0x218   : > { %2907 = vmatpush.bf16.msrb.mxu2 %v11111_v62  ;;  %2920 = vmatpush.bf16.msrb.mxu3 %v10539_v63  ;;  %v10606_v62 = vld [vmem:[%s16408_s19 + $0x250] sm:$0xf]  ;;  %v14105_v63 = vld [vmem:[%s16408_s19 + $0x270] sm:$0xf0] }
 0x219   : > { %v10607_v16 = vor.u32 %v14105_v63, %v10606_v62  ;;  %v10471_v62 = vor.u32 %v14070_v55, %v10470_v54  ;;  %v10759_v63 = vor.u32 %v14142_v57, %v10758_v56  ;;  %v14237_v54 = vld [vmem:[%s16408_s19 + $0x694] sm:$0xf]  ;;  %v11156_v55 = vld [vmem:[%s16408_s19 + $0x6b4] sm:$0xf0] }
 0x21b   : > { %2882 = vmatpush.bf16.msrb.mxu0 %v10499_v3  ;;  %2895 = vmatpush.bf16.msrb.mxu1 %v10787_v10  ;;  %v14164_v3 = vld [vmem:[%s16408_s19 + $0x44c] sm:$0xf]  ;;  %v10860_v10 = vld [vmem:[%s16408_s19 + $0x46c] sm:$0xf0] }
 0x21c   : > { %2908 = vmatpush.bf16.msrb.mxu2 %v11075_v14  ;;  %2921 = vmatpush.bf16.msrb.mxu3 %v10503_v15  ;;  %v10578_v14 = vld [vmem:[%s16408_s19 + $0x210] sm:$0xf]  ;;  %v10319_v15 = vor.u32 %v14033_v61, %v10318_v58  ;;  %v10755_v58 = vor.u32 %v14137_v48, %v10752_v49  ;;  %v14093_v48 = vld [vmem:[%s16408_s19 + $0x214] sm:$0xf]  ;;  %v10580_v49 = vld [vmem:[%s16408_s19 + $0x234] sm:$0xf0] }
 0x21d   : > { %v10716_v61 = vld [vmem:[%s16408_s19 + $0x34c] sm:$0xf0] }
 0x21f   : > { %2883 = vmatpush.bf16.msrb.mxu0 %v10463_v22  ;;  %2896 = vmatpush.bf16.msrb.mxu1 %v10751_v23  ;;  %v10863_v22 = vor.u32 %v14164_v3, %v10860_v10  ;;  %v11151_v23 = vor.u32 %v14236_v12, %v11148_v13  ;;  %v14119_v12 = vld [vmem:[%s16408_s19 + $0x2e4] sm:$0xf]  ;;  %v10680_v13 = vld [vmem:[%s16408_s19 + $0x304] sm:$0xf0] }
 0x220   : > { %2909 = vmatpush.bf16.msrb.mxu2 %v11039_v27  ;;  %2922 = vmatpush.bf16.msrb.mxu3 %v10467_v28  ;;  %v10579_v27 = vor.u32 %v14097_v17, %v10578_v14  ;;  %v10867_v28 = vor.u32 %v14169_v19, %v10866_v18  ;;  %v10435_v14 = vor.u32 %v14061_v2, %v10434_v41  ;;  %v10968_v17 = vld [vmem:[%s16408_s19 + $0x544] sm:$0xf0]  ;;  %v14052_v19 = vld [vmem:[%s16408_s19 + $0xc8] sm:$0xf0]  ;;  %v10832_v2 = vld [vmem:[%s16408_s19 + $0x42c] sm:$0xf0] }
 0x221   : > { %v10398_v18 = vld [vmem:[%s16408_s19 + $0xa8] sm:$0xf]  ;;  %v14156_v41 = vld [vmem:[%s16408_s19 + $0x40c] sm:$0xf] }
 0x223   : > { %2884 = vmatpush.bf16.msrb.mxu0 %v10427_v35  ;;  %2897 = vmatpush.bf16.msrb.mxu1 %v10715_v11  ;;  %v10827_v35 = vor.u32 %v14155_v25, %v10824_v26  ;;  %v11115_v11 = vor.u32 %v14227_v29, %v11112_v30  ;;  %v14110_v25 = vld [vmem:[%s16408_s19 + $0x29c] sm:$0xf]  ;;  %v10644_v26 = vld [vmem:[%s16408_s19 + $0x2bc] sm:$0xf0] }
 0x224   : > { %2910 = vmatpush.bf16.msrb.mxu2 %v11003_v38  ;;  %2923 = vmatpush.bf16.msrb.mxu3 %v10431_v39  ;;  %v10543_v38 = vor.u32 %v14088_v32, %v10542_v31  ;;  %v10831_v39 = vor.u32 %v14160_v34, %v10830_v33  ;;  %v14182_v29 = vld [vmem:[%s16408_s19 + $0x4dc] sm:$0xf]  ;;  %v10932_v30 = vld [vmem:[%s16408_s19 + $0x4fc] sm:$0xf0]  ;;  %v14043_v32 = vld [vmem:[%s16408_s19 + $0x80] sm:$0xf0] }
 0x225   : > { %v10362_v31 = vld [vmem:[%s16408_s19 + $0x60] sm:$0xf]  ;;  %v14115_v34 = vld [vmem:[%s16408_s19 + $0x2c0] sm:$0xf0] }
 0x226   : > { %v10650_v33 = vld [vmem:[%s16408_s19 + $0x2a0] sm:$0xf] }
 0x227   : > { %2885 = vmatpush.bf16.msrb.mxu0 %v10391_v46  ;;  %2898 = vmatpush.bf16.msrb.mxu1 %v10679_v47  ;;  %v10791_v46 = vor.u32 %v14146_v36, %v10788_v37  ;;  %v11079_v47 = vor.u32 %v14218_v40, %v11076_v44  ;;  %v10935_v36 = vor.u32 %v14182_v29, %v10932_v30  ;;  %v10608_v37 = vld [vmem:[%s16408_s19 + $0x274] sm:$0xf0]  ;;  %v14066_v29 = vld [vmem:[%s16408_s19 + $0x13c] sm:$0xf]  ;;  %v10472_v30 = vld [vmem:[%s16408_s19 + $0x15c] sm:$0xf0] }
 0x228   : > { %2911 = vmatpush.bf16.msrb.mxu2 %v10967_v50  ;;  %2924 = vmatpush.bf16.msrb.mxu3 %v10395_v51  ;;  %v10507_v50 = vor.u32 %v14079_v5, %v10506_v45  ;;  %v10795_v51 = vor.u32 %v14151_v7, %v10794_v6  ;;  %v10363_v40 = vor.u32 %v14043_v32, %v10362_v31  ;;  %v10326_v45 = vld [vmem:[%s16408_s19 + $0x18] sm:$0xf]  ;;  %v14034_v5 = vld [vmem:[%s16408_s19 + $0x38] sm:$0xf0]  ;;  %v10760_v32 = vld [vmem:[%s16408_s19 + $0x39c] sm:$0xf0] }
 0x229   : > { %v10651_v44 = vor.u32 %v14115_v34, %v10650_v33  ;;  %v10614_v6 = vld [vmem:[%s16408_s19 + $0x258] sm:$0xf]  ;;  %v14106_v7 = vld [vmem:[%s16408_s19 + $0x278] sm:$0xf0]  ;;  %v10327_v56 = vor.u32 %v14034_v5, %v10326_v45  ;;  %v11048_v34 = vld [vmem:[%s16408_s19 + $0x5dc] sm:$0xf0] }
 0x22a   : > { %v10615_v57 = vor.u32 %v14106_v7, %v10614_v6  ;;  %v14138_v31 = vld [vmem:[%s16408_s19 + $0x37c] sm:$0xf]  ;;  %v14129_v45 = vld [vmem:[%s16408_s19 + $0x334] sm:$0xf]  ;;  %v10724_v5 = vld [vmem:[%s16408_s19 + $0x354] sm:$0xf0] }
 0x22b   : > { %2886 = vmatpush.bf16.msrb.mxu0 %v10355_v59  ;;  %2899 = vmatpush.bf16.msrb.mxu1 %v10643_v60  ;;  %v11043_v59 = vor.u32 %v14209_v52, %v11040_v53  ;;  %v14128_v60 = vld [vmem:[%s16408_s19 + $0x32c] sm:$0xf]  ;;  %v10868_v53 = vld [vmem:[%s16408_s19 + $0x474] sm:$0xf0]  ;;  %v14210_v33 = vld [vmem:[%s16408_s19 + $0x5bc] sm:$0xf] }
 0x22c   : > { %2912 = vmatpush.bf16.msrb.mxu2 %v10931_v0  ;;  %2925 = vmatpush.bf16.msrb.mxu3 %v10359_v1  ;;  %v14200_v0 = vld [vmem:[%s16408_s19 + $0x56c] sm:$0xf]  ;;  %v11004_v1 = vld [vmem:[%s16408_s19 + $0x58c] sm:$0xf0]  ;;  %v10719_v3 = vor.u32 %v14128_v60, %v10716_v61  ;;  %v11118_v60 = vld [vmem:[%s16408_s19 + $0x648] sm:$0xf] }
 0x22d   : > { %v11007_v10 = vor.u32 %v14200_v0, %v11004_v1  ;;  %v14232_v61 = vld [vmem:[%s16408_s19 + $0x668] sm:$0xf0]  ;;  %v10544_v1 = vld [vmem:[%s16408_s19 + $0x1ec] sm:$0xf0]  ;;  %v14201_v6 = vld [vmem:[%s16408_s19 + $0x574] sm:$0xf] }
 0x22e   : > { %v14084_v0 = vld [vmem:[%s16408_s19 + $0x1cc] sm:$0xf]  ;;  %v11012_v7 = vld [vmem:[%s16408_s19 + $0x594] sm:$0xf0] }
 0x22f   : > { %2887 = vmatpush.bf16.msrb.mxu0 %v10319_v15  ;;  %2900 = vmatpush.bf16.msrb.mxu1 %v10607_v16  ;;  %v10723_v15 = vor.u32 %v14133_v43, %v10722_v42  ;;  %v14191_v16 = vld [vmem:[%s16408_s19 + $0x524] sm:$0xf]  ;;  %v14228_v42 = vld [vmem:[%s16408_s19 + $0x64c] sm:$0xf]  ;;  %v11120_v43 = vld [vmem:[%s16408_s19 + $0x66c] sm:$0xf0] }
 0x230   : > { %2913 = vmatpush.bf16.msrb.mxu2 %v10895_v20  ;;  %2926 = vmatpush.bf16.msrb.mxu3 %v10323_v21  ;;  %v10686_v20 = vld [vmem:[%s16408_s19 + $0x2e8] sm:$0xf]  ;;  %v14124_v21 = vld [vmem:[%s16408_s19 + $0x308] sm:$0xf0] }
 0x232   : > { %2888 = vmatmul.bf16.vlgmr.msrb.gmra.mxu0 %v16660_v4  ;;  %2901 = vmatmul.bf16.vlgmr.msrb.gmra.mxu1 %v16662_v8 }
 0x233   : > { %2932 = vmatpush.bf16.msra.mxu0 %v10863_v22  ;;  %2945 = vmatpush.bf16.msra.mxu1 %v11151_v23  ;;  %v10683_v22 = vor.u32 %v14119_v12, %v10680_v13  ;;  %v10971_v23 = vor.u32 %v14191_v16, %v10968_v17  ;;  %v11082_v12 = vld [vmem:[%s16408_s19 + $0x600] sm:$0xf]  ;;  %v14223_v13 = vld [vmem:[%s16408_s19 + $0x620] sm:$0xf0]  ;;  %v10508_v17 = vld [vmem:[%s16408_s19 + $0x1a4] sm:$0xf0] }
 0x234   : > { %2958 = vmatpush.bf16.msra.mxu2 %v10579_v27  ;;  %2971 = vmatpush.bf16.msra.mxu3 %v10867_v28  ;;  %v10399_v27 = vor.u32 %v14052_v19, %v10398_v18  ;;  %v10687_v28 = vor.u32 %v14124_v21, %v10686_v20  ;;  %v14075_v16 = vld [vmem:[%s16408_s19 + $0x184] sm:$0xf]  ;;  %v10796_v19 = vld [vmem:[%s16408_s19 + $0x3e4] sm:$0xf0] }
 0x235   : > { %2914 = vmatmul.bf16.vlgmr.msrb.gmra.mxu2 %v16664_v9  ;;  %2927 = vmatmul.bf16.vlgmr.msrb.gmra.mxu3 %v16660_v4  ;;  %v14147_v18 = vld [vmem:[%s16408_s19 + $0x3c4] sm:$0xf]  ;;  %v11084_v21 = vld [vmem:[%s16408_s19 + $0x624] sm:$0xf0] }
 0x236   : > { %v14219_v20 = vld [vmem:[%s16408_s19 + $0x604] sm:$0xf] }
 0x237   : > { %2933 = vmatpush.bf16.msra.mxu0 %v10827_v35  ;;  %2946 = vmatpush.bf16.msra.mxu1 %v11115_v11  ;;  %v14101_v35 = vld [vmem:[%s16408_s19 + $0x254] sm:$0xf]  ;;  %v10647_v11 = vor.u32 %v14110_v25, %v10644_v26  ;;  %v11046_v25 = vld [vmem:[%s16408_s19 + $0x5b8] sm:$0xf]  ;;  %v14214_v26 = vld [vmem:[%s16408_s19 + $0x5d8] sm:$0xf0] }
 0x238   : > { %2959 = vmatpush.bf16.msra.mxu2 %v10543_v38  ;;  %2972 = vmatpush.bf16.msra.mxu3 %v10831_v39  ;;  %v14173_v38 = vld [vmem:[%s16408_s19 + $0x494] sm:$0xf]  ;;  %v10896_v39 = vld [vmem:[%s16408_s19 + $0x4b4] sm:$0xf0] }
 0x239   : > { %v10899_v52 = vor.u32 %v14173_v38, %v10896_v39  ;;  %v10763_v38 = vor.u32 %v14138_v31, %v10760_v32  ;;  %v11051_v39 = vor.u32 %v14210_v33, %v11048_v34 }
 0x23b   : > { %2934 = vmatpush.bf16.msra.mxu0 %v10791_v46  ;;  %2947 = vmatpush.bf16.msra.mxu1 %v11079_v47  ;;  %v11154_v46 = vld [vmem:[%s16408_s19 + $0x690] sm:$0xf]  ;;  %v14241_v47 = vld [vmem:[%s16408_s19 + $0x6b0] sm:$0xf0] }
 0x23c   : > { %2960 = vmatpush.bf16.msra.mxu2 %v10507_v50  ;;  %2973 = vmatpush.bf16.msra.mxu3 %v10795_v51  ;;  %v14165_v50 = vld [vmem:[%s16408_s19 + $0x454] sm:$0xf]  ;;  %v10611_v51 = vor.u32 %v14101_v35, %v10608_v37  ;;  %v11047_v35 = vor.u32 %v14214_v26, %v11046_v25  ;;  %v10874_v25 = vld [vmem:[%s16408_s19 + $0x458] sm:$0xf]  ;;  %v14170_v26 = vld [vmem:[%s16408_s19 + $0x478] sm:$0xf0] }
 0x23d   : > { %v14205_v37 = vld [vmem:[%s16408_s19 + $0x590] sm:$0xf0]  ;;  %v10875_v34 = vor.u32 %v14170_v26, %v10874_v25  ;;  %v10694_v26 = vld [vmem:[%s16408_s19 + $0x2f0] sm:$0xf] }
 0x23e   : > { %v14053_v25 = vld [vmem:[%s16408_s19 + $0xd0] sm:$0xf0] }
 0x23f   : > { %2935 = vmatpush.bf16.msra.mxu0 %v10755_v58  ;;  %2948 = vmatpush.bf16.msra.mxu1 %v11043_v59  ;;  %v11155_v58 = vor.u32 %v14241_v47, %v11154_v46  ;;  %v10583_v59 = vor.u32 %v14093_v48, %v10580_v49  ;;  %v10974_v48 = vld [vmem:[%s16408_s19 + $0x528] sm:$0xf]  ;;  %v14196_v49 = vld [vmem:[%s16408_s19 + $0x548] sm:$0xf0] }
 0x240   : > { %2961 = vmatpush.bf16.msra.mxu2 %v10471_v62  ;;  %2974 = vmatpush.bf16.msra.mxu3 %v10759_v63  ;;  %v10871_v62 = vor.u32 %v14165_v50, %v10868_v53  ;;  %v11159_v63 = vor.u32 %v14237_v54, %v11156_v55  ;;  %v10727_v50 = vor.u32 %v14129_v45, %v10724_v5  ;;  %v10400_v53 = vld [vmem:[%s16408_s19 + $0xcc] sm:$0xf0]  ;;  %v14120_v54 = vld [vmem:[%s16408_s19 + $0x2ec] sm:$0xf] }
 0x241   : > { %v10688_v55 = vld [vmem:[%s16408_s19 + $0x30c] sm:$0xf0] }
 0x243   : > { %2936 = vmatpush.bf16.msra.mxu0 %v10719_v3  ;;  %2949 = vmatpush.bf16.msra.mxu1 %v11007_v10  ;;  %v11119_v3 = vor.u32 %v14232_v61, %v11118_v60  ;;  %v10547_v10 = vor.u32 %v14084_v0, %v10544_v1  ;;  %v10938_v60 = vld [vmem:[%s16408_s19 + $0x4e0] sm:$0xf]  ;;  %v14187_v61 = vld [vmem:[%s16408_s19 + $0x500] sm:$0xf0]  ;;  %v10364_v1 = vld [vmem:[%s16408_s19 + $0x84] sm:$0xf0] }
 0x244   : > { %2962 = vmatpush.bf16.msra.mxu2 %v10435_v14  ;;  %2975 = vmatpush.bf16.msra.mxu3 %v10723_v15  ;;  %v10835_v14 = vor.u32 %v14156_v41, %v10832_v2  ;;  %v11123_v15 = vor.u32 %v14228_v42, %v11120_v43  ;;  %v14039_v0 = vld [vmem:[%s16408_s19 + $0x64] sm:$0xf]  ;;  %v10652_v2 = vld [vmem:[%s16408_s19 + $0x2c4] sm:$0xf0] }
 0x245   : > { %v14111_v41 = vld [vmem:[%s16408_s19 + $0x2a4] sm:$0xf]  ;;  %v10940_v43 = vld [vmem:[%s16408_s19 + $0x504] sm:$0xf0] }
 0x246   : > { %v14183_v42 = vld [vmem:[%s16408_s19 + $0x4e4] sm:$0xf] }
 0x247   : > { %2937 = vmatpush.bf16.msra.mxu0 %v10683_v22  ;;  %2950 = vmatpush.bf16.msra.mxu1 %v10971_v23  ;;  %v11083_v22 = vor.u32 %v14223_v13, %v11082_v12  ;;  %v10511_v23 = vor.u32 %v14075_v16, %v10508_v17  ;;  %v10902_v12 = vld [vmem:[%s16408_s19 + $0x498] sm:$0xf]  ;;  %v14178_v13 = vld [vmem:[%s16408_s19 + $0x4b8] sm:$0xf0]  ;;  %v10943_v16 = vor.u32 %v14183_v42, %v10940_v43  ;;  %v10328_v17 = vld [vmem:[%s16408_s19 + $0x3c] sm:$0xf0] }
 0x248   : > { %2963 = vmatpush.bf16.msra.mxu2 %v10399_v27  ;;  %2976 = vmatpush.bf16.msra.mxu3 %v10687_v28  ;;  %v10799_v27 = vor.u32 %v14147_v18, %v10796_v19  ;;  %v11087_v28 = vor.u32 %v14219_v20, %v11084_v21  ;;  %v14102_v18 = vld [vmem:[%s16408_s19 + $0x25c] sm:$0xf]  ;;  %v10616_v19 = vld [vmem:[%s16408_s19 + $0x27c] sm:$0xf0] }
 0x249   : > { %v14174_v20 = vld [vmem:[%s16408_s19 + $0x49c] sm:$0xf]  ;;  %v10904_v21 = vld [vmem:[%s16408_s19 + $0x4bc] sm:$0xf0]  ;;  %v10619_v31 = vor.u32 %v14102_v18, %v10616_v19 }
 0x24a   : > { %v10907_v32 = vor.u32 %v14174_v20, %v10904_v21  ;;  %v14062_v43 = vld [vmem:[%s16408_s19 + $0x118] sm:$0xf0]  ;;  %v10406_v21 = vld [vmem:[%s16408_s19 + $0xb0] sm:$0xf] }
 0x24b   : > { %2938 = vmatpush.bf16.msra.mxu0 %v10647_v11  ;;  %2951 = vmatpush.bf16.msra.mxu1 %v10935_v36  ;;  %v10475_v11 = vor.u32 %v14066_v29, %v10472_v30  ;;  %v11010_v36 = vld [vmem:[%s16408_s19 + $0x570] sm:$0xf]  ;;  %v11162_v29 = vld [vmem:[%s16408_s19 + $0x698] sm:$0xf]  ;;  %v14242_v30 = vld [vmem:[%s16408_s19 + $0x6b8] sm:$0xf0] }
 0x24c   : > { %2964 = vmatpush.bf16.msra.mxu2 %v10363_v40  ;;  %2977 = vmatpush.bf16.msra.mxu3 %v10651_v44  ;;  %v14057_v40 = vld [vmem:[%s16408_s19 + $0xf4] sm:$0xf]  ;;  %v10436_v44 = vld [vmem:[%s16408_s19 + $0x114] sm:$0xf0]  ;;  %v11011_v46 = vor.u32 %v14205_v37, %v11010_v36  ;;  %v10838_v37 = vld [vmem:[%s16408_s19 + $0x410] sm:$0xf] }
 0x24d   : > { %v10439_v47 = vor.u32 %v14057_v40, %v10436_v44  ;;  %v14089_v36 = vld [vmem:[%s16408_s19 + $0x1f0] sm:$0xf0]  ;;  %v16947_v44 = vld [vmem:[%s16411_s30] sm:$0xff] }
 0x24e   : > { %v14233_v40 = vld [vmem:[%s16408_s19 + $0x670] sm:$0xf0] }
 0x24f   : > { %2939 = vmatpush.bf16.msra.mxu0 %v10611_v51  ;;  %2952 = vmatpush.bf16.msra.mxu1 %v10899_v52  ;;  %v11015_v51 = vor.u32 %v14201_v6, %v11012_v7  ;;  %v14048_v52 = vld [vmem:[%s16408_s19 + $0xac] sm:$0xf]  ;;  %v10514_v6 = vld [vmem:[%s16408_s19 + $0x188] sm:$0xf] }
 0x250   : > { %2965 = vmatpush.bf16.msra.mxu2 %v10327_v56  ;;  %2978 = vmatpush.bf16.msra.mxu3 %v10615_v57  ;;  %v14192_v56 = vld [vmem:[%s16408_s19 + $0x52c] sm:$0xf]  ;;  %v10976_v57 = vld [vmem:[%s16408_s19 + $0x54c] sm:$0xf0] }
 0x251   : > { %v14080_v7 = vld [vmem:[%s16408_s19 + $0x1a8] sm:$0xf0] }
 0x252   : > { %2940 = vmatmul.bf16.vlgmr.msra.gmra.mxu0 %v16662_v8  ;;  %2953 = vmatmul.bf16.vlgmr.msra.gmra.mxu1 %v16664_v9 }
 0x253   : > { %2984 = vmatpush.bf16.msrb.mxu0 %v11155_v58  ;;  %2997 = vmatpush.bf16.msrb.mxu1 %v10583_v59  ;;  %v10975_v58 = vor.u32 %v14196_v49, %v10974_v48  ;;  %v10403_v59 = vor.u32 %v14048_v52, %v10400_v53  ;;  %v14152_v48 = vld [vmem:[%s16408_s19 + $0x3e8] sm:$0xf0]  ;;  %v1602_v49 = vperm.slane %v16947_v44, 0 }
 0x254   : > { %3010 = vmatpush.bf16.msrb.mxu2 %v10871_v62  ;;  %3023 = vmatpush.bf16.msrb.mxu3 %v11159_v63  ;;  %v10691_v62 = vor.u32 %v14120_v54, %v10688_v55  ;;  %v10979_v63 = vor.u32 %v14192_v56, %v10976_v57  ;;  %v10515_v54 = vor.u32 %v14080_v7, %v10514_v6  ;;  %v10478_v56 = vld [vmem:[%s16408_s19 + $0x140] sm:$0xf] }
 0x255   : > { %2966 = vmatmul.bf16.vlgmr.msra.gmra.mxu2 %v16660_v4  ;;  %2979 = vmatmul.bf16.vlgmr.msra.gmra.mxu3 %v16662_v8  ;;  %v10334_v7 = vld [vmem:[%s16408_s19 + $0x20] sm:$0xf] }
 0x257   : > { %2985 = vmatpush.bf16.msrb.mxu0 %v11119_v3  ;;  %2998 = vmatpush.bf16.msrb.mxu1 %v10547_v10  ;;  %v10939_v3 = vor.u32 %v14187_v61, %v10938_v60  ;;  %v10367_v10 = vor.u32 %v14039_v0, %v10364_v1  ;;  %v10766_v60 = vld [vmem:[%s16408_s19 + $0x380] sm:$0xf]  ;;  %v14143_v61 = vld [vmem:[%s16408_s19 + $0x3a0] sm:$0xf0] }
 0x258   : > { %3011 = vmatpush.bf16.msrb.mxu2 %v10835_v14  ;;  %3024 = vmatpush.bf16.msrb.mxu3 %v11123_v15  ;;  %v14030_v14 = vld [vmem:[%s16408_s19 + $0x1c] sm:$0xf]  ;;  %v10655_v15 = vor.u32 %v14111_v41, %v10652_v2  ;;  %v10767_v1 = vor.u32 %v14143_v61, %v10766_v60  ;;  %v10442_v41 = vld [vmem:[%s16408_s19 + $0xf8] sm:$0xf] }
 0x259   : > { %v10443_v19 = vor.u32 %v14062_v43, %v10442_v41 }
 0x25b   : > { %2986 = vmatpush.bf16.msrb.mxu0 %v11083_v22  ;;  %2999 = vmatpush.bf16.msrb.mxu1 %v10511_v23  ;;  %v10586_v22 = vld [vmem:[%s16408_s19 + $0x218] sm:$0xf]  ;;  %v14098_v23 = vld [vmem:[%s16408_s19 + $0x238] sm:$0xf0] }
 0x25c   : > { %3012 = vmatpush.bf16.msrb.mxu2 %v10799_v27  ;;  %3025 = vmatpush.bf16.msrb.mxu3 %v11087_v28  ;;  %v10903_v27 = vor.u32 %v14178_v13, %v10902_v12  ;;  %v10331_v28 = vor.u32 %v14030_v14, %v10328_v17  ;;  %v10587_v33 = vor.u32 %v14098_v23, %v10586_v22  ;;  %v11018_v14 = vld [vmem:[%s16408_s19 + $0x578] sm:$0xf] }
 0x25f   : > { %2987 = vmatpush.bf16.msrb.mxu0 %v11047_v35  ;;  %3000 = vmatpush.bf16.msrb.mxu1 %v10475_v11  ;;  %v10550_v35 = vld [vmem:[%s16408_s19 + $0x1d0] sm:$0xf]  ;;  %v11163_v11 = vor.u32 %v14242_v30, %v11162_v29  ;;  %v14197_v29 = vld [vmem:[%s16408_s19 + $0x550] sm:$0xf0]  ;;  %v10407_v30 = vor.u32 %v14053_v25, %v10406_v21 }
 0x260   : > { %3013 = vmatpush.bf16.msrb.mxu2 %v10763_v38  ;;  %3026 = vmatpush.bf16.msrb.mxu3 %v11051_v39  ;;  %v14161_v38 = vld [vmem:[%s16408_s19 + $0x430] sm:$0xf0]  ;;  %v11126_v39 = vld [vmem:[%s16408_s19 + $0x650] sm:$0xf]  ;;  %v10551_v45 = vor.u32 %v14089_v36, %v10550_v35  ;;  %v10658_v35 = vld [vmem:[%s16408_s19 + $0x2a8] sm:$0xf] }
 0x261   : > { %v10839_v5 = vor.u32 %v14161_v38, %v10838_v37  ;;  %v10946_v38 = vld [vmem:[%s16408_s19 + $0x4e8] sm:$0xf] }
 0x263   : > { %2988 = vmatpush.bf16.msrb.mxu0 %v11011_v46  ;;  %3001 = vmatpush.bf16.msrb.mxu1 %v10439_v47  ;;  %v11127_v46 = vor.u32 %v14233_v40, %v11126_v39  ;;  %v10802_v47 = vld [vmem:[%s16408_s19 + $0x3c8] sm:$0xf]  ;;  %v14188_v39 = vld [vmem:[%s16408_s19 + $0x508] sm:$0xf0] }
 0x264   : > { %3014 = vmatpush.bf16.msrb.mxu2 %v10727_v50  ;;  %3027 = vmatpush.bf16.msrb.mxu3 %v11015_v51  ;;  %v11090_v50 = vld [vmem:[%s16408_s19 + $0x608] sm:$0xf]  ;;  %v14224_v51 = vld [vmem:[%s16408_s19 + $0x628] sm:$0xf0]  ;;  %v10803_v55 = vor.u32 %v14152_v48, %v10802_v47  ;;  %v14035_v47 = vld [vmem:[%s16408_s19 + $0x40] sm:$0xf0] }
 0x265   : > { %v11091_v57 = vor.u32 %v14224_v51, %v11090_v50  ;;  %v10622_v48 = vld [vmem:[%s16408_s19 + $0x260] sm:$0xf]  ;;  %v14179_v51 = vld [vmem:[%s16408_s19 + $0x4c0] sm:$0xf0] }
 0x266   : > { %v10910_v50 = vld [vmem:[%s16408_s19 + $0x4a0] sm:$0xf] }
 0x267   : > { %2989 = vmatpush.bf16.msrb.mxu0 %v10975_v58  ;;  %3002 = vmatpush.bf16.msrb.mxu1 %v10403_v59  ;;  %v14071_v59 = vld [vmem:[%s16408_s19 + $0x160] sm:$0xf0] }
 0x268   : > { %3015 = vmatpush.bf16.msrb.mxu2 %v10691_v62  ;;  %3028 = vmatpush.bf16.msrb.mxu3 %v10979_v63  ;;  %v11054_v62 = vld [vmem:[%s16408_s19 + $0x5c0] sm:$0xf]  ;;  %v14215_v63 = vld [vmem:[%s16408_s19 + $0x5e0] sm:$0xf0]  ;;  %v10479_v0 = vor.u32 %v14071_v59, %v10478_v56 }
 0x269   : > { %v11055_v42 = vor.u32 %v14215_v63, %v11054_v62  ;;  %v1605_v63 = vperm.slane %v16947_v44, 3 }
 0x26b   : > { %2990 = vmatpush.bf16.msrb.mxu0 %v10939_v3  ;;  %3003 = vmatpush.bf16.msrb.mxu1 %v10367_v10  ;;  %v10730_v3 = vld [vmem:[%s16408_s19 + $0x338] sm:$0xf]  ;;  %v14134_v10 = vld [vmem:[%s16408_s19 + $0x358] sm:$0xf0] }
 0x26c   : > { %3016 = vmatpush.bf16.msrb.mxu2 %v10655_v15  ;;  %3029 = vmatpush.bf16.msrb.mxu3 %v10943_v16  ;;  %v14206_v15 = vld [vmem:[%s16408_s19 + $0x598] sm:$0xf0]  ;;  %v10731_v20 = vor.u32 %v14134_v10, %v10730_v3 }
 0x26d   : > { %v11019_v23 = vor.u32 %v14206_v15, %v11018_v14 }
 0x26e   : > { %v2733_v52 = vpop.f32.mrf.mxu0  ;;  %v2746_v53 = vpop.f32.mrf.mxu1 }
 0x26f   : > { %2991 = vmatpush.bf16.msrb.mxu0 %v10903_v27  ;;  %3004 = vmatpush.bf16.msrb.mxu1 %v10331_v28  ;;  %v2734_v58 = vadd.f32 %v2733_v52, %v1602_v49  ;;  %v14125_v27 = vld [vmem:[%s16408_s19 + $0x310] sm:$0xf0]  ;;  %v10982_v28 = vld [vmem:[%s16408_s19 + $0x530] sm:$0xf]  ;;  %v14107_v49 = vld [vmem:[%s16408_s19 + $0x280] sm:$0xf0]  ;;  %v10335_v52 = vor.u32 %v14035_v47, %v10334_v7 }
 0x270   : > { %3017 = vmatpush.bf16.msrb.mxu2 %v10619_v31  ;;  %3030 = vmatpush.bf16.msrb.mxu3 %v10907_v32  ;;  %v10695_v31 = vor.u32 %v14125_v27, %v10694_v26  ;;  %v10370_v32 = vld [vmem:[%s16408_s19 + $0x68] sm:$0xf] }
 0x271   : > { %v2747_v2 = vadd.f32 %v2746_v53, %v2734_v58  ;;  %v10623_v53 = vor.u32 %v14107_v49, %v10622_v48 }
 0x272   : > { %2992 = vmatmul.bf16.vlgmr.msrb.gmra.mxu0 %v16664_v9  ;;  %3005 = vmatmul.bf16.vlgmr.msrb.gmra.mxu1 %v16660_v4 }
 0x273   : > { %3036 = vmatpush.bf16.msra.mxu0 %v10587_v33  ;;  %3049 = vmatpush.bf16.msra.mxu1 %v10875_v34  ;;  %v10983_v33 = vor.u32 %v14197_v29, %v10982_v28  ;;  %v14044_v34 = vld [vmem:[%s16408_s19 + $0x88] sm:$0xf0]  ;;  %v1604_v29 = vperm.slane %v16947_v44, 2 }
 0x274   : > { %3062 = vmatpush.bf16.msra.mxu2 %v11163_v11  ;;  %3031 = vmatmul.bf16.vlgmr.msrb.gmra.mxu3 %v16664_v9  ;;  %v14116_v11 = vld [vmem:[%s16408_s19 + $0x2c8] sm:$0xf0] }
 0x275   : > { %3018 = vmatmul.bf16.vlgmr.msrb.gmra.mxu2 %v16662_v8  ;;  %v2759_v12 = vpop.f32.mrf.mxu2  ;;  %v16970_v13 = vpop.f32.mrf.mxu3  ;;  %v10659_v6 = vor.u32 %v14116_v11, %v10658_v35  ;;  %v1607_v35 = vperm.slane %v16947_v44, 5 }
 0x276   : > { %v2760_v16 = vadd.f32 %v2759_v12, %v2747_v2  ;;  %v2735_v17 = vpop.f32.mrf.mxu0  ;;  %v2748_v18 = vpop.f32.mrf.mxu1  ;;  %v1606_v12 = vperm.slane %v16947_v44, 4 }
 0x277   : > { %3037 = vmatpush.bf16.msra.mxu0 %v10551_v45  ;;  %3050 = vmatpush.bf16.msra.mxu1 %v10839_v5  ;;  %v10371_v5 = vor.u32 %v14044_v34, %v10370_v32  ;;  %v1603_v17 = vperm.slane %v16947_v44, 1 }
 0x278   : > { %3063 = vmatpush.bf16.msra.mxu2 %v11127_v46  ;;  %v16975_v22 = vpack.c.bf16 %v2760_v16, %v2760_v16  ;;  %v10947_v46 = vor.u32 %v14188_v39, %v10946_v38 }
 0x279   : > { %v2773_v21 = vadd.f32 %v16970_v13, %v1603_v17  ;;  %v3075_v17 = vlaneseq }
 0x27a   : > { %3137 = vrot.lane.b32.xlu2 %v16975_v22, %s15981_s22 }
 0x27b   : > { %3038 = vmatpush.bf16.msra.mxu0 %v10515_v54  ;;  %3051 = vmatpush.bf16.msra.mxu1 %v10803_v55  ;;  %v10911_v54 = vor.u32 %v14179_v51, %v10910_v50  ;;  %v1608_v50 = vperm.slane %v16947_v44, 6 }
 0x27c   : > { %3064 = vmatpush.bf16.msra.mxu2 %v11091_v57 }
 0x27d   : > { %v2761_v36 = vpop.f32.mrf.mxu2  ;;  %v2774_v37 = vpop.f32.mrf.mxu3 }
 0x27e   : > { %v2785_v40 = vpop.f32.mrf.mxu0  ;;  %v16990_v45 = vpop.f32.mrf.mxu1 }
 0x27f   : > { %3039 = vmatpush.bf16.msra.mxu0 %v10479_v0  ;;  %3052 = vmatpush.bf16.msra.mxu1 %v10767_v1  ;;  %v2786_v27 = vadd.f32 %v2785_v40, %v2773_v21 }
 0x280   : > { %3065 = vmatpush.bf16.msra.mxu2 %v11055_v42 }
 0x283   : > { %3040 = vmatpush.bf16.msra.mxu0 %v10443_v19  ;;  %3053 = vmatpush.bf16.msra.mxu1 %v10731_v20 }
 0x284   : > { %3066 = vmatpush.bf16.msra.mxu2 %v11019_v23 }
 0x285   : > { %v2811_v55 = vpop.f32.mrf.mxu2  ;;  %v2824_v56 = vpop.f32.mrf.mxu3 }
 0x286   : > { %v2787_v57 = vpop.f32.mrf.mxu0  ;;  %v2800_v58 = vpop.f32.mrf.mxu1  ;;  %v2812_v32 = vadd.f32 %v2811_v55, %v1604_v29 }
 0x287   : > { %3041 = vmatpush.bf16.msra.mxu0 %v10407_v30  ;;  %3054 = vmatpush.bf16.msra.mxu1 %v10695_v31 }
 0x288   : > { %3067 = vmatpush.bf16.msra.mxu2 %v10983_v33  ;;  %v2825_v34 = vadd.f32 %v2824_v56, %v2812_v32  ;;  %v1609_v56 = vperm.slane %v16947_v44, 7 }
 0x28b   : > { %3042 = vmatpush.bf16.msra.mxu0 %v10371_v5  ;;  %3055 = vmatpush.bf16.msra.mxu1 %v10659_v6 }
 0x28c   : > { %3068 = vmatpush.bf16.msra.mxu2 %v10947_v46 }
 0x28d   : > { %v2813_v59 = vpop.f32.mrf.mxu2  ;;  %v2826_v60 = vpop.f32.mrf.mxu3 }
 0x28f   : > { %3043 = vmatpush.bf16.msra.mxu0 %v10335_v52  ;;  %3056 = vmatpush.bf16.msra.mxu1 %v10623_v53  ;;  %v2837_v61 = vpop.f32.mrf.mxu0  ;;  %v2850_v62 = vpop.f32.mrf.mxu1 }
 0x290   : > { %3069 = vmatpush.bf16.msra.mxu2 %v10911_v54  ;;  %v2851_v0 = vadd.f32 %v2850_v62, %v1605_v63  ;;  %v2838_v13 = vadd.f32 %v2837_v61, %v2825_v34 }
 0x292   : > { %3044 = vmatmul.bf16.vlgmr.msra.gmra.mxu0 %v16660_v4  ;;  %3057 = vmatmul.bf16.vlgmr.msra.gmra.mxu1 %v16662_v8  ;;  %v3313_v11 = vpack.c.bf16 %v2838_v13, %v2838_v13 }
 0x293   : > { %3070 = vmatmul.bf16.vlgmr.msra.gmra.mxu2 %v16664_v9 }
 0x297   : > { %v2839_v42 = vpop.f32.mrf.mxu0  ;;  %v2852_v43 = vpop.f32.mrf.mxu1 }
 0x298   : > { %v2863_v1 = vpop.f32.mrf.mxu2  ;;  %v2876_v41 = vpop.f32.mrf.mxu3  ;;  %v15175_v43 = vld [vmem:[%s16411_s30 + $0x8] ss:$0 sm:$0xff]  ;;  %s19668_s30 = sld [smem:[#allocation75_spill]] (!%p13768_p7) }
 0x299   : > { %v2864_v2 = vadd.f32 %v2863_v1, %v2851_v0 }
 0x29b   : > { %v2877_v3 = vadd.f32 %v2876_v41, %v2864_v2 }
 0x29d   : > { %v17002_v10 = vpack.c.bf16 %v2877_v3, %v2877_v3 }
 0x29f   : > { %v3086_v4 = vsel %vm3081_vm4, %v17002_v10, 0 }
 0x2a0   : > { %v2865_v8 = vpop.f32.mrf.mxu2  ;;  %v2878_v9 = vpop.f32.mrf.mxu3  ;;  %3095 = vmatpush.bf16.xpose.msra.mxu3 %v3086_v4 }
 0x2a7   : > { %11164 = vmatmul.msk.bf16.vlgmr.msra.gmra.mxu3 %vm3081_vm4, %v16975_v22  ;;  %v2799_v22 = vadd.f32 %v16990_v45, %v2786_v27 }
 0x2a9   : > { %v17014_v33 = vpack.c.bf16 %v2799_v22, %v2799_v22 }
 0x2af   : > { %v2889_v14 = vpop.f32.mrf.mxu0  ;;  %v2902_v15 = vpop.f32.mrf.mxu1 }
 0x2b0   : > { %v2890_v16 = vadd.f32 %v2889_v14, %v1606_v12 }
 0x2b2   : > { %v2903_v18 = vadd.f32 %v2902_v15, %v2890_v16 }
 0x2b7   : > { %v2891_v25 = vpop.f32.mrf.mxu0  ;;  %v2904_v26 = vpop.f32.mrf.mxu1 }
 0x2b8   : > { %v2915_v19 = vpop.f32.mrf.mxu2  ;;  %v2928_v20 = vpop.f32.mrf.mxu3 }
 0x2b9   : > { %v2916_v23 = vadd.f32 %v2915_v19, %v2903_v18  ;;  %v2929_v36 = vadd.f32 %v2928_v20, %v1607_v35  ;;  %v17033_v18 = vand.u32 127, %v3075_v17 }
 0x2bb   : > { %v3198_v28 = vpack.c.bf16 %v2916_v23, %v2916_v23  ;;  %vm3077_vm6 = vcmp.lt.s32.totalorder %v17033_v18, 5 }
 0x2bd   : > { %3256 = vrot.lane.b32.xlu2 %v3198_v28, %s15981_s22  ;;  %v3204_v59 = vsel %vm3081_vm4, %v3198_v28, 0 }
 0x2c0   : > { %v2917_v30 = vpop.f32.mrf.mxu2  ;;  %v2930_v31 = vpop.f32.mrf.mxu3 }
 0x2c5   : > { %3253 = vrot.lane.b32.xlu2 %v17014_v33, %s15981_s22 }
 0x2cd   : > { %3369 = vrot.lane.b32.xlu2 %v3313_v11, %s15981_s22 }
 0x2cf   : > { %v2941_v37 = vpop.f32.mrf.mxu0  ;;  %v2954_v38 = vpop.f32.mrf.mxu1 }
 0x2d0   : > { %v2942_v39 = vadd.f32 %v2941_v37, %v2929_v36 }
 0x2d2   : > { %v2955_v40 = vadd.f32 %v2954_v38, %v2942_v39 }
 0x2d4   : > { %v17020_v45 = vpack.c.bf16 %v2955_v40, %v2955_v40  ;;  %v3138_v32 = vpop.permute.xlu2 %3137 }
 0x2d6   : > { %v3320_v5 = vsel %vm3081_vm4, %v17020_v45, 0 }
 0x2d7   : > { %v2943_v46 = vpop.f32.mrf.mxu0  ;;  %v2956_v47 = vpop.f32.mrf.mxu1  ;;  %3329 = vmatpush.bf16.xpose.msrb.mxu2 %v3320_v5 }
 0x2d8   : > { %v2967_v6 = vpop.f32.mrf.mxu2  ;;  %v2980_v7 = vpop.f32.mrf.mxu3 }
 0x2d9   : > { %v2968_v51 = vadd.f32 %v2967_v6, %v1608_v50 }
 0x2db   : > { %v2981_v52 = vadd.f32 %v2980_v7, %v2968_v51 }
 0x2de   : > { %11172 = vmatmul.msk.bf16.vlgmr.msrb.gmra.mxu2 %vm3081_vm4, %v3313_v11 }
 0x2e0   : > { %v2969_v48 = vpop.f32.mrf.mxu2  ;;  %v2982_v49 = vpop.f32.mrf.mxu3 }
 0x2ef   : > { %v2993_v53 = vpop.f32.mrf.mxu0  ;;  %v3006_v55 = vpop.f32.mrf.mxu1 }
 0x2f0   : > { %v2994_v54 = vadd.f32 %v2993_v53, %v2981_v52  ;;  %v3007_v60 = vadd.f32 %v3006_v55, %v1609_v56 }
 0x2f2   : > { %v17027_v57 = vpack.c.bf16 %v2994_v54, %v2994_v54 }
 0x2f4   : > { %v3121_v58 = vsel %vm3119_vm5, %v17027_v57, 0 }
 0x2f5   : > { %3130 = vmatpush.bf16.msrb.mxu3 %v3121_v58 }
 0x2f7   : > { %v3032_v63 = vpop.f32.mrf.mxu3  ;;  %v2995_v0 = vpop.f32.mrf.mxu0 }
 0x2f8   : > { %v3019_v61 = vpop.f32.mrf.mxu2  ;;  %v3008_v1 = vpop.f32.mrf.mxu1 }
 0x2f9   : > { %3213 = vmatpush.bf16.xpose.msra.mxu3 %v3204_v59  ;;  %v3020_v62 = vadd.f32 %v3019_v61, %v3007_v60 }
 0x2fb   : > { %v3033_v41 = vadd.f32 %v3032_v63, %v3020_v62 }
 0x2fd   : > { %v3199_v38 = vpack.c.bf16 %v3033_v41, %v3033_v41 }
 0x2ff   : > { %v3034_v42 = vpop.f32.mrf.mxu3  ;;  %v3237_v5 = vsel %vm3119_vm5, %v3199_v38, 0 }
 0x300   : > { %v3021_v2 = vpop.f32.mrf.mxu2 }
 0x30f   : > { %v3045_v44 = vpop.f32.mrf.mxu0  ;;  %v3058_v3 = vpop.f32.mrf.mxu1 }
 0x310   : > { %v3046_v4 = vadd.f32 %v15175_v43, %v3045_v44 }
 0x312   : > { %v3059_v8 = vadd.f32 %v3058_v3, %v3046_v4 }
 0x316   : > { %v3071_v9 = vpop.f32.mrf.mxu2 }
 0x317   : > { %v3072_v12 = vadd.f32 %v3071_v9, %v3059_v8  ;;  %v3047_v14 = vpop.f32.mrf.mxu0  ;;  %v3060_v15 = vpop.f32.mrf.mxu1 }
 0x318   : > { %v3257_v34 = vpop.permute.xlu2 %3256 }
 0x319   : > { %v3262_v11 = vsel %vm3081_vm4, %v3257_v34, 0 }
 0x31e   : > { %v3073_v16 = vpop.f32.mrf.mxu2 }
 0x32a   : > { %v3097_v19 = vpop.f32.mrf.mxu3 }
 0x32b   : > { %v3101_v20 = vmul.f32 0.125, %v3097_v19 }
 0x32d   : > { %v3102_v21 = vsel %vm3077_vm6, %v3101_v20, -1e+30 }
 0x32e   : > { %v3104_v23 = vsel %vm3103_vm7, %v3102_v21, -inf }
 0x32f   : > { %3105 = vmax.xlane.f32.xlu1 %v3104_v23 }
 0x332   : > { %v3099_v25 = vpop.f32.mrf.mxu3 }
 0x348   : > { %3140 = vrot.lane.b32.xlu1 %v17002_v10, %s15981_s22  ;;  %v3254_v10 = vpop.permute.xlu2 %3253 }
 0x350   : > { %v3370_v46 = vpop.permute.xlu2 %3369 }
 0x361   : > { %v17041_v26 = vpop.f32.mrf.mxu2 }
 0x362   : > { %v3335_v8 = vmul.f32 0.125, %v17041_v26 }
 0x364   : > { %v3336_v16 = vsel %vm3077_vm6, %v3335_v8, -1e+30 }
 0x365   : > { %v3337_v19 = vsel %vm3103_vm7, %v3336_v16, -inf }
 0x369   : > { %v3333_v27 = vpop.f32.mrf.mxu2 }
 0x3a2   : > { %v3106_v28 = vpop.xlane.xlu1 %3105 }
 0x3a3   : > { %v3107_v29 = vsub.f32 %v3102_v21, %v3106_v28 }
 0x3a5   : > { %v3108_v22 = vmul.f32 1.442695, %v3107_v29 }
 0x3a7   : > { %15180 = vpow2.f32 %v3108_v22 }
 0x3ad   : > { %v15181_v30 = vpop.eup %15180 }
 0x3ae   : > { %v3110_v31 = vsel %vm3103_vm7, %v15181_v30, 0.0 }
 0x3af   : > { %3111 = vadd.xlane.f32.xlu0 %v3110_v31 }
 0x3ba   : > { %v3141_v13 = vpop.permute.xlu1 %3140 }
 0x3bb   : > { %v3146_v35 = vsel %vm3081_vm4, %v3141_v13, 0 }
 0x3bc   : > { %3155 = vmatpush.bf16.xpose.msrb.mxu0 %v3146_v35 }
 0x3c3   : > { %3372 = vrot.lane.b32.xlu0 %v17020_v45, %s15981_s22  ;;  %11166 = vmatmul.msk.bf16.vlgmr.msrb.gmra.mxu0 %vm3081_vm4, %v3138_v32  ;;  %v17053_v45 = vpack.c.bf16 %v3072_v12, %v3072_v12 }
 0x3c4   : > { %3271 = vmatpush.bf16.xpose.msra.mxu0 %v3262_v11 }
 0x3c5   : > { %v3353_v47 = vsel %vm3119_vm5, %v17053_v45, 0 }
 0x3d3   : > { %11170 = vmatmul.msk.bf16.vlgmr.msra.gmra.mxu0 %vm3081_vm4, %v3254_v10 }
 0x422   : > { %v3112_v36 = vpop.xlane.xlu0 %3111 }
 0x423   : > { %15182 = vrcp.f32 %v3112_v36 }
 0x429   : > { %v15183_v37 = vpop.eup %15182 }
 0x42a   : > { %v3114_v39 = vmul.f32 %v15183_v37, %v15181_v30 }
 0x42c   : > { %v3115_v40 = vpack.c.bf16 %v3114_v39, %v3114_v39 }
 0x42e   : > { %11165 = vmatmul.msk.bf16.vlgmr.msrb.gmra.mxu3 %vm3103_vm7, %v3115_v40 }
 0x42f   : > { %3246 = vmatpush.bf16.msrb.mxu3 %v3237_v5 }
 0x435   : > { %v3373_v6 = vpop.permute.xlu0 %3372 }
 0x436   : > { %v3378_v7 = vsel %vm3081_vm4, %v3373_v6, 0 }
 0x437   : > { %3387 = vmatpush.bf16.xpose.msrb.mxu0 %v3378_v7 }
 0x43e   : > { %11168 = vmatmul.msk.bf16.vlgmr.msra.gmra.mxu3 %vm3081_vm4, %v17014_v33  ;;  %11174 = vmatmul.msk.bf16.vlgmr.msrb.gmra.mxu0 %vm3081_vm4, %v3370_v46 }
 0x43f   : > { %3362 = vmatpush.bf16.msra.mxu3 %v3353_v47 }
 0x440   : > { %v3157_v48 = vpop.f32.mrf.mxu0 }
 0x441   : > { %v3161_v49 = vmul.f32 0.125, %v3157_v48 }
 0x443   : > { %v3162_v50 = vsel %vm3077_vm6, %v3161_v49, -1e+30 }
 0x444   : > { %v3163_v51 = vsel %vm3103_vm7, %v3162_v50, -inf }
 0x445   : > { %3164 = vmax.xlane.f32.xlu2 %v3163_v51 }
 0x448   : > { %v3159_v52 = vpop.f32.mrf.mxu0 }
 0x450   : > { %v3273_v53 = vpop.f32.mrf.mxu0 }
 0x451   : > { %v3277_v54 = vmul.f32 0.125, %v3273_v53  ;;  %v14265_v53 = vld [vmem:[%s16418_s20 + $0xb0] sm:$0xf0] }
 0x453   : > { %v3278_v55 = vsel %vm3077_vm6, %v3277_v54, -1e+30  ;;  %v14264_v54 = vld [vmem:[%s16418_s20 + $0xac] sm:$0xf] }
 0x454   : > { %v3279_v56 = vsel %vm3103_vm7, %v3278_v55, -inf }
 0x455   : > { %3280 = vmax.xlane.f32.xlu1 %v3279_v56 }
 0x458   : > { %v3275_v33 = vpop.f32.mrf.mxu0 }
 0x4b1   : > { %v17066_v58 = vpop.f32.mrf.mxu3 }
 0x4b8   : > { %v3165_v59 = vpop.xlane.xlu2 %3164 }
 0x4b9   : > { %v3166_v60 = vsub.f32 %v3162_v50, %v3165_v59  ;;  %v3134_v61 = vpop.f32.mrf.mxu3 }
 0x4ba   : > { %v11250_v61 = vld [vmem:[%s16418_s20 + $0x90] sm:$0xf] }
 0x4bb   : > { %v3167_v62 = vmul.f32 1.442695, %v3166_v60  ;;  %v3389_v63 = vpop.f32.mrf.mxu0  ;;  %v11264_v60 = vld [vmem:[%s16418_s20 + $0xb4] sm:$0xf0] }
 0x4bc   : > { %v3393_v0 = vmul.f32 0.125, %v3389_v63 }
 0x4bd   : > { %15184 = vpow2.f32 %v3167_v62  ;;  %v14262_v62 = vld [vmem:[%s16418_s20 + $0x98] sm:$0xf0] }
 0x4be   : > { %v3394_v1 = vsel %vm3077_vm6, %v3393_v0, -1e+30  ;;  %v11267_v0 = vor.u32 %v14264_v54, %v11264_v60 }
 0x4bf   : > { %v3395_v41 = vsel %vm3103_vm7, %v3394_v1, -inf }
 0x4c0   : > { %3396 = vmax.xlane.f32.xlu0 %v3395_v41  ;;  %v14261_v41 = vld [vmem:[%s16418_s20 + $0x94] sm:$0xf] }
 0x4c1   : > { %v3215_v2 = vpop.f32.mrf.mxu3 }
 0x4c2   : > { %v3219_v42 = vmul.f32 0.125, %v3215_v2 }
 0x4c3   : > { %v15185_v43 = vpop.eup %15184  ;;  %v3391_v44 = vpop.f32.mrf.mxu0 }
 0x4c4   : > { %v3169_v3 = vsel %vm3103_vm7, %v15185_v43, 0.0  ;;  %v3220_v4 = vsel %vm3077_vm6, %v3219_v42, -1e+30  ;;  %v11252_v42 = vld [vmem:[%s16418_s20 + $0x9c] sm:$0xf0] }
 0x4c5   : > { %3170 = vadd.xlane.f32.xlu1 %v3169_v3  ;;  %v3221_v9 = vsel %vm3103_vm7, %v3220_v4, -inf  ;;  %v14259_v44 = vld [vmem:[%s16418_s20 + $0x80] sm:$0xf0]  ;;  %v11255_v8 = vor.u32 %v14261_v41, %v11252_v42  ;;  %v14286_v42 = vld [vmem:[%s16418_s20 + $0x158] sm:$0xf0] }
 0x4c6   : > { %3222 = vmax.xlane.f32.xlu2 %v3221_v9 }
 0x4c8   : > { %v3281_v12 = vpop.xlane.xlu1 %3280 }
 0x4c9   : > { %v3282_v14 = vsub.f32 %v3278_v55, %v3281_v12  ;;  %v3217_v15 = vpop.f32.mrf.mxu3  ;;  %v14258_v12 = vld [vmem:[%s16418_s20 + $0x7c] sm:$0xf] }
 0x4ca   : > { %v11226_v15 = vld [vmem:[%s16418_s20 + $0x60] sm:$0xf] }
 0x4cb   : > { %v3283_v17 = vmul.f32 1.442695, %v3282_v14  ;;  %v11240_v14 = vld [vmem:[%s16418_s20 + $0x84] sm:$0xf0] }
 0x4cd   : > { %15186 = vpow2.f32 %v3283_v17  ;;  %3338 = vmax.xlane.f32.xlu1 %v3337_v19 }
 0x4d3   : > { %v15187_v20 = vpop.eup %15186 }
 0x4d4   : > { %v3285_v21 = vsel %vm3103_vm7, %v15187_v20, 0.0 }
 0x4d5   : > { %3286 = vadd.xlane.f32.xlu0 %v3285_v21 }
 0x4de   : > { %3176 = vrot.lane.b32.xlu2 %v17027_v57, %s15981_s22 }
 0x4e6   : > { %3292 = vrot.lane.b32.xlu1 %v3199_v38, %s15981_s22 }
 0x533   : > { %v3397_v23 = vpop.xlane.xlu0 %3396 }
 0x534   : > { %v3398_v25 = vsub.f32 %v3394_v1, %v3397_v23  ;;  %v11251_v1 = vor.u32 %v14262_v62, %v11250_v61  ;;  %v11358_v23 = vld [vmem:[%s16418_s20 + $0x168] sm:$0xf] }
 0x536   : > { %v3399_v26 = vmul.f32 1.442695, %v3398_v25  ;;  %v14289_v25 = vld [vmem:[%s16418_s20 + $0x170] sm:$0xf0] }
 0x538   : > { %15188 = vpow2.f32 %v3399_v26  ;;  %v3171_v18 = vpop.xlane.xlu1 %3170  ;;  %v14255_v26 = vld [vmem:[%s16418_s20 + $0x64] sm:$0xf] }
 0x539   : > { %15190 = vrcp.f32 %v3171_v18  ;;  %v3223_v27 = vpop.xlane.xlu2 %3222  ;;  %v11228_v18 = vld [vmem:[%s16418_s20 + $0x6c] sm:$0xf0] }
 0x53a   : > { %v3224_v28 = vsub.f32 %v3220_v4, %v3223_v27  ;;  %v11359_v27 = vor.u32 %v14289_v25, %v11358_v23  ;;  %v11330_v23 = vld [vmem:[%s16418_s20 + $0x128] sm:$0xf]  ;;  %v14281_v25 = vld [vmem:[%s16418_s20 + $0x130] sm:$0xf0] }
 0x53c   : > { %v3225_v29 = vmul.f32 1.442695, %v3224_v28 }
 0x53e   : > { %v15189_v22 = vpop.eup %15188  ;;  %15192 = vpow2.f32 %v3225_v29  ;;  %v11214_v29 = vld [vmem:[%s16418_s20 + $0x48] sm:$0xf] }
 0x53f   : > { %v15191_v30 = vpop.eup %15190  ;;  %v3401_v31 = vsel %vm3103_vm7, %v15189_v22, 0.0 }
 0x540   : > { %v3173_v32 = vmul.f32 %v15191_v30, %v15185_v43  ;;  %v3339_v34 = vpop.xlane.xlu1 %3338  ;;  %3402 = vadd.xlane.f32.xlu0 %v3401_v31  ;;  %v11238_v43 = vld [vmem:[%s16418_s20 + $0x78] sm:$0xf]  ;;  %v11231_v30 = vor.u32 %v14255_v26, %v11228_v18 }
 0x541   : > { %v3340_v57 = vsub.f32 %v3336_v16, %v3339_v34  ;;  %v3177_v13 = vpop.permute.xlu2 %3176  ;;  %v11239_v9 = vor.u32 %v14259_v44, %v11238_v43  ;;  %v14256_v16 = vld [vmem:[%s16418_s20 + $0x68] sm:$0xf0]  ;;  %v11216_v34 = vld [vmem:[%s16418_s20 + $0x54] sm:$0xf0] }
 0x542   : > { %v3182_v35 = vsel %vm3119_vm5, %v3177_v13, 0  ;;  %v3174_v36 = vpack.c.bf16 %v3173_v32, %v3173_v32  ;;  %v11227_v21 = vor.u32 %v14256_v16, %v11226_v15  ;;  %v14252_v32 = vld [vmem:[%s16418_s20 + $0x4c] sm:$0xf]  ;;  %v11202_v13 = vld [vmem:[%s16418_s20 + $0x30] sm:$0xf] }
 0x543   : > { %v3341_v11 = vmul.f32 1.442695, %v3340_v57  ;;  %3191 = vmatpush.bf16.msrb.mxu1 %v3182_v35  ;;  %v14250_v35 = vld [vmem:[%s16418_s20 + $0x38] sm:$0xf0]  ;;  %v11334_v44 = vld [vmem:[%s16418_s20 + $0x138] sm:$0xf] }
 0x544   : > { %v15193_v10 = vpop.eup %15192 }
 0x545   : > { %15194 = vpow2.f32 %v3341_v11  ;;  %v3227_v37 = vsel %vm3103_vm7, %v15193_v10, 0.0  ;;  %v11219_v11 = vor.u32 %v14252_v32, %v11216_v34  ;;  %v14278_v32 = vld [vmem:[%s16418_s20 + $0x118] sm:$0xf0] }
 0x546   : > { %3228 = vadd.xlane.f32.xlu2 %v3227_v37  ;;  %11167 = vmatmul.msk.bf16.vlgmr.msrb.gmra.mxu1 %vm3103_vm7, %v3174_v36  ;;  %v14249_v36 = vld [vmem:[%s16418_s20 + $0x34] sm:$0xf]  ;;  %v11204_v37 = vld [vmem:[%s16418_s20 + $0x3c] sm:$0xf0] }
 0x548   : > { %v3287_v39 = vpop.xlane.xlu0 %3286 }
 0x549   : > { %15196 = vrcp.f32 %v3287_v39  ;;  %v14247_v39 = vld [vmem:[%s16418_s20 + $0x20] sm:$0xf0] }
 0x54b   : > { %v17087_v38 = vpop.eup %15194 }
 0x54c   : > { %v3343_v40 = vsel %vm3103_vm7, %v17087_v38, 0.0 }
 0x54d   : > { %3344 = vadd.xlane.f32.xlu1 %v3343_v40  ;;  %v11207_v40 = vor.u32 %v14249_v36, %v11204_v37  ;;  %v11300_v36 = vld [vmem:[%s16418_s20 + $0xfc] sm:$0xf0]  ;;  %v11306_v37 = vld [vmem:[%s16418_s20 + $0xf8] sm:$0xf] }
 0x54f   : > { %v15197_v5 = vpop.eup %15196 }
 0x550   : > { %v3289_v6 = vmul.f32 %v15197_v5, %v15187_v20  ;;  %v11243_v20 = vor.u32 %v14258_v12, %v11240_v14  ;;  %v11342_v12 = vld [vmem:[%s16418_s20 + $0x140] sm:$0xf]  ;;  %v14284_v14 = vld [vmem:[%s16418_s20 + $0x148] sm:$0xf0] }
 0x551   : > { %v11343_v16 = vor.u32 %v14284_v14, %v11342_v12  ;;  %v14307_v12 = vld [vmem:[%s16418_s20 + $0x200] sm:$0xf0] }
 0x552   : > { %v3290_v47 = vpack.c.bf16 %v3289_v6, %v3289_v6 }
 0x554   : > { %3408 = vrot.lane.b32.xlu0 %v17053_v45, %s15981_s22  ;;  %v11262_v45 = vld [vmem:[%s16418_s20 + $0xa8] sm:$0xf] }
 0x555   : > { %v11263_v59 = vor.u32 %v14265_v53, %v11262_v45  ;;  %v14243_v45 = vld [vmem:[%s16418_s20 + $0x4] sm:$0xf]  ;;  %v11180_v53 = vld [vmem:[%s16418_s20 + $0xc] sm:$0xf0] }
 0x556   : > { %v11183_v60 = vor.u32 %v14243_v45, %v11180_v53  ;;  %v11274_v45 = vld [vmem:[%s16418_s20 + $0xc0] sm:$0xf]  ;;  %v14268_v53 = vld [vmem:[%s16418_s20 + $0xc8] sm:$0xf0] }
 0x557   : > { %3935 = vmatpush.bf16.msra.mxu2 %v11263_v59  ;;  %v11348_v59 = vld [vmem:[%s16418_s20 + $0x15c] sm:$0xf0] }
 0x558   : > { %v3293_v7 = vpop.permute.xlu1 %3292 }
 0x559   : > { %v3298_v46 = vsel %vm3119_vm5, %v3293_v7, 0  ;;  %v14246_v7 = vld [vmem:[%s16418_s20 + $0x1c] sm:$0xf] }
 0x55a   : > { %3307 = vmatpush.bf16.msra.mxu1 %v3298_v46  ;;  %v11192_v46 = vld [vmem:[%s16418_s20 + $0x24] sm:$0xf0] }
 0x55b   : > { %3936 = vmatpush.bf16.msra.mxu2 %v11251_v1  ;;  %v14287_v1 = vld [vmem:[%s16418_s20 + $0x160] sm:$0xf0] }
 0x55d   : > { %11171 = vmatmul.msk.bf16.vlgmr.msra.gmra.mxu1 %vm3103_vm7, %v3290_v47  ;;  %v11178_v47 = vld [vmem:[%s16418_s20] sm:$0xf] }
 0x55f   : > { %3937 = vmatpush.bf16.msra.mxu2 %v11239_v9  ;;  %v11336_v9 = vld [vmem:[%s16418_s20 + $0x144] sm:$0xf0] }
 0x563   : > { %3938 = vmatpush.bf16.msra.mxu2 %v11227_v21  ;;  %v11324_v21 = vld [vmem:[%s16418_s20 + $0x12c] sm:$0xf0] }
 0x5b3   : > { %v3403_v48 = vpop.xlane.xlu0 %3402 }
 0x5b9   : > { %v3229_v49 = vpop.xlane.xlu2 %3228 }
 0x5ba   : > { %15198 = vrcp.f32 %v3229_v49  ;;  %v14288_v49 = vld [vmem:[%s16418_s20 + $0x16c] sm:$0xf] }
 0x5bb   : > { %15200 = vrcp.f32 %v3403_v48  ;;  %v14244_v48 = vld [vmem:[%s16418_s20 + $0x8] sm:$0xf0] }
 0x5c0   : > { %v15199_v50 = vpop.eup %15198  ;;  %v3345_v56 = vpop.xlane.xlu1 %3344 }
 0x5c1   : > { %v3231_v51 = vmul.f32 %v15199_v50, %v15193_v10  ;;  %v15201_v52 = vpop.eup %15200  ;;  %15202 = vrcp.f32 %v3345_v56  ;;  %v11203_v10 = vor.u32 %v14250_v35, %v11202_v13  ;;  %v11360_v50 = vld [vmem:[%s16418_s20 + $0x174] sm:$0xf0]  ;;  %v14290_v56 = vld [vmem:[%s16418_s20 + $0x178] sm:$0xf0]  ;;  %v11298_v13 = vld [vmem:[%s16418_s20 + $0xf0] sm:$0xf] }
 0x5c2   : > { %v3405_v63 = vmul.f32 %v15201_v52, %v15189_v22  ;;  %v14253_v22 = vld [vmem:[%s16418_s20 + $0x50] sm:$0xf0]  ;;  %v11179_v52 = vor.u32 %v14244_v48, %v11178_v47  ;;  %v11363_v54 = vor.u32 %v14288_v49, %v11360_v50  ;;  %v11288_v48 = vld [vmem:[%s16418_s20 + $0xe4] sm:$0xf0]  ;;  %v11294_v49 = vld [vmem:[%s16418_s20 + $0xe0] sm:$0xf] }
 0x5c3   : > { %v3232_v55 = vpack.c.bf16 %v3231_v51, %v3231_v51  ;;  %v3193_v33 = vpop.f32.mrf.mxu1  ;;  %v11215_v31 = vor.u32 %v14253_v22, %v11214_v29  ;;  %v11195_v51 = vor.u32 %v14246_v7, %v11192_v46  ;;  %v14277_v29 = vld [vmem:[%s16418_s20 + $0x110] sm:$0xf0]  ;;  %v14276_v22 = vld [vmem:[%s16418_s20 + $0x10c] sm:$0xf]  ;;  %v14271_v7 = vld [vmem:[%s16418_s20 + $0xe0] sm:$0xf0] }
 0x5c4   : > { %3430 = vrot.lane.b32.xlu0 %v3193_v33, %s15981_s22  ;;  %v3406_v4 = vpack.c.bf16 %v3405_v63, %v3405_v63  ;;  %v14285_v33 = vld [vmem:[%s16418_s20 + $0x154] sm:$0xf]  ;;  %v14270_v46 = vld [vmem:[%s16418_s20 + $0xdc] sm:$0xf]  ;;  %v14272_v50 = vld [vmem:[%s16418_s20 + $0xe8] sm:$0xf0] }
 0x5c5   : > { %11169 = vmatmul.msk.bf16.vlgmr.msrb.gmra.mxu3 %vm3103_vm7, %v3232_v55  ;;  %3939 = vmatpush.bf16.msra.mxu2 %v11215_v31  ;;  %v11366_v55 = vld [vmem:[%s16418_s20 + $0x170] sm:$0xf]  ;;  %v11351_v63 = vor.u32 %v14285_v33, %v11348_v59  ;;  %v11282_v33 = vld [vmem:[%s16418_s20 + $0xc8] sm:$0xf]  ;;  %v14269_v59 = vld [vmem:[%s16418_s20 + $0xd0] sm:$0xf0] }
 0x5c6   : > { %v3409_v2 = vpop.permute.xlu0 %3408  ;;  %3948 = vmatpush.bf16.msrb.mxu3 %v11359_v27  ;;  %v11367_v62 = vor.u32 %v14290_v56, %v11366_v55  ;;  %v11310_v27 = vld [vmem:[%s16418_s20 + $0x108] sm:$0xf]  ;;  %v11318_v31 = vld [vmem:[%s16418_s20 + $0x110] sm:$0xf]  ;;  %v11275_v55 = vor.u32 %v14268_v53, %v11274_v45  ;;  %v14302_v45 = vld [vmem:[%s16418_s20 + $0x1d8] sm:$0xf0] }
 0x5c7   : > { %v3414_v3 = vsel %vm3119_vm5, %v3409_v2, 0  ;;  %v15203_v19 = vpop.eup %15202  ;;  %v11346_v2 = vld [vmem:[%s16418_s20 + $0x150] sm:$0xf]  ;;  %v11311_v34 = vor.u32 %v14277_v29, %v11310_v27  ;;  %v11319_v35 = vor.u32 %v14278_v32, %v11318_v31  ;;  %v11438_v27 = vld [vmem:[%s16418_s20 + $0x200] sm:$0xf] }
 0x5c8   : > { %3423 = vmatpush.bf16.msrb.mxu1 %v3414_v3  ;;  %v3347_v28 = vmul.f32 %v15203_v19, %v17087_v38  ;;  %v11190_v38 = vld [vmem:[%s16418_s20 + $0x18] sm:$0xf]  ;;  %v11347_v43 = vor.u32 %v14286_v42, %v11346_v2  ;;  %v14283_v3 = vld [vmem:[%s16418_s20 + $0x140] sm:$0xf0]  ;;  %v14280_v19 = vld [vmem:[%s16418_s20 + $0x128] sm:$0xf0] }
 0x5c9   : > { %3940 = vmatpush.bf16.msra.mxu2 %v11203_v10  ;;  %v11191_v6 = vor.u32 %v14247_v39, %v11190_v38  ;;  %v14273_v10 = vld [vmem:[%s16418_s20 + $0xf4] sm:$0xf]  ;;  %v14275_v38 = vld [vmem:[%s16418_s20 + $0x100] sm:$0xf0]  ;;  %v11276_v56 = vld [vmem:[%s16418_s20 + $0xcc] sm:$0xf0] }
 0x5ca   : > { %v3348_v57 = vpack.c.bf16 %v3347_v28, %v3347_v28  ;;  %3949 = vmatpush.bf16.msrb.mxu3 %v11347_v43  ;;  %v11331_v28 = vor.u32 %v14281_v25, %v11330_v23  ;;  %v11442_v2 = vld [vmem:[%s16418_s20 + $0x210] sm:$0xf]  ;;  %v14310_v43 = vld [vmem:[%s16418_s20 + $0x218] sm:$0xf0]  ;;  %v14304_v31 = vld [vmem:[%s16418_s20 + $0x1e8] sm:$0xf0] }
 0x5cb   : > { %v3195_v17 = vpop.f32.mrf.mxu1  ;;  %11175 = vmatmul.msk.bf16.vlgmr.msrb.gmra.mxu1 %vm3103_vm7, %v3406_v4  ;;  %v14282_v4 = vld [vmem:[%s16418_s20 + $0x13c] sm:$0xf] }
 0x5cc   : > { %3974 = vmatpush.bf16.msra.mxu1 %v11267_v0  ;;  %v11354_v0 = vld [vmem:[%s16418_s20 + $0x158] sm:$0xf]  ;;  %v11339_v15 = vor.u32 %v14282_v4, %v11336_v9  ;;  %v11322_v17 = vld [vmem:[%s16418_s20 + $0x120] sm:$0xf]  ;;  %v11462_v4 = vld [vmem:[%s16418_s20 + $0x230] sm:$0xf] }
 0x5cd   : > { %3941 = vmatpush.bf16.msra.mxu2 %v11191_v6  ;;  %v11355_v41 = vor.u32 %v14287_v1, %v11354_v0  ;;  %v11323_v26 = vor.u32 %v14280_v19, %v11322_v17  ;;  %v11286_v6 = vld [vmem:[%s16418_s20 + $0xd8] sm:$0xf]  ;;  %v11454_v1 = vld [vmem:[%s16418_s20 + $0x228] sm:$0xf]  ;;  %v11444_v17 = vld [vmem:[%s16418_s20 + $0x21c] sm:$0xf0] }
 0x5ce   : > { %v11287_v47 = vor.u32 %v14271_v7, %v11286_v6  ;;  %v11430_v9 = vld [vmem:[%s16418_s20 + $0x1f8] sm:$0xf]  ;;  %v14306_v25 = vld [vmem:[%s16418_s20 + $0x1fc] sm:$0xf]  ;;  %v11394_v7 = vld [vmem:[%s16418_s20 + $0x1b0] sm:$0xf] }
 0x5cf   : > { %v11450_v19 = vld [vmem:[%s16418_s20 + $0x218] sm:$0xf] }
 0x5d0   : > { %3975 = vmatpush.bf16.msra.mxu1 %v11255_v8  ;;  %v11335_v8 = vor.u32 %v14283_v3, %v11334_v44  ;;  %v14312_v44 = vld [vmem:[%s16418_s20 + $0x22c] sm:$0xf]  ;;  %v11443_v3 = vor.u32 %v14310_v43, %v11442_v2 }
 0x5d1   : > { %3942 = vmatpush.bf16.msra.mxu2 %v11179_v52  ;;  %v11295_v52 = vor.u32 %v14272_v50, %v11294_v49  ;;  %v14292_v43 = vld [vmem:[%s16418_s20 + $0x188] sm:$0xf0] }
 0x5d2   : > { %3950 = vmatpush.bf16.msrb.mxu3 %v11335_v8  ;;  %v14314_v8 = vld [vmem:[%s16418_s20 + $0x238] sm:$0xf0] }
 0x5d4   : > { %3976 = vmatpush.bf16.msra.mxu1 %v11243_v20  ;;  %v14279_v20 = vld [vmem:[%s16418_s20 + $0x124] sm:$0xf] }
 0x5d5   : > { %11173 = vmatmul.msk.bf16.vlgmr.msra.gmra.mxu3 %vm3103_vm7, %v3348_v57  ;;  %3987 = vmatpush.bf16.msrb.mxu2 %v11363_v54  ;;  %v11327_v18 = vor.u32 %v14279_v20, %v11324_v21  ;;  %v14267_v54 = vld [vmem:[%s16418_s20 + $0xc4] sm:$0xf] }
 0x5d6   : > { %3951 = vmatpush.bf16.msrb.mxu3 %v11323_v26  ;;  %v14311_v20 = vld [vmem:[%s16418_s20 + $0x220] sm:$0xf0]  ;;  %v11431_v26 = vor.u32 %v14307_v12, %v11430_v9 }
 0x5d7   : > { %v11451_v23 = vor.u32 %v14311_v20, %v11450_v19  ;;  %v14263_v9 = vld [vmem:[%s16418_s20 + $0xa0] sm:$0xf0]  ;;  %v14260_v20 = vld [vmem:[%s16418_s20 + $0x88] sm:$0xf0] }
 0x5d8   : > { %3977 = vmatpush.bf16.msra.mxu1 %v11231_v30  ;;  %v11312_v30 = vld [vmem:[%s16418_s20 + $0x114] sm:$0xf0] }
 0x5d9   : > { %3988 = vmatpush.bf16.msrb.mxu2 %v11351_v63  ;;  %v11315_v57 = vor.u32 %v14276_v22, %v11312_v30  ;;  %v11418_v30 = vld [vmem:[%s16418_s20 + $0x1e0] sm:$0xf] }
 0x5da   : > { %v3309_v5 = vpop.f32.mrf.mxu1  ;;  %3952 = vmatpush.bf16.msrb.mxu3 %v11311_v34 }
 0x5db   : > { %3434 = vrot.lane.b32.xlu0 %v3309_v5, %s15981_s22  ;;  %v11307_v5 = vor.u32 %v14275_v38, %v11306_v37  ;;  %v14305_v37 = vld [vmem:[%s16418_s20 + $0x1f0] sm:$0xf0] }
 0x5dc   : > { %3978 = vmatpush.bf16.msra.mxu1 %v11219_v11  ;;  %v14274_v11 = vld [vmem:[%s16418_s20 + $0xf8] sm:$0xf0] }
 0x5dd   : > { %3989 = vmatpush.bf16.msrb.mxu2 %v11339_v15  ;;  %v11299_v39 = vor.u32 %v14274_v11, %v11298_v13  ;;  %v11463_v15 = vor.u32 %v14314_v8, %v11462_v4  ;;  %v11406_v13 = vld [vmem:[%s16418_s20 + $0x1c8] sm:$0xf]  ;;  %v11420_v11 = vld [vmem:[%s16418_s20 + $0x1ec] sm:$0xf0]  ;;  %v11258_v8 = vld [vmem:[%s16418_s20 + $0x98] sm:$0xf] }
 0x5df   : > { %3953 = vmatpush.bf16.msrb.mxu3 %v11299_v39 }
 0x5e0   : > { %3979 = vmatpush.bf16.msra.mxu1 %v11207_v40  ;;  %v11303_v40 = vor.u32 %v14273_v10, %v11300_v36  ;;  %v14301_v10 = vld [vmem:[%s16418_s20 + $0x1d0] sm:$0xf0]  ;;  %v11426_v36 = vld [vmem:[%s16418_s20 + $0x1e8] sm:$0xf] }
 0x5e1   : > { %3990 = vmatpush.bf16.msrb.mxu2 %v11327_v18  ;;  %v11432_v18 = vld [vmem:[%s16418_s20 + $0x204] sm:$0xf0]  ;;  %v11407_v6 = vor.u32 %v14301_v10, %v11406_v13  ;;  %v14254_v13 = vld [vmem:[%s16418_s20 + $0x58] sm:$0xf0]  ;;  %v14251_v10 = vld [vmem:[%s16418_s20 + $0x40] sm:$0xf0] }
 0x5e2   : > { %v3311_v61 = vpop.f32.mrf.mxu1  ;;  %v11435_v32 = vor.u32 %v14306_v25, %v11432_v18  ;;  %v14291_v18 = vld [vmem:[%s16418_s20 + $0x184] sm:$0xf] }
 0x5e3   : > { %3954 = vmatpush.bf16.msrb.mxu3 %v11287_v47  ;;  %v11283_v61 = vor.u32 %v14269_v59, %v11282_v33  ;;  %v14300_v47 = vld [vmem:[%s16418_s20 + $0x1cc] sm:$0xf]  ;;  %v14297_v33 = vld [vmem:[%s16418_s20 + $0x1b4] sm:$0xf]  ;;  %v11396_v59 = vld [vmem:[%s16418_s20 + $0x1bc] sm:$0xf0] }
 0x5e4   : > { %3980 = vmatpush.bf16.msra.mxu1 %v11195_v51  ;;  %v11291_v51 = vor.u32 %v14270_v46, %v11288_v48  ;;  %v11427_v46 = vor.u32 %v14305_v37, %v11426_v36  ;;  %v11408_v48 = vld [vmem:[%s16418_s20 + $0x1d4] sm:$0xf0]  ;;  %v11198_v37 = vld [vmem:[%s16418_s20 + $0x20] sm:$0xf] }
 0x5e5   : > { %3991 = vmatpush.bf16.msrb.mxu2 %v11315_v57  ;;  %v11419_v57 = vor.u32 %v14304_v31, %v11418_v30  ;;  %v11411_v53 = vor.u32 %v14300_v47, %v11408_v48  ;;  %v11378_v30 = vld [vmem:[%s16418_s20 + $0x188] sm:$0xf]  ;;  %v14293_v31 = vld [vmem:[%s16418_s20 + $0x190] sm:$0xf0] }
 0x5e7   : > { %3955 = vmatpush.bf16.msrb.mxu3 %v11275_v55  ;;  %v11382_v55 = vld [vmem:[%s16418_s20 + $0x198] sm:$0xf] }
 0x5e8   : > { %3981 = vmatpush.bf16.msra.mxu1 %v11183_v60  ;;  %v11279_v60 = vor.u32 %v14267_v54, %v11276_v56 }
 0x5e9   : > { %3992 = vmatpush.bf16.msrb.mxu2 %v11303_v40 }
 0x5ec   : > { %4026 = vmatpush.bf16.msrb.mxu1 %v11367_v62 }
 0x5ed   : > { %3993 = vmatpush.bf16.msrb.mxu2 %v11291_v51  ;;  %v14298_v51 = vld [vmem:[%s16418_s20 + $0x1b8] sm:$0xf0] }
 0x5ee   : > { %v11395_v54 = vor.u32 %v14298_v51, %v11394_v7 }
 0x5f0   : > { %4027 = vmatpush.bf16.msrb.mxu1 %v11355_v41  ;;  %v14313_v41 = vld [vmem:[%s16418_s20 + $0x230] sm:$0xf0] }
 0x5f1   : > { %3994 = vmatpush.bf16.msrb.mxu2 %v11279_v60  ;;  %v11455_v42 = vor.u32 %v14313_v41, %v11454_v1  ;;  %v14295_v60 = vld [vmem:[%s16418_s20 + $0x1a0] sm:$0xf0] }
 0x5f2   : > { %v11383_v1 = vor.u32 %v14295_v60, %v11382_v55 }
 0x5f3   : > { %3961 = vmatpush.bf16.msra.mxu0 %v11455_v42  ;;  %v11370_v42 = vld [vmem:[%s16418_s20 + $0x180] sm:$0xf] }
 0x5f4   : > { %4028 = vmatpush.bf16.msrb.mxu1 %v11343_v16  ;;  %v14309_v16 = vld [vmem:[%s16418_s20 + $0x214] sm:$0xf] }
 0x5f5   : > { %v11447_v21 = vor.u32 %v14309_v16, %v11444_v17  ;;  %v11384_v16 = vld [vmem:[%s16418_s20 + $0x1a4] sm:$0xf0]  ;;  %v11246_v17 = vld [vmem:[%s16418_s20 + $0x80] sm:$0xf] }
 0x5f6   : > { %v11247_v25 = vor.u32 %v14260_v20, %v11246_v17 }
 0x5f7   : > { %3962 = vmatpush.bf16.msra.mxu0 %v11443_v3  ;;  %v14266_v3 = vld [vmem:[%s16418_s20 + $0xb8] sm:$0xf0] }
 0x5f8   : > { %4029 = vmatpush.bf16.msrb.mxu1 %v11331_v28  ;;  %v14308_v28 = vld [vmem:[%s16418_s20 + $0x208] sm:$0xf0] }
 0x5f9   : > { %v11439_v34 = vor.u32 %v14308_v28, %v11438_v27  ;;  %v11372_v27 = vld [vmem:[%s16418_s20 + $0x18c] sm:$0xf0]  ;;  %v11234_v28 = vld [vmem:[%s16418_s20 + $0x68] sm:$0xf] }
 0x5fb   : > { %3963 = vmatpush.bf16.msra.mxu0 %v11431_v26 }
 0x5fc   : > { %4030 = vmatpush.bf16.msrb.mxu1 %v11319_v35  ;;  %v14303_v35 = vld [vmem:[%s16418_s20 + $0x1e4] sm:$0xf] }
 0x5fd   : > { %v11423_v40 = vor.u32 %v14303_v35, %v11420_v11  ;;  %v11210_v11 = vld [vmem:[%s16418_s20 + $0x38] sm:$0xf] }
 0x5fe   : > { %v11211_v36 = vor.u32 %v14251_v10, %v11210_v11  ;;  %v12570_v11 = vld [vmem:[%s16436_s24 + $0x8a0] sm:$0xf]  ;;  %v14597_v10 = vld [vmem:[%s16436_s24 + $0x8cc] sm:$0xf0] }
 0x5ff   : > { %3964 = vmatpush.bf16.msra.mxu0 %v11419_v57  ;;  %v11222_v57 = vld [vmem:[%s16418_s20 + $0x50] sm:$0xf] }
 0x600   : > { %4031 = vmatpush.bf16.msrb.mxu1 %v11307_v5  ;;  %v11223_v35 = vor.u32 %v14254_v13, %v11222_v57  ;;  %v12186_v57 = vld [vmem:[%s16436_s24 + $0x5a0] sm:$0xf] }
 0x603   : > { %3965 = vmatpush.bf16.msra.mxu0 %v11407_v6 }
 0x604   : > { %4032 = vmatpush.bf16.msrb.mxu1 %v11295_v52  ;;  %v11414_v52 = vld [vmem:[%s16418_s20 + $0x1d0] sm:$0xf] }
 0x605   : > { %v11415_v56 = vor.u32 %v14302_v45, %v11414_v52  ;;  %v3543_v52 = vld [vmem:[%s1041_s0] sm:$0x7] }
 0x606   : > { %v3546_v45 = vperm.slane %v3543_v52, 1 }
 0x607   : > { %3966 = vmatpush.bf16.msra.mxu0 %v11395_v54 }
 0x608   : > { %4033 = vmatpush.bf16.msrb.mxu1 %v11283_v61  ;;  %v11402_v61 = vld [vmem:[%s16418_s20 + $0x1b8] sm:$0xf] }
 0x60b   : > { %3967 = vmatpush.bf16.msra.mxu0 %v11383_v1 }
 0x636   : > { %v3431_v62 = vpop.permute.xlu0 %3430 }
 0x637   : > { %v3441_v63 = vsel %vm3081_vm4, %v17066_v58, %v3431_v62  ;;  %v11456_v58 = vld [vmem:[%s16418_s20 + $0x234] sm:$0xf0]  ;;  %v14299_v62 = vld [vmem:[%s16418_s20 + $0x1c0] sm:$0xf0] }
 0x638   : > { %v17184_v0 = vpack.c.bf16 %v3441_v63, %v3441_v63  ;;  %v11459_v14 = vor.u32 %v14312_v44, %v11456_v58  ;;  %v11399_v63 = vor.u32 %v14297_v33, %v11396_v59  ;;  %v11403_v41 = vor.u32 %v14299_v62, %v11402_v61  ;;  %v11270_v44 = vld [vmem:[%s16418_s20 + $0xb0] sm:$0xf] }
 0x639   : > { %v11371_v58 = vor.u32 %v14292_v43, %v11370_v42  ;;  %v11271_v4 = vor.u32 %v14266_v3, %v11270_v44  ;;  %v4052_v44 = vld [vmem:[%s1051_s17] sm:$0x7] }
 0x63a   : > { %3943 = vmatmul.bf16.vlgmr.msra.gmra.mxu2 %v17184_v0  ;;  %3982 = vmatmul.bf16.vlgmr.msra.gmra.mxu1 %v17184_v0  ;;  %v4056_v20 = vperm.slane %v4052_v44, 2 }
 0x63b   : > { %4000 = vmatpush.bf16.msra.mxu3 %v11459_v14  ;;  %4039 = vmatpush.bf16.msra.mxu2 %v11463_v15  ;;  %v11259_v14 = vor.u32 %v14263_v9, %v11258_v8  ;;  %v14294_v15 = vld [vmem:[%s16418_s20 + $0x19c] sm:$0xf]  ;;  %v4054_v9 = vperm.slane %v4052_v44, 0 }
 0x63c   : > { %3968 = vmatpush.bf16.msra.mxu0 %v11371_v58  ;;  %v11387_v19 = vor.u32 %v14294_v15, %v11384_v16  ;;  %v4055_v58 = vperm.slane %v4052_v44, 1 }
 0x63f   : > { %4001 = vmatpush.bf16.msra.mxu3 %v11447_v21  ;;  %4040 = vmatpush.bf16.msra.mxu2 %v11451_v23  ;;  %v11390_v21 = vld [vmem:[%s16418_s20 + $0x1a0] sm:$0xf]  ;;  %v14296_v23 = vld [vmem:[%s16418_s20 + $0x1a8] sm:$0xf0] }
 0x640   : > { %4013 = vmatpush.bf16.msrb.mxu0 %v11271_v4  ;;  %v11391_v26 = vor.u32 %v14296_v23, %v11390_v21  ;;  %v3547_v4 = vperm.slane %v3543_v52, 2  ;;  %v15254_v21 = vld [vmem:[#allocation2] sm:$0xff] }
 0x643   : > { %4002 = vmatpush.bf16.msra.mxu3 %v11435_v32  ;;  %4041 = vmatpush.bf16.msra.mxu2 %v11439_v34  ;;  %v11379_v34 = vor.u32 %v14293_v31, %v11378_v30 }
 0x644   : > { %4014 = vmatpush.bf16.msrb.mxu0 %v11259_v14 }
 0x647   : > { %4003 = vmatpush.bf16.msra.mxu3 %v11423_v40  ;;  %4042 = vmatpush.bf16.msra.mxu2 %v11427_v46  ;;  %v11186_v40 = vld [vmem:[%s16418_s20 + $0x8] sm:$0xf] }
 0x648   : > { %v3248_v29 = vpop.f32.mrf.mxu3  ;;  %v3425_v22 = vpop.f32.mrf.mxu1  ;;  %4015 = vmatpush.bf16.msrb.mxu0 %v11247_v25 }
 0x649   : > { %3438 = vrot.lane.b32.xlu0 %v3425_v22, %s15981_s22  ;;  %v14257_v22 = vld [vmem:[%s16418_s20 + $0x70] sm:$0xf0] }
 0x64a   : > { %v11235_v32 = vor.u32 %v14257_v22, %v11234_v28 }
 0x64b   : > { %4004 = vmatpush.bf16.msra.mxu3 %v11411_v53  ;;  %4043 = vmatpush.bf16.msra.mxu2 %v11415_v56  ;;  %v3545_v53 = vperm.slane %v3543_v52, 0 }
 0x64c   : > { %4016 = vmatpush.bf16.msrb.mxu0 %v11235_v32  ;;  %v11802_v32 = vld [vmem:[%s16436_s24 + $0x2a0] sm:$0xf] }
 0x64d   : > { %v3435_v38 = vpop.permute.xlu0 %3434 }
 0x64e   : > { %v3442_v39 = vsel %vm3081_vm4, %v3248_v29, %v3435_v38  ;;  %v11375_v29 = vor.u32 %v14291_v18, %v11372_v27  ;;  %v14248_v38 = vld [vmem:[%s16418_s20 + $0x28] sm:$0xf0] }
 0x64f   : > { %v3445_v5 = vpack.c.bf16 %v3442_v39, %v3442_v39  ;;  %4005 = vmatpush.bf16.msra.mxu3 %v11399_v63  ;;  %4044 = vmatpush.bf16.msra.mxu2 %v11403_v41  ;;  %v11199_v39 = vor.u32 %v14248_v38, %v11198_v37  ;;  %v12571_v37 = vor.u32 %v14597_v10, %v12570_v11  ;;  %v14399_v38 = vld [vmem:[%s16436_s24 + $0x2a4] sm:$0xf]  ;;  %v14537_v11 = vld [vmem:[%s16436_s24 + $0x6ec] sm:$0xf0] }
 0x650   : > { %v3250_v49 = vpop.f32.mrf.mxu3  ;;  %v3427_v50 = vpop.f32.mrf.mxu1  ;;  %4017 = vmatpush.bf16.msrb.mxu0 %v11223_v35  ;;  %v14501_v35 = vld [vmem:[%s16436_s24 + $0x5cc] sm:$0xf0]  ;;  %v14339_v10 = vld [vmem:[%s16436_s24 + $0xc4] sm:$0xf] }
 0x651   : > { %3956 = vmatmul.bf16.vlgmr.msrb.gmra.mxu3 %v3445_v5  ;;  %3995 = vmatmul.bf16.vlgmr.msrb.gmra.mxu2 %v3445_v5 }
 0x652   : > { %4034 = vmatmul.bf16.vlgmr.msrb.gmra.mxu1 %v3445_v5  ;;  %v14245_v5 = vld [vmem:[%s16418_s20 + $0x10] sm:$0xf0]  ;;  %s19669_s20 = smov (!%p13768_p7), %s19668_s30 }
 0x653   : > { %4006 = vmatpush.bf16.msra.mxu3 %v11387_v19  ;;  %4045 = vmatpush.bf16.msra.mxu2 %v11391_v26  ;;  %v11187_v6 = vor.u32 %v14245_v5, %v11186_v40  ;;  %v15255_v26 = vld [vmem:[#allocation2 + $0x10] sm:$0xff] }
 0x654   : > { %4018 = vmatpush.bf16.msrb.mxu0 %v11211_v36  ;;  %v12187_v36 = vor.u32 %v14501_v35, %v12186_v57  ;;  %v11754_v40 = vld [vmem:[%s16436_s24 + $0x240] sm:$0xf]  ;;  %5903 = vmatpush.bf16.msra.mxu1 %v12571_v37 }
 0x655   : > { %v12330_v35 = vld [vmem:[%s16436_s24 + $0x6c0] sm:$0xf] }
 0x657   : > { %4007 = vmatpush.bf16.msra.mxu3 %v11375_v29  ;;  %4046 = vmatpush.bf16.msra.mxu2 %v11379_v34  ;;  %v15256_v29 = vld [vmem:[#allocation2 + $0x8] sm:$0xff]  ;;  %v14405_v34 = vld [vmem:[%s16436_s24 + $0x2cc] sm:$0xf0] }
 0x658   : > { %v3364_v2 = vpop.f32.mrf.mxu3  ;;  %4019 = vmatpush.bf16.msrb.mxu0 %v11199_v39  ;;  %v11803_v13 = vor.u32 %v14405_v34, %v11802_v32  ;;  %v11804_v39 = vld [vmem:[%s16436_s24 + $0x2d0] sm:$0xf0]  ;;  %v14345_v32 = vld [vmem:[%s16436_s24 + $0xec] sm:$0xf0]  ;;  %v11946_v34 = vld [vmem:[%s16436_s24 + $0x3c0] sm:$0xf] }
 0x659   : > { %v11807_v5 = vor.u32 %v14399_v38, %v11804_v39  ;;  %v11514_v38 = vld [vmem:[%s16436_s24 + $0x60] sm:$0xf]  ;;  %v14333_v39 = vld [vmem:[%s16436_s24 + $0x8c] sm:$0xf0] }
 0x65b   : > { %5877 = vmatpush.bf16.msrb.mxu3 %v11803_v13  ;;  %5916 = vmatpush.bf16.msrb.mxu2 %v11807_v5  ;;  %v14441_v13 = vld [vmem:[%s16436_s24 + $0x3ec] sm:$0xf0] }
 0x65c   : > { %4020 = vmatpush.bf16.msrb.mxu0 %v11187_v6  ;;  %v14393_v6 = vld [vmem:[%s16436_s24 + $0x26c] sm:$0xf0]  ;;  %v11947_v5 = vor.u32 %v14441_v13, %v11946_v34  ;;  %v14579_v34 = vld [vmem:[%s16436_s24 + $0x844] sm:$0xf]  ;;  %v11762_v13 = vld [vmem:[%s16436_s24 + $0x248] sm:$0xf] }
 0x660   : > { %v3366_v12 = vpop.f32.mrf.mxu3 }
 0x6b7   : > { %v3983_v7 = vpop.f32.mrf.mxu1 }
 0x6b8   : > { %v3984_v55 = vadd.f32 %v3983_v7, %v3546_v45  ;;  %v12138_v7 = vld [vmem:[%s16436_s24 + $0x540] sm:$0xf]  ;;  %v11756_v45 = vld [vmem:[%s16436_s24 + $0x270] sm:$0xf0] }
 0x6bb   : > { %v3439_v46 = vpop.permute.xlu0 %3438 }
 0x6bc   : > { %v3443_v47 = vsel %vm3081_vm4, %v3364_v2, %v3439_v46  ;;  %v14489_v46 = vld [vmem:[%s16436_s24 + $0x56c] sm:$0xf0] }
 0x6bd   : > { %v3446_v48 = vpack.c.bf16 %v3443_v47, %v3443_v47  ;;  %v3944_v49 = vpop.f32.mrf.mxu2  ;;  %v11755_v47 = vor.u32 %v14393_v6, %v11754_v40  ;;  %v11898_v40 = vld [vmem:[%s16436_s24 + $0x360] sm:$0xf]  ;;  %v12331_v6 = vor.u32 %v14537_v11, %v12330_v35  ;;  %v14394_v11 = vld [vmem:[%s16436_s24 + $0x274] sm:$0xf0] }
 0x6be   : > { %v3945_v56 = vadd.f32 %v3944_v49, %v3545_v53  ;;  %v12522_v49 = vld [vmem:[%s16436_s24 + $0x840] sm:$0xf] }
 0x6bf   : > { %3969 = vmatmul.bf16.vlgmr.msra.gmra.mxu0 %v3446_v48  ;;  %v3985_v50 = vpop.f32.mrf.mxu1  ;;  %4008 = vmatmul.bf16.vlgmr.msra.gmra.mxu3 %v3446_v48  ;;  %v11706_v53 = vld [vmem:[%s16436_s24 + $0x1e0] sm:$0xf] }
 0x6c0   : > { %4047 = vmatmul.bf16.vlgmr.msra.gmra.mxu2 %v3446_v48  ;;  %5890 = vmatpush.bf16.msra.mxu0 %v12187_v36  ;;  %v12139_v48 = vor.u32 %v14489_v46, %v12138_v7  ;;  %v14585_v50 = vld [vmem:[%s16436_s24 + $0x86c] sm:$0xf0]  ;;  %v11564_v36 = vld [vmem:[%s16436_s24 + $0xf0] sm:$0xf0]  ;;  %v12282_v46 = vld [vmem:[%s16436_s24 + $0x660] sm:$0xf] }
 0x6c1   : > { %v12523_v52 = vor.u32 %v14585_v50, %v12522_v49  ;;  %5878 = vmatpush.bf16.msrb.mxu3 %v11755_v47  ;;  %v14429_v7 = vld [vmem:[%s16436_s24 + $0x38c] sm:$0xf0]  ;;  %v11567_v49 = vor.u32 %v14339_v10, %v11564_v36  ;;  %v12146_v10 = vld [vmem:[%s16436_s24 + $0x548] sm:$0xf]  ;;  %v14490_v36 = vld [vmem:[%s16436_s24 + $0x574] sm:$0xf0] }
 0x6c2   : > { %v14525_v47 = vld [vmem:[%s16436_s24 + $0x68c] sm:$0xf0] }
 0x6c3   : > { %5904 = vmatpush.bf16.msra.mxu1 %v12523_v52  ;;  %v11516_v52 = vld [vmem:[%s16436_s24 + $0x90] sm:$0xf0] }
 0x6c4   : > { %5891 = vmatpush.bf16.msra.mxu0 %v12139_v48 }
 0x6c5   : > { %v3946_v51 = vpop.f32.mrf.mxu2 }
 0x6c6   : > { %v14387_v51 = vld [vmem:[%s16436_s24 + $0x244] sm:$0xf] }
 0x6cf   : > { %v4035_v54 = vpop.f32.mrf.mxu1  ;;  %4021 = vmatmul.bf16.vlgmr.msrb.gmra.mxu0 %v17184_v0 }
 0x6d4   : > { %v3957_v33 = vpop.f32.mrf.mxu3  ;;  %v3996_v59 = vpop.f32.mrf.mxu2 }
 0x6d5   : > { %v3958_v60 = vadd.f32 %v3957_v33, %v3945_v56  ;;  %v3997_v61 = vadd.f32 %v3996_v59, %v3984_v55  ;;  %v11759_v55 = vor.u32 %v14387_v51, %v11756_v45  ;;  %v12090_v56 = vld [vmem:[%s16436_s24 + $0x4e0] sm:$0xf]  ;;  %v14477_v33 = vld [vmem:[%s16436_s24 + $0x50c] sm:$0xf0]  ;;  %v14327_v51 = vld [vmem:[%s16436_s24 + $0x64] sm:$0xf]  ;;  %v11515_v45 = vor.u32 %v14333_v39, %v11514_v38 }
 0x6d6   : > { %v12474_v59 = vld [vmem:[%s16436_s24 + $0x7e0] sm:$0xf]  ;;  %v12147_v38 = vor.u32 %v14490_v36, %v12146_v10  ;;  %v14471_v39 = vld [vmem:[%s16436_s24 + $0x4e4] sm:$0xf]  ;;  %v11522_v10 = vld [vmem:[%s16436_s24 + $0x68] sm:$0xf] }
 0x6d7   : > { %v4037_v62 = vpop.f32.mrf.mxu1  ;;  %5917 = vmatpush.bf16.msrb.mxu2 %v11759_v55  ;;  %v14334_v36 = vld [vmem:[%s16436_s24 + $0x94] sm:$0xf0] }
 0x6d8   : > { %v14375_v62 = vld [vmem:[%s16436_s24 + $0x1e4] sm:$0xf] }
 0x6dc   : > { %v3959_v63 = vpop.f32.mrf.mxu3  ;;  %v3998_v1 = vpop.f32.mrf.mxu2 }
 0x6dd   : > { %v11708_v63 = vld [vmem:[%s16436_s24 + $0x210] sm:$0xf0]  ;;  %v12091_v1 = vor.u32 %v14477_v33, %v12090_v56 }
 0x6de   : > { %v11711_v44 = vor.u32 %v14375_v62, %v11708_v63 }
 0x6df   : > { %5892 = vmatpush.bf16.msra.mxu0 %v12091_v1 }
 0x6e0   : > { %5918 = vmatpush.bf16.msrb.mxu2 %v11711_v44  ;;  %v14417_v44 = vld [vmem:[%s16436_s24 + $0x32c] sm:$0xf0] }
 0x73c   : > { %v3970_v41 = vpop.f32.mrf.mxu0 }
 0x73d   : > { %v3971_v0 = vadd.f32 %v3970_v41, %v3958_v60 }
 0x73f   : > { %v4060_v17 = vmul.f32 %v4054_v9, %v3971_v0  ;;  %v11660_v0 = vld [vmem:[%s16436_s24 + $0x1b0] sm:$0xf0] }
 0x741   : > { %v17262_v18 = vadd.f32 %v15255_v26, %v4060_v17  ;;  %v11994_v17 = vld [vmem:[%s16436_s24 + $0x420] sm:$0xf]  ;;  %v14351_v26 = vld [vmem:[%s16436_s24 + $0x124] sm:$0xf] }
 0x742   : > { %v4009_v2 = vpop.f32.mrf.mxu3 }
 0x743   : > { %v4048_v42 = vpop.f32.mrf.mxu2  ;;  %v4010_v3 = vadd.f32 %v4009_v2, %v3997_v61  ;;  %v14573_v61 = vld [vmem:[%s16436_s24 + $0x80c] sm:$0xf0]  ;;  %v11658_v2 = vld [vmem:[%s16436_s24 + $0x180] sm:$0xf] }
 0x744   : > { %v3972_v43 = vpop.f32.mrf.mxu0  ;;  %v12475_v41 = vor.u32 %v14573_v61, %v12474_v59  ;;  %v11519_v59 = vor.u32 %v14327_v51, %v11516_v52  ;;  %v14478_v51 = vld [vmem:[%s16436_s24 + $0x514] sm:$0xf0] }
 0x745   : > { %v4061_v15 = vmul.f32 %v4055_v58, %v4010_v3  ;;  %v12042_v43 = vld [vmem:[%s16436_s24 + $0x480] sm:$0xf]  ;;  %v14465_v3 = vld [vmem:[%s16436_s24 + $0x4ac] sm:$0xf0] }
 0x746   : > { %v12426_v58 = vld [vmem:[%s16436_s24 + $0x780] sm:$0xf]  ;;  %5905 = vmatpush.bf16.msra.mxu1 %v12475_v41 }
 0x747   : > { %v17260_v23 = vadd.f32 %v15254_v21, %v4061_v15  ;;  %v11610_v15 = vld [vmem:[%s16436_s24 + $0x120] sm:$0xf] }
 0x748   : > { %v12378_v21 = vld [vmem:[%s16436_s24 + $0x720] sm:$0xf] }
 0x749   : > { %v4068_v30 = vadd.f32 %v17260_v23, %v17262_v18  ;;  %v11466_v41 = vld [vmem:[%s16436_s24] sm:$0xf] }
 0x74a   : > { %v4011_v8 = vpop.f32.mrf.mxu3 }
 0x74b   : > { %v4050_v12 = vpop.f32.mrf.mxu2  ;;  %v14363_v8 = vld [vmem:[%s16436_s24 + $0x184] sm:$0xf] }
 0x74c   : > { %v4022_v14 = vpop.f32.mrf.mxu0  ;;  %v12043_v12 = vor.u32 %v14465_v3, %v12042_v43  ;;  %v12234_v3 = vld [vmem:[%s16436_s24 + $0x600] sm:$0xf] }
 0x74d   : > { %v4023_v16 = vadd.f32 %v4022_v14, %v3547_v4  ;;  %v14561_v4 = vld [vmem:[%s16436_s24 + $0x7ac] sm:$0xf0] }
 0x74e   : > { %v12427_v14 = vor.u32 %v14561_v4, %v12426_v58  ;;  %5893 = vmatpush.bf16.msra.mxu0 %v12043_v12  ;;  %v14513_v58 = vld [vmem:[%s16436_s24 + $0x62c] sm:$0xf0]  ;;  %v14495_v12 = vld [vmem:[%s16436_s24 + $0x5a4] sm:$0xf] }
 0x74f   : > { %v4036_v19 = vadd.f32 %v4035_v54, %v4023_v16  ;;  %v14381_v54 = vld [vmem:[%s16436_s24 + $0x20c] sm:$0xf0] }
 0x750   : > { %v11707_v60 = vor.u32 %v14381_v54, %v11706_v53  ;;  %v14357_v16 = vld [vmem:[%s16436_s24 + $0x14c] sm:$0xf0]  ;;  %5906 = vmatpush.bf16.msra.mxu1 %v12427_v14  ;;  %v11899_v53 = vor.u32 %v14429_v7, %v11898_v40  ;;  %v12283_v54 = vor.u32 %v14525_v47, %v12282_v46  ;;  %v12092_v40 = vld [vmem:[%s16436_s24 + $0x510] sm:$0xf0]  ;;  %v11714_v46 = vld [vmem:[%s16436_s24 + $0x1e8] sm:$0xf] }
 0x751   : > { %v4049_v25 = vadd.f32 %v4048_v42, %v4036_v19  ;;  %v14369_v42 = vld [vmem:[%s16436_s24 + $0x1ac] sm:$0xf0]  ;;  %v11663_v19 = vor.u32 %v14363_v8, %v11660_v0  ;;  %v12235_v8 = vor.u32 %v14513_v58, %v12234_v3  ;;  %v14315_v0 = vld [vmem:[%s16436_s24 + $0x4] sm:$0xf]  ;;  %v12476_v7 = vld [vmem:[%s16436_s24 + $0x810] sm:$0xf0] }
 0x752   : > { %5879 = vmatpush.bf16.msrb.mxu3 %v11707_v60  ;;  %v11659_v9 = vor.u32 %v14369_v42, %v11658_v2  ;;  %v14321_v2 = vld [vmem:[%s16436_s24 + $0x2c] sm:$0xf0]  ;;  %v11850_v42 = vld [vmem:[%s16436_s24 + $0x300] sm:$0xf]  ;;  %v14382_v47 = vld [vmem:[%s16436_s24 + $0x214] sm:$0xf0] }
 0x753   : > { %v4062_v27 = vmul.f32 %v4056_v20, %v4049_v25  ;;  %v14453_v20 = vld [vmem:[%s16436_s24 + $0x44c] sm:$0xf0]  ;;  %5919 = vmatpush.bf16.msrb.mxu2 %v11663_v19  ;;  %v11467_v43 = vor.u32 %v14321_v2, %v11466_v41  ;;  %v11851_v4 = vor.u32 %v14417_v44, %v11850_v42  ;;  %v12050_v41 = vld [vmem:[%s16436_s24 + $0x488] sm:$0xf]  ;;  %v14466_v2 = vld [vmem:[%s16436_s24 + $0x4b4] sm:$0xf0] }
 0x754   : > { %v4024_v28 = vpop.f32.mrf.mxu0  ;;  %v14549_v25 = vld [vmem:[%s16436_s24 + $0x74c] sm:$0xf0]  ;;  %v12051_v42 = vor.u32 %v14466_v2, %v12050_v41  ;;  %v11996_v44 = vld [vmem:[%s16436_s24 + $0x450] sm:$0xf0]  ;;  %v14543_v3 = vld [vmem:[%s16436_s24 + $0x724] sm:$0xf] }
 0x755   : > { %v17264_v22 = vadd.f32 %v15256_v29, %v4062_v27  ;;  %v11612_v27 = vld [vmem:[%s16436_s24 + $0x150] sm:$0xf0]  ;;  %v11611_v28 = vor.u32 %v14357_v16, %v11610_v15  ;;  %v11995_v29 = vor.u32 %v14453_v20, %v11994_v17  ;;  %v14591_v16 = vld [vmem:[%s16436_s24 + $0x8a4] sm:$0xf] }
 0x756   : > { %5880 = vmatpush.bf16.msrb.mxu3 %v11659_v9  ;;  %v11615_v57 = vor.u32 %v14351_v26, %v11612_v27  ;;  %v11468_v9 = vld [vmem:[%s16436_s24 + $0x30] sm:$0xf0]  ;;  %v12194_v26 = vld [vmem:[%s16436_s24 + $0x5a8] sm:$0xf] }
 0x757   : > { %v4069_v31 = vadd.f32 %v4068_v30, %v17264_v22  ;;  %v12379_v30 = vor.u32 %v14549_v25, %v12378_v21  ;;  %5894 = vmatpush.bf16.msra.mxu0 %v11995_v29  ;;  %v11471_v14 = vor.u32 %v14315_v0, %v11468_v9  ;;  %v12188_v15 = vld [vmem:[%s16436_s24 + $0x5d0] sm:$0xf0]  ;;  %v11810_v21 = vld [vmem:[%s16436_s24 + $0x2a8] sm:$0xf]  ;;  %v14406_v25 = vld [vmem:[%s16436_s24 + $0x2d4] sm:$0xf0] }
 0x758   : > { %5920 = vmatpush.bf16.msrb.mxu2 %v11615_v57  ;;  %v12572_v17 = vld [vmem:[%s16436_s24 + $0x8d0] sm:$0xf0]  ;;  %v12191_v19 = vor.u32 %v14495_v12, %v12188_v15  ;;  %v11811_v27 = vor.u32 %v14406_v25, %v11810_v21  ;;  %v14483_v29 = vld [vmem:[%s16436_s24 + $0x544] sm:$0xf]  ;;  %v14358_v0 = vld [vmem:[%s16436_s24 + $0x154] sm:$0xf0] }
 0x759   : > { %4070 = vadd.xlane.f32.xlu0 %v4069_v31  ;;  %v11562_v31 = vld [vmem:[%s16436_s24 + $0xc0] sm:$0xf]  ;;  %5907 = vmatpush.bf16.msra.mxu1 %v12379_v30  ;;  %v12575_v20 = vor.u32 %v14591_v16, %v12572_v17  ;;  %v12140_v30 = vld [vmem:[%s16436_s24 + $0x570] sm:$0xf0]  ;;  %v14454_v15 = vld [vmem:[%s16436_s24 + $0x454] sm:$0xf0] }
 0x75a   : > { %5881 = vmatpush.bf16.msrb.mxu3 %v11611_v28  ;;  %v11563_v37 = vor.u32 %v14345_v32, %v11562_v31  ;;  %v14502_v28 = vld [vmem:[%s16436_s24 + $0x5d4] sm:$0xf0]  ;;  %v12143_v32 = vor.u32 %v14483_v29, %v12140_v30  ;;  %v12524_v57 = vld [vmem:[%s16436_s24 + $0x870] sm:$0xf0]  ;;  %v14435_v17 = vld [vmem:[%s16436_s24 + $0x3c4] sm:$0xf] }
 0x75b   : > { %5895 = vmatpush.bf16.msra.mxu0 %v11947_v5  ;;  %v12195_v31 = vor.u32 %v14502_v28, %v12194_v26  ;;  %v12527_v35 = vor.u32 %v14579_v34, %v12524_v57  ;;  %v14567_v5 = vld [vmem:[%s16436_s24 + $0x7e4] sm:$0xf]  ;;  %v12332_v25 = vld [vmem:[%s16436_s24 + $0x6f0] sm:$0xf0]  ;;  %v11570_v26 = vld [vmem:[%s16436_s24 + $0xc8] sm:$0xf] }
 0x75c   : > { %5921 = vmatpush.bf16.msrb.mxu2 %v11567_v49  ;;  %v11715_v49 = vor.u32 %v14382_v47, %v11714_v46  ;;  %v11954_v30 = vld [vmem:[%s16436_s24 + $0x3c8] sm:$0xf]  ;;  %v14423_v34 = vld [vmem:[%s16436_s24 + $0x364] sm:$0xf]  ;;  %v11900_v57 = vld [vmem:[%s16436_s24 + $0x390] sm:$0xf0] }
 0x75d   : > { %5908 = vmatpush.bf16.msra.mxu1 %v12331_v6  ;;  %v12095_v6 = vor.u32 %v14471_v39, %v12092_v40  ;;  %v11906_v39 = vld [vmem:[%s16436_s24 + $0x368] sm:$0xf]  ;;  %v14430_v40 = vld [vmem:[%s16436_s24 + $0x394] sm:$0xf0]  ;;  %v14507_v46 = vld [vmem:[%s16436_s24 + $0x604] sm:$0xf] }
 0x75e   : > { %5882 = vmatpush.bf16.msrb.mxu3 %v11563_v37  ;;  %v11763_v37 = vor.u32 %v14394_v11, %v11762_v13  ;;  %v14519_v13 = vld [vmem:[%s16436_s24 + $0x664] sm:$0xf]  ;;  %v12284_v11 = vld [vmem:[%s16436_s24 + $0x690] sm:$0xf0] }
 0x75f   : > { %5896 = vmatpush.bf16.msra.mxu0 %v11899_v53  ;;  %v12044_v53 = vld [vmem:[%s16436_s24 + $0x4b0] sm:$0xf0] }
 0x760   : > { %5922 = vmatpush.bf16.msrb.mxu2 %v11519_v59  ;;  %v12236_v47 = vld [vmem:[%s16436_s24 + $0x630] sm:$0xf0] }
 0x761   : > { %5909 = vmatpush.bf16.msra.mxu1 %v12283_v54  ;;  %v14555_v54 = vld [vmem:[%s16436_s24 + $0x784] sm:$0xf]  ;;  %v4066_v2 = vld [vmem:[%s1061_s11] sm:$0x7] }
 0x762   : > { %5883 = vmatpush.bf16.msrb.mxu3 %v11515_v45  ;;  %v14459_v45 = vld [vmem:[%s16436_s24 + $0x484] sm:$0xf] }
 0x763   : > { %5897 = vmatpush.bf16.msra.mxu0 %v11851_v4  ;;  %v12047_v59 = vor.u32 %v14459_v45, %v12044_v53  ;;  %v12380_v4 = vld [vmem:[%s16436_s24 + $0x750] sm:$0xf0]  ;;  %v12239_v45 = vor.u32 %v14507_v46, %v12236_v47  ;;  %v14418_v53 = vld [vmem:[%s16436_s24 + $0x334] sm:$0xf0] }
 0x764   : > { %5923 = vmatpush.bf16.msrb.mxu2 %v11471_v14  ;;  %v12383_v9 = vor.u32 %v14543_v3, %v12380_v4  ;;  %v12002_v14 = vld [vmem:[%s16436_s24 + $0x428] sm:$0xf]  ;;  %v4099_v3 = vperm.slane %v4066_v2, 0  ;;  %v4101_v4 = vperm.slane %v4066_v2, 2 }
 0x765   : > { %5910 = vmatpush.bf16.msra.mxu1 %v12235_v8  ;;  %v11618_v8 = vld [vmem:[%s16436_s24 + $0x128] sm:$0xf]  ;;  %v12003_v16 = vor.u32 %v14454_v15, %v12002_v14 }
 0x766   : > { %5884 = vmatpush.bf16.msrb.mxu3 %v11467_v43  ;;  %v14447_v43 = vld [vmem:[%s16436_s24 + $0x424] sm:$0xf]  ;;  %v11619_v12 = vor.u32 %v14358_v0, %v11618_v8 }
 0x767   : > { %5942 = vmatpush.bf16.msrb.mxu0 %v12575_v20  ;;  %v11999_v58 = vor.u32 %v14447_v43, %v11996_v44  ;;  %v14531_v20 = vld [vmem:[%s16436_s24 + $0x6c4] sm:$0xf]  ;;  %v4067_v43 = vld [vmem:[%s1071_s23] sm:$0x7] }
 0x768   : > { %5968 = vmatpush.bf16.msra.mxu2 %v12195_v31  ;;  %v12335_v28 = vor.u32 %v14531_v20, %v12332_v25  ;;  %v14442_v31 = vld [vmem:[%s16436_s24 + $0x3f4] sm:$0xf0]  ;;  %v4109_v8 = vperm.slane %v4067_v43, 0  ;;  %v4110_v0 = vperm.slane %v4067_v43, 1 }
 0x769   : > { %5955 = vmatpush.bf16.msrb.mxu1 %v11811_v27  ;;  %v14346_v27 = vld [vmem:[%s16436_s24 + $0xf4] sm:$0xf0] }
 0x76a   : > { %5929 = vmatpush.bf16.msra.mxu3 %v12191_v19  ;;  %v11948_v19 = vld [vmem:[%s16436_s24 + $0x3f0] sm:$0xf0]  ;;  %v11571_v29 = vor.u32 %v14346_v27, %v11570_v26  ;;  %v14598_v25 = vld [vmem:[%s16436_s24 + $0x8d4] sm:$0xf0]  ;;  %v14400_v26 = vld [vmem:[%s16436_s24 + $0x2ac] sm:$0xf] }
 0x76b   : > { %5943 = vmatpush.bf16.msrb.mxu0 %v12527_v35  ;;  %v11951_v21 = vor.u32 %v14435_v17, %v11948_v19  ;;  %v11903_v35 = vor.u32 %v14423_v34, %v11900_v57  ;;  %v11812_v27 = vld [vmem:[%s16436_s24 + $0x2d8] sm:$0xf0] }
 0x76c   : > { %5969 = vmatpush.bf16.msra.mxu2 %v12147_v38  ;;  %v11523_v38 = vor.u32 %v14334_v36, %v11522_v10  ;;  %v14586_v10 = vld [vmem:[%s16436_s24 + $0x874] sm:$0xf0] }
 0x76d   : > { %5956 = vmatpush.bf16.msrb.mxu1 %v11763_v37  ;;  %v12287_v37 = vor.u32 %v14519_v13, %v12284_v11  ;;  %v12530_v11 = vld [vmem:[%s16436_s24 + $0x848] sm:$0xf] }
 0x76e   : > { %5930 = vmatpush.bf16.msra.mxu3 %v12143_v32  ;;  %v11955_v32 = vor.u32 %v14442_v31, %v11954_v30  ;;  %v12196_v31 = vld [vmem:[%s16436_s24 + $0x5d8] sm:$0xf0]  ;;  %v12531_v46 = vor.u32 %v14586_v10, %v12530_v11 }
 0x76f   : > { %v12340_v11 = vld [vmem:[%s16436_s24 + $0x6f8] sm:$0xf0] }
 0x771   : > { %5957 = vmatpush.bf16.msrb.mxu1 %v11715_v49  ;;  %v14322_v49 = vld [vmem:[%s16436_s24 + $0x34] sm:$0xf0] }
 0x772   : > { %5931 = vmatpush.bf16.msra.mxu3 %v12095_v6  ;;  %v11907_v6 = vor.u32 %v14430_v40, %v11906_v39  ;;  %v11764_v39 = vld [vmem:[%s16436_s24 + $0x278] sm:$0xf0]  ;;  %v14484_v40 = vld [vmem:[%s16436_s24 + $0x54c] sm:$0xf] }
 0x776   : > { %5932 = vmatpush.bf16.msra.mxu3 %v12047_v59 }
 0x77a   : > { %5933 = vmatpush.bf16.msra.mxu3 %v11999_v58  ;;  %v4100_v58 = vperm.slane %v4066_v2, 1 }
 0x77e   : > { %5934 = vmatpush.bf16.msra.mxu3 %v11951_v21  ;;  %v12578_v21 = vld [vmem:[%s16436_s24 + $0x8a8] sm:$0xf] }
 0x782   : > { %5935 = vmatpush.bf16.msra.mxu3 %v11903_v35  ;;  %v11815_v35 = vor.u32 %v14400_v26, %v11812_v27 }
 0x7cc   : > { %v4071_v48 = vpop.xlane.xlu0 %4070 }
 0x7cd   : > { %v4072_v50 = vmul.f32 %v4071_v48, %v16546_v24  ;;  %v12479_v48 = vor.u32 %v14567_v5, %v12476_v7  ;;  %v14411_v5 = vld [vmem:[%s16436_s24 + $0x304] sm:$0xf]  ;;  %v11852_v7 = vld [vmem:[%s16436_s24 + $0x330] sm:$0xf0] }
 0x7cf   : > { %v17327_v55 = vsub.f32 %v17262_v18, %v4072_v50  ;;  %v17330_v56 = vsub.f32 %v17260_v23, %v4072_v50  ;;  %v17333_v33 = vsub.f32 %v17264_v22, %v4072_v50  ;;  %v12098_v50 = vld [vmem:[%s16436_s24 + $0x4e8] sm:$0xf]  ;;  %5944 = vmatpush.bf16.msrb.mxu0 %v12479_v48 }
 0x7d0   : > { %v12099_v52 = vor.u32 %v14478_v51, %v12098_v50  ;;  %v11474_v48 = vld [vmem:[%s16436_s24 + $0x8] sm:$0xf] }
 0x7d1   : > { %v4076_v60 = vmul.f32 %v17327_v55, %v17327_v55  ;;  %v4077_v61 = vmul.f32 %v17330_v56, %v17330_v56  ;;  %v4078_v62 = vmul.f32 %v17333_v33, %v17333_v33  ;;  %v11858_v50 = vld [vmem:[%s16436_s24 + $0x308] sm:$0xf]  ;;  %v11475_v59 = vor.u32 %v14322_v49, %v11474_v48  ;;  %v14574_v49 = vld [vmem:[%s16436_s24 + $0x814] sm:$0xf0] }
 0x7d2   : > { %5970 = vmatpush.bf16.msra.mxu2 %v12099_v52  ;;  %v11855_v52 = vor.u32 %v14411_v5, %v11852_v7  ;;  %v12148_v5 = vld [vmem:[%s16436_s24 + $0x578] sm:$0xf0]  ;;  %v12482_v48 = vld [vmem:[%s16436_s24 + $0x7e8] sm:$0xf] }
 0x7d3   : > { %v4079_v63 = vadd.f32 %v4077_v61, %v4076_v60  ;;  %v12428_v60 = vld [vmem:[%s16436_s24 + $0x7b0] sm:$0xf0]  ;;  %v11666_v61 = vld [vmem:[%s16436_s24 + $0x188] sm:$0xf]  ;;  %v12532_v7 = vld [vmem:[%s16436_s24 + $0x878] sm:$0xf0] }
 0x7d4   : > { %5936 = vmatpush.bf16.msra.mxu3 %v11855_v52  ;;  %v14376_v52 = vld [vmem:[%s16436_s24 + $0x1ec] sm:$0xf] }
 0x7d5   : > { %v4080_v1 = vadd.f32 %v4079_v63, %v4078_v62  ;;  %v14370_v62 = vld [vmem:[%s16436_s24 + $0x1b4] sm:$0xf0]  ;;  %v12431_v63 = vor.u32 %v14555_v54, %v12428_v60  ;;  %v11859_v60 = vor.u32 %v14418_v53, %v11858_v50  ;;  %v12151_v50 = vor.u32 %v14484_v40, %v12148_v5  ;;  %v14472_v53 = vld [vmem:[%s16436_s24 + $0x4ec] sm:$0xf] }
 0x7d6   : > { %5971 = vmatpush.bf16.msra.mxu2 %v12051_v42  ;;  %v14328_v5 = vld [vmem:[%s16436_s24 + $0x6c] sm:$0xf] }
 0x7d7   : > { %4081 = vadd.xlane.f32.xlu2 %v4080_v1  ;;  %v11667_v1 = vor.u32 %v14370_v62, %v11666_v61  ;;  %5945 = vmatpush.bf16.msrb.mxu0 %v12431_v63 }
 0x7d9   : > { %5958 = vmatpush.bf16.msrb.mxu1 %v11667_v1 }
 0x7da   : > { %5972 = vmatpush.bf16.msra.mxu2 %v12003_v16 }
 0x7db   : > { %5946 = vmatpush.bf16.msrb.mxu0 %v12383_v9 }
 0x7dd   : > { %5959 = vmatpush.bf16.msrb.mxu1 %v11619_v12  ;;  %v4111_v12 = vperm.slane %v4067_v43, 2  ;;  %v11668_v43 = vld [vmem:[%s16436_s24 + $0x1b8] sm:$0xf0] }
 0x7de   : > { %5973 = vmatpush.bf16.msra.mxu2 %v11955_v32  ;;  %v12579_v32 = vor.u32 %v14598_v25, %v12578_v21  ;;  %v14544_v21 = vld [vmem:[%s16436_s24 + $0x72c] sm:$0xf]  ;;  %v12388_v25 = vld [vmem:[%s16436_s24 + $0x758] sm:$0xf0] }
 0x7df   : > { %5947 = vmatpush.bf16.msrb.mxu0 %v12335_v28  ;;  %v14496_v28 = vld [vmem:[%s16436_s24 + $0x5ac] sm:$0xf] }
 0x7e0   : > { %v12199_v36 = vor.u32 %v14496_v28, %v12196_v31  ;;  %v12338_v28 = vld [vmem:[%s16436_s24 + $0x6c8] sm:$0xf]  ;;  %v14340_v31 = vld [vmem:[%s16436_s24 + $0xcc] sm:$0xf] }
 0x7e1   : > { %5960 = vmatpush.bf16.msrb.mxu1 %v11571_v29 }
 0x7e2   : > { %5974 = vmatpush.bf16.msra.mxu2 %v11907_v6  ;;  %v14580_v6 = vld [vmem:[%s16436_s24 + $0x84c] sm:$0xf] }
 0x7e3   : > { %5948 = vmatpush.bf16.msrb.mxu0 %v12287_v37 }
 0x7e5   : > { %5961 = vmatpush.bf16.msrb.mxu1 %v11523_v38  ;;  %v14388_v38 = vld [vmem:[%s16436_s24 + $0x24c] sm:$0xf] }
 0x7e6   : > { %5975 = vmatpush.bf16.msra.mxu2 %v11859_v60  ;;  %v11767_v47 = vor.u32 %v14388_v38, %v11764_v39  ;;  %v12484_v60 = vld [vmem:[%s16436_s24 + $0x818] sm:$0xf0]  ;;  %v14526_v38 = vld [vmem:[%s16436_s24 + $0x694] sm:$0xf0] }
 0x7e7   : > { %5949 = vmatpush.bf16.msrb.mxu0 %v12239_v45  ;;  %v11716_v45 = vld [vmem:[%s16436_s24 + $0x218] sm:$0xf0] }
 0x7e9   : > { %5962 = vmatpush.bf16.msrb.mxu1 %v11475_v59  ;;  %v14568_v59 = vld [vmem:[%s16436_s24 + $0x7ec] sm:$0xf] }
 0x7ea   : > { %v12487_v2 = vor.u32 %v14568_v59, %v12484_v60  ;;  %v14412_v60 = vld [vmem:[%s16436_s24 + $0x30c] sm:$0xf] }
 0x84a   : > { %v4082_v51 = vpop.xlane.xlu2 %4081 }
 0x84b   : > { %v4083_v54 = vmul.f32 %v4082_v51, %v16546_v24  ;;  %v12535_v51 = vor.u32 %v14580_v6, %v12532_v7  ;;  %v11524_v6 = vld [vmem:[%s16436_s24 + $0x98] sm:$0xf0]  ;;  %v14424_v7 = vld [vmem:[%s16436_s24 + $0x36c] sm:$0xf] }
 0x84d   : > { %v4084_v61 = vadd.f32 1e-06, %v4083_v54  ;;  %v12100_v54 = vld [vmem:[%s16436_s24 + $0x518] sm:$0xf0] }
 0x84f   : > { %15204 = vrsqrt.f32 %v4084_v61  ;;  %vm4091_vm9 = vweird.f32 %v4084_v61 }
 0x855   : > { %v15205_v62 = vpop.eup %15204 }
 0x856   : > { %v4086_v63 = vmul.f32 %v15205_v62, %v4084_v61  ;;  %vm4092_vm8 = vweird.f32 %v15205_v62  ;;  %v12483_v61 = vor.u32 %v14574_v49, %v12482_v48  ;;  %v12292_v48 = vld [vmem:[%s16436_s24 + $0x698] sm:$0xf0]  ;;  %v12242_v49 = vld [vmem:[%s16436_s24 + $0x608] sm:$0xf] }
 0x857   : > { %vm4093_vm10 = vmor %vm4091_vm9, %vm4092_vm8 }
 0x858   : > { %v4087_v1 = vmul.f32 %v15205_v62, %v4086_v63  ;;  %v12434_v63 = vld [vmem:[%s16436_s24 + $0x788] sm:$0xf] }
 0x85a   : > { %v4088_v41 = vmul.f32 0.5, %v4087_v1  ;;  %v14562_v1 = vld [vmem:[%s16436_s24 + $0x7b4] sm:$0xf0] }
 0x85c   : > { %v4089_v42 = vsub.f32 1.5, %v4088_v41  ;;  %v12103_v41 = vor.u32 %v14472_v53, %v12100_v54  ;;  %v11476_v53 = vld [vmem:[%s16436_s24 + $0x38] sm:$0xf0] }
 0x85e   : > { %v4090_v44 = vmul.f32 %v15205_v62, %v4089_v42  ;;  %v14364_v42 = vld [vmem:[%s16436_s24 + $0x18c] sm:$0xf] }
 0x860   : > { %v4094_v9 = vsel %vm4093_vm10, %v15205_v62, %v4090_v44  ;;  %v11719_v62 = vor.u32 %v14376_v52, %v11716_v45  ;;  %v14460_v44 = vld [vmem:[%s16436_s24 + $0x48c] sm:$0xf]  ;;  %v14514_v52 = vld [vmem:[%s16436_s24 + $0x634] sm:$0xf0] }
 0x861   : > { %v4095_v14 = vmul.f32 %v4094_v9, %v17327_v55  ;;  %v4096_v15 = vmul.f32 %v4094_v9, %v17330_v56  ;;  %v4097_v16 = vmul.f32 %v4094_v9, %v17333_v33  ;;  %v14592_v56 = vld [vmem:[%s16436_s24 + $0x8ac] sm:$0xf]  ;;  %v12580_v33 = vld [vmem:[%s16436_s24 + $0x8d8] sm:$0xf0]  ;;  %v12386_v9 = vld [vmem:[%s16436_s24 + $0x728] sm:$0xf] }
 0x862   : > { %v12583_v37 = vor.u32 %v14592_v56, %v12580_v33  ;;  %v11572_v56 = vld [vmem:[%s16436_s24 + $0xf8] sm:$0xf0]  ;;  %v14436_v33 = vld [vmem:[%s16436_s24 + $0x3cc] sm:$0xf] }
 0x863   : > { %v4105_v17 = vmul.f32 %v4099_v3, %v4095_v14  ;;  %v4106_v19 = vmul.f32 %v4100_v58, %v4096_v15  ;;  %v4107_v20 = vmul.f32 %v4101_v4, %v4097_v16  ;;  %v12052_v3 = vld [vmem:[%s16436_s24 + $0x4b8] sm:$0xf0]  ;;  %v14556_v58 = vld [vmem:[%s16436_s24 + $0x78c] sm:$0xf] }
 0x864   : > { %v12436_v4 = vld [vmem:[%s16436_s24 + $0x7b8] sm:$0xf0]  ;;  %v12055_v14 = vor.u32 %v14460_v44, %v12052_v3  ;;  %v14352_v16 = vld [vmem:[%s16436_s24 + $0x12c] sm:$0xf]  ;;  %v12243_v44 = vor.u32 %v14514_v52, %v12242_v49  ;;  %v14563_v49 = vld [vmem:[%s16436_s24 + $0x7bc] sm:$0xf0] }
 0x865   : > { %v4115_v29 = vadd.f32 %v4109_v8, %v4105_v17  ;;  %v4116_v30 = vadd.f32 %v4110_v0, %v4106_v19  ;;  %v4117_v55 = vadd.f32 %v4111_v12, %v4107_v20  ;;  %v12435_v8 = vor.u32 %v14562_v1, %v12434_v63  ;;  %v14550_v12 = vld [vmem:[%s16436_s24 + $0x754] sm:$0xf0]  ;;  %v11620_v17 = vld [vmem:[%s16436_s24 + $0x158] sm:$0xf0]  ;;  %v14448_v19 = vld [vmem:[%s16436_s24 + $0x42c] sm:$0xf] }
 0x866   : > { %v11671_v0 = vor.u32 %v14364_v42, %v11668_v43  ;;  %v12439_v15 = vor.u32 %v14556_v58, %v12436_v4  ;;  %v12004_v20 = vld [vmem:[%s16436_s24 + $0x458] sm:$0xf0]  ;;  %v12387_v26 = vor.u32 %v14550_v12, %v12386_v9  ;;  %v11623_v27 = vor.u32 %v14352_v16, %v11620_v17  ;;  %v14316_v45 = vld [vmem:[%s16436_s24 + $0xc] sm:$0xf]  ;;  %v11818_v1 = vld [vmem:[%s16436_s24 + $0x2b0] sm:$0xf] }
 0x867   : > { %v17429_v34 = vpack.c.bf16 %v4115_v29, %v4115_v29  ;;  %v17431_v57 = vpack.c.bf16 %v4116_v30, %v4116_v30  ;;  %v17433_v13 = vpack.c.bf16 %v4117_v55, %v4117_v55  ;;  %v14538_v29 = vld [vmem:[%s16436_s24 + $0x6f4] sm:$0xf0]  ;;  %v12007_v30 = vor.u32 %v14448_v19, %v12004_v20  ;;  %v12244_v63 = vld [vmem:[%s16436_s24 + $0x638] sm:$0xf0]  ;;  %v14503_v42 = vld [vmem:[%s16436_s24 + $0x5dc] sm:$0xf0] }
 0x868   : > { %v12391_v55 = vor.u32 %v14544_v21, %v12388_v25  ;;  %v12339_v10 = vor.u32 %v14538_v29, %v12338_v28  ;;  %v12586_v43 = vld [vmem:[%s16436_s24 + $0x8b0] sm:$0xf]  ;;  %v11479_v3 = vor.u32 %v14316_v45, %v11476_v53  ;;  %v14599_v58 = vld [vmem:[%s16436_s24 + $0x8dc] sm:$0xf0]  ;;  %v14401_v4 = vld [vmem:[%s16436_s24 + $0x2b4] sm:$0xf] }
 0x869   : > { %5885 = vmatmul.bf16.vlgmr.msrb.gmra.mxu3 %v17429_v34  ;;  %5898 = vmatmul.bf16.vlgmr.msra.gmra.mxu0 %v17431_v57  ;;  %v14395_v16 = vld [vmem:[%s16436_s24 + $0x27c] sm:$0xf0]  ;;  %v12587_v17 = vor.u32 %v14599_v58, %v12586_v43  ;;  %v12154_v20 = vld [vmem:[%s16436_s24 + $0x550] sm:$0xf]  ;;  %v11772_v28 = vld [vmem:[%s16436_s24 + $0x280] sm:$0xf0] }
 0x86a   : > { %5911 = vmatmul.bf16.vlgmr.msra.gmra.mxu1 %v17433_v13  ;;  %5924 = vmatmul.bf16.vlgmr.msrb.gmra.mxu2 %v17429_v34  ;;  %v14491_v21 = vld [vmem:[%s16436_s24 + $0x57c] sm:$0xf0]  ;;  %v12538_v25 = vld [vmem:[%s16436_s24 + $0x850] sm:$0xf] }
 0x86b   : > { %5981 = vmatpush.bf16.msrb.mxu3 %v12579_v32  ;;  %5994 = vmatpush.bf16.msra.mxu0 %v11815_v35  ;;  %v11956_v32 = vld [vmem:[%s16436_s24 + $0x3f8] sm:$0xf0]  ;;  %v14532_v35 = vld [vmem:[%s16436_s24 + $0x6cc] sm:$0xf]  ;;  %v11626_v53 = vld [vmem:[%s16436_s24 + $0x130] sm:$0xf] }
 0x86c   : > { %6007 = vmatpush.bf16.msra.mxu1 %v12199_v36  ;;  %6020 = vmatpush.bf16.msrb.mxu2 %v12583_v37  ;;  %v11575_v36 = vor.u32 %v14340_v31, %v11572_v56  ;;  %v12290_v37 = vld [vmem:[%s16436_s24 + $0x668] sm:$0xf]  ;;  %v11959_v39 = vor.u32 %v14436_v33, %v11956_v32  ;;  %v12343_v40 = vor.u32 %v14532_v35, %v12340_v11  ;;  %v14383_v31 = vld [vmem:[%s16436_s24 + $0x21c] sm:$0xf0]  ;;  %v12106_v32 = vld [vmem:[%s16436_s24 + $0x4f0] sm:$0xf] }
 0x86d   : > { %v14479_v35 = vld [vmem:[%s16436_s24 + $0x51c] sm:$0xf0]  ;;  %v12490_v11 = vld [vmem:[%s16436_s24 + $0x7f0] sm:$0xf] }
 0x86f   : > { %5982 = vmatpush.bf16.msrb.mxu3 %v12531_v46  ;;  %5995 = vmatpush.bf16.msra.mxu0 %v11767_v47  ;;  %v11908_v46 = vld [vmem:[%s16436_s24 + $0x398] sm:$0xf0]  ;;  %v14520_v47 = vld [vmem:[%s16436_s24 + $0x66c] sm:$0xf] }
 0x870   : > { %6008 = vmatpush.bf16.msra.mxu1 %v12151_v50  ;;  %6021 = vmatpush.bf16.msrb.mxu2 %v12535_v51  ;;  %v12291_v50 = vor.u32 %v14526_v38, %v12290_v37  ;;  %v11527_v51 = vor.u32 %v14328_v5, %v11524_v6  ;;  %v11911_v54 = vor.u32 %v14424_v7, %v11908_v46  ;;  %v11724_v37 = vld [vmem:[%s16436_s24 + $0x220] sm:$0xf0]  ;;  %v14371_v5 = vld [vmem:[%s16436_s24 + $0x1bc] sm:$0xf0]  ;;  %v12058_v46 = vld [vmem:[%s16436_s24 + $0x490] sm:$0xf] }
 0x871   : > { %v12295_v59 = vor.u32 %v14520_v47, %v12292_v48  ;;  %v14467_v47 = vld [vmem:[%s16436_s24 + $0x4bc] sm:$0xf0]  ;;  %v12442_v48 = vld [vmem:[%s16436_s24 + $0x790] sm:$0xf] }
 0x872   : > { %v12059_v45 = vor.u32 %v14467_v47, %v12058_v46  ;;  %v12588_v46 = vld [vmem:[%s16436_s24 + $0x8e0] sm:$0xf0]  ;;  %v11826_v47 = vld [vmem:[%s16436_s24 + $0x2b8] sm:$0xf] }
 0x873   : > { %5983 = vmatpush.bf16.msrb.mxu3 %v12483_v61  ;;  %5996 = vmatpush.bf16.msra.mxu0 %v11719_v62  ;;  %v11860_v61 = vld [vmem:[%s16436_s24 + $0x338] sm:$0xf0]  ;;  %v14508_v62 = vld [vmem:[%s16436_s24 + $0x60c] sm:$0xf] }
 0x874   : > { %6009 = vmatpush.bf16.msra.mxu1 %v12103_v41  ;;  %6022 = vmatpush.bf16.msrb.mxu2 %v12487_v2  ;;  %v14407_v41 = vld [vmem:[%s16436_s24 + $0x2dc] sm:$0xf0]  ;;  %v12202_v2 = vld [vmem:[%s16436_s24 + $0x5b0] sm:$0xf]  ;;  %v12247_v9 = vor.u32 %v14508_v62, %v12244_v63 }
 0x875   : > { %v11819_v12 = vor.u32 %v14407_v41, %v11818_v1  ;;  %v14455_v62 = vld [vmem:[%s16436_s24 + $0x45c] sm:$0xf0]  ;;  %v12394_v63 = vld [vmem:[%s16436_s24 + $0x730] sm:$0xf]  ;;  %v14353_v41 = vld [vmem:[%s16436_s24 + $0x134] sm:$0xf] }
 0x876   : > { %v14551_v1 = vld [vmem:[%s16436_s24 + $0x75c] sm:$0xf0] }
 0x877   : > { %5984 = vmatpush.bf16.msrb.mxu3 %v12435_v8  ;;  %5997 = vmatpush.bf16.msra.mxu0 %v11671_v0  ;;  %v11820_v8 = vld [vmem:[%s16436_s24 + $0x2e0] sm:$0xf0]  ;;  %v11863_v0 = vor.u32 %v14412_v60, %v11860_v61  ;;  %v12010_v61 = vld [vmem:[%s16436_s24 + $0x430] sm:$0xf]  ;;  %v12395_v58 = vor.u32 %v14551_v1, %v12394_v63  ;;  %v14581_v1 = vld [vmem:[%s16436_s24 + $0x854] sm:$0xf] }
 0x878   : > { %6010 = vmatpush.bf16.msra.mxu1 %v12055_v14  ;;  %6023 = vmatpush.bf16.msrb.mxu2 %v12439_v15  ;;  %v12203_v14 = vor.u32 %v14503_v42, %v12202_v2  ;;  %v11770_v15 = vld [vmem:[%s16436_s24 + $0x250] sm:$0xf]  ;;  %v11823_v19 = vor.u32 %v14401_v4, %v11820_v8  ;;  %v11628_v2 = vld [vmem:[%s16436_s24 + $0x160] sm:$0xf0]  ;;  %v12011_v43 = vor.u32 %v14455_v62, %v12010_v61 }
 0x879   : > { %5937 = vmatmul.bf16.vlgmr.msra.gmra.mxu3 %v17431_v57  ;;  %5950 = vmatmul.bf16.vlgmr.msrb.gmra.mxu0 %v17433_v13  ;;  %v11771_v29 = vor.u32 %v14395_v16, %v11770_v15  ;;  %v11631_v4 = vor.u32 %v14353_v41, %v11628_v2  ;;  %v11962_v8 = vld [vmem:[%s16436_s24 + $0x3d0] sm:$0xf]  ;;  %v11580_v15 = vld [vmem:[%s16436_s24 + $0x100] sm:$0xf0]  ;;  %v11778_v2 = vld [vmem:[%s16436_s24 + $0x258] sm:$0xf] }
 0x87a   : > { %5963 = vmatmul.bf16.vlgmr.msrb.gmra.mxu1 %v17429_v34  ;;  %5976 = vmatmul.bf16.vlgmr.msra.gmra.mxu2 %v17431_v57  ;;  %v12156_v61 = vld [vmem:[%s16436_s24 + $0x580] sm:$0xf0] }
 0x87b   : > { %5985 = vmatpush.bf16.msrb.mxu3 %v12387_v26  ;;  %5998 = vmatpush.bf16.msra.mxu0 %v11623_v27  ;;  %v14587_v26 = vld [vmem:[%s16436_s24 + $0x87c] sm:$0xf0]  ;;  %v14389_v27 = vld [vmem:[%s16436_s24 + $0x254] sm:$0xf]  ;;  %v12540_v41 = vld [vmem:[%s16436_s24 + $0x880] sm:$0xf0] }
 0x87c   : > { %6011 = vmatpush.bf16.msra.mxu1 %v12007_v30  ;;  %6024 = vmatpush.bf16.msrb.mxu2 %v12391_v55  ;;  %v12155_v30 = vor.u32 %v14491_v21, %v12154_v20  ;;  %v11722_v55 = vld [vmem:[%s16436_s24 + $0x1f0] sm:$0xf]  ;;  %v12539_v56 = vor.u32 %v14587_v26, %v12538_v25  ;;  %v11775_v33 = vor.u32 %v14389_v27, %v11772_v28  ;;  %v14335_v20 = vld [vmem:[%s16436_s24 + $0x9c] sm:$0xf0] }
 0x87d   : > { %v11723_v38 = vor.u32 %v14383_v31, %v11722_v55  ;;  %v11914_v26 = vld [vmem:[%s16436_s24 + $0x370] sm:$0xf]  ;;  %v14431_v27 = vld [vmem:[%s16436_s24 + $0x39c] sm:$0xf0]  ;;  %v11532_v55 = vld [vmem:[%s16436_s24 + $0xa0] sm:$0xf0] }
 0x87e   : > { %v12298_v28 = vld [vmem:[%s16436_s24 + $0x670] sm:$0xf] }
 0x87f   : > { %5986 = vmatpush.bf16.msrb.mxu3 %v12339_v10  ;;  %5999 = vmatpush.bf16.msra.mxu0 %v11575_v36  ;;  %v14575_v10 = vld [vmem:[%s16436_s24 + $0x81c] sm:$0xf0]  ;;  %v14377_v36 = vld [vmem:[%s16436_s24 + $0x1f4] sm:$0xf]  ;;  %v11482_v31 = vld [vmem:[%s16436_s24 + $0x10] sm:$0xf] }
 0x880   : > { %6012 = vmatpush.bf16.msra.mxu1 %v11959_v39  ;;  %6025 = vmatpush.bf16.msrb.mxu2 %v12343_v40  ;;  %v12107_v39 = vor.u32 %v14479_v35, %v12106_v32  ;;  %v11674_v40 = vld [vmem:[%s16436_s24 + $0x190] sm:$0xf]  ;;  %v12491_v6 = vor.u32 %v14575_v10, %v12490_v11  ;;  %v11727_v7 = vor.u32 %v14377_v36, %v11724_v37  ;;  %v14323_v32 = vld [vmem:[%s16436_s24 + $0x3c] sm:$0xf0] }
 0x881   : > { %v11675_v52 = vor.u32 %v14371_v5, %v11674_v40  ;;  %v11866_v35 = vld [vmem:[%s16436_s24 + $0x310] sm:$0xf]  ;;  %v14419_v11 = vld [vmem:[%s16436_s24 + $0x33c] sm:$0xf0]  ;;  %v11484_v40 = vld [vmem:[%s16436_s24 + $0x40] sm:$0xf0] }
 0x882   : > { %v12250_v37 = vld [vmem:[%s16436_s24 + $0x610] sm:$0xf]  ;;  %v14497_v5 = vld [vmem:[%s16436_s24 + $0x5b4] sm:$0xf] }
 0x883   : > { %5987 = vmatpush.bf16.msrb.mxu3 %v12291_v50  ;;  %6000 = vmatpush.bf16.msra.mxu0 %v11527_v51  ;;  %v14365_v50 = vld [vmem:[%s16436_s24 + $0x194] sm:$0xf]  ;;  %v11676_v51 = vld [vmem:[%s16436_s24 + $0x1c0] sm:$0xf0] }
 0x884   : > { %6013 = vmatpush.bf16.msra.mxu1 %v11911_v54  ;;  %6026 = vmatpush.bf16.msrb.mxu2 %v12295_v59  ;;  %v14359_v54 = vld [vmem:[%s16436_s24 + $0x15c] sm:$0xf0]  ;;  %v12443_v59 = vor.u32 %v14563_v49, %v12442_v48  ;;  %v11679_v60 = vor.u32 %v14365_v50, %v11676_v51  ;;  %v11483_v48 = vor.u32 %v14323_v32, %v11482_v31  ;;  %v14408_v50 = vld [vmem:[%s16436_s24 + $0x2e4] sm:$0xf0]  ;;  %v12210_v51 = vld [vmem:[%s16436_s24 + $0x5b8] sm:$0xf] }
 0x885   : > { %v11627_v42 = vor.u32 %v14359_v54, %v11626_v53  ;;  %v11867_v49 = vor.u32 %v14419_v11, %v11866_v35  ;;  %v11827_v62 = vor.u32 %v14408_v50, %v11826_v47  ;;  %v14372_v31 = vld [vmem:[%s16436_s24 + $0x1c4] sm:$0xf0]  ;;  %v14449_v11 = vld [vmem:[%s16436_s24 + $0x434] sm:$0xf] }
 0x887   : > { %5988 = vmatpush.bf16.msrb.mxu3 %v12243_v44  ;;  %6001 = vmatpush.bf16.msra.mxu0 %v11479_v3  ;;  %v11578_v44 = vld [vmem:[%s16436_s24 + $0xd0] sm:$0xf]  ;;  %v14347_v3 = vld [vmem:[%s16436_s24 + $0xfc] sm:$0xf0] }
 0x888   : > { %6014 = vmatpush.bf16.msra.mxu1 %v11863_v0  ;;  %6027 = vmatpush.bf16.msrb.mxu2 %v12247_v9  ;;  %v14443_v0 = vld [vmem:[%s16436_s24 + $0x3fc] sm:$0xf0]  ;;  %v12346_v9 = vld [vmem:[%s16436_s24 + $0x6d0] sm:$0xf]  ;;  %v11579_v16 = vor.u32 %v14347_v3, %v11578_v44  ;;  %v14492_v44 = vld [vmem:[%s16436_s24 + $0x584] sm:$0xf0] }
 0x88a   : > { %5989 = vmatmul.bf16.vlgmr.msrb.gmra.mxu3 %v17433_v13  ;;  %6002 = vmatmul.bf16.vlgmr.msra.gmra.mxu0 %v17429_v34 }
 0x88b   : > { %6033 = vmatpush.bf16.msra.mxu3 %v11819_v12  ;;  %6046 = vmatpush.bf16.msrb.mxu0 %v12203_v14  ;;  %v14539_v12 = vld [vmem:[%s16436_s24 + $0x6fc] sm:$0xf0]  ;;  %v14341_v14 = vld [vmem:[%s16436_s24 + $0xd4] sm:$0xf] }
 0x88c   : > { %6059 = vmatpush.bf16.msrb.mxu1 %v12587_v17  ;;  %6072 = vmatpush.bf16.msra.mxu2 %v11823_v19  ;;  %v11963_v17 = vor.u32 %v14443_v0, %v11962_v8  ;;  %v11530_v19 = vld [vmem:[%s16436_s24 + $0x70] sm:$0xf]  ;;  %v12347_v21 = vor.u32 %v14539_v12, %v12346_v9  ;;  %v11583_v25 = vor.u32 %v14341_v14, %v11580_v15  ;;  %v12108_v8 = vld [vmem:[%s16436_s24 + $0x520] sm:$0xf0]  ;;  %v14569_v12 = vld [vmem:[%s16436_s24 + $0x7f4] sm:$0xf] }
 0x88d   : > { %6015 = vmatmul.bf16.vlgmr.msra.gmra.mxu1 %v17431_v57  ;;  %6028 = vmatmul.bf16.vlgmr.msrb.gmra.mxu2 %v17433_v13  ;;  %v12492_v14 = vld [vmem:[%s16436_s24 + $0x820] sm:$0xf0]  ;;  %v11730_v15 = vld [vmem:[%s16436_s24 + $0x1f8] sm:$0xf] }
 0x88f   : > { %6034 = vmatpush.bf16.msra.mxu3 %v11771_v29  ;;  %6047 = vmatpush.bf16.msrb.mxu0 %v12155_v30  ;;  %v14527_v29 = vld [vmem:[%s16436_s24 + $0x69c] sm:$0xf0]  ;;  %v14329_v30 = vld [vmem:[%s16436_s24 + $0x74] sm:$0xf] }
 0x890   : > { %6060 = vmatpush.bf16.msrb.mxu1 %v12539_v56  ;;  %6073 = vmatpush.bf16.msra.mxu2 %v11775_v33  ;;  %v11531_v56 = vor.u32 %v14335_v20, %v11530_v19  ;;  %v11915_v33 = vor.u32 %v14431_v27, %v11914_v26  ;;  %v12299_v10 = vor.u32 %v14527_v29, %v12298_v28  ;;  %v14480_v19 = vld [vmem:[%s16436_s24 + $0x524] sm:$0xf0]  ;;  %v12060_v26 = vld [vmem:[%s16436_s24 + $0x4c0] sm:$0xf0]  ;;  %v14557_v29 = vld [vmem:[%s16436_s24 + $0x794] sm:$0xf] }
 0x891   : > { %v11535_v36 = vor.u32 %v14329_v30, %v11532_v55  ;;  %v12444_v30 = vld [vmem:[%s16436_s24 + $0x7c0] sm:$0xf0]  ;;  %v11682_v55 = vld [vmem:[%s16436_s24 + $0x198] sm:$0xf] }
 0x892   : > { %v12447_v35 = vor.u32 %v14557_v29, %v12444_v30  ;;  %v11828_v29 = vld [vmem:[%s16436_s24 + $0x2e8] sm:$0xf0]  ;;  %v14498_v30 = vld [vmem:[%s16436_s24 + $0x5bc] sm:$0xf] }
 0x893   : > { %6035 = vmatpush.bf16.msra.mxu3 %v11723_v38  ;;  %6048 = vmatpush.bf16.msrb.mxu0 %v12107_v39  ;;  %v14515_v38 = vld [vmem:[%s16436_s24 + $0x63c] sm:$0xf0]  ;;  %v14317_v39 = vld [vmem:[%s16436_s24 + $0x14] sm:$0xf] }
 0x894   : > { %6061 = vmatpush.bf16.msrb.mxu1 %v12491_v6  ;;  %6074 = vmatpush.bf16.msra.mxu2 %v11727_v7  ;;  %v12204_v6 = vld [vmem:[%s16436_s24 + $0x5e0] sm:$0xf0]  ;;  %v14593_v7 = vld [vmem:[%s16436_s24 + $0x8b4] sm:$0xf]  ;;  %v11487_v53 = vor.u32 %v14317_v39, %v11484_v40  ;;  %v11634_v40 = vld [vmem:[%s16436_s24 + $0x138] sm:$0xf] }
 0x895   : > { %v12207_v54 = vor.u32 %v14497_v5, %v12204_v6  ;;  %v12396_v39 = vld [vmem:[%s16436_s24 + $0x760] sm:$0xf0]  ;;  %v14360_v5 = vld [vmem:[%s16436_s24 + $0x164] sm:$0xf0]  ;;  %v12018_v6 = vld [vmem:[%s16436_s24 + $0x438] sm:$0xf] }
 0x896   : > { %v11635_v50 = vor.u32 %v14360_v5, %v11634_v40  ;;  %v14390_v5 = vld [vmem:[%s16436_s24 + $0x25c] sm:$0xf] }
 0x897   : > { %6036 = vmatpush.bf16.msra.mxu3 %v11675_v52  ;;  %6049 = vmatpush.bf16.msrb.mxu0 %v12059_v45  ;;  %v14504_v52 = vld [vmem:[%s16436_s24 + $0x5e4] sm:$0xf0]  ;;  %v12251_v45 = vor.u32 %v14515_v38, %v12250_v37  ;;  %v14545_v38 = vld [vmem:[%s16436_s24 + $0x734] sm:$0xf] }
 0x898   : > { %6062 = vmatpush.bf16.msrb.mxu1 %v12443_v59  ;;  %6075 = vmatpush.bf16.msra.mxu2 %v11679_v60  ;;  %v12591_v59 = vor.u32 %v14593_v7, %v12588_v46  ;;  %v14485_v60 = vld [vmem:[%s16436_s24 + $0x554] sm:$0xf]  ;;  %v12211_v63 = vor.u32 %v14504_v52, %v12210_v51  ;;  %v14456_v7 = vld [vmem:[%s16436_s24 + $0x464] sm:$0xf0]  ;;  %v12399_v47 = vor.u32 %v14545_v38, %v12396_v39 }
 0x899   : > { %v12159_v3 = vor.u32 %v14485_v60, %v12156_v61  ;;  %v12019_v51 = vor.u32 %v14456_v7, %v12018_v6  ;;  %v14533_v52 = vld [vmem:[%s16436_s24 + $0x6d4] sm:$0xf]  ;;  %v14444_v60 = vld [vmem:[%s16436_s24 + $0x404] sm:$0xf0]  ;;  %v11780_v6 = vld [vmem:[%s16436_s24 + $0x288] sm:$0xf0] }
 0x89a   : > { %v14588_v38 = vld [vmem:[%s16436_s24 + $0x884] sm:$0xf0]  ;;  %v14486_v7 = vld [vmem:[%s16436_s24 + $0x55c] sm:$0xf] }
 0x89b   : > { %6037 = vmatpush.bf16.msra.mxu3 %v11627_v42  ;;  %6050 = vmatpush.bf16.msrb.mxu0 %v12011_v43  ;;  %v14396_v42 = vld [vmem:[%s16436_s24 + $0x284] sm:$0xf0]  ;;  %v12162_v43 = vld [vmem:[%s16436_s24 + $0x558] sm:$0xf] }
 0x89c   : > { %6063 = vmatpush.bf16.msrb.mxu1 %v12395_v58  ;;  %6076 = vmatpush.bf16.msra.mxu2 %v11631_v4  ;;  %v12543_v58 = vor.u32 %v14581_v1, %v12540_v41  ;;  %v14473_v4 = vld [vmem:[%s16436_s24 + $0x4f4] sm:$0xf]  ;;  %v11779_v0 = vor.u32 %v14396_v42, %v11778_v2  ;;  %v12163_v9 = vor.u32 %v14492_v44, %v12162_v43  ;;  %v11916_v1 = vld [vmem:[%s16436_s24 + $0x3a0] sm:$0xf0]  ;;  %v11538_v44 = vld [vmem:[%s16436_s24 + $0x78] sm:$0xf] }
 0x89d   : > { %v12111_v20 = vor.u32 %v14473_v4, %v12108_v8  ;;  %v14521_v42 = vld [vmem:[%s16436_s24 + $0x674] sm:$0xf]  ;;  %v12300_v43 = vld [vmem:[%s16436_s24 + $0x6a0] sm:$0xf0]  ;;  %v14432_v4 = vld [vmem:[%s16436_s24 + $0x3a4] sm:$0xf0] }
 0x89e   : > { %v14413_v8 = vld [vmem:[%s16436_s24 + $0x314] sm:$0xf] }
 0x89f   : > { %6038 = vmatpush.bf16.msra.mxu3 %v11579_v16  ;;  %6051 = vmatpush.bf16.msrb.mxu0 %v11963_v17  ;;  %v14384_v16 = vld [vmem:[%s16436_s24 + $0x224] sm:$0xf0]  ;;  %v12114_v17 = vld [vmem:[%s16436_s24 + $0x4f8] sm:$0xf] }
 0x8a0   : > { %6064 = vmatpush.bf16.msrb.mxu1 %v12347_v21  ;;  %6077 = vmatpush.bf16.msra.mxu2 %v11583_v25  ;;  %v12495_v21 = vor.u32 %v14569_v12, %v12492_v14  ;;  %v14461_v25 = vld [vmem:[%s16436_s24 + $0x494] sm:$0xf]  ;;  %v11731_v27 = vor.u32 %v14384_v16, %v11730_v15  ;;  %v12115_v28 = vor.u32 %v14480_v19, %v12114_v17  ;;  %v11868_v12 = vld [vmem:[%s16436_s24 + $0x340] sm:$0xf0]  ;;  %v11490_v19 = vld [vmem:[%s16436_s24 + $0x18] sm:$0xf] }
 0x8a1   : > { %v12063_v32 = vor.u32 %v14461_v25, %v12060_v26  ;;  %v14509_v14 = vld [vmem:[%s16436_s24 + $0x614] sm:$0xf]  ;;  %v12252_v15 = vld [vmem:[%s16436_s24 + $0x640] sm:$0xf0]  ;;  %v14420_v25 = vld [vmem:[%s16436_s24 + $0x344] sm:$0xf0] }
 0x8a2   : > { %v12594_v26 = vld [vmem:[%s16436_s24 + $0x8b8] sm:$0xf] }
 0x8a3   : > { %6039 = vmatpush.bf16.msra.mxu3 %v11531_v56  ;;  %6052 = vmatpush.bf16.msrb.mxu0 %v11915_v33  ;;  %v12066_v56 = vld [vmem:[%s16436_s24 + $0x498] sm:$0xf]  ;;  %v14468_v33 = vld [vmem:[%s16436_s24 + $0x4c4] sm:$0xf0] }
 0x8a4   : > { %6065 = vmatpush.bf16.msrb.mxu1 %v12299_v10  ;;  %6078 = vmatpush.bf16.msra.mxu2 %v11535_v36  ;;  %v12012_v10 = vld [vmem:[%s16436_s24 + $0x460] sm:$0xf0]  ;;  %v11683_v36 = vor.u32 %v14372_v31, %v11682_v55  ;;  %v12067_v37 = vor.u32 %v14468_v33, %v12066_v56  ;;  %v11871_v55 = vor.u32 %v14413_v8, %v11868_v12  ;;  %v12212_v56 = vld [vmem:[%s16436_s24 + $0x5e8] sm:$0xf0]  ;;  %v14594_v33 = vld [vmem:[%s16436_s24 + $0x8bc] sm:$0xf] }
 0x8a5   : > { %v12015_v46 = vor.u32 %v14449_v11, %v12012_v10  ;;  %v12255_v31 = vor.u32 %v14509_v14, %v12252_v15  ;;  %v12215_v39 = vor.u32 %v14498_v30, %v12212_v56  ;;  %v12068_v8 = vld [vmem:[%s16436_s24 + $0x4c8] sm:$0xf0]  ;;  %v12402_v15 = vld [vmem:[%s16436_s24 + $0x738] sm:$0xf] }
 0x8a7   : > { %6040 = vmatpush.bf16.msra.mxu3 %v11483_v48  ;;  %6053 = vmatpush.bf16.msrb.mxu0 %v11867_v49  ;;  %v14437_v48 = vld [vmem:[%s16436_s24 + $0x3d4] sm:$0xf]  ;;  %v11964_v49 = vld [vmem:[%s16436_s24 + $0x400] sm:$0xf0] }
 0x8a8   : > { %6066 = vmatpush.bf16.msrb.mxu1 %v12251_v45  ;;  %6079 = vmatpush.bf16.msra.mxu2 %v11487_v53  ;;  %v12348_v45 = vld [vmem:[%s16436_s24 + $0x700] sm:$0xf0]  ;;  %v11586_v53 = vld [vmem:[%s16436_s24 + $0xd8] sm:$0xf]  ;;  %v11967_v61 = vor.u32 %v14437_v48, %v11964_v49  ;;  %v12548_v48 = vld [vmem:[%s16436_s24 + $0x888] sm:$0xf0] }
 0x8aa   : > { %6041 = vmatmul.bf16.vlgmr.msra.gmra.mxu3 %v17429_v34  ;;  %6054 = vmatmul.bf16.vlgmr.msrb.gmra.mxu0 %v17431_v57 }
 0x8ab   : > { %6085 = vmatpush.bf16.msrb.mxu3 %v12207_v54  ;;  %6098 = vmatpush.bf16.msra.mxu0 %v12591_v59  ;;  %v14348_v54 = vld [vmem:[%s16436_s24 + $0x104] sm:$0xf0]  ;;  %v11970_v59 = vld [vmem:[%s16436_s24 + $0x3d8] sm:$0xf] }
 0x8ac   : > { %6111 = vmatpush.bf16.msra.mxu1 %v11827_v62  ;;  %6124 = vmatpush.bf16.msrb.mxu2 %v12211_v63  ;;  %v12351_v62 = vor.u32 %v14533_v52, %v12348_v45  ;;  %v14425_v63 = vld [vmem:[%s16436_s24 + $0x374] sm:$0xf]  ;;  %v11587_v41 = vor.u32 %v14348_v54, %v11586_v53  ;;  %v11971_v2 = vor.u32 %v14444_v60, %v11970_v59  ;;  %v14576_v52 = vld [vmem:[%s16436_s24 + $0x824] sm:$0xf0]  ;;  %v14378_v54 = vld [vmem:[%s16436_s24 + $0x1fc] sm:$0xf] }
 0x8ad   : > { %6067 = vmatmul.bf16.vlgmr.msrb.gmra.mxu1 %v17433_v13  ;;  %6080 = vmatmul.bf16.vlgmr.msra.gmra.mxu2 %v17429_v34  ;;  %v11732_v59 = vld [vmem:[%s16436_s24 + $0x228] sm:$0xf0]  ;;  %v14474_v60 = vld [vmem:[%s16436_s24 + $0x4fc] sm:$0xf] }
 0x8af   : > { %6086 = vmatpush.bf16.msrb.mxu3 %v12159_v3  ;;  %6099 = vmatpush.bf16.msra.mxu0 %v12543_v58  ;;  %v14336_v3 = vld [vmem:[%s16436_s24 + $0xa4] sm:$0xf0]  ;;  %v11922_v58 = vld [vmem:[%s16436_s24 + $0x378] sm:$0xf] }
 0x8b0   : > { %6112 = vmatpush.bf16.msra.mxu1 %v11779_v0  ;;  %6125 = vmatpush.bf16.msrb.mxu2 %v12163_v9  ;;  %v11919_v0 = vor.u32 %v14425_v63, %v11916_v1  ;;  %v12303_v9 = vor.u32 %v14521_v42, %v12300_v43  ;;  %v11539_v16 = vor.u32 %v14336_v3, %v11538_v44  ;;  %v12500_v63 = vld [vmem:[%s16436_s24 + $0x828] sm:$0xf0]  ;;  %v14564_v42 = vld [vmem:[%s16436_s24 + $0x7c4] sm:$0xf0]  ;;  %v14366_v3 = vld [vmem:[%s16436_s24 + $0x19c] sm:$0xf] }
 0x8b1   : > { %v11923_v17 = vor.u32 %v14432_v4, %v11922_v58  ;;  %v11684_v58 = vld [vmem:[%s16436_s24 + $0x1c8] sm:$0xf0]  ;;  %v14462_v4 = vld [vmem:[%s16436_s24 + $0x49c] sm:$0xf] }
 0x8b2   : > { %v11687_v14 = vor.u32 %v14366_v3, %v11684_v58  ;;  %v14505_v3 = vld [vmem:[%s16436_s24 + $0x5ec] sm:$0xf0]  ;;  %v12602_v58 = vld [vmem:[%s16436_s24 + $0x8c0] sm:$0xf] }
 0x8b3   : > { %6087 = vmatpush.bf16.msrb.mxu3 %v12111_v20  ;;  %6100 = vmatpush.bf16.msra.mxu0 %v12495_v21  ;;  %v14324_v20 = vld [vmem:[%s16436_s24 + $0x44] sm:$0xf0]  ;;  %v11874_v21 = vld [vmem:[%s16436_s24 + $0x318] sm:$0xf] }
 0x8b4   : > { %6113 = vmatpush.bf16.msra.mxu1 %v11731_v27  ;;  %6126 = vmatpush.bf16.msrb.mxu2 %v12115_v28  ;;  %v14600_v27 = vld [vmem:[%s16436_s24 + $0x8e4] sm:$0xf0]  ;;  %v14402_v28 = vld [vmem:[%s16436_s24 + $0x2bc] sm:$0xf]  ;;  %v11875_v11 = vor.u32 %v14420_v25, %v11874_v21  ;;  %v11636_v21 = vld [vmem:[%s16436_s24 + $0x168] sm:$0xf0] }
 0x8b5   : > { %v12595_v10 = vor.u32 %v14600_v27, %v12594_v26  ;;  %v14450_v25 = vld [vmem:[%s16436_s24 + $0x43c] sm:$0xf]  ;;  %v12020_v26 = vld [vmem:[%s16436_s24 + $0x468] sm:$0xf0] }
 0x8b6   : > { %v14546_v27 = vld [vmem:[%s16436_s24 + $0x73c] sm:$0xf]  ;;  %v12023_v56 = vor.u32 %v14450_v25, %v12020_v26  ;;  %v12170_v26 = vld [vmem:[%s16436_s24 + $0x560] sm:$0xf] }
 0x8b7   : > { %6088 = vmatpush.bf16.msrb.mxu3 %v12063_v32  ;;  %6101 = vmatpush.bf16.msra.mxu0 %v12447_v35  ;;  %v12596_v32 = vld [vmem:[%s16436_s24 + $0x8e8] sm:$0xf0]  ;;  %v11491_v35 = vor.u32 %v14324_v20, %v11490_v19  ;;  %v14354_v20 = vld [vmem:[%s16436_s24 + $0x13c] sm:$0xf] }
 0x8b8   : > { %6114 = vmatpush.bf16.msra.mxu1 %v11683_v36  ;;  %6127 = vmatpush.bf16.msrb.mxu2 %v12067_v37  ;;  %v11831_v36 = vor.u32 %v14402_v28, %v11828_v29  ;;  %v12546_v37 = vld [vmem:[%s16436_s24 + $0x858] sm:$0xf]  ;;  %v12599_v40 = vor.u32 %v14594_v33, %v12596_v32  ;;  %v12404_v28 = vld [vmem:[%s16436_s24 + $0x768] sm:$0xf0]  ;;  %v11639_v30 = vor.u32 %v14354_v20, %v11636_v21  ;;  %v14342_v32 = vld [vmem:[%s16436_s24 + $0xdc] sm:$0xf] }
 0x8b9   : > { %v12547_v49 = vor.u32 %v14588_v38, %v12546_v37  ;;  %v12407_v33 = vor.u32 %v14546_v27, %v12404_v28  ;;  %v12356_v37 = vld [vmem:[%s16436_s24 + $0x708] sm:$0xf0]  ;;  %v14397_v20 = vld [vmem:[%s16436_s24 + $0x28c] sm:$0xf0]  ;;  %v12554_v28 = vld [vmem:[%s16436_s24 + $0x860] sm:$0xf] }
 0x8ba   : > { %v14493_v27 = vld [vmem:[%s16436_s24 + $0x58c] sm:$0xf0] }
 0x8bb   : > { %6089 = vmatpush.bf16.msrb.mxu3 %v12015_v46  ;;  %6102 = vmatpush.bf16.msra.mxu0 %v12399_v47  ;;  %v12164_v46 = vld [vmem:[%s16436_s24 + $0x588] sm:$0xf0]  ;;  %v14582_v47 = vld [vmem:[%s16436_s24 + $0x85c] sm:$0xf] }
 0x8bc   : > { %6115 = vmatpush.bf16.msra.mxu1 %v11635_v50  ;;  %6128 = vmatpush.bf16.msrb.mxu2 %v12019_v51  ;;  %v11783_v50 = vor.u32 %v14390_v5, %v11780_v6  ;;  %v12498_v51 = vld [vmem:[%s16436_s24 + $0x7f8] sm:$0xf]  ;;  %v12167_v45 = vor.u32 %v14486_v7, %v12164_v46  ;;  %v12551_v53 = vor.u32 %v14582_v47, %v12548_v48  ;;  %v14528_v5 = vld [vmem:[%s16436_s24 + $0x6a4] sm:$0xf0]  ;;  %v14330_v46 = vld [vmem:[%s16436_s24 + $0x7c] sm:$0xf] }
 0x8bd   : > { %v12499_v1 = vor.u32 %v14576_v52, %v12498_v51  ;;  %v11540_v47 = vld [vmem:[%s16436_s24 + $0xa8] sm:$0xf0]  ;;  %v14426_v48 = vld [vmem:[%s16436_s24 + $0x37c] sm:$0xf]  ;;  %v12258_v52 = vld [vmem:[%s16436_s24 + $0x618] sm:$0xf] }
 0x8be   : > { %v12308_v51 = vld [vmem:[%s16436_s24 + $0x6a8] sm:$0xf0] }
 0x8bf   : > { %6090 = vmatpush.bf16.msrb.mxu3 %v11967_v61  ;;  %6103 = vmatpush.bf16.msra.mxu0 %v12351_v62  ;;  %v12116_v61 = vld [vmem:[%s16436_s24 + $0x528] sm:$0xf0]  ;;  %v14570_v62 = vld [vmem:[%s16436_s24 + $0x7fc] sm:$0xf] }
 0x8c0   : > { %6116 = vmatpush.bf16.msra.mxu1 %v11587_v41  ;;  %6129 = vmatpush.bf16.msrb.mxu2 %v11971_v2  ;;  %v11735_v41 = vor.u32 %v14378_v54, %v11732_v59  ;;  %v12450_v2 = vld [vmem:[%s16436_s24 + $0x798] sm:$0xf]  ;;  %v12119_v43 = vor.u32 %v14474_v60, %v12116_v61  ;;  %v12503_v44 = vor.u32 %v14570_v62, %v12500_v63  ;;  %v14516_v54 = vld [vmem:[%s16436_s24 + $0x644] sm:$0xf0]  ;;  %v14318_v59 = vld [vmem:[%s16436_s24 + $0x1c] sm:$0xf] }
 0x8c1   : > { %v12451_v12 = vor.u32 %v14564_v42, %v12450_v2  ;;  %v11492_v60 = vld [vmem:[%s16436_s24 + $0x48] sm:$0xf0]  ;;  %v14414_v63 = vld [vmem:[%s16436_s24 + $0x31c] sm:$0xf]  ;;  %v11834_v42 = vld [vmem:[%s16436_s24 + $0x2c0] sm:$0xf] }
 0x8c2   : > { %v12260_v2 = vld [vmem:[%s16436_s24 + $0x648] sm:$0xf0] }
 0x8c3   : > { %6091 = vmatpush.bf16.msrb.mxu3 %v11919_v0  ;;  %6104 = vmatpush.bf16.msra.mxu0 %v12303_v9  ;;  %v14558_v0 = vld [vmem:[%s16436_s24 + $0x79c] sm:$0xf]  ;;  %v12452_v9 = vld [vmem:[%s16436_s24 + $0x7c8] sm:$0xf0] }
 0x8c4   : > { %6117 = vmatpush.bf16.msra.mxu1 %v11539_v16  ;;  %6130 = vmatpush.bf16.msrb.mxu2 %v11923_v17  ;;  %v14552_v16 = vld [vmem:[%s16436_s24 + $0x764] sm:$0xf0]  ;;  %v12071_v17 = vor.u32 %v14462_v4, %v12068_v8  ;;  %v12455_v19 = vor.u32 %v14558_v0, %v12452_v9  ;;  %v12259_v4 = vor.u32 %v14516_v54, %v12258_v52  ;;  %v14601_v0 = vld [vmem:[%s16436_s24 + $0x8ec] sm:$0xf0]  ;;  %v14403_v9 = vld [vmem:[%s16436_s24 + $0x2c4] sm:$0xf] }
 0x8c5   : > { %v12403_v29 = vor.u32 %v14552_v16, %v12402_v15  ;;  %v11495_v8 = vor.u32 %v14318_v59, %v11492_v60  ;;  %v12603_v21 = vor.u32 %v14601_v0, %v12602_v58  ;;  %v14565_v54 = vld [vmem:[%s16436_s24 + $0x7cc] sm:$0xf0]  ;;  %v14367_v59 = vld [vmem:[%s16436_s24 + $0x1a4] sm:$0xf]  ;;  %v11692_v60 = vld [vmem:[%s16436_s24 + $0x1d0] sm:$0xf0] }
 0x8c6   : > { %v12410_v58 = vld [vmem:[%s16436_s24 + $0x740] sm:$0xf]  ;;  %v14553_v0 = vld [vmem:[%s16436_s24 + $0x76c] sm:$0xf0] }
 0x8c7   : > { %6092 = vmatpush.bf16.msrb.mxu3 %v11871_v55  ;;  %6105 = vmatpush.bf16.msra.mxu0 %v12255_v31  ;;  %v12354_v55 = vld [vmem:[%s16436_s24 + $0x6d8] sm:$0xf]  ;;  %v14540_v31 = vld [vmem:[%s16436_s24 + $0x704] sm:$0xf0] }
 0x8c8   : > { %6118 = vmatpush.bf16.msra.mxu1 %v11491_v35  ;;  %6131 = vmatpush.bf16.msrb.mxu2 %v11875_v11  ;;  %v11588_v35 = vld [vmem:[%s16436_s24 + $0x108] sm:$0xf0]  ;;  %v14438_v11 = vld [vmem:[%s16436_s24 + $0x3dc] sm:$0xf]  ;;  %v12355_v38 = vor.u32 %v14540_v31, %v12354_v55  ;;  %v11788_v55 = vld [vmem:[%s16436_s24 + $0x290] sm:$0xf0] }
 0x8ca   : > { %6093 = vmatmul.bf16.vlgmr.msrb.gmra.mxu3 %v17431_v57  ;;  %6106 = vmatmul.bf16.vlgmr.msra.gmra.mxu0 %v17433_v13 }
 0x8cb   : > { %6137 = vmatpush.bf16.msra.mxu3 %v12595_v10  ;;  %6150 = vmatpush.bf16.msrb.mxu0 %v11831_v36  ;;  %v11972_v10 = vld [vmem:[%s16436_s24 + $0x408] sm:$0xf0]  ;;  %v14534_v36 = vld [vmem:[%s16436_s24 + $0x6dc] sm:$0xf] }
 0x8cc   : > { %6163 = vmatpush.bf16.msrb.mxu1 %v12215_v39  ;;  %6176 = vmatpush.bf16.msra.mxu2 %v12599_v40  ;;  %v11591_v39 = vor.u32 %v14342_v32, %v11588_v35  ;;  %v12306_v40 = vld [vmem:[%s16436_s24 + $0x678] sm:$0xf]  ;;  %v11975_v6 = vor.u32 %v14438_v11, %v11972_v10  ;;  %v12359_v7 = vor.u32 %v14534_v36, %v12356_v37  ;;  %v14385_v32 = vld [vmem:[%s16436_s24 + $0x22c] sm:$0xf0]  ;;  %v12122_v10 = vld [vmem:[%s16436_s24 + $0x500] sm:$0xf] }
 0x8cd   : > { %6119 = vmatmul.bf16.vlgmr.msra.gmra.mxu1 %v17429_v34  ;;  %6132 = vmatmul.bf16.vlgmr.msrb.gmra.mxu2 %v17431_v57  ;;  %v14481_v36 = vld [vmem:[%s16436_s24 + $0x52c] sm:$0xf0]  ;;  %v12506_v37 = vld [vmem:[%s16436_s24 + $0x800] sm:$0xf] }
 0x8cf   : > { %6138 = vmatpush.bf16.msra.mxu3 %v12547_v49  ;;  %6151 = vmatpush.bf16.msrb.mxu0 %v11783_v50  ;;  %v11924_v49 = vld [vmem:[%s16436_s24 + $0x3a8] sm:$0xf0]  ;;  %v14522_v50 = vld [vmem:[%s16436_s24 + $0x67c] sm:$0xf] }
 0x8d0   : > { %6164 = vmatpush.bf16.msrb.mxu1 %v12167_v45  ;;  %6177 = vmatpush.bf16.msra.mxu2 %v12551_v53  ;;  %v12307_v45 = vor.u32 %v14528_v5, %v12306_v40  ;;  %v11543_v53 = vor.u32 %v14330_v46, %v11540_v47  ;;  %v11927_v61 = vor.u32 %v14426_v48, %v11924_v49  ;;  %v11740_v40 = vld [vmem:[%s16436_s24 + $0x230] sm:$0xf0]  ;;  %v11690_v48 = vld [vmem:[%s16436_s24 + $0x1a0] sm:$0xf]  ;;  %v14373_v49 = vld [vmem:[%s16436_s24 + $0x1cc] sm:$0xf0] }
 0x8d1   : > { %v12311_v62 = vor.u32 %v14522_v50, %v12308_v51  ;;  %v12123_v46 = vor.u32 %v14481_v36, %v12122_v10  ;;  %v12074_v50 = vld [vmem:[%s16436_s24 + $0x4a0] sm:$0xf]  ;;  %v14337_v36 = vld [vmem:[%s16436_s24 + $0xac] sm:$0xf0] }
 0x8d3   : > { %6139 = vmatpush.bf16.msra.mxu3 %v12499_v1  ;;  %6152 = vmatpush.bf16.msrb.mxu0 %v11735_v41  ;;  %v11876_v1 = vld [vmem:[%s16436_s24 + $0x348] sm:$0xf0]  ;;  %v14510_v41 = vld [vmem:[%s16436_s24 + $0x61c] sm:$0xf] }
 0x8d4   : > { %6165 = vmatpush.bf16.msrb.mxu1 %v12119_v43  ;;  %6178 = vmatpush.bf16.msra.mxu2 %v12503_v44  ;;  %v14409_v43 = vld [vmem:[%s16436_s24 + $0x2ec] sm:$0xf0]  ;;  %v12218_v44 = vld [vmem:[%s16436_s24 + $0x5c0] sm:$0xf]  ;;  %v12263_v15 = vor.u32 %v14510_v41, %v12260_v2 }
 0x8d5   : > { %v11835_v16 = vor.u32 %v14409_v43, %v11834_v42  ;;  %v14361_v41 = vld [vmem:[%s16436_s24 + $0x16c] sm:$0xf0]  ;;  %v11695_v42 = vor.u32 %v14367_v59, %v11692_v60 }
 0x8d7   : > { %6140 = vmatpush.bf16.msra.mxu3 %v12451_v12  ;;  %6153 = vmatpush.bf16.msrb.mxu0 %v11687_v14  ;;  %v11836_v12 = vld [vmem:[%s16436_s24 + $0x2f0] sm:$0xf0]  ;;  %v11879_v14 = vor.u32 %v14414_v63, %v11876_v1  ;;  %v11642_v1 = vld [vmem:[%s16436_s24 + $0x140] sm:$0xf] }
 0x8d8   : > { %6166 = vmatpush.bf16.msrb.mxu1 %v12071_v17  ;;  %6179 = vmatpush.bf16.msra.mxu2 %v12455_v19  ;;  %v12219_v17 = vor.u32 %v14505_v3, %v12218_v44  ;;  %v11786_v19 = vld [vmem:[%s16436_s24 + $0x260] sm:$0xf]  ;;  %v11839_v25 = vor.u32 %v14403_v9, %v11836_v12  ;;  %v14457_v3 = vld [vmem:[%s16436_s24 + $0x46c] sm:$0xf0]  ;;  %v14355_v9 = vld [vmem:[%s16436_s24 + $0x144] sm:$0xf] }
 0x8d9   : > { %v11787_v31 = vor.u32 %v14397_v20, %v11786_v19  ;;  %v12026_v44 = vld [vmem:[%s16436_s24 + $0x440] sm:$0xf]  ;;  %v11644_v12 = vld [vmem:[%s16436_s24 + $0x170] sm:$0xf0] }
 0x8da   : > { %v11594_v20 = vld [vmem:[%s16436_s24 + $0xe0] sm:$0xf] }
 0x8db   : > { %6141 = vmatpush.bf16.msra.mxu3 %v12403_v29  ;;  %6154 = vmatpush.bf16.msrb.mxu0 %v11639_v30  ;;  %v14589_v29 = vld [vmem:[%s16436_s24 + $0x88c] sm:$0xf0]  ;;  %v14391_v30 = vld [vmem:[%s16436_s24 + $0x264] sm:$0xf] }
 0x8dc   : > { %6167 = vmatpush.bf16.msrb.mxu1 %v12023_v56  ;;  %6180 = vmatpush.bf16.msra.mxu2 %v12407_v33  ;;  %v12171_v56 = vor.u32 %v14493_v27, %v12170_v26  ;;  %v11738_v33 = vld [vmem:[%s16436_s24 + $0x200] sm:$0xf]  ;;  %v12555_v35 = vor.u32 %v14589_v29, %v12554_v28  ;;  %v11791_v11 = vor.u32 %v14391_v30, %v11788_v55  ;;  %v14445_v28 = vld [vmem:[%s16436_s24 + $0x40c] sm:$0xf0] }
 0x8dd   : > { %v11647_v26 = vor.u32 %v14355_v9, %v11644_v12  ;;  %v11978_v27 = vld [vmem:[%s16436_s24 + $0x3e0] sm:$0xf]  ;;  %v14541_v55 = vld [vmem:[%s16436_s24 + $0x70c] sm:$0xf0]  ;;  %v11842_v9 = vld [vmem:[%s16436_s24 + $0x2c8] sm:$0xf] }
 0x8de   : > { %v12362_v29 = vld [vmem:[%s16436_s24 + $0x6e0] sm:$0xf]  ;;  %v11979_v10 = vor.u32 %v14445_v28, %v11978_v27 }
 0x8df   : > { %6142 = vmatpush.bf16.msra.mxu3 %v12355_v38  ;;  %6155 = vmatpush.bf16.msrb.mxu0 %v11591_v39  ;;  %v14577_v38 = vld [vmem:[%s16436_s24 + $0x82c] sm:$0xf0]  ;;  %v14379_v39 = vld [vmem:[%s16436_s24 + $0x204] sm:$0xf] }
 0x8e0   : > { %6168 = vmatpush.bf16.msrb.mxu1 %v11975_v6  ;;  %6181 = vmatpush.bf16.msra.mxu2 %v12359_v7  ;;  %v17732_v6 = vld [vmem:[%s16443_s13] sm:$0xff]  ;;  %v11739_v7 = vor.u32 %v14385_v32, %v11738_v33  ;;  %v12507_v51 = vor.u32 %v14577_v38, %v12506_v37  ;;  %v11743_v52 = vor.u32 %v14379_v39, %v11740_v40 }
 0x8e1   : > { %v4414_v33 = vperm.slane %v17732_v6, 1  ;;  %v11546_v32 = vld [vmem:[%s16436_s24 + $0x80] sm:$0xf]  ;;  %v12363_v38 = vor.u32 %v14541_v55, %v12362_v29  ;;  %v14487_v29 = vld [vmem:[%s16436_s24 + $0x564] sm:$0xf] }
 0x8e2   : > { %v11930_v37 = vld [vmem:[%s16436_s24 + $0x380] sm:$0xf]  ;;  %v11547_v59 = vor.u32 %v14337_v36, %v11546_v32  ;;  %v12172_v55 = vld [vmem:[%s16436_s24 + $0x590] sm:$0xf0]  ;;  %v14583_v32 = vld [vmem:[%s16436_s24 + $0x864] sm:$0xf] }
 0x8e3   : > { %6143 = vmatpush.bf16.msra.mxu3 %v12307_v45  ;;  %6156 = vmatpush.bf16.msrb.mxu0 %v11543_v53  ;;  %v14469_v45 = vld [vmem:[%s16436_s24 + $0x4cc] sm:$0xf0]  ;;  %v12458_v53 = vld [vmem:[%s16436_s24 + $0x7a0] sm:$0xf] }
 0x8e4   : > { %6169 = vmatpush.bf16.msrb.mxu1 %v11927_v61  ;;  %6182 = vmatpush.bf16.msra.mxu2 %v12311_v62  ;;  %v4413_v61 = vperm.slane %v17732_v6, 0  ;;  %v11691_v62 = vor.u32 %v14373_v49, %v11690_v48  ;;  %v12075_v63 = vor.u32 %v14469_v45, %v12074_v50  ;;  %v12459_v2 = vor.u32 %v14565_v54, %v12458_v53  ;;  %v14331_v49 = vld [vmem:[%s16436_s24 + $0x84] sm:$0xf]  ;;  %v11548_v50 = vld [vmem:[%s16436_s24 + $0xb0] sm:$0xf0] }
 0x8e5   : > { %v14325_v45 = vld [vmem:[%s16436_s24 + $0x4c] sm:$0xf0]  ;;  %v11882_v53 = vld [vmem:[%s16436_s24 + $0x320] sm:$0xf] }
 0x8e6   : > { %v5899_v5 = vpop.f32.mrf.mxu0 }
 0x8e7   : > { %6144 = vmatpush.bf16.msra.mxu3 %v12259_v4  ;;  %6157 = vmatpush.bf16.msrb.mxu0 %v11495_v8  ;;  %v5912_v47 = vpop.f32.mrf.mxu1 }
 0x8e8   : > { %6170 = vmatpush.bf16.msrb.mxu1 %v11879_v14  ;;  %6183 = vmatpush.bf16.msra.mxu2 %v12263_v15 }
 0x8ea   : > { %6145 = vmatmul.bf16.vlgmr.msra.gmra.mxu3 %v17433_v13  ;;  %6158 = vmatmul.bf16.vlgmr.msrb.gmra.mxu0 %v17429_v34 }
 0x8eb   : > { %6189 = vmatpush.bf16.msrb.mxu3 %v11835_v16  ;;  %6202 = vmatpush.bf16.msra.mxu0 %v12219_v17  ;;  %v11643_v16 = vor.u32 %v14361_v41, %v11642_v1  ;;  %v12027_v17 = vor.u32 %v14457_v3, %v12026_v44  ;;  %v11551_v41 = vor.u32 %v14331_v49, %v11548_v50  ;;  %v14499_v3 = vld [vmem:[%s16436_s24 + $0x5c4] sm:$0xf] }
 0x8ec   : > { %6215 = vmatpush.bf16.msra.mxu1 %v12603_v21  ;;  %6228 = vmatpush.bf16.msrb.mxu2 %v11839_v25  ;;  %v5886_v43 = vpop.f32.mrf.mxu3  ;;  %v14349_v21 = vld [vmem:[%s16436_s24 + $0x10c] sm:$0xf0]  ;;  %v12411_v25 = vor.u32 %v14553_v0, %v12410_v58  ;;  %v12220_v58 = vld [vmem:[%s16436_s24 + $0x5f0] sm:$0xf0]  ;;  %v12175_v49 = vor.u32 %v14487_v29, %v12172_v55 }
 0x8ed   : > { %6171 = vmatmul.bf16.vlgmr.msrb.gmra.mxu1 %v17431_v57  ;;  %6184 = vmatmul.bf16.vlgmr.msra.gmra.mxu2 %v17433_v13  ;;  %v5887_v4 = vadd.f32 %v5886_v43, %v4413_v61  ;;  %v17748_v8 = vpop.f32.mrf.mxu2  ;;  %v11500_v43 = vld [vmem:[%s16436_s24 + $0x50] sm:$0xf0] }
 0x8ee   : > { %v5901_v14 = vpop.f32.mrf.mxu0  ;;  %v12604_v0 = vld [vmem:[%s16436_s24 + $0x8f0] sm:$0xf0]  ;;  %v5926_v12 = vadd.f32 %v17748_v8, %v4414_v33 }
 0x8ef   : > { %6190 = vmatpush.bf16.msrb.mxu3 %v11787_v31  ;;  %6203 = vmatpush.bf16.msra.mxu0 %v12171_v56  ;;  %v5900_v15 = vadd.f32 %v5899_v5, %v5887_v4  ;;  %v5914_v19 = vpop.f32.mrf.mxu1  ;;  %v14343_v31 = vld [vmem:[%s16436_s24 + $0xe4] sm:$0xf]  ;;  %v11596_v56 = vld [vmem:[%s16436_s24 + $0x110] sm:$0xf0]  ;;  %v14433_v5 = vld [vmem:[%s16436_s24 + $0x3ac] sm:$0xf0] }
 0x8f0   : > { %6216 = vmatpush.bf16.msra.mxu1 %v12555_v35  ;;  %6229 = vmatpush.bf16.msrb.mxu2 %v11791_v11  ;;  %v11595_v11 = vor.u32 %v14349_v21, %v11594_v20  ;;  %v11599_v39 = vor.u32 %v14343_v31, %v11596_v56  ;;  %v11931_v60 = vor.u32 %v14433_v5, %v11930_v37  ;;  %v14595_v4 = vld [vmem:[%s16436_s24 + $0x8c4] sm:$0xf]  ;;  %v14506_v19 = vld [vmem:[%s16436_s24 + $0x5f4] sm:$0xf0] }
 0x8f1   : > { %v17758_v30 = vadd.f32 %v5912_v47, %v5900_v15  ;;  %v12607_v8 = vor.u32 %v14595_v4, %v12604_v0  ;;  %v14475_v5 = vld [vmem:[%s16436_s24 + $0x504] sm:$0xf] }
 0x8f3   : > { %6191 = vmatpush.bf16.msrb.mxu3 %v11739_v7  ;;  %6204 = vmatpush.bf16.msra.mxu0 %v12123_v46  ;;  %v17766_v35 = vmul.f32 0.70710677, %v17758_v30  ;;  %v12314_v7 = vld [vmem:[%s16436_s24 + $0x680] sm:$0xf]  ;;  %v14529_v46 = vld [vmem:[%s16436_s24 + $0x6ac] sm:$0xf0] }
 0x8f4   : > { %6217 = vmatpush.bf16.msra.mxu1 %v12507_v51  ;;  %6230 = vmatpush.bf16.msrb.mxu2 %v11743_v52  ;;  %v5888_v40 = vpop.f32.mrf.mxu3  ;;  %v11498_v52 = vld [vmem:[%s16436_s24 + $0x20] sm:$0xf]  ;;  %v12315_v1 = vor.u32 %v14529_v46, %v12314_v7  ;;  %v12124_v7 = vld [vmem:[%s16436_s24 + $0x530] sm:$0xf0] }
 0x8f5   : > { %v17774_v47 = vand.u32 2147483647, %v17766_v35  ;;  %v5927_v48 = vpop.f32.mrf.mxu2  ;;  %v11499_v14 = vor.u32 %v14325_v45, %v11498_v52  ;;  %v14494_v40 = vld [vmem:[%s16436_s24 + $0x594] sm:$0xf0]  ;;  %v12508_v52 = vld [vmem:[%s16436_s24 + $0x830] sm:$0xf0]  ;;  %v12127_v4 = vor.u32 %v14475_v5, %v12124_v7 }
 0x8f6   : > { %v5951_v51 = vpop.f32.mrf.mxu0  ;;  %v17873_v5 = vld [vmem:[%s16436_s24 + $0x174] sm:$0xf0]  ;;  %vm6369_vm14 = vcmp.ge.f32.partialorder %v17766_v35, 0.0 }
 0x8f7   : > { %6192 = vmatpush.bf16.msrb.mxu3 %v11691_v62  ;;  %6205 = vmatpush.bf16.msra.mxu0 %v12075_v63  ;;  %v6405_v54 = vmul.f32 0.3275911, %v17774_v47  ;;  %v17782_v61 = vpop.f32.mrf.mxu1  ;;  %v14421_v62 = vld [vmem:[%s16436_s24 + $0x34c] sm:$0xf0]  ;;  %v12266_v63 = vld [vmem:[%s16436_s24 + $0x620] sm:$0xf] }
 0x8f8   : > { %6218 = vmatpush.bf16.msra.mxu1 %v12459_v2  ;;  %6231 = vmatpush.bf16.msrb.mxu2 %v11695_v42  ;;  %v14517_v2 = vld [vmem:[%s16436_s24 + $0x64c] sm:$0xf0]  ;;  %v14319_v42 = vld [vmem:[%s16436_s24 + $0x24] sm:$0xf]  ;;  %v11883_v15 = vor.u32 %v14421_v62, %v11882_v53  ;;  %v12130_v62 = vld [vmem:[%s16436_s24 + $0x508] sm:$0xf] }
 0x8f9   : > { %v17789_v44 = vadd.f32 1.0, %v6405_v54  ;;  %v12267_v20 = vor.u32 %v14517_v2, %v12266_v63  ;;  %v11503_v21 = vor.u32 %v14319_v42, %v11500_v43  ;;  %v12076_v43 = vld [vmem:[%s16436_s24 + $0x4d0] sm:$0xf0] }
 0x8fb   : > { %6193 = vmatpush.bf16.msrb.mxu3 %v11643_v16  ;;  %6206 = vmatpush.bf16.msra.mxu0 %v12027_v17  ;;  %15206 = vrcp.f32 %v17789_v44  ;;  %v14410_v16 = vld [vmem:[%s16436_s24 + $0x2f4] sm:$0xf0]  ;;  %v12226_v17 = vld [vmem:[%s16436_s24 + $0x5c8] sm:$0xf]  ;;  %vm6434_vm12 = vweird.f32 %v17789_v44  ;;  %v6438_v7 = vand.u32 2147483647, %v17789_v44 }
 0x8fc   : > { %6219 = vmatpush.bf16.msra.mxu1 %v12411_v25  ;;  %6232 = vmatpush.bf16.msrb.mxu2 %v11647_v26  ;;  %v5938_v25 = vpop.f32.mrf.mxu3  ;;  %v12223_v26 = vor.u32 %v14499_v3, %v12220_v58  ;;  %v11843_v31 = vor.u32 %v14410_v16, %v11842_v9  ;;  %v12227_v56 = vor.u32 %v14506_v19, %v12226_v17  ;;  %v14559_v3 = vld [vmem:[%s16436_s24 + $0x7a4] sm:$0xf]  ;;  %v4416_v19 = vperm.slane %v17732_v6, 3 }
 0x8fd   : > { %v5939_v27 = vadd.f32 %v5938_v25, %v5926_v12  ;;  %v17801_v28 = vpop.f32.mrf.mxu2  ;;  %v12460_v12 = vld [vmem:[%s16436_s24 + $0x7d0] sm:$0xf0]  ;;  %v4415_v25 = vperm.slane %v17732_v6, 2  ;;  %vm6439_vm15 = vcmp.eq.f32.partialorder %v6438_v7, 8.507059e+37 }
 0x8fe   : > { %v5953_v33 = vpop.f32.mrf.mxu0 }
 0x8ff   : > { %6194 = vmatpush.bf16.msrb.mxu3 %v11595_v11  ;;  %6207 = vmatpush.bf16.msra.mxu0 %v11979_v10  ;;  %v12556_v11 = vld [vmem:[%s16436_s24 + $0x890] sm:$0xf0]  ;;  %v11794_v10 = vld [vmem:[%s16436_s24 + $0x268] sm:$0xf]  ;;  %v17808_v36 = vadd.f32 %v5951_v51, %v5939_v27  ;;  %v5966_v37 = vpop.f32.mrf.mxu1  ;;  %v14571_v51 = vld [vmem:[%s16436_s24 + $0x804] sm:$0xf] }
 0x900   : > { %6220 = vmatpush.bf16.msra.mxu1 %v12363_v38  ;;  %6233 = vmatpush.bf16.msrb.mxu2 %v11599_v39  ;;  %v14398_v38 = vld [vmem:[%s16436_s24 + $0x294] sm:$0xf0]  ;;  %v12178_v39 = vld [vmem:[%s16436_s24 + $0x568] sm:$0xf]  ;;  %v12559_v50 = vor.u32 %v14583_v32, %v12556_v11  ;;  %v12511_v0 = vor.u32 %v14571_v51, %v12508_v52  ;;  %v17852_v27 = vld [vmem:[%s16436_s24 + $0x444] sm:$0xf] }
 0x901   : > { %v17815_v46 = vpop.eup %15206  ;;  %v17818_v48 = vmul.f32 0.70710677, %v17808_v36  ;;  %v11795_v53 = vor.u32 %v14398_v38, %v11794_v10  ;;  %v12179_v54 = vor.u32 %v14494_v40, %v12178_v39  ;;  %v17858_v33 = vld [vmem:[%s16436_s24 + $0x470] sm:$0xf0]  ;;  %v17861_v32 = vld [vmem:[%s16436_s24 + $0x744] sm:$0xf] }
 0x902   : > { %v6430_v45 = vmul.f32 %v17815_v46, %v17789_v44  ;;  %vm6435_vm11 = vweird.f32 %v17815_v46  ;;  %v17864_v11 = vld [vmem:[%s16436_s24 + $0x770] sm:$0xf0]  ;;  %v6440_v10 = vand.u32 2147483648, %v17789_v44  ;;  %v6717_v37 = vsub.f32 0.0, %v17774_v47  ;;  %v17870_v40 = vld [vmem:[%s16436_s24 + $0x148] sm:$0xf] }
 0x903   : > { %6195 = vmatpush.bf16.msrb.mxu3 %v11547_v59  ;;  %6208 = vmatpush.bf16.msra.mxu0 %v11931_v60  ;;  %v11746_v59 = vld [vmem:[%s16436_s24 + $0x208] sm:$0xf]  ;;  %v14386_v60 = vld [vmem:[%s16436_s24 + $0x234] sm:$0xf0]  ;;  %v17828_v63 = vand.u32 2147483647, %v17818_v48  ;;  %vm17881_vm13 = vmor %vm6434_vm12, %vm6435_vm11 }
 0x904   : > { %6221 = vmatpush.bf16.msra.mxu1 %v12315_v1  ;;  %6234 = vmatpush.bf16.msrb.mxu2 %v11551_v41  ;;  %v14482_v1 = vld [vmem:[%s16436_s24 + $0x534] sm:$0xf0]  ;;  %v17834_v41 = vld [vmem:[%s16436_s24 + $0x4a4] sm:$0xf]  ;;  %v6431_v2 = vsub.f32 1.0, %v6430_v45  ;;  %v5940_v42 = vpop.f32.mrf.mxu3  ;;  %v11747_v16 = vor.u32 %v14386_v60, %v11746_v59  ;;  %v12031_v60 = vor.u32 %v17852_v27, %v17858_v33  ;;  %vm6370_vm2 = vcmp.ge.f32.partialorder %v17818_v48, 0.0 }
 0x905   : > { %v6406_v58 = vmul.f32 0.3275911, %v17828_v63  ;;  %v5979_v9 = vpop.f32.mrf.mxu2  ;;  %v12131_v17 = vor.u32 %v14482_v1, %v12130_v62  ;;  %v12034_v51 = vld [vmem:[%s16436_s24 + $0x448] sm:$0xf]  ;;  %v14458_v52 = vld [vmem:[%s16436_s24 + $0x474] sm:$0xf0]  ;;  %v12415_v62 = vor.u32 %v17861_v32, %v17864_v11  ;;  %v11651_v1 = vor.u32 %v17873_v5, %v17870_v40 }
 0x906   : > { %v17890_v44 = vld [vmem:[%s16436_s24 + $0x410] sm:$0xf0]  ;;  %v17911_v42 = vmul.f32 0.5, %v17758_v30  ;;  %v17924_v9 = vld [vmem:[%s16436_s24 + $0x384] sm:$0xf] }
 0x907   : > { %6196 = vmatpush.bf16.msrb.mxu3 %v11499_v14  ;;  %6209 = vmatpush.bf16.msra.mxu0 %v11883_v15  ;;  %v11698_v14 = vld [vmem:[%s16436_s24 + $0x1a8] sm:$0xf]  ;;  %v6432_v15 = vmul.f32 %v17815_v46, %v6431_v2  ;;  %v6003_v55 = vpop.f32.mrf.mxu0  ;;  %v11796_v48 = vld [vmem:[%s16436_s24 + $0x298] sm:$0xf0] }
 0x908   : > { %6222 = vmatpush.bf16.msra.mxu1 %v12267_v20  ;;  %6235 = vmatpush.bf16.msrb.mxu2 %v11503_v21  ;;  %v14374_v20 = vld [vmem:[%s16436_s24 + $0x1d4] sm:$0xf0]  ;;  %v12082_v21 = vld [vmem:[%s16436_s24 + $0x4a8] sm:$0xf] }
 0x909   : > { %v6433_v29 = vadd.f32 %v17815_v46, %v6432_v15  ;;  %v11699_v39 = vor.u32 %v14374_v20, %v11698_v14  ;;  %v17908_v2 = vld [vmem:[%s16436_s24 + $0xe8] sm:$0xf]  ;;  %v17939_v20 = vld [vmem:[%s16436_s24 + $0x6b0] sm:$0xf0] }
 0x90a   : > { %6197 = vmatmul.bf16.vlgmr.msrb.gmra.mxu3 %v17429_v34  ;;  %6210 = vmatmul.bf16.vlgmr.msra.gmra.mxu0 %v17431_v57  ;;  %v6016_v38 = vpop.f32.mrf.mxu1 }
 0x90b   : > { %6241 = vmatpush.bf16.msra.mxu3 %v12223_v26  ;;  %6254 = vmatpush.bf16.msrb.mxu0 %v12607_v8  ;;  %v17848_v26 = vadd.f32 1.0, %v6406_v58  ;;  %v14470_v8 = vld [vmem:[%s16436_s24 + $0x4d4] sm:$0xf0]  ;;  %v6437_v59 = vsel %vm17881_vm13, %v17815_v46, %v6433_v29  ;;  %v6441_v46 = vor.u32 1.1754944e-38, %v6440_v10  ;;  %v17948_v29 = vld [vmem:[%s16436_s24 + $0x88] sm:$0xf] }
 0x90c   : > { %6267 = vmatpush.bf16.msrb.mxu1 %v11843_v31  ;;  %6280 = vmatpush.bf16.msra.mxu2 %v12227_v56  ;;  %v12079_v31 = vor.u32 %v17834_v41, %v12076_v43  ;;  %v12463_v56 = vor.u32 %v14559_v3, %v12460_v12  ;;  %v17905_v41 = vld [vmem:[%s16436_s24 + $0x710] sm:$0xf0]  ;;  %v6729_v43 = vmul.f32 %v6717_v37, %v17774_v47  ;;  %v17916_v58 = vld [vmem:[%s16436_s24 + $0x114] sm:$0xf0] }
 0x90d   : > { %6223 = vmatmul.bf16.vlgmr.msra.gmra.mxu1 %v17433_v13  ;;  %6236 = vmatmul.bf16.vlgmr.msrb.gmra.mxu2 %v17429_v34  ;;  %15208 = vrcp.f32 %v17848_v26  ;;  %v5990_v47 = vpop.f32.mrf.mxu3  ;;  %v17928_v14 = vsel %vm6439_vm15, %v6441_v46, %v6437_v59  ;;  %v11603_v37 = vor.u32 %v17916_v58, %v17908_v2  ;;  %v6453_v35 = vand.u32 2147483647, %v17848_v26 }
 0x90e   : > { %v17959_v33 = vmul.f32 1.442695, %v6729_v43  ;;  %v6609_v40 = vmul.f32 1.0614054, %v17928_v14  ;;  %v18016_v43 = vld [vmem:[%s16436_s24 + $0x328] sm:$0xf]  ;;  %vm6449_vm1 = vweird.f32 %v17848_v26 }
 0x90f   : > { %6242 = vmatpush.bf16.msra.mxu3 %v12175_v49  ;;  %6255 = vmatpush.bf16.msrb.mxu0 %v12559_v50  ;;  %v6004_v49 = vadd.f32 %v6003_v55, %v4416_v19  ;;  %v12083_v50 = vor.u32 %v14470_v8, %v12082_v21  ;;  %v17936_v19 = vld [vmem:[%s16436_s24 + $0x684] sm:$0xf]  ;;  %v6005_v8 = vpop.f32.mrf.mxu0  ;;  %v17951_v55 = vld [vmem:[%s16436_s24 + $0xb4] sm:$0xf0]  ;;  %vm6454_vm4 = vcmp.eq.f32.partialorder %v6453_v35, 8.507059e+37 }
 0x910   : > { %6268 = vmatpush.bf16.msrb.mxu1 %v11795_v53  ;;  %6281 = vmatpush.bf16.msra.mxu2 %v12179_v54  ;;  %v5965_v53 = vadd.f32 %v17782_v61, %v4415_v25  ;;  %v17887_v54 = vld [vmem:[%s16436_s24 + $0x3e4] sm:$0xf]  ;;  %v11555_v2 = vor.u32 %v17951_v55, %v17948_v29  ;;  %v6621_v58 = vadd.f32 -1.4531521, %v6609_v40  ;;  %v14500_v29 = vld [vmem:[%s16436_s24 + $0x5cc] sm:$0xf] }
 0x911   : > { %v17902_v61 = vld [vmem:[%s16436_s24 + $0x6e4] sm:$0xf]  ;;  %v6017_v30 = vadd.f32 %v6016_v38, %v6004_v49  ;;  %v11983_v27 = vor.u32 %v17887_v54, %v17890_v44  ;;  %v17994_v44 = vld [vmem:[%s16436_s24 + $0x650] sm:$0xf0]  ;;  %v12228_v55 = vld [vmem:[%s16436_s24 + $0x5f8] sm:$0xf0] }
 0x912   : > { %v5978_v3 = vadd.f32 %v17801_v28, %v5965_v53  ;;  %v14446_v28 = vld [vmem:[%s16436_s24 + $0x414] sm:$0xf0]  ;;  %v6018_v11 = vpop.f32.mrf.mxu1  ;;  %v12367_v10 = vor.u32 %v17902_v61, %v17905_v41  ;;  %v17969_v38 = vld [vmem:[%s16436_s24 + $0x324] sm:$0xf]  ;;  %v18062_v40 = vld [vmem:[%s16436_s24 + $0x868] sm:$0xf] }
 0x913   : > { %6243 = vmatpush.bf16.msra.mxu3 %v12127_v4  ;;  %6256 = vmatpush.bf16.msrb.mxu0 %v12511_v0  ;;  %v17919_v4 = vld [vmem:[%s16436_s24 + $0x3e8] sm:$0xf]  ;;  %v12035_v0 = vor.u32 %v14458_v52, %v12034_v51  ;;  %v17926_v12 = vpop.eup %15208  ;;  %v6455_v52 = vand.u32 2147483648, %v17848_v26  ;;  %v17991_v54 = vld [vmem:[%s16436_s24 + $0x624] sm:$0xf] }
 0x914   : > { %6269 = vmatpush.bf16.msrb.mxu1 %v11747_v16  ;;  %6282 = vmatpush.bf16.msra.mxu2 %v12131_v17  ;;  %v17930_v15 = vadd.f32 %v5990_v47, %v5978_v3  ;;  %v6029_v16 = vpop.f32.mrf.mxu2  ;;  %v17933_v17 = vld [vmem:[%s16436_s24 + $0x3b0] sm:$0xf0]  ;;  %v6445_v21 = vmul.f32 %v17926_v12, %v17848_v26  ;;  %v11987_v49 = vor.u32 %v14446_v28, %v17919_v4  ;;  %vm6450_vm0 = vweird.f32 %v17926_v12  ;;  %v18019_v3 = vld [vmem:[%s16436_s24 + $0x354] sm:$0xf0]  ;;  %v12610_v47 = vld [vmem:[%s16436_s24 + $0x8c8] sm:$0xf] }
 0x915   : > { %v17943_v25 = vadd.f32 %v6029_v16, %v6017_v30  ;;  %v11935_v53 = vor.u32 %v17924_v9, %v17933_v17  ;;  %v5992_v30 = vpop.f32.mrf.mxu3  ;;  %v14602_v28 = vld [vmem:[%s16436_s24 + $0x8f4] sm:$0xf0]  ;;  %v14404_v9 = vld [vmem:[%s16436_s24 + $0x2cc] sm:$0xf]  ;;  %v11844_v16 = vld [vmem:[%s16436_s24 + $0x2f8] sm:$0xf0]  ;;  %v12271_v8 = vor.u32 %v17991_v54, %v17994_v44 }
 0x916   : > { %v17962_v32 = vmul.f32 0.70710677, %v17930_v15  ;;  %v6446_v5 = vsub.f32 1.0, %v6445_v21  ;;  %vm6451_vm3 = vmor %vm6449_vm1, %vm6450_vm0  ;;  %v6456_v17 = vor.u32 1.1754944e-38, %v6455_v52  ;;  %v14596_v11 = vld [vmem:[%s16436_s24 + $0x8cc] sm:$0xf]  ;;  %v12611_v52 = vor.u32 %v14602_v28, %v12610_v47 }
 0x917   : > { %6244 = vmatpush.bf16.msra.mxu3 %v12079_v31  ;;  %6257 = vmatpush.bf16.msrb.mxu0 %v12463_v56  ;;  %v17954_v31 = vld [vmem:[%s16436_s24 + $0x388] sm:$0xf]  ;;  %v17957_v56 = vld [vmem:[%s16436_s24 + $0x3b4] sm:$0xf0]  ;;  %v17976_v7 = vmul.f32 0.70710677, %v17943_v25 }
 0x918   : > { %6270 = vmatpush.bf16.msrb.mxu1 %v11699_v39  ;;  %6283 = vmatpush.bf16.msra.mxu2 %v12083_v50  ;;  %v17972_v39 = vld [vmem:[%s16436_s24 + $0x350] sm:$0xf0]  ;;  %v15982_v50 = vmov -1.0   ;;  %v17986_v45 = vand.u32 2147483647, %v17962_v32  ;;  %v6447_v59 = vmul.f32 %v17926_v12, %v6446_v5  ;;  %v11939_v46 = vor.u32 %v17957_v56, %v17954_v31 }
 0x919   : > { %v17982_v51 = vsel %vm6369_vm14, 1.0, %v15982_v50  ;;  %v18009_v41 = vand.u32 2147483647, %v17976_v7  ;;  %v18043_v31 = vmul.f32 0.5, %v17808_v36  ;;  %v18055_v36 = vsel %vm6370_vm2, 1.0, %v15982_v50 }
 0x91a   : > { %v6407_v61 = vmul.f32 0.3275911, %v17986_v45  ;;  %v6448_v4 = vadd.f32 %v17926_v12, %v6447_v59  ;;  %v18065_v5 = vld [vmem:[%s16436_s24 + $0x894] sm:$0xf0]  ;;  %v18072_v54 = vld [vmem:[%s16436_s24 + $0x56c] sm:$0xf] }
 0x91b   : > { %6245 = vmatpush.bf16.msra.mxu3 %v12031_v60  ;;  %6258 = vmatpush.bf16.msrb.mxu0 %v12415_v62  ;;  %v12319_v60 = vor.u32 %v17936_v19, %v17939_v20  ;;  %v18002_v62 = vld [vmem:[%s16436_s24 + $0x28] sm:$0xf]  ;;  %v6408_v19 = vmul.f32 0.3275911, %v18009_v41  ;;  %v18075_v44 = vld [vmem:[%s16436_s24 + $0x598] sm:$0xf0] }
 0x91c   : > { %6271 = vmatpush.bf16.msrb.mxu1 %v11651_v1  ;;  %6284 = vmatpush.bf16.msra.mxu2 %v12035_v0  ;;  %v18005_v1 = vld [vmem:[%s16436_s24 + $0x54] sm:$0xf0]  ;;  %v11887_v0 = vor.u32 %v17969_v38, %v17972_v39  ;;  %v18032_v26 = vadd.f32 1.0, %v6407_v61  ;;  %v6031_v20 = vpop.f32.mrf.mxu2  ;;  %v6452_v21 = vsel %vm6451_vm3, %v17926_v12, %v6448_v4  ;;  %v6718_v12 = vsub.f32 0.0, %v17828_v63  ;;  %v18078_v59 = vld [vmem:[%s16436_s24 + $0x86c] sm:$0xf] }
 0x91d   : > { %v18045_v56 = vsel %vm6454_vm4, %v6456_v17, %v6452_v21  ;;  %v18057_v38 = vadd.f32 1.0, %v6408_v19  ;;  %v11891_v39 = vor.u32 %v18019_v3, %v18016_v43  ;;  %v18081_v35 = vld [vmem:[%s16436_s24 + $0x898] sm:$0xf0]  ;;  %v18086_v61 = vld [vmem:[%s16436_s24 + $0x808] sm:$0xf]  ;;  %vm6371_vm13 = vcmp.ge.f32.partialorder %v17962_v32, 0.0 }
 0x91e   : > { %15210 = vrcp.f32 %v18032_v26  ;;  %v18095_v43 = vld [vmem:[%s16436_s24 + $0x238] sm:$0xf0]  ;;  %v6730_v3 = vmul.f32 %v6718_v12, %v17828_v63  ;;  %v18105_v30 = vld [vmem:[%s16436_s24 + $0x80c] sm:$0xf]  ;;  %v18119_v17 = vld [vmem:[%s16436_s24 + $0x7d4] sm:$0xf0]  ;;  %vm6464_vm6 = vweird.f32 %v18032_v26 }
 0x91f   : > { %6246 = vmatpush.bf16.msra.mxu3 %v11983_v27  ;;  %6259 = vmatpush.bf16.msrb.mxu0 %v12367_v10  ;;  %v11507_v27 = vor.u32 %v18005_v1, %v18002_v62  ;;  %v12612_v10 = vld [vmem:[%s16436_s24 + $0x8f8] sm:$0xf0]  ;;  %15212 = vrcp.f32 %v18057_v38  ;;  %v12231_v62 = vor.u32 %v14500_v29, %v12228_v55  ;;  %v18122_v19 = vld [vmem:[%s16436_s24 + $0x1ac] sm:$0xf]  ;;  %v12567_v29 = vor.u32 %v18078_v59, %v18081_v35  ;;  %v18168_v59 = vld [vmem:[%s16436_s24 + $0x774] sm:$0xf0] }
 0x920   : > { %6272 = vmatpush.bf16.msrb.mxu1 %v11603_v37  ;;  %6285 = vmatpush.bf16.msra.mxu2 %v11987_v49  ;;  %v6633_v37 = vmul.f32 %v6621_v58, %v17928_v14  ;;  %v18068_v49 = vld [vmem:[%s16436_s24 + $0x26c] sm:$0xf]  ;;  %v12615_v1 = vor.u32 %v14596_v11, %v12612_v10  ;;  %v18102_v4 = vld [vmem:[%s16436_s24 + $0x538] sm:$0xf0]  ;;  %v18139_v11 = vmul.f32 1.442695, %v6730_v3  ;;  %vm6479_vm10 = vweird.f32 %v18057_v38 }
 0x921   : > { %v18099_v58 = vld [vmem:[%s16436_s24 + $0x50c] sm:$0xf]  ;;  %v18108_v28 = vld [vmem:[%s16436_s24 + $0x838] sm:$0xf0]  ;;  %v6470_v35 = vand.u32 2147483648, %v18032_v26  ;;  %v6719_v3 = vsub.f32 0.0, %v17986_v45  ;;  %15214 = vpow2.f32 %v17959_v33 }
 0x922   : > { %v6645_v47 = vadd.f32 1.4214138, %v6633_v37  ;;  %v18125_v20 = vld [vmem:[%s16436_s24 + $0x1d8] sm:$0xf0]  ;;  %v18134_v55 = vld [vmem:[%s16436_s24 + $0x4ac] sm:$0xf]  ;;  %15216 = vpow2.f32 %v18139_v11 }
 0x923   : > { %6247 = vmatpush.bf16.msra.mxu3 %v11935_v53  ;;  %6260 = vmatpush.bf16.msrb.mxu0 %v12319_v60  ;;  %v11847_v53 = vor.u32 %v14404_v9, %v11844_v16  ;;  %v6610_v60 = vmul.f32 1.0614054, %v18045_v56  ;;  %v18111_v9 = vld [vmem:[%s16436_s24 + $0x7a8] sm:$0xf]  ;;  %v11799_v16 = vor.u32 %v18068_v49, %v11796_v48  ;;  %v18137_v12 = vld [vmem:[%s16436_s24 + $0x4d8] sm:$0xf0] }
 0x924   : > { %6273 = vmatpush.bf16.msrb.mxu1 %v11555_v2  ;;  %6286 = vmatpush.bf16.msra.mxu2 %v11939_v46  ;;  %v18089_v2 = vld [vmem:[%s16436_s24 + $0x834] sm:$0xf0]  ;;  %v18092_v46 = vld [vmem:[%s16436_s24 + $0x20c] sm:$0xf]  ;;  %v18113_v63 = vpop.eup %15210  ;;  %v6657_v48 = vmul.f32 %v6645_v47, %v17928_v14  ;;  %v18190_v47 = vld [vmem:[%s16436_s24 + $0x178] sm:$0xf0] }
 0x925   : > { %v6622_v21 = vadd.f32 -1.4531521, %v6610_v60  ;;  %v12515_v10 = vor.u32 %v18089_v2, %v18086_v61  ;;  %v11751_v37 = vor.u32 %v18092_v46, %v18095_v43  ;;  %v18155_v49 = vpop.eup %15212  ;;  %vm6465_vm5 = vweird.f32 %v18113_v63  ;;  %v18182_v43 = vld [vmem:[%s16436_s24 + $0x14c] sm:$0xf] }
 0x926   : > { %v6475_v60 = vmul.f32 %v18155_v49, %v18057_v38  ;;  %v6468_v46 = vand.u32 2147483647, %v18032_v26  ;;  %vm18203_vm7 = vmor %vm6464_vm6, %vm6465_vm5  ;;  %vm6480_vm8 = vweird.f32 %v18155_v49  ;;  %vm6372_vm14 = vcmp.ge.f32.partialorder %v17976_v7, 0.0 }
 0x927   : > { %6248 = vmatpush.bf16.msra.mxu3 %v11887_v0  ;;  %6261 = vmatpush.bf16.msrb.mxu0 %v12271_v8  ;;  %v12563_v0 = vor.u32 %v18065_v5, %v18062_v40  ;;  %v6460_v8 = vmul.f32 %v18113_v63, %v18032_v26  ;;  %v18150_v40 = vld [vmem:[%s16436_s24 + $0x7ac] sm:$0xf]  ;;  %v18153_v5 = vld [vmem:[%s16436_s24 + $0x7d8] sm:$0xf0]  ;;  %v6634_v61 = vmul.f32 %v6622_v21, %v18045_v56  ;;  %v6471_v21 = vor.u32 1.1754944e-38, %v6470_v35  ;;  %vm6481_vm11 = vmor %vm6479_vm10, %vm6480_vm8 }
 0x928   : > { %6274 = vmatpush.bf16.msrb.mxu1 %v11507_v27  ;;  %6287 = vmatpush.bf16.msra.mxu2 %v11891_v39  ;;  %v12183_v27 = vor.u32 %v18072_v54, %v18075_v44  ;;  %v12135_v39 = vor.u32 %v18099_v58, %v18102_v4  ;;  %v12467_v54 = vor.u32 %v18119_v17, %v18111_v9  ;;  %v18165_v44 = vld [vmem:[%s16436_s24 + $0x748] sm:$0xf]  ;;  %v6476_v58 = vsub.f32 1.0, %v6475_v60  ;;  %v6055_v17 = vpop.f32.mrf.mxu0 }
 0x929   : > { %v12471_v4 = vor.u32 %v18150_v40, %v18153_v5  ;;  %v6669_v9 = vadd.f32 -0.28449672, %v6657_v48  ;;  %vm6469_vm9 = vcmp.eq.f32.partialorder %v6468_v46, 8.507059e+37  ;;  %v11655_v40 = vor.u32 %v18182_v43, %v18190_v47  ;;  %v12420_v5 = vld [vmem:[%s16436_s24 + $0x778] sm:$0xf0] }
 0x92a   : > { %6249 = vmatmul.bf16.vlgmr.msra.gmra.mxu3 %v17431_v57  ;;  %6262 = vmatmul.bf16.vlgmr.msrb.gmra.mxu0 %v17433_v13  ;;  %v18210_v26 = vpop.f32.mrf.mxu1  ;;  %v11604_v46 = vld [vmem:[%s16436_s24 + $0x118] sm:$0xf0]  ;;  %v14440_v43 = vld [vmem:[%s16436_s24 + $0x3ec] sm:$0xf] }
 0x92b   : > { %6293 = vmatpush.bf16.msrb.mxu3 %v12611_v52  ;;  %6306 = vmatpush.bf16.msra.mxu0 %v11847_v53  ;;  %v6461_v52 = vsub.f32 1.0, %v6460_v8  ;;  %v12519_v53 = vor.u32 %v18105_v30, %v18108_v28  ;;  %v12419_v30 = vor.u32 %v18168_v59, %v18165_v44  ;;  %v18193_v28 = vld [vmem:[%s16436_s24 + $0x44c] sm:$0xf]  ;;  %v6477_v8 = vmul.f32 %v18155_v49, %v6476_v58 }
 0x92c   : > { %6319 = vmatpush.bf16.msra.mxu1 %v12231_v62  ;;  %6332 = vmatpush.bf16.msrb.mxu2 %v12615_v1  ;;  %v11703_v62 = vor.u32 %v18122_v19, %v18125_v20  ;;  %v12087_v1 = vor.u32 %v18134_v55, %v18137_v12  ;;  %v18199_v19 = vld [vmem:[%s16436_s24 + $0x478] sm:$0xf0]  ;;  %v6646_v55 = vadd.f32 1.4214138, %v6634_v61  ;;  %v14344_v61 = vld [vmem:[%s16436_s24 + $0xec] sm:$0xf] }
 0x92d   : > { %6275 = vmatmul.bf16.vlgmr.msrb.gmra.mxu1 %v17429_v34  ;;  %6288 = vmatmul.bf16.vlgmr.msra.gmra.mxu2 %v17431_v57  ;;  %v6462_v2 = vmul.f32 %v18113_v63, %v6461_v52  ;;  %v18225_v52 = vld [vmem:[%s16436_s24 + $0x6e8] sm:$0xf]  ;;  %v12039_v60 = vor.u32 %v18193_v28, %v18199_v19  ;;  %v6720_v28 = vsub.f32 0.0, %v18009_v41  ;;  %v14428_v44 = vld [vmem:[%s16436_s24 + $0x38c] sm:$0xf] }
 0x92e   : > { %v6658_v58 = vmul.f32 %v6646_v55, %v18045_v56 }
 0x92f   : > { %6294 = vmatpush.bf16.msrb.mxu3 %v12563_v0  ;;  %6307 = vmatpush.bf16.msra.mxu0 %v11799_v16  ;;  %v6463_v0 = vadd.f32 %v18113_v63, %v6462_v2  ;;  %v6485_v16 = vand.u32 2147483648, %v18057_v38  ;;  %v6732_v11 = vmul.f32 %v6720_v28, %v18009_v41  ;;  %v12882_v41 = vld [vmem:[%s16446_s16 + $0x210] sm:$0xf]  ;;  %v15215_v28 = vpop.eup %15214 }
 0x930   : > { %6320 = vmatpush.bf16.msra.mxu1 %v12183_v27  ;;  %6333 = vmatpush.bf16.msrb.mxu2 %v12567_v29  ;;  %v6483_v27 = vand.u32 2147483647, %v18057_v38  ;;  %v14548_v29 = vld [vmem:[%s16436_s24 + $0x74c] sm:$0xf]  ;;  %v6731_v38 = vmul.f32 %v6719_v3, %v17986_v45  ;;  %v6042_v45 = vpop.f32.mrf.mxu3  ;;  %v18245_v3 = vpop.f32.mrf.mxu2 }
 0x931   : > { %v6467_v12 = vsel %vm18203_vm7, %v18113_v63, %v6463_v0  ;;  %v14542_v63 = vld [vmem:[%s16436_s24 + $0x714] sm:$0xf0]  ;;  %v6486_v35 = vor.u32 1.1754944e-38, %v6485_v16  ;;  %v12423_v2 = vor.u32 %v14548_v29, %v12420_v5  ;;  %v14536_v0 = vld [vmem:[%s16436_s24 + $0x6ec] sm:$0xf] }
 0x932   : > { %v18219_v48 = vsel %vm6469_vm9, %v6471_v21, %v6467_v12  ;;  %vm6484_vm12 = vcmp.eq.f32.partialorder %v6483_v27, 8.507059e+37  ;;  %v12372_v16 = vld [vmem:[%s16436_s24 + $0x718] sm:$0xf0]  ;;  %v6057_v21 = vpop.f32.mrf.mxu0  ;;  %v12322_v27 = vld [vmem:[%s16436_s24 + $0x688] sm:$0xf]  ;;  %v6070_v5 = vpop.f32.mrf.mxu1 }
 0x933   : > { %6295 = vmatpush.bf16.msrb.mxu3 %v12515_v10  ;;  %6308 = vmatpush.bf16.msra.mxu0 %v11751_v37  ;;  %v6478_v10 = vadd.f32 %v18155_v49, %v6477_v8  ;;  %v4417_v37 = vperm.slane %v17732_v6, 4  ;;  %v12371_v8 = vor.u32 %v14542_v63, %v18225_v52  ;;  %v18256_v29 = vmul.f32 1.442695, %v6731_v38  ;;  %v12274_v38 = vld [vmem:[%s16436_s24 + $0x628] sm:$0xf] }
 0x934   : > { %6321 = vmatpush.bf16.msra.mxu1 %v12135_v39  ;;  %6334 = vmatpush.bf16.msrb.mxu2 %v12519_v53  ;;  %v6681_v39 = vmul.f32 %v6669_v9, %v17928_v14  ;;  %v6611_v53 = vmul.f32 1.0614054, %v18219_v48  ;;  %v6670_v52 = vadd.f32 -0.28449672, %v6658_v58  ;;  %v12702_v21 = vld [vmem:[%s16446_s16 + $0xa8] sm:$0xf] }
 0x935   : > { %v6482_v6 = vsel %vm6481_vm11, %v18155_v49, %v6478_v10  ;;  %v11988_v49 = vld [vmem:[%s16436_s24 + $0x418] sm:$0xf0]  ;;  %v11607_v10 = vor.u32 %v14344_v61, %v11604_v46  ;;  %v14649_v5 = vld [vmem:[%s16446_s16 + $0x170] sm:$0xf0] }
 0x936   : > { %v6623_v47 = vadd.f32 -1.4531521, %v6611_v53  ;;  %v18240_v9 = vsel %vm6484_vm12, %v6486_v35, %v6482_v6  ;;  %v18249_v19 = vadd.f32 0.2548296, %v6681_v39  ;;  %v11991_v39 = vor.u32 %v14440_v43, %v11988_v49  ;;  %v12324_v35 = vld [vmem:[%s16436_s24 + $0x6b8] sm:$0xf0] }
 0x937   : > { %6296 = vmatpush.bf16.msrb.mxu3 %v12467_v54  ;;  %6309 = vmatpush.bf16.msra.mxu0 %v11703_v62  ;;  %v6612_v54 = vmul.f32 1.0614054, %v18240_v9  ;;  %v6043_v62 = vadd.f32 %v6042_v45, %v4417_v37  ;;  %v11556_v37 = vld [vmem:[%s16436_s24 + $0xb8] sm:$0xf0]  ;;  %v12375_v53 = vor.u32 %v14536_v0, %v12372_v16  ;;  %v14320_v6 = vld [vmem:[%s16436_s24 + $0x2c] sm:$0xf] }
 0x938   : > { %6322 = vmatpush.bf16.msra.mxu1 %v12087_v1  ;;  %6335 = vmatpush.bf16.msrb.mxu2 %v12471_v4  ;;  %v6635_v20 = vmul.f32 %v6623_v47, %v18219_v48  ;;  %v14530_v1 = vld [vmem:[%s16436_s24 + $0x6b4] sm:$0xf0]  ;;  %v14332_v4 = vld [vmem:[%s16436_s24 + $0x8c] sm:$0xf]  ;;  %v11892_v45 = vld [vmem:[%s16436_s24 + $0x358] sm:$0xf0] }
 0x939   : > { %v6624_v55 = vadd.f32 -1.4531521, %v6612_v54  ;;  %v6056_v12 = vadd.f32 %v6055_v17, %v6043_v62  ;;  %v11940_v17 = vld [vmem:[%s16436_s24 + $0x3b8] sm:$0xf0]  ;;  %v11559_v58 = vor.u32 %v14332_v4, %v11556_v37  ;;  %v14416_v47 = vld [vmem:[%s16436_s24 + $0x32c] sm:$0xf]  ;;  %v6682_v62 = vmul.f32 %v6670_v52, %v18045_v56 }
 0x93a   : > { %v6647_v63 = vadd.f32 1.4214138, %v6635_v20  ;;  %v14512_v49 = vld [vmem:[%s16436_s24 + $0x62c] sm:$0xf]  ;;  %v12276_v54 = vld [vmem:[%s16436_s24 + $0x658] sm:$0xf0]  ;;  %v11943_v0 = vor.u32 %v14428_v44, %v11940_v17  ;;  %v6044_v20 = vpop.f32.mrf.mxu3  ;;  %v11895_v17 = vor.u32 %v14416_v47, %v11892_v45  ;;  %v6705_v47 = vmul.f32 %v18249_v19, %v17928_v14 }
 0x93b   : > { %6297 = vmatpush.bf16.msrb.mxu3 %v12419_v30  ;;  %6310 = vmatpush.bf16.msra.mxu0 %v11655_v40  ;;  %v6636_v59 = vmul.f32 %v6624_v55, %v18240_v9  ;;  %v18265_v30 = vadd.f32 %v18210_v26, %v6056_v12  ;;  %v14524_v40 = vld [vmem:[%s16436_s24 + $0x68c] sm:$0xf]  ;;  %v12323_v26 = vor.u32 %v14530_v1, %v12322_v27  ;;  %v12798_v55 = vld [vmem:[%s16446_s16 + $0x168] sm:$0xf]  ;;  %v6083_v12 = vpop.f32.mrf.mxu2  ;;  %v6747_v14 = vmul.f32 1.442695, %v6732_v11 }
 0x93c   : > { %6323 = vmatpush.bf16.msra.mxu1 %v12039_v60  ;;  %6336 = vmatpush.bf16.msrb.mxu2 %v12423_v2  ;;  %v6659_v61 = vmul.f32 %v6647_v63, %v18219_v48  ;;  %v14518_v60 = vld [vmem:[%s16436_s24 + $0x654] sm:$0xf0]  ;;  %v11508_v2 = vld [vmem:[%s16436_s24 + $0x58] sm:$0xf0]  ;;  %v12327_v16 = vor.u32 %v14524_v40, %v12324_v35  ;;  %v14673_v37 = vld [vmem:[%s16446_s16 + $0x230] sm:$0xf0]  ;;  %v12279_v40 = vor.u32 %v14512_v49, %v12276_v54 }
 0x93d   : > { %v6648_v46 = vadd.f32 1.4214138, %v6636_v59  ;;  %v18276_v43 = vmul.f32 0.70710677, %v18265_v30  ;;  %v12990_v52 = vld [vmem:[%s16446_s16 + $0x2e8] sm:$0xf]  ;;  %v12275_v33 = vor.u32 %v14518_v60, %v12274_v38  ;;  %v12799_v60 = vor.u32 %v14649_v5, %v12798_v55 }
 0x93e   : > { %v6671_v27 = vadd.f32 -0.28449672, %v6659_v61  ;;  %v14697_v44 = vld [vmem:[%s16446_s16 + $0x2f0] sm:$0xf0]  ;;  %v6694_v59 = vadd.f32 0.2548296, %v6682_v62 }
 0x93f   : > { %6298 = vmatpush.bf16.msrb.mxu3 %v12371_v8  ;;  %6311 = vmatpush.bf16.msra.mxu0 %v11607_v10  ;;  %v14625_v8 = vld [vmem:[%s16446_s16 + $0xb0] sm:$0xf0]  ;;  %v6660_v1 = vmul.f32 %v6648_v46, %v18240_v9  ;;  %v18289_v4 = vand.u32 2147483647, %v18276_v43  ;;  %v12894_v10 = vld [vmem:[%s16446_s16 + $0x228] sm:$0xf] }
 0x940   : > { %6324 = vmatpush.bf16.msra.mxu1 %v11991_v39  ;;  %6337 = vmatpush.bf16.msrb.mxu2 %v12375_v53  ;;  %v11511_v53 = vor.u32 %v14320_v6, %v11508_v2  ;;  %v6683_v35 = vmul.f32 %v6671_v27, %v18219_v48  ;;  %v12703_v38 = vor.u32 %v14625_v8, %v12702_v21  ;;  %v12690_v6 = vld [vmem:[%s16446_s16 + $0x90] sm:$0xf]  ;;  %v14622_v2 = vld [vmem:[%s16446_s16 + $0x98] sm:$0xf0]  ;;  %v18318_v21 = vmul.f32 0.5, %v17930_v15 }
 0x941   : > { %v6672_v63 = vadd.f32 -0.28449672, %v6660_v1  ;;  %v6409_v39 = vmul.f32 0.3275911, %v18289_v4  ;;  %v12895_v46 = vor.u32 %v14673_v37, %v12894_v10  ;;  %v14646_v62 = vld [vmem:[%s16446_s16 + $0x158] sm:$0xf0]  ;;  %v6706_v20 = vmul.f32 %v6694_v59, %v18045_v56 }
 0x942   : > { %v14670_v49 = vld [vmem:[%s16446_s16 + $0x218] sm:$0xf0]  ;;  %v12978_v54 = vld [vmem:[%s16446_s16 + $0x2d0] sm:$0xf]  ;;  %v12678_v19 = vld [vmem:[%s16446_s16 + $0x78] sm:$0xf]  ;;  %v12691_v55 = vor.u32 %v14622_v2, %v12690_v6 }
 0x943   : > { %6299 = vmatpush.bf16.msrb.mxu3 %v12323_v26  ;;  %6312 = vmatpush.bf16.msra.mxu0 %v11559_v58  ;;  %v18302_v61 = vadd.f32 1.0, %v6409_v39  ;;  %v12991_v26 = vor.u32 %v14697_v44, %v12990_v52  ;;  %v12786_v58 = vld [vmem:[%s16446_s16 + $0x150] sm:$0xf]  ;;  %v6684_v45 = vmul.f32 %v6672_v63, %v18240_v9  ;;  %v6695_v8 = vadd.f32 0.2548296, %v6683_v35 }
 0x944   : > { %6325 = vmatpush.bf16.msra.mxu1 %v11943_v0  ;;  %6338 = vmatpush.bf16.msrb.mxu2 %v12327_v16  ;;  %v14694_v0 = vld [vmem:[%s16446_s16 + $0x2d8] sm:$0xf0]  ;;  %v15217_v16 = vpop.eup %15216  ;;  %v12787_v27 = vor.u32 %v14646_v62, %v12786_v58  ;;  %v14619_v56 = vld [vmem:[%s16446_s16 + $0x80] sm:$0xf0]  ;;  %v12774_v1 = vld [vmem:[%s16446_s16 + $0x138] sm:$0xf]  ;;  %v12883_v15 = vor.u32 %v14670_v49, %v12882_v41  ;;  %v6765_v52 = vmul.f32 %v15215_v28, %v6705_v47 }
 0x945   : > { %15218 = vrcp.f32 %v18302_v61  ;;  %v12979_v12 = vor.u32 %v14694_v0, %v12978_v54  ;;  %v14643_v5 = vld [vmem:[%s16446_s16 + $0x140] sm:$0xf0]  ;;  %v12870_v10 = vld [vmem:[%s16446_s16 + $0x1f8] sm:$0xf]  ;;  %v6696_v63 = vadd.f32 0.2548296, %v6684_v45  ;;  %v6707_v44 = vmul.f32 %v6695_v8, %v18219_v48 }
 0x946   : > { %15220 = vpow2.f32 %v18256_v29  ;;  %v14667_v37 = vld [vmem:[%s16446_s16 + $0x200] sm:$0xf0]  ;;  %v12966_v39 = vld [vmem:[%s16446_s16 + $0x2b8] sm:$0xf]  ;;  %v18335_v29 = vsel %vm6371_vm13, 1.0, %v15982_v50  ;;  %v12679_v59 = vor.u32 %v14619_v56, %v12678_v19  ;;  %v12775_v32 = vor.u32 %v14643_v5, %v12774_v1 }
 0x947   : > { %6300 = vmatpush.bf16.msrb.mxu3 %v12275_v33  ;;  %6313 = vmatpush.bf16.msra.mxu0 %v11511_v53  ;;  %v14691_v33 = vld [vmem:[%s16446_s16 + $0x2c0] sm:$0xf0]  ;;  %v6766_v53 = vmul.f32 %v15217_v16, %v6706_v20  ;;  %15222 = vpow2.f32 %v6747_v14  ;;  %v12666_v11 = vld [vmem:[%s16446_s16 + $0x60] sm:$0xf]  ;;  %v6777_v6 = vsub.f32 1.0, %v6765_v52  ;;  %v18354_v2 = vsel %vm6372_vm14, 1.0, %v15982_v50  ;;  %v18363_v49 = vpop.f32.mrf.mxu0 }
 0x948   : > { %6326 = vmatpush.bf16.msra.mxu1 %v11895_v17  ;;  %6339 = vmatpush.bf16.msrb.mxu2 %v12279_v40  ;;  %v14616_v17 = vld [vmem:[%s16446_s16 + $0x68] sm:$0xf0]  ;;  %v12762_v40 = vld [vmem:[%s16446_s16 + $0x120] sm:$0xf]  ;;  %v12967_v35 = vor.u32 %v14691_v33, %v12966_v39  ;;  %v12654_v0 = vld [vmem:[%s16446_s16 + $0x48] sm:$0xf]  ;;  %vm6494_vm0 = vweird.f32 %v18302_v61 }
 0x949   : > { %v12858_v48 = vld [vmem:[%s16446_s16 + $0x1e0] sm:$0xf]  ;;  %v14688_v58 = vld [vmem:[%s16446_s16 + $0x2a8] sm:$0xf0]  ;;  %v6778_v41 = vsub.f32 1.0, %v6766_v53  ;;  %v12667_v54 = vor.u32 %v14616_v17, %v12666_v11  ;;  %v6500_v16 = vand.u32 2147483648, %v18302_v61  ;;  %v6789_v5 = vmul.f32 %v6777_v6, %v17982_v51 }
 0x94a   : > { %6301 = vmatmul.bf16.vlgmr.msrb.gmra.mxu3 %v17433_v13  ;;  %6314 = vmatmul.bf16.vlgmr.msra.gmra.mxu0 %v17429_v34  ;;  %v18360_v47 = vld [vmem:[%s16443_s13] sm:$0xff]  ;;  %v6498_v56 = vand.u32 2147483647, %v18302_v61  ;;  %vm6373_vm3 = vcmp.ge.f32.partialorder %v18276_v43, 0.0 }
 0x94b   : > { %8765 = vmatpush.bf16.msra.mxu3 %v12703_v38  ;;  %8778 = vmatpush.bf16.msrb.mxu0 %v12799_v60  ;;  %v18340_v34 = vpop.eup %15218  ;;  %v14640_v38 = vld [vmem:[%s16446_s16 + $0x128] sm:$0xf0]  ;;  %v4418_v45 = vperm.slane %v18360_v47, 5  ;;  %v14613_v19 = vld [vmem:[%s16446_s16 + $0x50] sm:$0xf0]  ;;  %v6790_v39 = vmul.f32 %v6778_v41, %v18055_v36  ;;  %v6501_v11 = vor.u32 1.1754944e-38, %v6500_v16 }
 0x94c   : > { %8791 = vmatpush.bf16.msrb.mxu1 %v12895_v46  ;;  %8804 = vmatpush.bf16.msra.mxu2 %v12991_v26  ;;  %v14664_v60 = vld [vmem:[%s16446_s16 + $0x1e8] sm:$0xf0]  ;;  %v6708_v46 = vmul.f32 %v6696_v63, %v18240_v9  ;;  %v12954_v26 = vld [vmem:[%s16446_s16 + $0x2a0] sm:$0xf]  ;;  %v15221_v62 = vpop.eup %15220  ;;  %v18367_v9 = vpop.f32.mrf.mxu1  ;;  %v12763_v20 = vor.u32 %v14640_v38, %v12762_v40  ;;  %v12750_v8 = vld [vmem:[%s16446_s16 + $0x108] sm:$0xf]  ;;  %vm6495_vm15 = vweird.f32 %v18340_v34  ;;  %v12655_v36 = vor.u32 %v14613_v19, %v12654_v0 }
 0x94d   : > { %6327 = vmatmul.bf16.vlgmr.msra.gmra.mxu1 %v17431_v57  ;;  %6340 = vmatmul.bf16.vlgmr.msrb.gmra.mxu2 %v17433_v13  ;;  %v6490_v57 = vmul.f32 %v18340_v34, %v18302_v61  ;;  %v12871_v13 = vor.u32 %v14667_v37, %v12870_v10  ;;  %v6767_v7 = vmul.f32 %v15221_v62, %v6707_v44  ;;  %v14661_v37 = vld [vmem:[%s16446_s16 + $0x1d0] sm:$0xf0]  ;;  %v12942_v52 = vld [vmem:[%s16446_s16 + $0x288] sm:$0xf]  ;;  %v12642_v44 = vld [vmem:[%s16446_s16 + $0x30] sm:$0xf] }
 0x94e   : > { %v12859_v14 = vor.u32 %v14664_v60, %v12858_v48  ;;  %v12955_v1 = vor.u32 %v14688_v58, %v12954_v26  ;;  %v14685_v63 = vld [vmem:[%s16446_s16 + $0x290] sm:$0xf0]  ;;  %v6082_v53 = vadd.f32 %v18245_v3, %v4418_v45  ;;  %vm18388_vm1 = vmor %vm6494_vm0, %vm6495_vm15  ;;  %v12738_v40 = vld [vmem:[%s16446_s16 + $0xf0] sm:$0xf]  ;;  %vm6499_vm2 = vcmp.eq.f32.partialorder %v6498_v56, 8.507059e+37 }
 0x94f   : > { %8766 = vmatpush.bf16.msra.mxu3 %v12691_v55  ;;  %8779 = vmatpush.bf16.msrb.mxu0 %v12787_v27  ;;  %v6491_v28 = vsub.f32 1.0, %v6490_v57  ;;  %v15223_v55 = vpop.eup %15222  ;;  %v14634_v61 = vld [vmem:[%s16446_s16 + $0xf8] sm:$0xf0]  ;;  %v12834_v38 = vld [vmem:[%s16446_s16 + $0x1b0] sm:$0xf]  ;;  %v6801_v60 = vadd.f32 1.0, %v6789_v5 }
 0x950   : > { %8792 = vmatpush.bf16.msrb.mxu1 %v12883_v15  ;;  %8805 = vmatpush.bf16.msra.mxu2 %v12979_v12  ;;  %v14637_v15 = vld [vmem:[%s16446_s16 + $0x110] sm:$0xf0]  ;;  %v12846_v12 = vld [vmem:[%s16446_s16 + $0x1c8] sm:$0xf]  ;;  %v6768_v10 = vmul.f32 %v15223_v55, %v6708_v46  ;;  %v14658_v48 = vld [vmem:[%s16446_s16 + $0x1b8] sm:$0xf0]  ;;  %v18401_v58 = vpop.f32.mrf.mxu2  ;;  %v12739_v19 = vor.u32 %v14634_v61, %v12738_v40 }
 0x951   : > { %v6492_v27 = vmul.f32 %v18340_v34, %v6491_v28  ;;  %v12751_v17 = vor.u32 %v14637_v15, %v12750_v8  ;;  %v12847_v57 = vor.u32 %v14661_v37, %v12846_v12  ;;  %v12930_v62 = vld [vmem:[%s16446_s16 + $0x270] sm:$0xf]  ;;  %v6802_v41 = vadd.f32 1.0, %v6790_v39  ;;  %v14607_v8 = vld [vmem:[%s16446_s16 + $0x20] sm:$0xf0] }
 0x952   : > { %v6780_v6 = vsub.f32 1.0, %v6768_v10  ;;  %v6721_v45 = vsub.f32 0.0, %v18289_v4  ;;  %v12726_v55 = vld [vmem:[%s16446_s16 + $0xd8] sm:$0xf]  ;;  %v14655_v12 = vld [vmem:[%s16446_s16 + $0x1a0] sm:$0xf0] }
 0x953   : > { %8767 = vmatpush.bf16.msra.mxu3 %v12679_v59  ;;  %8780 = vmatpush.bf16.msrb.mxu0 %v12775_v32  ;;  %v6493_v33 = vadd.f32 %v18340_v34, %v6492_v27  ;;  %v14610_v59 = vld [vmem:[%s16446_s16 + $0x38] sm:$0xf0]  ;;  %v6779_v32 = vsub.f32 1.0, %v6767_v7  ;;  %v12630_v7 = vld [vmem:[%s16446_s16 + $0x18] sm:$0xf] }
 0x954   : > { %8793 = vmatpush.bf16.msrb.mxu1 %v12871_v13  ;;  %8806 = vmatpush.bf16.msra.mxu2 %v12967_v35  ;;  %v12943_v13 = vor.u32 %v14685_v63, %v12942_v52  ;;  %v6094_v35 = vpop.f32.mrf.mxu3  ;;  %v12643_v0 = vor.u32 %v14610_v59, %v12642_v44  ;;  %v14631_v27 = vld [vmem:[%s16446_s16 + $0xe0] sm:$0xf0]  ;;  %v12822_v15 = vld [vmem:[%s16446_s16 + $0x198] sm:$0xf]  ;;  %v6733_v63 = vmul.f32 %v6721_v45, %v18289_v4  ;;  %v12618_v39 = vld [vmem:[%s16446_s16] sm:$0xf] }
 0x955   : > { %v6497_v3 = vsel %vm18388_vm1, %v18340_v34, %v6493_v33  ;;  %v6095_v26 = vadd.f32 %v6094_v35, %v6082_v53  ;;  %v14682_v34 = vld [vmem:[%s16446_s16 + $0x278] sm:$0xf0]  ;;  %v6791_v16 = vmul.f32 %v6779_v32, %v18335_v29  ;;  %v12835_v29 = vor.u32 %v14658_v48, %v12834_v38  ;;  %v12918_v10 = vld [vmem:[%s16446_s16 + $0x258] sm:$0xf]  ;;  %v14679_v37 = vld [vmem:[%s16446_s16 + $0x260] sm:$0xf0] }
 0x956   : > { %v18399_v46 = vsel %vm6499_vm2, %v6501_v11, %v6497_v3  ;;  %v14604_v33 = vld [vmem:[%s16446_s16 + $0x8] sm:$0xf0]  ;;  %v12714_v53 = vld [vmem:[%s16446_s16 + $0xc0] sm:$0xf]  ;;  %v12631_v32 = vor.u32 %v14607_v8, %v12630_v7  ;;  %v12727_v51 = vor.u32 %v14631_v27, %v12726_v55  ;;  %v12823_v4 = vor.u32 %v14655_v12, %v12822_v15  ;;  %v13182_v45 = vld [vmem:[%s16446_s16 + $0x468] sm:$0xf] }
 0x957   : > { %8768 = vmatpush.bf16.msra.mxu3 %v12667_v54  ;;  %8781 = vmatpush.bf16.msrb.mxu0 %v12763_v20  ;;  %v6613_v28 = vmul.f32 1.0614054, %v18399_v46  ;;  %v6109_v54 = vpop.f32.mrf.mxu0  ;;  %v18410_v20 = vadd.f32 %v18363_v49, %v6095_v26  ;;  %v6792_v49 = vmul.f32 %v6780_v6, %v18354_v2  ;;  %v14628_v44 = vld [vmem:[%s16446_s16 + $0xc8] sm:$0xf0]  ;;  %v6803_v59 = vadd.f32 1.0, %v6791_v16 }
 0x958   : > { %8794 = vmatpush.bf16.msrb.mxu1 %v12859_v14  ;;  %8807 = vmatpush.bf16.msra.mxu2 %v12955_v1  ;;  %v6122_v14 = vpop.f32.mrf.mxu1  ;;  %v12931_v1 = vor.u32 %v14682_v34, %v12930_v62  ;;  %v12810_v11 = vld [vmem:[%s16446_s16 + $0x180] sm:$0xf]  ;;  %v12919_v40 = vor.u32 %v14679_v37, %v12918_v10  ;;  %v6135_v48 = vpop.f32.mrf.mxu2  ;;  %v13086_v6 = vld [vmem:[%s16446_s16 + $0x3a8] sm:$0xf]  ;;  %v6813_v26 = vmul.f32 %v6801_v60, %v17911_v42  ;;  %v14745_v54 = vld [vmem:[%s16446_s16 + $0x470] sm:$0xf0] }
 0x959   : > { %v6625_v56 = vadd.f32 -1.4531521, %v6613_v28  ;;  %v18419_v5 = vmul.f32 0.70710677, %v18410_v20  ;;  %v12906_v3 = vld [vmem:[%s16446_s16 + $0x240] sm:$0xf]  ;;  %v6814_v62 = vmul.f32 %v6802_v41, %v18043_v31  ;;  %v12715_v16 = vor.u32 %v14628_v44, %v12714_v53 }
 0x95a   : > { %v6804_v35 = vadd.f32 1.0, %v6792_v49  ;;  %v14721_v28 = vld [vmem:[%s16446_s16 + $0x3b0] sm:$0xf0]  ;;  %v6815_v42 = vmul.f32 %v6803_v59, %v18318_v21  ;;  %v13074_v8 = vld [vmem:[%s16446_s16 + $0x390] sm:$0xf]  ;;  %v13183_v55 = vor.u32 %v14745_v54, %v13182_v45  ;;  %v18454_v15 = vpack.c.bf16 %v6813_v26, %v6813_v26 }
 0x95b   : > { %8769 = vmatpush.bf16.msra.mxu3 %v12655_v36  ;;  %8782 = vmatpush.bf16.msrb.mxu0 %v12751_v17  ;;  %v6637_v52 = vmul.f32 %v6625_v56, %v18399_v46  ;;  %v18430_v2 = vand.u32 2147483647, %v18419_v5  ;;  %v14652_v36 = vld [vmem:[%s16446_s16 + $0x188] sm:$0xf0]  ;;  %v14718_v56 = vld [vmem:[%s16446_s16 + $0x398] sm:$0xf0]  ;;  %v18456_v21 = vpack.c.bf16 %v6814_v62, %v6814_v62 }
 0x95c   : > { %8795 = vmatpush.bf16.msrb.mxu1 %v12847_v57  ;;  %8808 = vmatpush.bf16.msra.mxu2 %v12943_v13  ;;  %v6096_v61 = vpop.f32.mrf.mxu3  ;;  %v14676_v57 = vld [vmem:[%s16446_s16 + $0x248] sm:$0xf0]  ;;  %v6348_v13 = vmul.f32 0.5, %v17943_v25  ;;  %v12619_v25 = vor.u32 %v14604_v33, %v12618_v39  ;;  %v12811_v31 = vor.u32 %v14652_v36, %v12810_v11  ;;  %v18458_v12 = vpack.c.bf16 %v6815_v42, %v6815_v42  ;;  %v14715_v39 = vld [vmem:[%s16446_s16 + $0x380] sm:$0xf0] }
 0x95d   : > { %v6649_v17 = vadd.f32 1.4214138, %v6637_v52  ;;  %v6410_v38 = vmul.f32 0.3275911, %v18430_v2  ;;  %v12907_v41 = vor.u32 %v14676_v57, %v12906_v3  ;;  %v13075_v37 = vor.u32 %v14718_v56, %v13074_v8  ;;  %v13062_v52 = vld [vmem:[%s16446_s16 + $0x378] sm:$0xf] }
 0x95e   : > { %v6816_v14 = vmul.f32 %v6804_v35, %v6348_v13  ;;  %v13158_v33 = vld [vmem:[%s16446_s16 + $0x438] sm:$0xf]  ;;  %v14739_v53 = vld [vmem:[%s16446_s16 + $0x440] sm:$0xf0]  ;;  %v13050_v11 = vld [vmem:[%s16446_s16 + $0x360] sm:$0xf] }
 0x95f   : > { %8770 = vmatpush.bf16.msra.mxu3 %v12643_v0  ;;  %8783 = vmatpush.bf16.msrb.mxu0 %v12739_v19  ;;  %v6661_v34 = vmul.f32 %v6649_v17, %v18399_v46  ;;  %v6749_v0 = vmul.f32 1.442695, %v6733_v63  ;;  %v18445_v7 = vadd.f32 1.0, %v6410_v38  ;;  %v13087_v19 = vor.u32 %v14721_v28, %v13086_v6  ;;  %v14712_v36 = vld [vmem:[%s16446_s16 + $0x368] sm:$0xf0] }
 0x960   : > { %8796 = vmatpush.bf16.msrb.mxu1 %v12835_v29  ;;  %8809 = vmatpush.bf16.msra.mxu2 %v12931_v1  ;;  %v13170_v29 = vld [vmem:[%s16446_s16 + $0x450] sm:$0xf]  ;;  %v14742_v1 = vld [vmem:[%s16446_s16 + $0x458] sm:$0xf0]  ;;  %v18460_v10 = vpack.c.bf16 %v6816_v14, %v6816_v14  ;;  %v13159_v17 = vor.u32 %v14739_v53, %v13158_v33  ;;  %v4420_v61 = vperm.slane %v18360_v47, 7  ;;  %v4419_v13 = vperm.slane %v18360_v47, 6 }
 0x961   : > { %v6673_v60 = vadd.f32 -0.28449672, %v6661_v34  ;;  %15224 = vrcp.f32 %v18445_v7  ;;  %v13171_v63 = vor.u32 %v14742_v1, %v13170_v29  ;;  %v14736_v3 = vld [vmem:[%s16446_s16 + $0x428] sm:$0xf0]  ;;  %v6515_v35 = vand.u32 2147483648, %v18445_v7 }
 0x962   : > { %15226 = vpow2.f32 %v6749_v0  ;;  %v6513_v48 = vand.u32 2147483647, %v18445_v7  ;;  %v13038_v26 = vld [vmem:[%s16446_s16 + $0x348] sm:$0xf]  ;;  %v6385_v62 = vsel %vm6373_vm3, 1.0, %v15982_v50  ;;  %v6722_v34 = vsub.f32 0.0, %v18430_v2 }
 0x963   : > { %8771 = vmatpush.bf16.msra.mxu3 %v12631_v32  ;;  %8784 = vmatpush.bf16.msrb.mxu0 %v12727_v51  ;;  %v6685_v27 = vmul.f32 %v6673_v60, %v18399_v46  ;;  %v13063_v51 = vor.u32 %v14715_v39, %v13062_v52  ;;  %v13051_v47 = vor.u32 %v14712_v36, %v13050_v11  ;;  %v14709_v45 = vld [vmem:[%s16446_s16 + $0x350] sm:$0xf0]  ;;  %v13134_v0 = vld [vmem:[%s16446_s16 + $0x408] sm:$0xf]  ;;  %vm6509_vm5 = vweird.f32 %v18445_v7  ;;  %v13122_v52 = vld [vmem:[%s16446_s16 + $0x3f0] sm:$0xf] }
 0x964   : > { %8797 = vmatpush.bf16.msrb.mxu1 %v12823_v4  ;;  %8810 = vmatpush.bf16.msra.mxu2 %v12919_v40  ;;  %v14733_v42 = vld [vmem:[%s16446_s16 + $0x410] sm:$0xf0]  ;;  %v13278_v60 = vld [vmem:[%s16446_s16 + $0x528] sm:$0xf]  ;;  %v6516_v14 = vor.u32 1.1754944e-38, %v6515_v35  ;;  %vm6514_vm7 = vcmp.eq.f32.partialorder %v6513_v48, 8.507059e+37 }
 0x965   : > { %v6697_v49 = vadd.f32 0.2548296, %v6685_v27  ;;  %v14769_v43 = vld [vmem:[%s16446_s16 + $0x530] sm:$0xf0]  ;;  %v13374_v8 = vld [vmem:[%s16446_s16 + $0x5e8] sm:$0xf] }
 0x966   : > { %v14730_v53 = vld [vmem:[%s16446_s16 + $0x3f8] sm:$0xf0]  ;;  %v13362_v36 = vld [vmem:[%s16446_s16 + $0x5d0] sm:$0xf]  ;;  %vm6374_vm8 = vcmp.ge.f32.partialorder %v18419_v5, 0.0 }
 0x967   : > { %8772 = vmatpush.bf16.msra.mxu3 %v12619_v25  ;;  %8785 = vmatpush.bf16.msrb.mxu0 %v12715_v16  ;;  %v15225_v44 = vpop.eup %15224  ;;  %v6709_v59 = vmul.f32 %v6697_v49, %v18399_v46  ;;  %v13146_v46 = vld [vmem:[%s16446_s16 + $0x420] sm:$0xf]  ;;  %v6159_v6 = vpop.f32.mrf.mxu0  ;;  %v13026_v49 = vld [vmem:[%s16446_s16 + $0x330] sm:$0xf]  ;;  %v14766_v11 = vld [vmem:[%s16446_s16 + $0x518] sm:$0xf0]  ;;  %v13123_v48 = vor.u32 %v14730_v53, %v13122_v52 }
 0x968   : > { %8798 = vmatpush.bf16.msrb.mxu1 %v12811_v31  ;;  %8811 = vmatpush.bf16.msra.mxu2 %v12907_v41  ;;  %v6505_v32 = vmul.f32 %v15225_v44, %v18445_v7  ;;  %v15227_v4 = vpop.eup %15226  ;;  %vm6510_vm4 = vweird.f32 %v15225_v44  ;;  %v13147_v54 = vor.u32 %v14736_v3, %v13146_v46  ;;  %v6160_v16 = vadd.f32 %v6159_v6, %v4420_v61  ;;  %v13014_v46 = vld [vmem:[%s16446_s16 + $0x318] sm:$0xf]  ;;  %v14817_v52 = vld [vmem:[%s16446_s16 + $0x6b0] sm:$0xf0] }
 0x969   : > { %v6769_v57 = vmul.f32 %v15227_v4, %v6709_v59  ;;  %v6121_v41 = vadd.f32 %v18367_v9, %v4419_v13  ;;  %vm6511_vm6 = vmor %vm6509_vm5, %vm6510_vm4  ;;  %v13039_v7 = vor.u32 %v14709_v45, %v13038_v26  ;;  %v14706_v9 = vld [vmem:[%s16446_s16 + $0x338] sm:$0xf0]  ;;  %v13110_v6 = vld [vmem:[%s16446_s16 + $0x3d8] sm:$0xf] }
 0x96a   : > { %8773 = vmatmul.bf16.vlgmr.msra.gmra.mxu3 %v18454_v15  ;;  %8786 = vmatmul.bf16.vlgmr.msrb.gmra.mxu0 %v18456_v21  ;;  %v6506_v40 = vsub.f32 1.0, %v6505_v32  ;;  %v6172_v28 = vpop.f32.mrf.mxu1  ;;  %v13027_v35 = vor.u32 %v14706_v9, %v13026_v49  ;;  %v14757_v5 = vld [vmem:[%s16446_s16 + $0x4d0] sm:$0xf0] }
 0x96b   : > { %8817 = vmatpush.bf16.msrb.mxu3 %v13087_v19  ;;  %8830 = vmatpush.bf16.msra.mxu0 %v13183_v55  ;;  %v6781_v31 = vsub.f32 1.0, %v6769_v57  ;;  %v13279_v19 = vor.u32 %v14769_v43, %v13278_v60  ;;  %v14793_v55 = vld [vmem:[%s16446_s16 + $0x5f0] sm:$0xf0]  ;;  %v6134_v1 = vadd.f32 %v18401_v58, %v6121_v41  ;;  %v6173_v39 = vadd.f32 %v6172_v28, %v6160_v16  ;;  %v13254_v28 = vld [vmem:[%s16446_s16 + $0x4f8] sm:$0xf] }
 0x96c   : > { %8799 = vmatmul.bf16.vlgmr.msrb.gmra.mxu1 %v18458_v12  ;;  %8812 = vmatmul.bf16.vlgmr.msra.gmra.mxu2 %v18460_v10  ;;  %v6507_v38 = vmul.f32 %v15225_v44, %v6506_v40  ;;  %v13375_v56 = vor.u32 %v14793_v55, %v13374_v8  ;;  %v6734_v58 = vmul.f32 %v6722_v34, %v18430_v2  ;;  %v14727_v34 = vld [vmem:[%s16446_s16 + $0x3e0] sm:$0xf0]  ;;  %v14700_v60 = vld [vmem:[%s16446_s16 + $0x308] sm:$0xf0]  ;;  %v13350_v8 = vld [vmem:[%s16446_s16 + $0x5b8] sm:$0xf] }
 0x96d   : > { %v6146_v33 = vpop.f32.mrf.mxu3  ;;  %8843 = vmatpush.bf16.msra.mxu1 %v13279_v19  ;;  %v6793_v59 = vmul.f32 %v6781_v31, %v6385_v62  ;;  %v13111_v41 = vor.u32 %v14727_v34, %v13110_v6 }
 0x96e   : > { %v6508_v25 = vadd.f32 %v15225_v44, %v6507_v38  ;;  %8856 = vmatpush.bf16.msrb.mxu2 %v13375_v56  ;;  %v18506_v32 = vadd.f32 %v6146_v33, %v6134_v1  ;;  %v14703_v38 = vld [vmem:[%s16446_s16 + $0x320] sm:$0xf0]  ;;  %v14724_v56 = vld [vmem:[%s16446_s16 + $0x3c8] sm:$0xf0] }
 0x96f   : > { %8818 = vmatpush.bf16.msrb.mxu3 %v13075_v37  ;;  %8831 = vmatpush.bf16.msra.mxu0 %v13171_v63  ;;  %v13135_v37 = vor.u32 %v14733_v42, %v13134_v0  ;;  %v6161_v61 = vpop.f32.mrf.mxu0  ;;  %v6805_v0 = vadd.f32 1.0, %v6793_v59  ;;  %v13002_v42 = vld [vmem:[%s16446_s16 + $0x300] sm:$0xf]  ;;  %v13015_v31 = vor.u32 %v14703_v38, %v13014_v46  ;;  %v14787_v1 = vld [vmem:[%s16446_s16 + $0x5c0] sm:$0xf0]  ;;  %v6386_v38 = vsel %vm6374_vm8, 1.0, %v15982_v50 }
 0x970   : > { %v6512_v27 = vsel %vm6511_vm6, %v15225_v44, %v6508_v25  ;;  %v13266_v44 = vld [vmem:[%s16446_s16 + $0x510] sm:$0xf]  ;;  %v18515_v2 = vmul.f32 0.70710677, %v18506_v32  ;;  %v14784_v61 = vld [vmem:[%s16446_s16 + $0x5a8] sm:$0xf0] }
 0x971   : > { %v18496_v29 = vsel %vm6514_vm7, %v6516_v14, %v6512_v27  ;;  %v13267_v3 = vor.u32 %v14766_v11, %v13266_v44  ;;  %v13098_v14 = vld [vmem:[%s16446_s16 + $0x3c0] sm:$0xf]  ;;  %v13003_v44 = vor.u32 %v14700_v60, %v13002_v42  ;;  %v13458_v46 = vld [vmem:[%s16446_s16 + $0x690] sm:$0xf]  ;;  %v13446_v42 = vld [vmem:[%s16446_s16 + $0x678] sm:$0xf] }
 0x972   : > { %v6614_v63 = vmul.f32 1.0614054, %v18496_v29  ;;  %v6174_v13 = vpop.f32.mrf.mxu1  ;;  %v18526_v45 = vand.u32 2147483647, %v18515_v2  ;;  %v13099_v59 = vor.u32 %v14724_v56, %v13098_v14  ;;  %v14811_v60 = vld [vmem:[%s16446_s16 + $0x680] sm:$0xf0] }
 0x973   : > { %8819 = vmatpush.bf16.msrb.mxu3 %v13063_v51  ;;  %8832 = vmatpush.bf16.msra.mxu0 %v13159_v17  ;;  %v6185_v51 = vpop.f32.mrf.mxu2  ;;  %v14790_v17 = vld [vmem:[%s16446_s16 + $0x5d8] sm:$0xf0]  ;;  %vm6375_vm1 = vcmp.ge.f32.partialorder %v18515_v2, 0.0 }
 0x974   : > { %v6626_v4 = vadd.f32 -1.4531521, %v6614_v63  ;;  %v18511_v40 = vadd.f32 %v6185_v51, %v6173_v39  ;;  %v13363_v57 = vor.u32 %v14790_v17, %v13362_v36  ;;  %8844 = vmatpush.bf16.msra.mxu1 %v13267_v3  ;;  %v6411_v43 = vmul.f32 0.3275911, %v18526_v45  ;;  %v14760_v51 = vld [vmem:[%s16446_s16 + $0x4e8] sm:$0xf0] }
 0x975   : > { %v13351_v63 = vor.u32 %v14787_v1, %v13350_v8  ;;  %v6349_v39 = vmul.f32 0.5, %v18265_v30  ;;  %v18555_v36 = vld [vmem:[%s16443_s13 + $0x8] sm:$0xf]  ;;  %v6723_v56 = vsub.f32 0.0, %v18526_v45 }
 0x976   : > { %v6638_v26 = vmul.f32 %v6626_v4, %v18496_v29  ;;  %v18521_v62 = vmul.f32 0.70710677, %v18511_v40  ;;  %8857 = vmatpush.bf16.msrb.mxu2 %v13363_v57  ;;  %v18541_v49 = vadd.f32 1.0, %v6411_v43  ;;  %v13338_v4 = vld [vmem:[%s16446_s16 + $0x5a0] sm:$0xf] }
 0x977   : > { %8820 = vmatpush.bf16.msrb.mxu3 %v13051_v47  ;;  %8833 = vmatpush.bf16.msra.mxu0 %v13147_v54  ;;  %v6751_v47 = vmul.f32 1.442695, %v6734_v58  ;;  %v14763_v54 = vld [vmem:[%s16446_s16 + $0x500] sm:$0xf0]  ;;  %v13242_v58 = vld [vmem:[%s16446_s16 + $0x4e0] sm:$0xf]  ;;  %v6817_v11 = vmul.f32 %v6805_v0, %v6349_v39  ;;  %v13339_v6 = vor.u32 %v14784_v61, %v13338_v4 }
 0x978   : > { %v6650_v25 = vadd.f32 1.4214138, %v6638_v26  ;;  %v18530_v16 = vand.u32 2147483647, %v18521_v62  ;;  %v13255_v19 = vor.u32 %v14763_v54, %v13254_v28  ;;  %v14814_v3 = vld [vmem:[%s16446_s16 + $0x698] sm:$0xf0]  ;;  %v13243_v13 = vor.u32 %v14760_v51, %v13242_v58 }
 0x979   : > { %15228 = vpow2.f32 %v6751_v47  ;;  %v13230_v26 = vld [vmem:[%s16446_s16 + $0x4c8] sm:$0xf]  ;;  %v18569_v28 = vpack.c.bf16 %v6817_v11, %v6817_v11  ;;  %v14781_v0 = vld [vmem:[%s16446_s16 + $0x590] sm:$0xf0]  ;;  %v14754_v8 = vld [vmem:[%s16446_s16 + $0x4b8] sm:$0xf0]  ;;  %vm6524_vm10 = vweird.f32 %v18541_v49 }
 0x97a   : > { %v6662_v55 = vmul.f32 %v6650_v25, %v18496_v29  ;;  %v6412_v27 = vmul.f32 0.3275911, %v18530_v16  ;;  %8845 = vmatpush.bf16.msra.mxu1 %v13255_v19  ;;  %15230 = vrcp.f32 %v18541_v49  ;;  %8858 = vmatpush.bf16.msrb.mxu2 %v13351_v63  ;;  %v13326_v54 = vld [vmem:[%s16446_s16 + $0x588] sm:$0xf]  ;;  %v13231_v43 = vor.u32 %v14757_v5, %v13230_v26  ;;  %v13434_v39 = vld [vmem:[%s16446_s16 + $0x660] sm:$0xf] }
 0x97b   : > { %8821 = vmatpush.bf16.msrb.mxu3 %v13039_v7  ;;  %8834 = vmatpush.bf16.msra.mxu0 %v13135_v37  ;;  %v6148_v7 = vpop.f32.mrf.mxu3  ;;  %v6187_v9 = vpop.f32.mrf.mxu2  ;;  %v13470_v37 = vld [vmem:[%s16446_s16 + $0x6a8] sm:$0xf]  ;;  %v13447_v63 = vor.u32 %v14811_v60, %v13446_v42  ;;  %v13206_v11 = vld [vmem:[%s16446_s16 + $0x498] sm:$0xf]  ;;  %vm6376_vm2 = vcmp.ge.f32.partialorder %v18521_v62, 0.0 }
 0x97c   : > { %v6674_v33 = vadd.f32 -0.28449672, %v6662_v55  ;;  %v18546_v53 = vadd.f32 1.0, %v6412_v27  ;;  %v13471_v17 = vor.u32 %v14817_v52, %v13470_v37  ;;  %v13314_v55 = vld [vmem:[%s16446_s16 + $0x570] sm:$0xf]  ;;  %v6724_v9 = vsub.f32 0.0, %v18530_v16 }
 0x97d   : > { %v14778_v27 = vld [vmem:[%s16446_s16 + $0x578] sm:$0xf0]  ;;  %v6528_v7 = vand.u32 2147483647, %v18541_v49  ;;  %v6388_v2 = vsel %vm6376_vm2, 1.0, %v15982_v50 }
 0x97e   : > { %v6686_v30 = vmul.f32 %v6674_v33, %v18496_v29  ;;  %15232 = vrcp.f32 %v18546_v53  ;;  %8846 = vmatpush.bf16.msra.mxu1 %v13243_v13  ;;  %8859 = vmatpush.bf16.msrb.mxu2 %v13339_v6  ;;  %v14808_v33 = vld [vmem:[%s16446_s16 + $0x668] sm:$0xf0]  ;;  %v13315_v51 = vor.u32 %v14778_v27, %v13314_v55  ;;  %v6545_v61 = vand.u32 2147483648, %v18546_v53 }
 0x97f   : > { %8822 = vmatpush.bf16.msrb.mxu3 %v13027_v35  ;;  %8835 = vmatpush.bf16.msra.mxu0 %v13123_v48  ;;  %v18562_v35 = vmul.f32 0.5, %v18410_v20  ;;  %v4421_v48 = vperm.slane %v18555_v36, 0  ;;  %v15229_v34 = vpop.eup %15228  ;;  %v13459_v20 = vor.u32 %v14814_v3, %v13458_v46  ;;  %v13302_v46 = vld [vmem:[%s16446_s16 + $0x558] sm:$0xf]  ;;  %v14775_v3 = vld [vmem:[%s16446_s16 + $0x560] sm:$0xf0]  ;;  %vm6539_vm13 = vweird.f32 %v18546_v53 }
 0x980   : > { %v6698_v57 = vadd.f32 0.2548296, %v6686_v30  ;;  %v18575_v25 = vpop.eup %15230  ;;  %v14751_v30 = vld [vmem:[%s16446_s16 + $0x4a0] sm:$0xf0]  ;;  %v6543_v13 = vand.u32 2147483647, %v18546_v53  ;;  %v13303_v60 = vor.u32 %v14775_v3, %v13302_v46  ;;  %v6736_v46 = vmul.f32 %v6724_v9, %v18530_v16 }
 0x981   : > { %v6520_v19 = vmul.f32 %v18575_v25, %v18541_v49  ;;  %vm6525_vm9 = vweird.f32 %v18575_v25  ;;  %v13207_v5 = vor.u32 %v14751_v30, %v13206_v11  ;;  %vm6529_vm14 = vcmp.eq.f32.partialorder %v6528_v7, 8.507059e+37  ;;  %v13410_v7 = vld [vmem:[%s16446_s16 + $0x630] sm:$0xf] }
 0x982   : > { %v6710_v47 = vmul.f32 %v6698_v57, %v18496_v29  ;;  %8847 = vmatpush.bf16.msra.mxu1 %v13231_v43  ;;  %vm18612_vm12 = vmor %vm6524_vm10, %vm6525_vm9  ;;  %v13194_v43 = vld [vmem:[%s16446_s16 + $0x480] sm:$0xf]  ;;  %vm6544_vm0 = vcmp.eq.f32.partialorder %v6543_v13, 8.507059e+37  ;;  %v6735_v11 = vmul.f32 %v6723_v56, %v18526_v45  ;;  %v13398_v13 = vld [vmem:[%s16446_s16 + $0x618] sm:$0xf] }
 0x983   : > { %8823 = vmatpush.bf16.msrb.mxu3 %v13015_v31  ;;  %8836 = vmatpush.bf16.msra.mxu0 %v13111_v41  ;;  %v13327_v31 = vor.u32 %v14781_v0, %v13326_v54  ;;  %v13218_v41 = vld [vmem:[%s16446_s16 + $0x4b0] sm:$0xf]  ;;  %v6521_v52 = vsub.f32 1.0, %v6520_v19  ;;  %v6546_v19 = vor.u32 1.1754944e-38, %v6545_v61 }
 0x984   : > { %v18580_v14 = vpop.eup %15232  ;;  %v6770_v29 = vmul.f32 %v15229_v34, %v6710_v47  ;;  %v13435_v34 = vor.u32 %v14808_v33, %v13434_v39  ;;  %v13422_v47 = vld [vmem:[%s16446_s16 + $0x648] sm:$0xf]  ;;  %v6753_v9 = vmul.f32 1.442695, %v6735_v11  ;;  %v14832_v11 = vld [vmem:[%s16446_s16 + $0x728] sm:$0xf0] }
 0x985   : > { %v6535_v1 = vmul.f32 %v18580_v14, %v18546_v53  ;;  %8860 = vmatpush.bf16.msrb.mxu2 %v13327_v31  ;;  %v6522_v4 = vmul.f32 %v18575_v25, %v6521_v52  ;;  %vm6540_vm11 = vweird.f32 %v18580_v14  ;;  %v14748_v31 = vld [vmem:[%s16446_s16 + $0x488] sm:$0xf0]  ;;  %v14802_v52 = vld [vmem:[%s16446_s16 + $0x638] sm:$0xf0] }
 0x986   : > { %v6782_v37 = vsub.f32 1.0, %v6770_v29  ;;  %vm6541_vm15 = vmor %vm6539_vm13, %vm6540_vm11  ;;  %v14772_v53 = vld [vmem:[%s16446_s16 + $0x548] sm:$0xf0]  ;;  %15234 = vpow2.f32 %v6753_v9 }
 0x987   : > { %8824 = vmatpush.bf16.msrb.mxu3 %v13003_v44  ;;  %8837 = vmatpush.bf16.msra.mxu0 %v13099_v59  ;;  %v13219_v44 = vor.u32 %v14754_v8, %v13218_v41  ;;  %v6530_v59 = vand.u32 2147483648, %v18541_v49  ;;  %v6536_v58 = vsub.f32 1.0, %v6535_v1  ;;  %v6211_v26 = vpop.f32.mrf.mxu0  ;;  %v13290_v8 = vld [vmem:[%s16446_s16 + $0x540] sm:$0xf]  ;;  %v6755_v49 = vmul.f32 1.442695, %v6736_v46 }
 0x988   : > { %v13291_v33 = vor.u32 %v14772_v53, %v13290_v8  ;;  %v14835_v53 = vld [vmem:[%s16446_s16 + $0x740] sm:$0xf0] }
 0x989   : > { %v6537_v57 = vmul.f32 %v18580_v14, %v6536_v58  ;;  %8848 = vmatpush.bf16.msra.mxu1 %v13219_v44  ;;  %v6531_v54 = vor.u32 1.1754944e-38, %v6530_v59  ;;  %8861 = vmatpush.bf16.msrb.mxu2 %v13315_v51  ;;  %v13566_v44 = vld [vmem:[%s16446_s16 + $0x768] sm:$0xf]  ;;  %15236 = vpow2.f32 %v6755_v49  ;;  %v14826_v49 = vld [vmem:[%s16446_s16 + $0x6f8] sm:$0xf0] }
 0x98a   : > { %8825 = vmatmul.bf16.vlgmr.msrb.gmra.mxu3 %v18569_v28  ;;  %v6224_v42 = vpop.f32.mrf.mxu1 }
 0x98b   : > { %8869 = vmatpush.bf16.msra.mxu3 %v13471_v17  ;;  %v6794_v17 = vmul.f32 %v6782_v37, %v6386_v38  ;;  %v6523_v38 = vadd.f32 %v18575_v25, %v6522_v4  ;;  %v6538_v0 = vadd.f32 %v18580_v14, %v6537_v57  ;;  %v13411_v57 = vor.u32 %v14802_v52, %v13410_v7 }
 0x98d   : > { %v6806_v6 = vadd.f32 1.0, %v6794_v17  ;;  %v6527_v29 = vsel %vm18612_vm12, %v18575_v25, %v6523_v38  ;;  %v6542_v27 = vsel %vm6541_vm15, %v18580_v14, %v6538_v0  ;;  %8849 = vmatpush.bf16.msra.mxu1 %v13207_v5  ;;  %8862 = vmatpush.bf16.msrb.mxu2 %v13303_v60  ;;  %v14841_v14 = vld [vmem:[%s16446_s16 + $0x770] sm:$0xf0]  ;;  %v6198_v58 = vpop.f32.mrf.mxu3  ;;  %v13554_v38 = vld [vmem:[%s16446_s16 + $0x750] sm:$0xf] }
 0x98e   : > { %v18628_v55 = vsel %vm6529_vm14, %v6531_v54, %v6527_v29  ;;  %v18634_v37 = vsel %vm6544_vm0, %v6546_v19, %v6542_v27  ;;  %v13567_v51 = vor.u32 %v14841_v14, %v13566_v44  ;;  %v6199_v17 = vadd.f32 %v6198_v58, %v4421_v48  ;;  %v14799_v48 = vld [vmem:[%s16446_s16 + $0x620] sm:$0xf0]  ;;  %v13386_v0 = vld [vmem:[%s16446_s16 + $0x600] sm:$0xf]  ;;  %v14796_v60 = vld [vmem:[%s16446_s16 + $0x608] sm:$0xf0] }
 0x98f   : > { %8870 = vmatpush.bf16.msra.mxu3 %v13459_v20  ;;  %v14805_v20 = vld [vmem:[%s16446_s16 + $0x650] sm:$0xf0]  ;;  %v6818_v41 = vmul.f32 %v6806_v6, %v18562_v35  ;;  %v6615_v25 = vmul.f32 1.0614054, %v18628_v55  ;;  %v6616_v39 = vmul.f32 1.0614054, %v18634_v37  ;;  %v6213_v3 = vpop.f32.mrf.mxu0  ;;  %v13399_v54 = vor.u32 %v14799_v48, %v13398_v13 }
 0x990   : > { %v13423_v35 = vor.u32 %v14805_v20, %v13422_v47  ;;  %v18647_v4 = vpop.f32.mrf.mxu2  ;;  %v6212_v56 = vadd.f32 %v6211_v26, %v6199_v17  ;;  %8882 = vmatpush.bf16.msrb.mxu0 %v13567_v51  ;;  %v13542_v29 = vld [vmem:[%s16446_s16 + $0x738] sm:$0xf]  ;;  %v14621_v14 = vld [vmem:[%s16446_s16 + $0x94] sm:$0xf]  ;;  %v12692_v51 = vld [vmem:[%s16446_s16 + $0x9c] sm:$0xf0]  ;;  %v15235_v3 = vpop.eup %15234 }
 0x991   : > { %v18631_v1 = vpack.c.bf16 %v6818_v41, %v6818_v41  ;;  %v6627_v59 = vadd.f32 -1.4531521, %v6615_v25  ;;  %v6628_v30 = vadd.f32 -1.4531521, %v6616_v39  ;;  %8863 = vmatpush.bf16.msrb.mxu2 %v13291_v33  ;;  %v14624_v41 = vld [vmem:[%s16446_s16 + $0xac] sm:$0xf]  ;;  %v13543_v7 = vor.u32 %v14835_v53, %v13542_v29 }
 0x992   : > { %v6226_v6 = vpop.f32.mrf.mxu1  ;;  %v18658_v5 = vadd.f32 %v6224_v42, %v6212_v56  ;;  %v12704_v42 = vld [vmem:[%s16446_s16 + $0xb4] sm:$0xf0]  ;;  %v12695_v13 = vor.u32 %v14621_v14, %v12692_v51  ;;  %v14829_v56 = vld [vmem:[%s16446_s16 + $0x710] sm:$0xf0] }
 0x993   : > { %8871 = vmatpush.bf16.msra.mxu3 %v13447_v63  ;;  %v13195_v63 = vor.u32 %v14748_v31, %v13194_v43  ;;  %8838 = vmatmul.bf16.vlgmr.msra.gmra.mxu0 %v18631_v1  ;;  %v6639_v61 = vmul.f32 %v6627_v59, %v18628_v55  ;;  %v6640_v45 = vmul.f32 %v6628_v30, %v18634_v37  ;;  %v13530_v59 = vld [vmem:[%s16446_s16 + $0x720] sm:$0xf]  ;;  %v15237_v6 = vpop.eup %15236  ;;  %v12656_v14 = vld [vmem:[%s16446_s16 + $0x54] sm:$0xf0] }
 0x994   : > { %v18665_v31 = vmul.f32 0.70710677, %v18658_v5  ;;  %v12707_v44 = vor.u32 %v14624_v41, %v12704_v42  ;;  %v6351_v41 = vmul.f32 0.5, %v18506_v32 }
 0x995   : > { %8850 = vmatpush.bf16.msra.mxu1 %v13195_v63  ;;  %v6651_v47 = vadd.f32 1.4214138, %v6639_v61  ;;  %v6652_v20 = vadd.f32 1.4214138, %v6640_v45  ;;  %v6200_v8 = vpop.f32.mrf.mxu3  ;;  %v13387_v63 = vor.u32 %v14796_v60, %v13386_v0  ;;  %v13531_v61 = vor.u32 %v14832_v11, %v13530_v59  ;;  %v13518_v45 = vld [vmem:[%s16446_s16 + $0x708] sm:$0xf] }
 0x996   : > { %v14615_v0 = vld [vmem:[%s16446_s16 + $0x64] sm:$0xf]  ;;  %v12668_v60 = vld [vmem:[%s16446_s16 + $0x6c] sm:$0xf0]  ;;  %v6352_v8 = vmul.f32 0.5, %v18511_v40  ;;  %vm6377_vm7 = vcmp.ge.f32.partialorder %v18665_v31, 0.0 }
 0x997   : > { %8872 = vmatpush.bf16.msra.mxu3 %v13435_v34  ;;  %v14838_v34 = vld [vmem:[%s16446_s16 + $0x758] sm:$0xf0]  ;;  %v6663_v26 = vmul.f32 %v6651_v47, %v18628_v55  ;;  %v6664_v43 = vmul.f32 %v6652_v20, %v18634_v37 }
 0x998   : > { %v13555_v16 = vor.u32 %v14838_v34, %v13554_v38  ;;  %v6239_v25 = vpop.f32.mrf.mxu2  ;;  %v14618_v38 = vld [vmem:[%s16446_s16 + $0x7c] sm:$0xf]  ;;  %v13519_v34 = vor.u32 %v14829_v56, %v13518_v45  ;;  %v14609_v56 = vld [vmem:[%s16446_s16 + $0x34] sm:$0xf] }
 0x999   : > { %v6675_v19 = vadd.f32 -0.28449672, %v6663_v26  ;;  %v6676_v27 = vadd.f32 -0.28449672, %v6664_v43  ;;  %v13506_v26 = vld [vmem:[%s16446_s16 + $0x6f0] sm:$0xf] }
 0x99a   : > { %8883 = vmatpush.bf16.msrb.mxu0 %v13555_v16  ;;  %v6387_v16 = vsel %vm6375_vm1, 1.0, %v15982_v50  ;;  %v13507_v43 = vor.u32 %v14826_v49, %v13506_v26 }
 0x99b   : > { %8873 = vmatpush.bf16.msra.mxu3 %v13423_v35  ;;  %v18672_v35 = vand.u32 2147483647, %v18665_v31  ;;  %v6687_v52 = vmul.f32 %v6675_v19, %v18628_v55  ;;  %v6688_v39 = vmul.f32 %v6676_v27, %v18634_v37  ;;  %v12728_v31 = vld [vmem:[%s16446_s16 + $0xe4] sm:$0xf0] }
 0x99d   : > { %v6413_v33 = vmul.f32 0.3275911, %v18672_v35  ;;  %v6699_v58 = vadd.f32 0.2548296, %v6687_v52  ;;  %v6700_v30 = vadd.f32 0.2548296, %v6688_v39 }
 0x99e   : > { %8884 = vmatpush.bf16.msrb.mxu0 %v13543_v7  ;;  %v12671_v7 = vor.u32 %v14615_v0, %v12668_v60  ;;  %v13494_v52 = vld [vmem:[%s16446_s16 + $0x6d8] sm:$0xf]  ;;  %v14648_v0 = vld [vmem:[%s16446_s16 + $0x16c] sm:$0xf] }
 0x99f   : > { %8874 = vmatpush.bf16.msra.mxu3 %v13411_v57  ;;  %v18681_v17 = vadd.f32 1.0, %v6413_v33  ;;  %v6711_v46 = vmul.f32 %v6699_v58, %v18628_v55  ;;  %v6712_v57 = vmul.f32 %v6700_v30, %v18634_v37  ;;  %v12680_v55 = vld [vmem:[%s16446_s16 + $0x84] sm:$0xf0]  ;;  %v4422_v58 = vperm.slane %v18555_v36, 1  ;;  %v12800_v60 = vld [vmem:[%s16446_s16 + $0x174] sm:$0xf0] }
 0x9a0   : > { %v12683_v20 = vor.u32 %v14618_v38, %v12680_v55  ;;  %v14865_v38 = vld [vmem:[%s16446_s16 + $0x830] sm:$0xf0]  ;;  %v13758_v55 = vld [vmem:[%s16446_s16 + $0x8e8] sm:$0xf] }
 0x9a1   : > { %15238 = vrcp.f32 %v18681_v17  ;;  %v6771_v48 = vmul.f32 %v15235_v3, %v6711_v46  ;;  %v6772_v37 = vmul.f32 %v15237_v6, %v6712_v57  ;;  %v6558_v53 = vand.u32 2147483647, %v18681_v17  ;;  %v12788_v3 = vld [vmem:[%s16446_s16 + $0x15c] sm:$0xf0] }
 0x9a2   : > { %8885 = vmatpush.bf16.msrb.mxu0 %v13531_v61  ;;  %v6560_v25 = vand.u32 2147483648, %v18681_v17  ;;  %vm6554_vm4 = vweird.f32 %v18681_v17  ;;  %v6725_v61 = vsub.f32 0.0, %v18672_v35 }
 0x9a3   : > { %8875 = vmatpush.bf16.msra.mxu3 %v13399_v54  ;;  %v6783_v47 = vsub.f32 1.0, %v6771_v48  ;;  %v6784_v9 = vsub.f32 1.0, %v6772_v37  ;;  %vm18720_vm6 = vcmp.eq.f32.partialorder %v6558_v53, 8.507059e+37  ;;  %v13662_v48 = vld [vmem:[%s16446_s16 + $0x828] sm:$0xf]  ;;  %v6238_v37 = vadd.f32 %v18647_v4, %v4422_v58 }
 0x9a4   : > { %v13650_v53 = vld [vmem:[%s16446_s16 + $0x810] sm:$0xf] }
 0x9a5   : > { %v6795_v54 = vmul.f32 %v6783_v47, %v6387_v16  ;;  %v6796_v29 = vmul.f32 %v6784_v9, %v6388_v2  ;;  %v14889_v47 = vld [vmem:[%s16446_s16 + $0x8f0] sm:$0xf0]  ;;  %v13482_v16 = vld [vmem:[%s16446_s16 + $0x6c0] sm:$0xf]  ;;  %v14820_v9 = vld [vmem:[%s16446_s16 + $0x6c8] sm:$0xf0] }
 0x9a6   : > { %8886 = vmatpush.bf16.msrb.mxu0 %v13519_v34  ;;  %v13663_v34 = vor.u32 %v14865_v38, %v13662_v48  ;;  %v13483_v2 = vor.u32 %v14820_v9, %v13482_v16 }
 0x9a7   : > { %8876 = vmatpush.bf16.msra.mxu3 %v13387_v63  ;;  %v15239_v62 = vpop.eup %15238  ;;  %v6807_v19 = vadd.f32 1.0, %v6795_v54  ;;  %v6808_v27 = vadd.f32 1.0, %v6796_v29  ;;  %v14823_v63 = vld [vmem:[%s16446_s16 + $0x6e0] sm:$0xf0]  ;;  %v6263_v33 = vpop.f32.mrf.mxu0  ;;  %v13759_v54 = vor.u32 %v14889_v47, %v13758_v55  ;;  %v14606_v29 = vld [vmem:[%s16446_s16 + $0x1c] sm:$0xf] }
 0x9a8   : > { %v6550_v42 = vmul.f32 %v15239_v62, %v18681_v17  ;;  %vm6555_vm3 = vweird.f32 %v15239_v62  ;;  %v13495_v40 = vor.u32 %v14823_v63, %v13494_v52  ;;  %v12644_v17 = vld [vmem:[%s16446_s16 + $0x3c] sm:$0xf0]  ;;  %8895 = vmatpush.bf16.msrb.mxu1 %v13663_v34  ;;  %v13746_v63 = vld [vmem:[%s16446_s16 + $0x8d0] sm:$0xf] }
 0x9a9   : > { %v6819_v39 = vmul.f32 %v6807_v19, %v6351_v41  ;;  %v6820_v59 = vmul.f32 %v6808_v27, %v6352_v8  ;;  %vm18716_vm5 = vmor %vm6554_vm4, %vm6555_vm3  ;;  %v12647_v49 = vor.u32 %v14609_v56, %v12644_v17  ;;  %v12803_v19 = vor.u32 %v14648_v0, %v12800_v60  ;;  %8908 = vmatpush.bf16.msra.mxu2 %v13759_v54  ;;  %v14862_v27 = vld [vmem:[%s16446_s16 + $0x818] sm:$0xf0]  ;;  %v14859_v56 = vld [vmem:[%s16446_s16 + $0x800] sm:$0xf0] }
 0x9aa   : > { %8887 = vmatpush.bf16.msrb.mxu0 %v13507_v43  ;;  %v6551_v32 = vsub.f32 1.0, %v6550_v42  ;;  %v18708_v51 = vpop.f32.mrf.mxu1  ;;  %v13651_v52 = vor.u32 %v14862_v27, %v13650_v53  ;;  %v13734_v17 = vld [vmem:[%s16446_s16 + $0x8b8] sm:$0xf]  ;;  %v14856_v0 = vld [vmem:[%s16446_s16 + $0x7e8] sm:$0xf0] }
 0x9ab   : > { %8921 = vmatpush.bf16.msrb.mxu3 %v12707_v44  ;;  %v14612_v44 = vld [vmem:[%s16446_s16 + $0x4c] sm:$0xf]  ;;  %v18710_v11 = vpack.c.bf16 %v6819_v39, %v6819_v39  ;;  %v18714_v46 = vpack.c.bf16 %v6820_v59, %v6820_v59  ;;  %v14886_v39 = vld [vmem:[%s16446_s16 + $0x8d8] sm:$0xf0]  ;;  %v14645_v59 = vld [vmem:[%s16446_s16 + $0x154] sm:$0xf] }
 0x9ac   : > { %v6552_v30 = vmul.f32 %v15239_v62, %v6551_v32  ;;  %v12659_v45 = vor.u32 %v14612_v44, %v12656_v14  ;;  %v6737_v44 = vmul.f32 %v6725_v61, %v18672_v35  ;;  %v14603_v14 = vld [vmem:[%s16446_s16 + $0x4] sm:$0xf]  ;;  %8896 = vmatpush.bf16.msrb.mxu1 %v13651_v52  ;;  %v13722_v60 = vld [vmem:[%s16446_s16 + $0x8a0] sm:$0xf]  ;;  %v12764_v53 = vld [vmem:[%s16446_s16 + $0x12c] sm:$0xf0] }
 0x9ad   : > { %8851 = vmatmul.bf16.vlgmr.msra.gmra.mxu1 %v18710_v11  ;;  %8864 = vmatmul.bf16.vlgmr.msrb.gmra.mxu2 %v18714_v46  ;;  %v6250_v26 = vpop.f32.mrf.mxu3  ;;  %v14853_v52 = vld [vmem:[%s16446_s16 + $0x7d0] sm:$0xf0] }
 0x9ae   : > { %8888 = vmatpush.bf16.msrb.mxu0 %v13495_v40  ;;  %v6553_v6 = vadd.f32 %v15239_v62, %v6552_v30  ;;  %v6251_v43 = vadd.f32 %v6250_v26, %v6238_v37  ;;  %v13747_v40 = vor.u32 %v14886_v39, %v13746_v63  ;;  %v12620_v30 = vld [vmem:[%s16446_s16 + $0xc] sm:$0xf0]  ;;  %v6757_v38 = vmul.f32 1.442695, %v6737_v44  ;;  %v12776_v26 = vld [vmem:[%s16446_s16 + $0x144] sm:$0xf0] }
 0x9af   : > { %8922 = vmatpush.bf16.msrb.mxu3 %v12695_v13  ;;  %v6561_v13 = vor.u32 1.1754944e-38, %v6560_v25  ;;  %v6265_v42 = vpop.f32.mrf.mxu0  ;;  %v12623_v16 = vor.u32 %v14603_v14, %v12620_v30  ;;  %v14877_v44 = vld [vmem:[%s16446_s16 + $0x890] sm:$0xf0]  ;;  %v12752_v30 = vld [vmem:[%s16446_s16 + $0x114] sm:$0xf0] }
 0x9b0   : > { %v18743_v41 = vpop.f32.mrf.mxu2  ;;  %v18750_v25 = vadd.f32 %v6263_v33, %v6251_v43  ;;  %8909 = vmatpush.bf16.msra.mxu2 %v13747_v40  ;;  %15240 = vpow2.f32 %v6757_v38  ;;  %v14639_v42 = vld [vmem:[%s16446_s16 + $0x124] sm:$0xf]  ;;  %v14636_v40 = vld [vmem:[%s16446_s16 + $0x10c] sm:$0xf]  ;;  %v14633_v38 = vld [vmem:[%s16446_s16 + $0xf4] sm:$0xf] }
 0x9b1   : > { %v12767_v27 = vor.u32 %v14639_v42, %v12764_v53  ;;  %v14630_v42 = vld [vmem:[%s16446_s16 + $0xdc] sm:$0xf]  ;;  %v6353_v53 = vmul.f32 0.5, %v18658_v5 }
 0x9b2   : > { %8889 = vmatpush.bf16.msrb.mxu0 %v13483_v2  ;;  %v18758_v58 = vmul.f32 0.70710677, %v18750_v25 }
 0x9b3   : > { %8923 = vmatpush.bf16.msrb.mxu3 %v12683_v20  ;;  %v6557_v20 = vsel %vm18716_vm5, %v15239_v62, %v6553_v6  ;;  %v12632_v62 = vld [vmem:[%s16446_s16 + $0x24] sm:$0xf0]  ;;  %v14883_v6 = vld [vmem:[%s16446_s16 + $0x8c0] sm:$0xf0] }
 0x9b4   : > { %v18741_v4 = vsel %vm18720_vm6, %v6561_v13, %v6557_v20  ;;  %v12635_v33 = vor.u32 %v14606_v29, %v12632_v62  ;;  %v12791_v13 = vor.u32 %v14645_v59, %v12788_v3  ;;  %v18767_v35 = vand.u32 2147483647, %v18758_v58  ;;  %v14642_v20 = vld [vmem:[%s16446_s16 + $0x13c] sm:$0xf]  ;;  %v14880_v62 = vld [vmem:[%s16446_s16 + $0x8a8] sm:$0xf0] }
 0x9b5   : > { %v6617_v8 = vmul.f32 1.0614054, %v18741_v4  ;;  %v6252_v55 = vpop.f32.mrf.mxu3  ;;  %v13735_v37 = vor.u32 %v14883_v6, %v13734_v17  ;;  %v12779_v2 = vor.u32 %v14642_v20, %v12776_v26  ;;  %v13602_v3 = vld [vmem:[%s16446_s16 + $0x7b0] sm:$0xf]  ;;  %v13590_v26 = vld [vmem:[%s16446_s16 + $0x798] sm:$0xf] }
 0x9b6   : > { %8934 = vmatpush.bf16.msra.mxu0 %v12803_v19  ;;  %v6414_v34 = vmul.f32 0.3275911, %v18767_v35  ;;  %v15241_v59 = vpop.eup %15240  ;;  %v13698_v17 = vld [vmem:[%s16446_s16 + $0x870] sm:$0xf]  ;;  %v12740_v55 = vld [vmem:[%s16446_s16 + $0xfc] sm:$0xf0] }
 0x9b7   : > { %8924 = vmatpush.bf16.msrb.mxu3 %v12671_v7  ;;  %v6278_v7 = vpop.f32.mrf.mxu1  ;;  %v6629_v32 = vadd.f32 -1.4531521, %v6617_v8  ;;  %8910 = vmatpush.bf16.msra.mxu2 %v13735_v37  ;;  %v13723_v8 = vor.u32 %v14880_v62, %v13722_v60  ;;  %v4423_v37 = vperm.slane %v18555_v36, 2  ;;  %vm6378_vm12 = vcmp.ge.f32.partialorder %v18758_v58, 0.0 }
 0x9b8   : > { %v6291_v47 = vpop.f32.mrf.mxu2  ;;  %v18775_v54 = vadd.f32 1.0, %v6414_v34  ;;  %v13614_v7 = vld [vmem:[%s16446_s16 + $0x7c8] sm:$0xf]  ;;  %v6390_v58 = vsel %vm6378_vm12, 1.0, %v15982_v50 }
 0x9b9   : > { %v6641_v57 = vmul.f32 %v6629_v32, %v18741_v4  ;;  %v13615_v39 = vor.u32 %v14853_v52, %v13614_v7  ;;  %v13710_v32 = vld [vmem:[%s16446_s16 + $0x888] sm:$0xf]  ;;  %v4424_v47 = vperm.slane %v18555_v36, 3  ;;  %v14871_v36 = vld [vmem:[%s16446_s16 + $0x860] sm:$0xf0]  ;;  %v6277_v5 = vadd.f32 %v18708_v51, %v4423_v37 }
 0x9ba   : > { %8935 = vmatpush.bf16.msra.mxu0 %v12791_v13  ;;  %15242 = vrcp.f32 %v18775_v54  ;;  %v13711_v14 = vor.u32 %v14877_v44, %v13710_v32  ;;  %v6573_v34 = vand.u32 2147483647, %v18775_v54  ;;  %v14720_v7 = vld [vmem:[%s16446_s16 + $0x3ac] sm:$0xf]  ;;  %v13088_v52 = vld [vmem:[%s16446_s16 + $0x3b4] sm:$0xf0]  ;;  %vm6569_vm9 = vweird.f32 %v18775_v54 }
 0x9bb   : > { %8925 = vmatpush.bf16.msrb.mxu3 %v12659_v45  ;;  %v13638_v45 = vld [vmem:[%s16446_s16 + $0x7f8] sm:$0xf]  ;;  %v6653_v48 = vadd.f32 1.4214138, %v6641_v57  ;;  %8911 = vmatpush.bf16.msra.mxu2 %v13723_v8  ;;  %v14850_v57 = vld [vmem:[%s16446_s16 + $0x7b8] sm:$0xf0] }
 0x9bc   : > { %v13639_v61 = vor.u32 %v14859_v56, %v13638_v45  ;;  %v12755_v45 = vor.u32 %v14636_v40, %v12752_v30  ;;  %v13603_v56 = vor.u32 %v14850_v57, %v13602_v3  ;;  %v14844_v40 = vld [vmem:[%s16446_s16 + $0x788] sm:$0xf0]  ;;  %v13674_v3 = vld [vmem:[%s16446_s16 + $0x840] sm:$0xf]  ;;  %vm6574_vm11 = vcmp.eq.f32.partialorder %v6573_v34, 8.507059e+37 }
 0x9bd   : > { %v6665_v9 = vmul.f32 %v6653_v48, %v18741_v4  ;;  %v14868_v57 = vld [vmem:[%s16446_s16 + $0x848] sm:$0xf0] }
 0x9be   : > { %8897 = vmatpush.bf16.msrb.mxu1 %v13639_v61  ;;  %8936 = vmatpush.bf16.msra.mxu0 %v12779_v2  ;;  %v14874_v61 = vld [vmem:[%s16446_s16 + $0x878] sm:$0xf0]  ;;  %v6389_v2 = vsel %vm6377_vm7, 1.0, %v15982_v50  ;;  %v13675_v51 = vor.u32 %v14868_v57, %v13674_v3  ;;  %v14711_v57 = vld [vmem:[%s16446_s16 + $0x364] sm:$0xf] }
 0x9bf   : > { %8926 = vmatpush.bf16.msrb.mxu3 %v12647_v49  ;;  %v13626_v49 = vld [vmem:[%s16446_s16 + $0x7e0] sm:$0xf]  ;;  %v6677_v43 = vadd.f32 -0.28449672, %v6665_v9  ;;  %8912 = vmatpush.bf16.msra.mxu2 %v13711_v14 }
 0x9c0   : > { %v13627_v29 = vor.u32 %v14856_v0, %v13626_v49  ;;  %v18793_v13 = vpop.eup %15242  ;;  %v14847_v49 = vld [vmem:[%s16446_s16 + $0x7a0] sm:$0xf0]  ;;  %v6575_v0 = vand.u32 2147483648, %v18775_v54  ;;  %v13578_v14 = vld [vmem:[%s16446_s16 + $0x780] sm:$0xf] }
 0x9c1   : > { %v6689_v19 = vmul.f32 %v6677_v43, %v18741_v4  ;;  %v6565_v48 = vmul.f32 %v18793_v13, %v18775_v54  ;;  %v13591_v60 = vor.u32 %v14847_v49, %v13590_v26  ;;  %v13686_v43 = vld [vmem:[%s16446_s16 + $0x858] sm:$0xf]  ;;  %vm6570_vm8 = vweird.f32 %v18793_v13 }
 0x9c2   : > { %8898 = vmatpush.bf16.msrb.mxu1 %v13627_v29  ;;  %8937 = vmatpush.bf16.msra.mxu0 %v12767_v27  ;;  %v13687_v8 = vor.u32 %v14871_v36, %v13686_v43  ;;  %vm6571_vm10 = vmor %vm6569_vm9, %vm6570_vm8  ;;  %v13579_v30 = vor.u32 %v14844_v40, %v13578_v14 }
 0x9c3   : > { %8927 = vmatpush.bf16.msrb.mxu3 %v12635_v33  ;;  %v6701_v63 = vadd.f32 0.2548296, %v6689_v19  ;;  %v6566_v20 = vsub.f32 1.0, %v6565_v48  ;;  %v13091_v48 = vor.u32 %v14720_v7, %v13088_v52  ;;  %v12884_v7 = vld [vmem:[%s16446_s16 + $0x21c] sm:$0xf0] }
 0x9c5   : > { %v6713_v33 = vmul.f32 %v6701_v63, %v18741_v4  ;;  %v13699_v4 = vor.u32 %v14874_v61, %v13698_v17  ;;  %v6567_v62 = vmul.f32 %v18793_v13, %v6566_v20  ;;  %v12731_v63 = vor.u32 %v14630_v42, %v12728_v31  ;;  %v14672_v17 = vld [vmem:[%s16446_s16 + $0x22c] sm:$0xf]  ;;  %v14627_v20 = vld [vmem:[%s16446_s16 + $0xc4] sm:$0xf]  ;;  %v14714_v42 = vld [vmem:[%s16446_s16 + $0x37c] sm:$0xf] }
 0x9c6   : > { %8899 = vmatpush.bf16.msrb.mxu1 %v13615_v39  ;;  %8938 = vmatpush.bf16.msra.mxu0 %v12755_v45  ;;  %v14669_v31 = vld [vmem:[%s16446_s16 + $0x214] sm:$0xf] }
 0x9c7   : > { %8928 = vmatpush.bf16.msrb.mxu3 %v12623_v16  ;;  %v6773_v6 = vmul.f32 %v15241_v59, %v6713_v33  ;;  %v12743_v16 = vor.u32 %v14633_v38, %v12740_v55  ;;  %v6315_v19 = vpop.f32.mrf.mxu0  ;;  %8913 = vmatpush.bf16.msra.mxu2 %v13699_v4  ;;  %v6568_v32 = vadd.f32 %v18793_v13, %v6567_v62  ;;  %v6576_v59 = vor.u32 1.1754944e-38, %v6575_v0  ;;  %v13076_v4 = vld [vmem:[%s16446_s16 + $0x39c] sm:$0xf0]  ;;  %v12896_v38 = vld [vmem:[%s16446_s16 + $0x234] sm:$0xf0] }
 0x9c8   : > { %v6316_v44 = vadd.f32 %v6315_v19, %v4424_v47  ;;  %v6726_v33 = vsub.f32 0.0, %v18767_v35  ;;  %v14696_v55 = vld [vmem:[%s16446_s16 + $0x2ec] sm:$0xf] }
 0x9c9   : > { %v6785_v9 = vsub.f32 1.0, %v6773_v6  ;;  %v6572_v45 = vsel %vm6571_vm10, %v18793_v13, %v6568_v32  ;;  %v6290_v6 = vadd.f32 %v18743_v41, %v6277_v5 }
 0x9ca   : > { %8900 = vmatpush.bf16.msrb.mxu1 %v13603_v56  ;;  %v6328_v27 = vpop.f32.mrf.mxu1  ;;  %8939 = vmatpush.bf16.msra.mxu0 %v12743_v16  ;;  %v14717_v56 = vld [vmem:[%s16446_s16 + $0x394] sm:$0xf]  ;;  %v18833_v61 = vsel %vm6574_vm11, %v6576_v59, %v6572_v45  ;;  %v12899_v16 = vor.u32 %v14672_v17, %v12896_v38  ;;  %v12980_v59 = vld [vmem:[%s16446_s16 + $0x2dc] sm:$0xf0]  ;;  %v13040_v38 = vld [vmem:[%s16446_s16 + $0x354] sm:$0xf0] }
 0x9cb   : > { %v6797_v29 = vmul.f32 %v6785_v9, %v6389_v2  ;;  %8914 = vmatpush.bf16.msra.mxu2 %v13687_v8  ;;  %v6618_v13 = vmul.f32 1.0614054, %v18833_v61  ;;  %v6329_v34 = vadd.f32 %v6328_v27, %v6316_v44  ;;  %v12992_v9 = vld [vmem:[%s16446_s16 + $0x2f4] sm:$0xf0]  ;;  %v12716_v2 = vld [vmem:[%s16446_s16 + $0xcc] sm:$0xf0]  ;;  %v13079_v8 = vor.u32 %v14717_v56, %v13076_v4 }
 0x9cc   : > { %v12995_v49 = vor.u32 %v14696_v55, %v12992_v9  ;;  %v13064_v27 = vld [vmem:[%s16446_s16 + $0x384] sm:$0xf0]  ;;  %v14708_v4 = vld [vmem:[%s16446_s16 + $0x34c] sm:$0xf]  ;;  %v18891_v9 = vld [vmem:[%s1111_s15] sm:$0x7] }
 0x9cd   : > { %v6809_v39 = vadd.f32 1.0, %v6797_v29  ;;  %v6302_v47 = vpop.f32.mrf.mxu3  ;;  %v6630_v0 = vadd.f32 -1.4531521, %v6618_v13  ;;  %v12719_v29 = vor.u32 %v14627_v20, %v12716_v2  ;;  %v13067_v5 = vor.u32 %v14714_v42, %v13064_v27  ;;  %v14666_v13 = vld [vmem:[%s16446_s16 + $0x1fc] sm:$0xf] }
 0x9ce   : > { %8901 = vmatpush.bf16.msrb.mxu1 %v13591_v60  ;;  %8940 = vmatpush.bf16.msra.mxu0 %v12731_v63  ;;  %v18844_v26 = vadd.f32 %v6302_v47, %v6290_v6  ;;  %v6738_v60 = vmul.f32 %v6726_v33, %v18767_v35  ;;  %v12887_v63 = vor.u32 %v14669_v31, %v12884_v7  ;;  %v14690_v47 = vld [vmem:[%s16446_s16 + $0x2bc] sm:$0xf]  ;;  %v18896_v2 = vmul.f32 0.5, %v18750_v25  ;;  %v14663_v31 = vld [vmem:[%s16446_s16 + $0x1e4] sm:$0xf] }
 0x9cf   : > { %v6821_v54 = vmul.f32 %v6809_v39, %v6353_v53  ;;  %v6317_v36 = vpop.f32.mrf.mxu0  ;;  %8915 = vmatpush.bf16.msra.mxu2 %v13675_v51  ;;  %v6642_v35 = vmul.f32 %v6630_v0, %v18833_v61  ;;  %v14693_v39 = vld [vmem:[%s16446_s16 + $0x2d4] sm:$0xf]  ;;  %v13043_v0 = vor.u32 %v14708_v4, %v13040_v38  ;;  %v7223_v42 = vperm.slane %v18891_v9, 0  ;;  %v12860_v27 = vld [vmem:[%s16446_s16 + $0x1ec] sm:$0xf0] }
 0x9d0   : > { %v6341_v41 = vpop.f32.mrf.mxu2  ;;  %v18852_v62 = vmul.f32 0.70710677, %v18844_v26  ;;  %v6759_v44 = vmul.f32 1.442695, %v6738_v60  ;;  %v12983_v45 = vor.u32 %v14693_v39, %v12980_v59  ;;  %v14687_v7 = vld [vmem:[%s16446_s16 + $0x2a4] sm:$0xf]  ;;  %v12863_v59 = vor.u32 %v14663_v31, %v12860_v27 }
 0x9d1   : > { %v18839_v37 = vpack.c.bf16 %v6821_v54, %v6821_v54  ;;  %v18848_v43 = vadd.f32 %v6341_v41, %v6329_v34  ;;  %v6654_v32 = vadd.f32 1.4214138, %v6642_v35  ;;  %v13052_v54 = vld [vmem:[%s16446_s16 + $0x36c] sm:$0xf0]  ;;  %v12872_v34 = vld [vmem:[%s16446_s16 + $0x204] sm:$0xf0] }
 0x9d2   : > { %8902 = vmatpush.bf16.msrb.mxu1 %v13579_v30  ;;  %v6330_v19 = vpop.f32.mrf.mxu1  ;;  %8941 = vmatpush.bf16.msra.mxu0 %v12719_v29  ;;  %v18863_v52 = vand.u32 2147483647, %v18852_v62  ;;  %15244 = vpow2.f32 %v6759_v44  ;;  %v13028_v41 = vld [vmem:[%s16446_s16 + $0x33c] sm:$0xf0]  ;;  %v12875_v60 = vor.u32 %v14666_v13, %v12872_v34  ;;  %v12944_v34 = vld [vmem:[%s16446_s16 + $0x294] sm:$0xf0] }
 0x9d3   : > { %8877 = vmatmul.bf16.vlgmr.msra.gmra.mxu3 %v18839_v37  ;;  %v18858_v53 = vmul.f32 0.70710677, %v18848_v43  ;;  %8960 = vmatpush.bf16.msrb.mxu2 %v12995_v49  ;;  %v6666_v33 = vmul.f32 %v6654_v32, %v18833_v61  ;;  %v12968_v49 = vld [vmem:[%s16446_s16 + $0x2c4] sm:$0xf0]  ;;  %v14681_v31 = vld [vmem:[%s16446_s16 + $0x274] sm:$0xf] }
 0x9d4   : > { %8973 = vmatpush.bf16.msra.mxu3 %v13091_v48  ;;  %v6415_v40 = vmul.f32 0.3275911, %v18863_v52  ;;  %v13055_v48 = vor.u32 %v14711_v57, %v13052_v54  ;;  %v12971_v36 = vor.u32 %v14690_v47, %v12968_v49  ;;  %v14660_v54 = vld [vmem:[%s16446_s16 + $0x1cc] sm:$0xf]  ;;  %v18942_v49 = vld [vmem:[%s16446_s16 + $0x30c] sm:$0xf0] }
 0x9d5   : > { %v18867_v14 = vand.u32 2147483647, %v18858_v53  ;;  %v6304_v3 = vpop.f32.mrf.mxu3  ;;  %v6678_v17 = vadd.f32 -0.28449672, %v6666_v33  ;;  %vm6379_vm5 = vcmp.ge.f32.partialorder %v18852_v62, 0.0  ;;  %vm6380_vm6 = vcmp.ge.f32.partialorder %v18858_v53, 0.0 }
 0x9d6   : > { %8947 = vmatpush.bf16.msra.mxu1 %v12899_v16  ;;  %v18875_v56 = vadd.f32 1.0, %v6415_v40  ;;  %v14705_v16 = vld [vmem:[%s16446_s16 + $0x334] sm:$0xf]  ;;  %v18915_v40 = vld [vmem:[%s16446_s16 + $0x31c] sm:$0xf]  ;;  %v6392_v53 = vsel %vm6380_vm6, 1.0, %v15982_v50 }
 0x9d7   : > { %v6416_v30 = vmul.f32 0.3275911, %v18867_v14  ;;  %8961 = vmatpush.bf16.msrb.mxu2 %v12983_v45  ;;  %v6690_v55 = vmul.f32 %v6678_v17, %v18833_v61  ;;  %v13031_v35 = vor.u32 %v14705_v16, %v13028_v41  ;;  %v12848_v17 = vld [vmem:[%s16446_s16 + $0x1d4] sm:$0xf0]  ;;  %v18939_v41 = vld [vmem:[%s16446_s16 + $0x304] sm:$0xf] }
 0x9d8   : > { %8974 = vmatpush.bf16.msra.mxu3 %v13079_v8  ;;  %v6343_v51 = vpop.f32.mrf.mxu2  ;;  %15246 = vrcp.f32 %v18875_v56  ;;  %v15245_v29 = vpop.eup %15244  ;;  %v6727_v8 = vsub.f32 0.0, %v18863_v52  ;;  %v6588_v44 = vand.u32 2147483647, %v18875_v56  ;;  %v6590_v33 = vand.u32 2147483648, %v18875_v56 }
 0x9d9   : > { %v18877_v6 = vadd.f32 1.0, %v6416_v30  ;;  %v6702_v20 = vadd.f32 0.2548296, %v6690_v55  ;;  %v18930_v55 = vld [vmem:[%s16446_s16 + $0x46c] sm:$0xf]  ;;  %v12851_v13 = vor.u32 %v14660_v54, %v12848_v17  ;;  %vm6584_vm15 = vweird.f32 %v18875_v56 }
 0x9da   : > { %8948 = vmatpush.bf16.msra.mxu1 %v12887_v63  ;;  %v12956_v63 = vld [vmem:[%s16446_s16 + $0x2ac] sm:$0xf0]  ;;  %vm18961_vm2 = vcmp.eq.f32.partialorder %v6588_v44, 8.507059e+37  ;;  %v14741_v17 = vld [vmem:[%s16446_s16 + $0x454] sm:$0xf] }
 0x9db   : > { %15248 = vrcp.f32 %v18877_v6  ;;  %v6714_v19 = vmul.f32 %v6702_v20, %v18833_v61  ;;  %8962 = vmatpush.bf16.msrb.mxu2 %v12971_v36  ;;  %v6603_v3 = vand.u32 2147483647, %v18877_v6  ;;  %v12959_v57 = vor.u32 %v14687_v7, %v12956_v63  ;;  %v18936_v20 = vld [vmem:[%s16446_s16 + $0x474] sm:$0xf0]  ;;  %v12908_v63 = vld [vmem:[%s16446_s16 + $0x24c] sm:$0xf0] }
 0x9dc   : > { %8975 = vmatpush.bf16.msra.mxu3 %v13067_v5  ;;  %v18918_v5 = vld [vmem:[%s16446_s16 + $0x324] sm:$0xf0]  ;;  %v6605_v38 = vand.u32 2147483648, %v18877_v6  ;;  %vm6599_vm0 = vweird.f32 %v18877_v6 }
 0x9dd   : > { %v6774_v61 = vmul.f32 %v15245_v29, %v6714_v19  ;;  %v13019_v29 = vor.u32 %v18915_v40, %v18918_v5  ;;  %v12836_v19 = vld [vmem:[%s16446_s16 + $0x1bc] sm:$0xf0]  ;;  %vm6604_vm4 = vcmp.eq.f32.partialorder %v6603_v3, 8.507059e+37 }
 0x9de   : > { %v18903_v25 = vpop.eup %15246  ;;  %8949 = vmatpush.bf16.msra.mxu1 %v12875_v60  ;;  %v6606_v44 = vor.u32 1.1754944e-38, %v6605_v38  ;;  %v14678_v38 = vld [vmem:[%s16446_s16 + $0x25c] sm:$0xf] }
 0x9df   : > { %v6580_v32 = vmul.f32 %v18903_v25, %v18875_v56  ;;  %v6786_v45 = vsub.f32 1.0, %v6774_v61  ;;  %vm6585_vm13 = vweird.f32 %v18903_v25  ;;  %8963 = vmatpush.bf16.msrb.mxu2 %v12959_v57  ;;  %v14675_v56 = vld [vmem:[%s16446_s16 + $0x244] sm:$0xf] }
 0x9e0   : > { %8976 = vmatpush.bf16.msra.mxu3 %v13055_v48  ;;  %v14684_v48 = vld [vmem:[%s16446_s16 + $0x28c] sm:$0xf]  ;;  %vm18957_vm1 = vmor %vm6584_vm15, %vm6585_vm13 }
 0x9e1   : > { %v18908_v39 = vpop.eup %15248  ;;  %v6581_v51 = vsub.f32 1.0, %v6580_v32  ;;  %v6798_v47 = vmul.f32 %v6786_v45, %v6390_v58  ;;  %v14657_v58 = vld [vmem:[%s16446_s16 + $0x1b4] sm:$0xf]  ;;  %v12932_v32 = vld [vmem:[%s16446_s16 + $0x27c] sm:$0xf0]  ;;  %v13187_v45 = vor.u32 %v18930_v55, %v18936_v20 }
 0x9e2   : > { %v6595_v30 = vmul.f32 %v18908_v39, %v18877_v6  ;;  %8950 = vmatpush.bf16.msra.mxu1 %v12863_v59  ;;  %vm6600_vm14 = vweird.f32 %v18908_v39  ;;  %v14816_v59 = vld [vmem:[%s16446_s16 + $0x6ac] sm:$0xf]  ;;  %v12935_v57 = vor.u32 %v14681_v31, %v12932_v32  ;;  %v13172_v55 = vld [vmem:[%s16446_s16 + $0x45c] sm:$0xf0] }
 0x9e3   : > { %8929 = vmatmul.bf16.vlgmr.msrb.gmra.mxu3 %v18454_v15  ;;  %v6582_v16 = vmul.f32 %v18903_v25, %v6581_v51  ;;  %v6810_v27 = vadd.f32 1.0, %v6798_v47  ;;  %vm18973_vm3 = vmor %vm6599_vm0, %vm6600_vm14  ;;  %v13007_v51 = vor.u32 %v18939_v41, %v18942_v49  ;;  %v14813_v49 = vld [vmem:[%s16446_s16 + $0x694] sm:$0xf]  ;;  %v13175_v5 = vor.u32 %v14741_v17, %v13172_v55  ;;  %v14735_v55 = vld [vmem:[%s16446_s16 + $0x424] sm:$0xf] }
 0x9e4   : > { %8977 = vmatpush.bf16.msra.mxu3 %v13043_v0  ;;  %v6596_v4 = vsub.f32 1.0, %v6595_v30  ;;  %v12947_v0 = vor.u32 %v14684_v48, %v12944_v34  ;;  %v12839_v30 = vor.u32 %v14657_v58, %v12836_v19  ;;  %v14654_v48 = vld [vmem:[%s16446_s16 + $0x19c] sm:$0xf]  ;;  %v12920_v34 = vld [vmem:[%s16446_s16 + $0x264] sm:$0xf0] }
 0x9e5   : > { %v6583_v7 = vadd.f32 %v18903_v25, %v6582_v16  ;;  %v6822_v54 = vmul.f32 %v6810_v27, %v18896_v2  ;;  %v14651_v58 = vld [vmem:[%s16446_s16 + $0x184] sm:$0xf]  ;;  %v12812_v19 = vld [vmem:[%s16446_s16 + $0x18c] sm:$0xf0] }
 0x9e6   : > { %v6597_v60 = vmul.f32 %v18908_v39, %v6596_v4  ;;  %8951 = vmatpush.bf16.msra.mxu1 %v12851_v13  ;;  %8964 = vmatpush.bf16.msrb.mxu2 %v12947_v0  ;;  %v12824_v4 = vld [vmem:[%s16446_s16 + $0x1a4] sm:$0xf0]  ;;  %v13460_v0 = vld [vmem:[%s16446_s16 + $0x69c] sm:$0xf0] }
 0x9e7   : > { %v18947_v36 = vpop.f32.mrf.mxu0  ;;  %v6587_v6 = vsel %vm18957_vm1, %v18903_v25, %v6583_v7  ;;  %v6728_v25 = vsub.f32 0.0, %v18867_v14  ;;  %v19001_v47 = vpack.c.bf16 %v6822_v54, %v6822_v54 }
 0x9e8   : > { %8978 = vmatpush.bf16.msra.mxu3 %v13031_v35  ;;  %v6591_v35 = vor.u32 1.1754944e-38, %v6590_v33  ;;  %v6598_v40 = vadd.f32 %v18908_v39, %v6597_v60  ;;  %v13472_v33 = vld [vmem:[%s16446_s16 + $0x6b4] sm:$0xf0]  ;;  %v12827_v60 = vor.u32 %v14654_v48, %v12824_v4 }
 0x9e9   : > { %v18965_v61 = vpop.f32.mrf.mxu1  ;;  %v13475_v41 = vor.u32 %v14816_v59, %v13472_v33  ;;  %8890 = vmatmul.bf16.vlgmr.msrb.gmra.mxu0 %v19001_v47  ;;  %v13463_v33 = vor.u32 %v14813_v49, %v13460_v0  ;;  %v13436_v49 = vld [vmem:[%s16446_s16 + $0x66c] sm:$0xf0] }
 0x9ea   : > { %v18993_v13 = vsel %vm18961_vm2, %v6591_v35, %v6587_v6  ;;  %v6602_v2 = vsel %vm18973_vm3, %v18908_v39, %v6598_v40  ;;  %8952 = vmatpush.bf16.msra.mxu1 %v12839_v30  ;;  %8965 = vmatpush.bf16.msrb.mxu2 %v12935_v57  ;;  %v6739_v35 = vmul.f32 %v6727_v8, %v18863_v52  ;;  %v14738_v30 = vld [vmem:[%s16446_s16 + $0x43c] sm:$0xf]  ;;  %v13160_v57 = vld [vmem:[%s16446_s16 + $0x444] sm:$0xf0] }
 0x9eb   : > { %v6619_v16 = vmul.f32 1.0614054, %v18993_v13  ;;  %v19004_v20 = vsel %vm6604_vm4, %v6606_v44, %v6602_v2  ;;  %8986 = vmatpush.bf16.msrb.mxu0 %v13187_v45  ;;  %v14810_v52 = vld [vmem:[%s16446_s16 + $0x67c] sm:$0xf]  ;;  %v13448_v8 = vld [vmem:[%s16446_s16 + $0x684] sm:$0xf0]  ;;  %v12815_v6 = vor.u32 %v14651_v58, %v12812_v19  ;;  %v12911_v45 = vor.u32 %v14675_v56, %v12908_v63 }
 0x9ec   : > { %8979 = vmatpush.bf16.msra.mxu3 %v13019_v29  ;;  %v6620_v39 = vmul.f32 1.0614054, %v19004_v20  ;;  %v12923_v29 = vor.u32 %v14678_v38, %v12920_v34  ;;  %v13163_v48 = vor.u32 %v14738_v30, %v13160_v57  ;;  %v13148_v34 = vld [vmem:[%s16446_s16 + $0x42c] sm:$0xf0]  ;;  %v14732_v19 = vld [vmem:[%s16446_s16 + $0x40c] sm:$0xf] }
 0x9ed   : > { %v8774_v3 = vpop.f32.mrf.mxu3  ;;  %v6631_v31 = vadd.f32 -1.4531521, %v6619_v16  ;;  %v13424_v56 = vld [vmem:[%s16446_s16 + $0x654] sm:$0xf0]  ;;  %v13412_v30 = vld [vmem:[%s16446_s16 + $0x63c] sm:$0xf0] }
 0x9ee   : > { %v8775_v27 = vadd.f32 %v8774_v3, %v7223_v42  ;;  %v6632_v32 = vadd.f32 -1.4531521, %v6620_v39  ;;  %v6740_v42 = vmul.f32 %v6728_v25, %v18867_v14  ;;  %8953 = vmatpush.bf16.msra.mxu1 %v12827_v60  ;;  %8966 = vmatpush.bf16.msrb.mxu2 %v12923_v29  ;;  %v13451_v25 = vor.u32 %v14810_v52, %v13448_v8 }
 0x9ef   : > { %v8813_v7 = vpop.f32.mrf.mxu2  ;;  %v8789_v40 = vpop.f32.mrf.mxu0  ;;  %v6643_v9 = vmul.f32 %v6631_v31, %v18993_v13  ;;  %8987 = vmatpush.bf16.msrb.mxu0 %v13175_v5  ;;  %v13151_v60 = vor.u32 %v14735_v55, %v13148_v34  ;;  %v13136_v31 = vld [vmem:[%s16446_s16 + $0x414] sm:$0xf0]  ;;  %v14792_v55 = vld [vmem:[%s16446_s16 + $0x5ec] sm:$0xf]  ;;  %v6355_v34 = vmul.f32 0.5, %v18844_v26 }
 0x9f0   : > { %8980 = vmatpush.bf16.msra.mxu3 %v13007_v51  ;;  %v8788_v44 = vadd.f32 %v18947_v36, %v8775_v27  ;;  %v6644_v54 = vmul.f32 %v6632_v32, %v19004_v20  ;;  %v6761_v36 = vmul.f32 1.442695, %v6739_v35  ;;  %v6763_v38 = vmul.f32 1.442695, %v6740_v42  ;;  %v13124_v42 = vld [vmem:[%s16446_s16 + $0x3fc] sm:$0xf0] }
 0x9f1   : > { %v8802_v59 = vpop.f32.mrf.mxu1  ;;  %v6655_v51 = vadd.f32 1.4214138, %v6643_v9  ;;  %v13139_v32 = vor.u32 %v14732_v19, %v13136_v31  ;;  %v14729_v9 = vld [vmem:[%s16446_s16 + $0x3f4] sm:$0xf]  ;;  %v13388_v19 = vld [vmem:[%s16446_s16 + $0x60c] sm:$0xf0] }
 0x9f2   : > { %v8801_v14 = vadd.f32 %v18965_v61, %v8788_v44  ;;  %v6656_v17 = vadd.f32 1.4214138, %v6644_v54  ;;  %8954 = vmatpush.bf16.msra.mxu1 %v12815_v6  ;;  %8967 = vmatpush.bf16.msrb.mxu2 %v12911_v45  ;;  %15250 = vpow2.f32 %v6761_v36  ;;  %v13127_v52 = vor.u32 %v14729_v9, %v13124_v42  ;;  %v14726_v6 = vld [vmem:[%s16446_s16 + $0x3dc] sm:$0xf]  ;;  %v13112_v45 = vld [vmem:[%s16446_s16 + $0x3e4] sm:$0xf0] }
 0x9f3   : > { %8981 = vmatmul.bf16.vlgmr.msra.gmra.mxu3 %v18569_v28  ;;  %v6667_v4 = vmul.f32 %v6655_v51, %v18993_v13  ;;  %8988 = vmatpush.bf16.msrb.mxu0 %v13163_v48  ;;  %15252 = vpow2.f32 %v6763_v38  ;;  %v6391_v51 = vsel %vm6379_vm5, 1.0, %v15982_v50  ;;  %v13400_v36 = vld [vmem:[%s16446_s16 + $0x624] sm:$0xf0]  ;;  %v14768_v38 = vld [vmem:[%s16446_s16 + $0x52c] sm:$0xf]  ;;  %v6356_v50 = vmul.f32 0.5, %v18848_v43 }
 0x9f4   : > { %9025 = vmatpush.bf16.msrb.mxu3 %v13475_v41  ;;  %v19030_v2 = vadd.f32 %v8813_v7, %v8801_v14  ;;  %v6668_v16 = vmul.f32 %v6656_v17, %v19004_v20  ;;  %v14807_v41 = vld [vmem:[%s16446_s16 + $0x664] sm:$0xf]  ;;  %v14804_v7 = vld [vmem:[%s16446_s16 + $0x64c] sm:$0xf]  ;;  %v14798_v14 = vld [vmem:[%s16446_s16 + $0x61c] sm:$0xf] }
 0x9f5   : > { %v8776_v61 = vpop.f32.mrf.mxu3  ;;  %v6679_v0 = vadd.f32 -0.28449672, %v6667_v4  ;;  %v13439_v58 = vor.u32 %v14807_v41, %v13436_v49  ;;  %v13427_v5 = vor.u32 %v14804_v7, %v13424_v56  ;;  %v13115_v4 = vor.u32 %v14726_v6, %v13112_v45  ;;  %v13376_v41 = vld [vmem:[%s16446_s16 + $0x5f4] sm:$0xf0]  ;;  %v14723_v49 = vld [vmem:[%s16446_s16 + $0x3c4] sm:$0xf] }
 0x9f6   : > { %v6680_v3 = vadd.f32 -0.28449672, %v6668_v16  ;;  %v13403_v61 = vor.u32 %v14798_v14, %v13400_v36  ;;  %v14626_v7 = vld [vmem:[%s16446_s16 + $0xb8] sm:$0xf0]  ;;  %v13379_v43 = vor.u32 %v14792_v55, %v13376_v41  ;;  %v14789_v42 = vld [vmem:[%s16446_s16 + $0x5d4] sm:$0xf] }
 0x9f7   : > { %v8815_v39 = vpop.f32.mrf.mxu2  ;;  %v6691_v29 = vmul.f32 %v6679_v0, %v18993_v13  ;;  %8989 = vmatpush.bf16.msrb.mxu0 %v13151_v60  ;;  %v14762_v6 = vld [vmem:[%s16446_s16 + $0x4fc] sm:$0xf]  ;;  %v13256_v45 = vld [vmem:[%s16446_s16 + $0x504] sm:$0xf0]  ;;  %v13244_v55 = vld [vmem:[%s16446_s16 + $0x4ec] sm:$0xf0] }
 0x9f8   : > { %9026 = vmatpush.bf16.msrb.mxu3 %v13463_v33  ;;  %v6692_v27 = vmul.f32 %v6680_v3, %v19004_v20  ;;  %v15251_v44 = vpop.eup %15250  ;;  %v14801_v33 = vld [vmem:[%s16446_s16 + $0x634] sm:$0xf]  ;;  %v13100_v39 = vld [vmem:[%s16446_s16 + $0x3cc] sm:$0xf0]  ;;  %v14840_v3 = vld [vmem:[%s16446_s16 + $0x76c] sm:$0xf] }
 0x9f9   : > { %v6703_v63 = vadd.f32 0.2548296, %v6691_v29  ;;  %v15253_v57 = vpop.eup %15252  ;;  %8942 = vmatmul.bf16.vlgmr.msra.gmra.mxu0 %v18456_v21  ;;  %v13568_v29 = vld [vmem:[%s16446_s16 + $0x774] sm:$0xf0]  ;;  %v13352_v14 = vld [vmem:[%s16446_s16 + $0x5c4] sm:$0xf0] }
 0x9fa   : > { %v6704_v35 = vadd.f32 0.2548296, %v6692_v27  ;;  %v12710_v27 = vld [vmem:[%s16446_s16 + $0xb0] sm:$0xf] }
 0x9fb   : > { %v6715_v40 = vmul.f32 %v6703_v63, %v18993_v13  ;;  %8990 = vmatpush.bf16.msrb.mxu0 %v13139_v32  ;;  %v13103_v63 = vor.u32 %v14723_v49, %v13100_v39  ;;  %v13268_v32 = vld [vmem:[%s16446_s16 + $0x51c] sm:$0xf0]  ;;  %v13340_v41 = vld [vmem:[%s16446_s16 + $0x5ac] sm:$0xf0] }
 0x9fc   : > { %9027 = vmatpush.bf16.msrb.mxu3 %v13451_v25  ;;  %v6716_v59 = vmul.f32 %v6704_v35, %v19004_v20  ;;  %v13415_v20 = vor.u32 %v14801_v33, %v13412_v30  ;;  %v13280_v25 = vld [vmem:[%s16446_s16 + $0x534] sm:$0xf0]  ;;  %v14765_v35 = vld [vmem:[%s16446_s16 + $0x514] sm:$0xf]  ;;  %v13556_v30 = vld [vmem:[%s16446_s16 + $0x75c] sm:$0xf0] }
 0x9fd   : > { %v6775_v54 = vmul.f32 %v15251_v44, %v6715_v40  ;;  %v13283_v31 = vor.u32 %v14768_v38, %v13280_v25  ;;  %v13364_v44 = vld [vmem:[%s16446_s16 + $0x5dc] sm:$0xf0]  ;;  %v14837_v33 = vld [vmem:[%s16446_s16 + $0x754] sm:$0xf]  ;;  %v14759_v25 = vld [vmem:[%s16446_s16 + $0x4e4] sm:$0xf] }
 0x9fe   : > { %v6776_v13 = vmul.f32 %v15253_v57, %v6716_v59  ;;  %v12711_v59 = vor.u32 %v14626_v7, %v12710_v27  ;;  %v13532_v39 = vld [vmem:[%s16446_s16 + $0x72c] sm:$0xf0]  ;;  %v14780_v7 = vld [vmem:[%s16446_s16 + $0x58c] sm:$0xf] }
 0x9ff   : > { %v6787_v8 = vsub.f32 1.0, %v6775_v54  ;;  %8991 = vmatpush.bf16.msrb.mxu0 %v13127_v52  ;;  %v13271_v54 = vor.u32 %v14765_v35, %v13268_v32  ;;  %v14623_v52 = vld [vmem:[%s16446_s16 + $0xa0] sm:$0xf0]  ;;  %v14828_v35 = vld [vmem:[%s16446_s16 + $0x70c] sm:$0xf] }
 0xa00   : > { %9028 = vmatpush.bf16.msrb.mxu3 %v13439_v58  ;;  %v6788_v62 = vsub.f32 1.0, %v6776_v13  ;;  %v14795_v58 = vld [vmem:[%s16446_s16 + $0x604] sm:$0xf]  ;;  %v12698_v13 = vld [vmem:[%s16446_s16 + $0x98] sm:$0xf] }
 0xa01   : > { %v6799_v17 = vmul.f32 %v6787_v8, %v6391_v51  ;;  %v13391_v9 = vor.u32 %v14795_v58, %v13388_v19  ;;  %v13559_v51 = vor.u32 %v14837_v33, %v13556_v30  ;;  %v12699_v36 = vor.u32 %v14623_v52, %v12698_v13  ;;  %v14617_v58 = vld [vmem:[%s16446_s16 + $0x70] sm:$0xf0]  ;;  %v13520_v32 = vld [vmem:[%s16446_s16 + $0x714] sm:$0xf0]  ;;  %v13220_v33 = vld [vmem:[%s16446_s16 + $0x4bc] sm:$0xf0] }
 0xa02   : > { %v6800_v48 = vmul.f32 %v6788_v62, %v6392_v53  ;;  %v14786_v62 = vld [vmem:[%s16446_s16 + $0x5bc] sm:$0xf]  ;;  %v13259_v53 = vor.u32 %v14762_v6, %v13256_v45  ;;  %v13523_v30 = vor.u32 %v14828_v35, %v13520_v32  ;;  %v13316_v13 = vld [vmem:[%s16446_s16 + $0x57c] sm:$0xf0]  ;;  %v12650_v45 = vld [vmem:[%s16446_s16 + $0x38] sm:$0xf] }
 0xa03   : > { %v6811_v16 = vadd.f32 1.0, %v6799_v17  ;;  %8992 = vmatpush.bf16.msrb.mxu0 %v13115_v4  ;;  %v14834_v17 = vld [vmem:[%s16446_s16 + $0x73c] sm:$0xf]  ;;  %v14620_v4 = vld [vmem:[%s16446_s16 + $0x88] sm:$0xf0]  ;;  %v13355_v38 = vor.u32 %v14786_v62, %v13352_v14 }
 0xa04   : > { %9029 = vmatpush.bf16.msrb.mxu3 %v13427_v5  ;;  %v6812_v0 = vadd.f32 1.0, %v6800_v48  ;;  %v13571_v5 = vor.u32 %v14840_v3, %v13568_v29  ;;  %v12686_v48 = vld [vmem:[%s16446_s16 + $0x80] sm:$0xf]  ;;  %v12674_v29 = vld [vmem:[%s16446_s16 + $0x68] sm:$0xf] }
 0xa05   : > { %v6823_v60 = vmul.f32 %v6811_v16, %v6355_v34  ;;  %v14750_v14 = vld [vmem:[%s16446_s16 + $0x49c] sm:$0xf]  ;;  %v12626_v32 = vld [vmem:[%s16446_s16 + $0x8] sm:$0xf] }
 0xa06   : > { %v6824_v26 = vmul.f32 %v6812_v0, %v6356_v50  ;;  %v12687_v50 = vor.u32 %v14620_v4, %v12686_v48  ;;  %v14831_v0 = vld [vmem:[%s16446_s16 + $0x724] sm:$0xf]  ;;  %v14822_v4 = vld [vmem:[%s16446_s16 + $0x6dc] sm:$0xf] }
 0xa07   : > { %v19072_v56 = vpack.c.bf16 %v6823_v60, %v6823_v60  ;;  %8993 = vmatpush.bf16.msrb.mxu0 %v13103_v63  ;;  %v13247_v60 = vor.u32 %v14759_v25, %v13244_v55  ;;  %v13535_v27 = vor.u32 %v14831_v0, %v13532_v39  ;;  %v12675_v63 = vor.u32 %v14617_v58, %v12674_v29  ;;  %v14747_v55 = vld [vmem:[%s16446_s16 + $0x484] sm:$0xf]  ;;  %v13292_v0 = vld [vmem:[%s16446_s16 + $0x54c] sm:$0xf0]  ;;  %v14888_v29 = vld [vmem:[%s16446_s16 + $0x8ec] sm:$0xf] }
 0xa08   : > { %9030 = vmatpush.bf16.msrb.mxu3 %v13415_v20  ;;  %v19076_v40 = vpack.c.bf16 %v6824_v26, %v6824_v26  ;;  %v13367_v20 = vor.u32 %v14789_v42, %v13364_v44  ;;  %v14756_v26 = vld [vmem:[%s16446_s16 + $0x4cc] sm:$0xf]  ;;  %v14614_v42 = vld [vmem:[%s16446_s16 + $0x58] sm:$0xf0] }
 0xa09   : > { %8903 = vmatmul.bf16.vlgmr.msrb.gmra.mxu1 %v19072_v56 }
 0xa0a   : > { %8916 = vmatmul.bf16.vlgmr.msra.gmra.mxu2 %v19076_v40  ;;  %8999 = vmatpush.bf16.msrb.mxu1 %v13283_v31  ;;  %v13232_v31 = vld [vmem:[%s16446_s16 + $0x4d4] sm:$0xf0] }
 0xa0b   : > { %9012 = vmatpush.bf16.msra.mxu2 %v13379_v43  ;;  %9038 = vmatpush.bf16.msra.mxu0 %v13571_v5  ;;  %v13328_v43 = vld [vmem:[%s16446_s16 + $0x594] sm:$0xf0]  ;;  %v13235_v5 = vor.u32 %v14756_v26, %v13232_v31  ;;  %v14819_v26 = vld [vmem:[%s16446_s16 + $0x6c4] sm:$0xf]  ;;  %v13484_v31 = vld [vmem:[%s16446_s16 + $0x6cc] sm:$0xf0] }
 0xa0c   : > { %9031 = vmatpush.bf16.msrb.mxu3 %v13403_v61  ;;  %8994 = vmatmul.bf16.vlgmr.msrb.gmra.mxu0 %v18631_v1  ;;  %v14783_v61 = vld [vmem:[%s16446_s16 + $0x5a4] sm:$0xf]  ;;  %v13331_v44 = vor.u32 %v14780_v7, %v13328_v43  ;;  %v12806_v7 = vld [vmem:[%s16446_s16 + $0x170] sm:$0xf]  ;;  %v14650_v43 = vld [vmem:[%s16446_s16 + $0x178] sm:$0xf0] }
 0xa0d   : > { %v8826_v57 = vpop.f32.mrf.mxu3  ;;  %v13343_v19 = vor.u32 %v14783_v61, %v13340_v41  ;;  %v13196_v41 = vld [vmem:[%s16446_s16 + $0x48c] sm:$0xf0] }
 0xa0e   : > { %v8827_v8 = vadd.f32 %v8826_v57, %v19030_v2  ;;  %v13544_v2 = vld [vmem:[%s16446_s16 + $0x744] sm:$0xf0]  ;;  %9000 = vmatpush.bf16.msrb.mxu1 %v13271_v54  ;;  %v14777_v54 = vld [vmem:[%s16446_s16 + $0x574] sm:$0xf] }
 0xa0f   : > { %9013 = vmatpush.bf16.msra.mxu2 %v13367_v20  ;;  %9039 = vmatpush.bf16.msra.mxu0 %v13559_v51  ;;  %v13547_v34 = vor.u32 %v14834_v17, %v13544_v2  ;;  %v13508_v20 = vld [vmem:[%s16446_s16 + $0x6fc] sm:$0xf0]  ;;  %v14611_v51 = vld [vmem:[%s16446_s16 + $0x40] sm:$0xf0]  ;;  %v13319_v62 = vor.u32 %v14777_v54, %v13316_v13  ;;  %v14774_v2 = vld [vmem:[%s16446_s16 + $0x55c] sm:$0xf] }
 0xa10   : > { %9032 = vmatpush.bf16.msrb.mxu3 %v13391_v9  ;;  %v8839_v16 = vpop.f32.mrf.mxu0  ;;  %v12662_v9 = vld [vmem:[%s16446_s16 + $0x50] sm:$0xf]  ;;  %v12651_v48 = vor.u32 %v14611_v51, %v12650_v45  ;;  %v14722_v13 = vld [vmem:[%s16446_s16 + $0x3b8] sm:$0xf0] }
 0xa11   : > { %v19101_v49 = vadd.f32 %v8839_v16, %v8827_v8  ;;  %v12663_v52 = vor.u32 %v14614_v42, %v12662_v9  ;;  %v14825_v8 = vld [vmem:[%s16446_s16 + $0x6f4] sm:$0xf]  ;;  %v14608_v16 = vld [vmem:[%s16446_s16 + $0x28] sm:$0xf0]  ;;  %v13487_v42 = vor.u32 %v14819_v26, %v13484_v31  ;;  %v13094_v54 = vld [vmem:[%s16446_s16 + $0x3b0] sm:$0xf] }
 0xa12   : > { %9001 = vmatpush.bf16.msrb.mxu1 %v13259_v53  ;;  %v13511_v17 = vor.u32 %v14825_v8, %v13508_v20  ;;  %v13304_v53 = vld [vmem:[%s16446_s16 + $0x564] sm:$0xf0]  ;;  %v12794_v8 = vld [vmem:[%s16446_s16 + $0x158] sm:$0xf]  ;;  %v14647_v20 = vld [vmem:[%s16446_s16 + $0x160] sm:$0xf0]  ;;  %v13095_v51 = vor.u32 %v14722_v13, %v13094_v54 }
 0xa13   : > { %9033 = vmatmul.bf16.vlgmr.msrb.gmra.mxu3 %v18839_v37  ;;  %9014 = vmatpush.bf16.msra.mxu2 %v13355_v38  ;;  %v13496_v38 = vld [vmem:[%s16446_s16 + $0x6e4] sm:$0xf0]  ;;  %v13307_v61 = vor.u32 %v14774_v2, %v13304_v53  ;;  %v13082_v53 = vld [vmem:[%s16446_s16 + $0x398] sm:$0xf]  ;;  %v14849_v54 = vld [vmem:[%s16446_s16 + $0x7b4] sm:$0xf] }
 0xa14   : > { %9077 = vmatpush.bf16.msra.mxu3 %v12711_v59  ;;  %9040 = vmatpush.bf16.msra.mxu0 %v13547_v34  ;;  %v14753_v59 = vld [vmem:[%s16446_s16 + $0x4b4] sm:$0xf]  ;;  %v12638_v34 = vld [vmem:[%s16446_s16 + $0x20] sm:$0xf]  ;;  %v13499_v39 = vor.u32 %v14822_v4, %v13496_v38  ;;  %v13736_v2 = vld [vmem:[%s16446_s16 + $0x8c4] sm:$0xf0] }
 0xa15   : > { %v8828_v3 = vpop.f32.mrf.mxu3  ;;  %v13223_v6 = vor.u32 %v14753_v59, %v13220_v33  ;;  %v12639_v58 = vor.u32 %v14608_v16, %v12638_v34  ;;  %v13652_v59 = vld [vmem:[%s16446_s16 + $0x81c] sm:$0xf0]  ;;  %v14885_v33 = vld [vmem:[%s16446_s16 + $0x8d4] sm:$0xf]  ;;  %v14644_v38 = vld [vmem:[%s16446_s16 + $0x148] sm:$0xf0] }
 0xa16   : > { %9002 = vmatpush.bf16.msrb.mxu1 %v13247_v60  ;;  %v14864_v3 = vld [vmem:[%s16446_s16 + $0x82c] sm:$0xf]  ;;  %v13664_v60 = vld [vmem:[%s16446_s16 + $0x834] sm:$0xf0]  ;;  %v12782_v4 = vld [vmem:[%s16446_s16 + $0x140] sm:$0xf] }
 0xa17   : > { %9015 = vmatpush.bf16.msra.mxu2 %v13343_v19  ;;  %v13760_v19 = vld [vmem:[%s16446_s16 + $0x8f4] sm:$0xf0]  ;;  %v13667_v35 = vor.u32 %v14864_v3, %v13664_v60  ;;  %v13724_v3 = vld [vmem:[%s16446_s16 + $0x8ac] sm:$0xf0]  ;;  %v13070_v60 = vld [vmem:[%s16446_s16 + $0x380] sm:$0xf] }
 0xa18   : > { %9078 = vmatpush.bf16.msra.mxu3 %v12699_v36  ;;  %9041 = vmatpush.bf16.msra.mxu0 %v13535_v27  ;;  %v8841_v57 = vpop.f32.mrf.mxu0  ;;  %v13208_v36 = vld [vmem:[%s16446_s16 + $0x4a4] sm:$0xf0]  ;;  %v13199_v27 = vor.u32 %v14747_v55, %v13196_v41  ;;  %v13763_v9 = vor.u32 %v14888_v29, %v13760_v19  ;;  %v13628_v41 = vld [vmem:[%s16446_s16 + $0x7ec] sm:$0xf0]  ;;  %v14716_v29 = vld [vmem:[%s16446_s16 + $0x388] sm:$0xf0] }
 0xa19   : > { %8955 = vmatmul.bf16.vlgmr.msra.gmra.mxu1 %v18458_v12  ;;  %v13211_v25 = vor.u32 %v14750_v14, %v13208_v36  ;;  %v13748_v57 = vld [vmem:[%s16446_s16 + $0x8dc] sm:$0xf0]  ;;  %v13640_v14 = vld [vmem:[%s16446_s16 + $0x804] sm:$0xf0]  ;;  %v14882_v36 = vld [vmem:[%s16446_s16 + $0x8bc] sm:$0xf]  ;;  %v13071_v31 = vor.u32 %v14716_v29, %v13070_v60 }
 0xa1a   : > { %8968 = vmatmul.bf16.vlgmr.msrb.gmra.mxu2 %v18460_v10  ;;  %9003 = vmatpush.bf16.msrb.mxu1 %v13235_v5  ;;  %v14605_v5 = vld [vmem:[%s16446_s16 + $0x10] sm:$0xf0]  ;;  %v13751_v45 = vor.u32 %v14885_v33, %v13748_v57  ;;  %v13739_v55 = vor.u32 %v14882_v36, %v13736_v2  ;;  %v13604_v13 = vld [vmem:[%s16446_s16 + $0x7bc] sm:$0xf0]  ;;  %v14846_v2 = vld [vmem:[%s16446_s16 + $0x79c] sm:$0xf] }
 0xa1b   : > { %9016 = vmatpush.bf16.msra.mxu2 %v13331_v44  ;;  %v14861_v44 = vld [vmem:[%s16446_s16 + $0x814] sm:$0xf]  ;;  %v14867_v60 = vld [vmem:[%s16446_s16 + $0x844] sm:$0xf]  ;;  %v13676_v29 = vld [vmem:[%s16446_s16 + $0x84c] sm:$0xf0] }
 0xa1c   : > { %9079 = vmatpush.bf16.msra.mxu3 %v12687_v50  ;;  %9042 = vmatpush.bf16.msra.mxu0 %v13523_v30  ;;  %v14771_v50 = vld [vmem:[%s16446_s16 + $0x544] sm:$0xf]  ;;  %v12807_v30 = vor.u32 %v14650_v43, %v12806_v7  ;;  %v14641_v19 = vld [vmem:[%s16446_s16 + $0x130] sm:$0xf0]  ;;  %v13616_v7 = vld [vmem:[%s16446_s16 + $0x7d4] sm:$0xf0] }
 0xa1e   : > { %9004 = vmatpush.bf16.msrb.mxu1 %v13223_v6  ;;  %v13655_v6 = vor.u32 %v14861_v44, %v13652_v59 }
 0xa1f   : > { %9017 = vmatpush.bf16.msra.mxu2 %v13319_v62  ;;  %v14858_v62 = vld [vmem:[%s16446_s16 + $0x7fc] sm:$0xf] }
 0xa20   : > { %9080 = vmatpush.bf16.msra.mxu3 %v12675_v63  ;;  %9043 = vmatpush.bf16.msra.mxu0 %v13511_v17  ;;  %v13295_v63 = vor.u32 %v14771_v50, %v13292_v0  ;;  %v12795_v17 = vor.u32 %v14647_v20, %v12794_v8  ;;  %v14879_v50 = vld [vmem:[%s16446_s16 + $0x8a4] sm:$0xf]  ;;  %v13700_v20 = vld [vmem:[%s16446_s16 + $0x87c] sm:$0xf0] }
 0xa22   : > { %9005 = vmatpush.bf16.msrb.mxu1 %v13211_v25  ;;  %v13643_v25 = vor.u32 %v14858_v62, %v13640_v14  ;;  %v14635_v62 = vld [vmem:[%s16446_s16 + $0x100] sm:$0xf0]  ;;  %v13607_v14 = vor.u32 %v14849_v54, %v13604_v13  ;;  %v12890_v54 = vld [vmem:[%s16446_s16 + $0x218] sm:$0xf] }
 0xa23   : > { %9018 = vmatpush.bf16.msra.mxu2 %v13307_v61  ;;  %v14855_v61 = vld [vmem:[%s16446_s16 + $0x7e4] sm:$0xf] }
 0xa24   : > { %9081 = vmatpush.bf16.msra.mxu3 %v12663_v52  ;;  %9044 = vmatpush.bf16.msra.mxu0 %v13499_v39  ;;  %v12627_v52 = vor.u32 %v14605_v5, %v12626_v32  ;;  %v12783_v39 = vor.u32 %v14644_v38, %v12782_v4  ;;  %v13631_v26 = vor.u32 %v14855_v61, %v13628_v41  ;;  %v14713_v32 = vld [vmem:[%s16446_s16 + $0x370] sm:$0xf0]  ;;  %v12758_v5 = vld [vmem:[%s16446_s16 + $0x110] sm:$0xf]  ;;  %v13688_v38 = vld [vmem:[%s16446_s16 + $0x864] sm:$0xf0] }
 0xa25   : > { %v14671_v13 = vld [vmem:[%s16446_s16 + $0x220] sm:$0xf0] }
 0xa26   : > { %9006 = vmatpush.bf16.msrb.mxu1 %v13199_v27  ;;  %v14852_v27 = vld [vmem:[%s16446_s16 + $0x7cc] sm:$0xf] }
 0xa27   : > { %9019 = vmatpush.bf16.msra.mxu2 %v13295_v63  ;;  %v13712_v63 = vld [vmem:[%s16446_s16 + $0x894] sm:$0xf0]  ;;  %v13619_v44 = vor.u32 %v14852_v27, %v13616_v7  ;;  %v12998_v27 = vld [vmem:[%s16446_s16 + $0x2f0] sm:$0xf]  ;;  %v14698_v7 = vld [vmem:[%s16446_s16 + $0x2f8] sm:$0xf0] }
 0xa28   : > { %9082 = vmatpush.bf16.msra.mxu3 %v12651_v48  ;;  %9045 = vmatpush.bf16.msra.mxu0 %v13487_v42  ;;  %v14719_v48 = vld [vmem:[%s16446_s16 + $0x3a0] sm:$0xf0] }
 0xa29   : > { %9007 = vmatmul.bf16.vlgmr.msrb.gmra.mxu1 %v18710_v11  ;;  %v13083_v34 = vor.u32 %v14719_v48, %v13082_v53  ;;  %v13592_v53 = vld [vmem:[%s16446_s16 + $0x7a4] sm:$0xf0]  ;;  %v14870_v48 = vld [vmem:[%s16446_s16 + $0x85c] sm:$0xf] }
 0xa2a   : > { %9051 = vmatpush.bf16.msra.mxu1 %v13667_v35  ;;  %9020 = vmatmul.bf16.vlgmr.msra.gmra.mxu2 %v18714_v46  ;;  %v8852_v16 = vpop.f32.mrf.mxu1  ;;  %v13058_v35 = vld [vmem:[%s16446_s16 + $0x368] sm:$0xf]  ;;  %v13595_v41 = vor.u32 %v14846_v2, %v13592_v53  ;;  %v12878_v53 = vld [vmem:[%s16446_s16 + $0x200] sm:$0xf] }
 0xa2b   : > { %9064 = vmatpush.bf16.msrb.mxu2 %v13763_v9  ;;  %9046 = vmatmul.bf16.vlgmr.msra.gmra.mxu0 %v19001_v47  ;;  %v8853_v0 = vadd.f32 %v8852_v16, %v19101_v49  ;;  %v14876_v49 = vld [vmem:[%s16446_s16 + $0x88c] sm:$0xf]  ;;  %v14638_v9 = vld [vmem:[%s16446_s16 + $0x118] sm:$0xf0] }
 0xa2c   : > { %9083 = vmatpush.bf16.msra.mxu3 %v12639_v58  ;;  %9090 = vmatpush.bf16.msrb.mxu0 %v12807_v30  ;;  %v12770_v58 = vld [vmem:[%s16446_s16 + $0x128] sm:$0xf]  ;;  %v13715_v33 = vor.u32 %v14876_v49, %v13712_v63  ;;  %v13059_v30 = vor.u32 %v14713_v32, %v13058_v35  ;;  %v12759_v8 = vor.u32 %v14638_v9, %v12758_v5  ;;  %v14632_v16 = vld [vmem:[%s16446_s16 + $0xe8] sm:$0xf0]  ;;  %v14629_v63 = vld [vmem:[%s16446_s16 + $0xd0] sm:$0xf0] }
 0xa2d   : > { %v12771_v43 = vor.u32 %v14641_v19, %v12770_v58  ;;  %v13022_v19 = vld [vmem:[%s16446_s16 + $0x320] sm:$0xf]  ;;  %v13679_v35 = vor.u32 %v14867_v60, %v13676_v29  ;;  %v13190_v5 = vld [vmem:[%s16446_s16 + $0x470] sm:$0xf]  ;;  %v14746_v9 = vld [vmem:[%s16446_s16 + $0x478] sm:$0xf0] }
 0xa2e   : > { %9052 = vmatpush.bf16.msra.mxu1 %v13655_v6  ;;  %v13046_v6 = vld [vmem:[%s16446_s16 + $0x350] sm:$0xf]  ;;  %v12962_v60 = vld [vmem:[%s16446_s16 + $0x2a8] sm:$0xf] }
 0xa2f   : > { %9065 = vmatpush.bf16.msrb.mxu2 %v13751_v45  ;;  %v14710_v45 = vld [vmem:[%s16446_s16 + $0x358] sm:$0xf0] }
 0xa30   : > { %9084 = vmatpush.bf16.msra.mxu3 %v12627_v52  ;;  %9091 = vmatpush.bf16.msrb.mxu0 %v12795_v17  ;;  %v8865_v42 = vpop.f32.mrf.mxu2  ;;  %v14873_v52 = vld [vmem:[%s16446_s16 + $0x874] sm:$0xf]  ;;  %v13047_v17 = vor.u32 %v14710_v45, %v13046_v6  ;;  %v13478_v6 = vld [vmem:[%s16446_s16 + $0x6b0] sm:$0xf]  ;;  %v14818_v45 = vld [vmem:[%s16446_s16 + $0x6b8] sm:$0xf0] }
 0xa31   : > { %v19184_v59 = vadd.f32 %v8865_v42, %v8853_v0  ;;  %v13703_v36 = vor.u32 %v14873_v52, %v13700_v20  ;;  %v13691_v0 = vor.u32 %v14870_v48, %v13688_v38  ;;  %v12986_v52 = vld [vmem:[%s16446_s16 + $0x2d8] sm:$0xf]  ;;  %v14695_v20 = vld [vmem:[%s16446_s16 + $0x2e0] sm:$0xf0]  ;;  %v13479_v2 = vor.u32 %v14818_v45, %v13478_v6  ;;  %v14668_v48 = vld [vmem:[%s16446_s16 + $0x208] sm:$0xf0] }
 0xa32   : > { %9053 = vmatpush.bf16.msra.mxu1 %v13643_v25  ;;  %v8854_v57 = vpop.f32.mrf.mxu1  ;;  %v13034_v25 = vld [vmem:[%s16446_s16 + $0x338] sm:$0xf]  ;;  %v14806_v6 = vld [vmem:[%s16446_s16 + $0x658] sm:$0xf0] }
 0xa33   : > { %9085 = vmatmul.bf16.vlgmr.msra.gmra.mxu3 %v18454_v15  ;;  %9066 = vmatpush.bf16.msrb.mxu2 %v13739_v55  ;;  %v13727_v15 = vor.u32 %v14879_v50, %v13724_v3  ;;  %v14707_v55 = vld [vmem:[%s16446_s16 + $0x340] sm:$0xf0]  ;;  %v13580_v3 = vld [vmem:[%s16446_s16 + $0x78c] sm:$0xf0] }
 0xa34   : > { %9129 = vmatpush.bf16.msrb.mxu3 %v13095_v51  ;;  %9092 = vmatpush.bf16.msrb.mxu0 %v12783_v39  ;;  %v12746_v51 = vld [vmem:[%s16446_s16 + $0xf8] sm:$0xf]  ;;  %v14843_v50 = vld [vmem:[%s16446_s16 + $0x784] sm:$0xf]  ;;  %v13035_v39 = vor.u32 %v14707_v55, %v13034_v25  ;;  %v14692_v25 = vld [vmem:[%s16446_s16 + $0x2c8] sm:$0xf0] }
 0xa35   : > { %v12747_v4 = vor.u32 %v14635_v62, %v12746_v51  ;;  %v13583_v49 = vor.u32 %v14843_v50, %v13580_v3  ;;  %v13178_v62 = vld [vmem:[%s16446_s16 + $0x458] sm:$0xf]  ;;  %v14665_v3 = vld [vmem:[%s16446_s16 + $0x1f0] sm:$0xf0] }
 0xa36   : > { %9054 = vmatpush.bf16.msra.mxu1 %v13631_v26  ;;  %v14704_v26 = vld [vmem:[%s16446_s16 + $0x328] sm:$0xf0]  ;;  %v13466_v55 = vld [vmem:[%s16446_s16 + $0x698] sm:$0xf] }
 0xa37   : > { %9067 = vmatpush.bf16.msrb.mxu2 %v13727_v15  ;;  %v12902_v15 = vld [vmem:[%s16446_s16 + $0x230] sm:$0xf]  ;;  %v13023_v32 = vor.u32 %v14704_v26, %v13022_v19  ;;  %v14812_v19 = vld [vmem:[%s16446_s16 + $0x688] sm:$0xf0]  ;;  %v13154_v26 = vld [vmem:[%s16446_s16 + $0x428] sm:$0xf] }
 0xa38   : > { %9130 = vmatpush.bf16.msrb.mxu3 %v13083_v34  ;;  %9093 = vmatpush.bf16.msrb.mxu0 %v12771_v43  ;;  %v12734_v34 = vld [vmem:[%s16446_s16 + $0xe0] sm:$0xf]  ;;  %v8867_v61 = vpop.f32.mrf.mxu2  ;;  %v12722_v43 = vld [vmem:[%s16446_s16 + $0xc8] sm:$0xf] }
 0xa39   : > { %v12735_v58 = vor.u32 %v14632_v16, %v12734_v34  ;;  %v12723_v57 = vor.u32 %v14629_v63, %v12722_v43  ;;  %v14815_v34 = vld [vmem:[%s16446_s16 + $0x6a0] sm:$0xf0]  ;;  %v13166_v16 = vld [vmem:[%s16446_s16 + $0x440] sm:$0xf]  ;;  %v14740_v61 = vld [vmem:[%s16446_s16 + $0x448] sm:$0xf0] }
 0xa3a   : > { %9055 = vmatpush.bf16.msra.mxu1 %v13619_v44  ;;  %v12999_v44 = vor.u32 %v14698_v7, %v12998_v27  ;;  %v13167_v29 = vor.u32 %v14740_v61, %v13166_v16  ;;  %v12950_v43 = vld [vmem:[%s16446_s16 + $0x290] sm:$0xf]  ;;  %v14728_v16 = vld [vmem:[%s16446_s16 + $0x3e8] sm:$0xf0] }
 0xa3b   : > { %9068 = vmatpush.bf16.msrb.mxu2 %v13715_v33  ;;  %v13010_v33 = vld [vmem:[%s16446_s16 + $0x308] sm:$0xf] }
 0xa3c   : > { %9131 = vmatpush.bf16.msrb.mxu3 %v13071_v31  ;;  %9094 = vmatpush.bf16.msrb.mxu0 %v12759_v8  ;;  %v14674_v31 = vld [vmem:[%s16446_s16 + $0x238] sm:$0xf0]  ;;  %v13191_v8 = vor.u32 %v14746_v9, %v13190_v5  ;;  %v14809_v5 = vld [vmem:[%s16446_s16 + $0x670] sm:$0xf0]  ;;  %v13142_v9 = vld [vmem:[%s16446_s16 + $0x410] sm:$0xf] }
 0xa3d   : > { %v12903_v42 = vor.u32 %v14674_v31, %v12902_v15  ;;  %v14737_v15 = vld [vmem:[%s16446_s16 + $0x430] sm:$0xf0] }
 0xa3e   : > { %9056 = vmatpush.bf16.msra.mxu1 %v13607_v14  ;;  %v14743_v14 = vld [vmem:[%s16446_s16 + $0x460] sm:$0xf0]  ;;  %v13155_v63 = vor.u32 %v14737_v15, %v13154_v26  ;;  %v14770_v15 = vld [vmem:[%s16446_s16 + $0x538] sm:$0xf0] }
 0xa3f   : > { %9069 = vmatpush.bf16.msrb.mxu2 %v13703_v36  ;;  %v12891_v36 = vor.u32 %v14671_v13, %v12890_v54  ;;  %v13179_v38 = vor.u32 %v14743_v14, %v13178_v62  ;;  %v14659_v54 = vld [vmem:[%s16446_s16 + $0x1c0] sm:$0xf0]  ;;  %v12938_v13 = vld [vmem:[%s16446_s16 + $0x278] sm:$0xf] }
 0xa40   : > { %9132 = vmatpush.bf16.msrb.mxu3 %v13059_v30  ;;  %9095 = vmatpush.bf16.msrb.mxu0 %v12747_v4  ;;  %v14701_v30 = vld [vmem:[%s16446_s16 + $0x310] sm:$0xf0]  ;;  %v12974_v4 = vld [vmem:[%s16446_s16 + $0x2c0] sm:$0xf]  ;;  %v14731_v62 = vld [vmem:[%s16446_s16 + $0x400] sm:$0xf0] }
 0xa41   : > { %v13011_v51 = vor.u32 %v14701_v30, %v13010_v33  ;;  %v12975_v50 = vor.u32 %v14692_v25, %v12974_v4  ;;  %v13418_v25 = vld [vmem:[%s16446_s16 + $0x638] sm:$0xf] }
 0xa42   : > { %9057 = vmatpush.bf16.msra.mxu1 %v13595_v41  ;;  %v12879_v41 = vor.u32 %v14668_v48, %v12878_v53  ;;  %v14656_v53 = vld [vmem:[%s16446_s16 + $0x1a8] sm:$0xf0]  ;;  %v12926_v48 = vld [vmem:[%s16446_s16 + $0x260] sm:$0xf] }
 0xa43   : > { %9070 = vmatpush.bf16.msrb.mxu2 %v13691_v0  ;;  %v13467_v0 = vor.u32 %v14815_v34, %v13466_v55  ;;  %v14803_v55 = vld [vmem:[%s16446_s16 + $0x640] sm:$0xf0]  ;;  %v13118_v34 = vld [vmem:[%s16446_s16 + $0x3e0] sm:$0xf] }
 0xa44   : > { %9133 = vmatpush.bf16.msrb.mxu3 %v13047_v17  ;;  %9096 = vmatpush.bf16.msrb.mxu0 %v12735_v58  ;;  %v12987_v17 = vor.u32 %v14695_v20, %v12986_v52  ;;  %v14689_v58 = vld [vmem:[%s16446_s16 + $0x2b0] sm:$0xf0]  ;;  %v13430_v20 = vld [vmem:[%s16446_s16 + $0x650] sm:$0xf] }
 0xa45   : > { %v12963_v27 = vor.u32 %v14689_v58, %v12962_v60  ;;  %v14677_v60 = vld [vmem:[%s16446_s16 + $0x250] sm:$0xf0]  ;;  %v13406_v58 = vld [vmem:[%s16446_s16 + $0x620] sm:$0xf] }
 0xa46   : > { %9058 = vmatpush.bf16.msra.mxu1 %v13583_v49  ;;  %v14662_v49 = vld [vmem:[%s16446_s16 + $0x1d8] sm:$0xf0] }
 0xa47   : > { %9071 = vmatpush.bf16.msrb.mxu2 %v13679_v35  ;;  %v14686_v35 = vld [vmem:[%s16446_s16 + $0x298] sm:$0xf0] }
 0xa48   : > { %9134 = vmatpush.bf16.msrb.mxu3 %v13035_v39  ;;  %9097 = vmatpush.bf16.msrb.mxu0 %v12723_v57  ;;  %v12866_v39 = vld [vmem:[%s16446_s16 + $0x1e8] sm:$0xf]  ;;  %v12951_v33 = vor.u32 %v14686_v35, %v12950_v43  ;;  %v12842_v57 = vld [vmem:[%s16446_s16 + $0x1b8] sm:$0xf]  ;;  %v13574_v35 = vld [vmem:[%s16446_s16 + $0x770] sm:$0xf] }
 0xa49   : > { %9059 = vmatmul.bf16.vlgmr.msra.gmra.mxu1 %v19072_v56  ;;  %v12867_v31 = vor.u32 %v14665_v3, %v12866_v39  ;;  %v12843_v14 = vor.u32 %v14659_v54, %v12842_v57  ;;  %v14653_v39 = vld [vmem:[%s16446_s16 + $0x190] sm:$0xf0]  ;;  %v12914_v3 = vld [vmem:[%s16446_s16 + $0x248] sm:$0xf]  ;;  %v14767_v57 = vld [vmem:[%s16446_s16 + $0x520] sm:$0xf0] }
 0xa4a   : > { %9103 = vmatpush.bf16.msrb.mxu1 %v12903_v42  ;;  %9072 = vmatmul.bf16.vlgmr.msrb.gmra.mxu2 %v19076_v40  ;;  %v14734_v42 = vld [vmem:[%s16446_s16 + $0x418] sm:$0xf0]  ;;  %v12915_v43 = vor.u32 %v14677_v60, %v12914_v3 }
 0xa4b   : > { %9116 = vmatpush.bf16.msra.mxu2 %v12999_v44  ;;  %9098 = vmatmul.bf16.vlgmr.msrb.gmra.mxu0 %v18456_v21  ;;  %v13454_v21 = vld [vmem:[%s16446_s16 + $0x680] sm:$0xf]  ;;  %v13143_v52 = vor.u32 %v14734_v42, %v13142_v9  ;;  %v13394_v42 = vld [vmem:[%s16446_s16 + $0x608] sm:$0xf]  ;;  %v14758_v60 = vld [vmem:[%s16446_s16 + $0x4d8] sm:$0xf0] }
 0xa4c   : > { %9135 = vmatpush.bf16.msrb.mxu3 %v13023_v32  ;;  %9142 = vmatpush.bf16.msra.mxu0 %v13191_v8  ;;  %v13455_v7 = vor.u32 %v14812_v19, %v13454_v21  ;;  %v13442_v32 = vld [vmem:[%s16446_s16 + $0x668] sm:$0xf]  ;;  %v14683_v8 = vld [vmem:[%s16446_s16 + $0x280] sm:$0xf0]  ;;  %v14800_v21 = vld [vmem:[%s16446_s16 + $0x628] sm:$0xf0] }
 0xa4d   : > { %v13443_v30 = vor.u32 %v14809_v5, %v13442_v32  ;;  %v13286_v19 = vld [vmem:[%s16446_s16 + $0x530] sm:$0xf]  ;;  %v14842_v32 = vld [vmem:[%s16446_s16 + $0x778] sm:$0xf0] }
 0xa4e   : > { %9104 = vmatpush.bf16.msrb.mxu1 %v12891_v36  ;;  %v12939_v36 = vor.u32 %v14683_v8, %v12938_v13  ;;  %v13287_v5 = vor.u32 %v14770_v15, %v13286_v19  ;;  %v13575_v54 = vor.u32 %v14842_v32, %v13574_v35  ;;  %v13370_v13 = vld [vmem:[%s16446_s16 + $0x5d8] sm:$0xf]  ;;  %v13526_v19 = vld [vmem:[%s16446_s16 + $0x710] sm:$0xf]  ;;  %v14827_v32 = vld [vmem:[%s16446_s16 + $0x700] sm:$0xf0] }
 0xa4f   : > { %9117 = vmatpush.bf16.msra.mxu2 %v12987_v17  ;;  %v13431_v17 = vor.u32 %v14806_v6, %v13430_v20  ;;  %v13562_v20 = vld [vmem:[%s16446_s16 + $0x758] sm:$0xf]  ;;  %v14839_v6 = vld [vmem:[%s16446_s16 + $0x760] sm:$0xf0] }
 0xa50   : > { %9136 = vmatpush.bf16.msrb.mxu3 %v13011_v51  ;;  %9143 = vmatpush.bf16.msra.mxu0 %v13179_v38  ;;  %v13130_v51 = vld [vmem:[%s16446_s16 + $0x3f8] sm:$0xf]  ;;  %v14680_v38 = vld [vmem:[%s16446_s16 + $0x268] sm:$0xf0] }
 0xa51   : > { %v13131_v4 = vor.u32 %v14731_v62, %v13130_v51  ;;  %v13514_v35 = vld [vmem:[%s16446_s16 + $0x6f8] sm:$0xf] }
 0xa52   : > { %9105 = vmatpush.bf16.msrb.mxu1 %v12879_v41  ;;  %v12818_v41 = vld [vmem:[%s16446_s16 + $0x188] sm:$0xf] }
 0xa53   : > { %9137 = vmatmul.bf16.vlgmr.msrb.gmra.mxu3 %v18569_v28  ;;  %9118 = vmatpush.bf16.msra.mxu2 %v12975_v50  ;;  %v12854_v28 = vld [vmem:[%s16446_s16 + $0x1d0] sm:$0xf]  ;;  %v12927_v50 = vor.u32 %v14680_v38, %v12926_v48  ;;  %v14788_v48 = vld [vmem:[%s16446_s16 + $0x5c8] sm:$0xf0] }
 0xa54   : > { %9181 = vmatpush.bf16.msra.mxu3 %v13479_v2  ;;  %9144 = vmatpush.bf16.msra.mxu0 %v13167_v29  ;;  %v12855_v44 = vor.u32 %v14662_v49, %v12854_v28  ;;  %v12830_v2 = vld [vmem:[%s16446_s16 + $0x1a0] sm:$0xf]  ;;  %v13119_v29 = vor.u32 %v14728_v16, %v13118_v34  ;;  %v13106_v28 = vld [vmem:[%s16446_s16 + $0x3c8] sm:$0xf]  ;;  %v14725_v49 = vld [vmem:[%s16446_s16 + $0x3d0] sm:$0xf0] }
 0xa55   : > { %v12831_v61 = vor.u32 %v14656_v53, %v12830_v2  ;;  %v13563_v2 = vor.u32 %v14839_v6, %v13562_v20  ;;  %v13358_v53 = vld [vmem:[%s16446_s16 + $0x5c0] sm:$0xf]  ;;  %v13346_v16 = vld [vmem:[%s16446_s16 + $0x5a8] sm:$0xf] }
 0xa56   : > { %9106 = vmatpush.bf16.msrb.mxu1 %v12867_v31  ;;  %v19260_v45 = vpop.f32.mrf.mxu3  ;;  %v13382_v31 = vld [vmem:[%s16446_s16 + $0x5f0] sm:$0xf]  ;;  %v13202_v20 = vld [vmem:[%s16446_s16 + $0x488] sm:$0xf] }
 0xa57   : > { %9119 = vmatpush.bf16.msra.mxu2 %v12963_v27  ;;  %v14794_v27 = vld [vmem:[%s16446_s16 + $0x5f8] sm:$0xf0] }
 0xa58   : > { %9182 = vmatpush.bf16.msra.mxu3 %v13467_v0  ;;  %9145 = vmatpush.bf16.msra.mxu0 %v13155_v63  ;;  %v13419_v0 = vor.u32 %v14803_v55, %v13418_v25  ;;  %v13407_v63 = vor.u32 %v14800_v21, %v13406_v58  ;;  %v13383_v9 = vor.u32 %v14794_v27, %v13382_v31  ;;  %v13250_v55 = vld [vmem:[%s16446_s16 + $0x4e8] sm:$0xf]  ;;  %v13334_v58 = vld [vmem:[%s16446_s16 + $0x590] sm:$0xf]  ;;  %v14782_v21 = vld [vmem:[%s16446_s16 + $0x598] sm:$0xf0] }
 0xa59   : > { %v13359_v25 = vor.u32 %v14788_v48, %v13358_v53  ;;  %v13335_v31 = vor.u32 %v14782_v21, %v13334_v58  ;;  %v13226_v27 = vld [vmem:[%s16446_s16 + $0x4b8] sm:$0xf]  ;;  %v14866_v53 = vld [vmem:[%s16446_s16 + $0x838] sm:$0xf0]  ;;  %v13766_v48 = vld [vmem:[%s16446_s16 + $0x8f0] sm:$0xf] }
 0xa5a   : > { %9107 = vmatpush.bf16.msrb.mxu1 %v12855_v44  ;;  %v14797_v44 = vld [vmem:[%s16446_s16 + $0x610] sm:$0xf0]  ;;  %v14860_v58 = vld [vmem:[%s16446_s16 + $0x808] sm:$0xf0] }
 0xa5b   : > { %9120 = vmatpush.bf16.msra.mxu2 %v12951_v33  ;;  %v13107_v33 = vor.u32 %v14725_v49, %v13106_v28  ;;  %v13395_v8 = vor.u32 %v14797_v44, %v13394_v42  ;;  %v13322_v49 = vld [vmem:[%s16446_s16 + $0x578] sm:$0xf]  ;;  %v13214_v44 = vld [vmem:[%s16446_s16 + $0x4a0] sm:$0xf] }
 0xa5c   : > { %9183 = vmatpush.bf16.msra.mxu3 %v13455_v7  ;;  %9146 = vmatpush.bf16.msra.mxu0 %v13143_v52  ;;  %v12819_v7 = vor.u32 %v14653_v39, %v12818_v41  ;;  %v14791_v52 = vld [vmem:[%s16446_s16 + $0x5e0] sm:$0xf0] }
 0xa5d   : > { %v13371_v62 = vor.u32 %v14791_v52, %v13370_v13  ;;  %v13502_v13 = vld [vmem:[%s16446_s16 + $0x6e0] sm:$0xf]  ;;  %v14824_v52 = vld [vmem:[%s16446_s16 + $0x6e8] sm:$0xf0] }
 0xa5e   : > { %9108 = vmatpush.bf16.msrb.mxu1 %v12843_v14  ;;  %v8880_v26 = vpop.f32.mrf.mxu3 }
 0xa5f   : > { %9121 = vmatpush.bf16.msra.mxu2 %v12939_v36  ;;  %v13262_v36 = vld [vmem:[%s16446_s16 + $0x500] sm:$0xf]  ;;  %v14830_v26 = vld [vmem:[%s16446_s16 + $0x718] sm:$0xf0] }
 0xa60   : > { %9184 = vmatpush.bf16.msra.mxu3 %v13443_v30  ;;  %9147 = vmatpush.bf16.msra.mxu0 %v13131_v4  ;;  %v13274_v30 = vld [vmem:[%s16446_s16 + $0x518] sm:$0xf]  ;;  %v13550_v4 = vld [vmem:[%s16446_s16 + $0x740] sm:$0xf]  ;;  %v13527_v28 = vor.u32 %v14830_v26, %v13526_v19  ;;  %v14884_v26 = vld [vmem:[%s16446_s16 + $0x8c8] sm:$0xf0] }
 0xa61   : > { %v13275_v51 = vor.u32 %v14767_v57, %v13274_v30  ;;  %v13515_v30 = vor.u32 %v14827_v32, %v13514_v35  ;;  %v13310_v57 = vld [vmem:[%s16446_s16 + $0x560] sm:$0xf]  ;;  %v13622_v35 = vld [vmem:[%s16446_s16 + $0x7d0] sm:$0xf]  ;;  %v14854_v32 = vld [vmem:[%s16446_s16 + $0x7d8] sm:$0xf0] }
 0xa62   : > { %9109 = vmatpush.bf16.msrb.mxu1 %v12831_v61  ;;  %v14785_v61 = vld [vmem:[%s16446_s16 + $0x5b0] sm:$0xf0]  ;;  %v13742_v19 = vld [vmem:[%s16446_s16 + $0x8c0] sm:$0xf] }
 0xa63   : > { %9122 = vmatpush.bf16.msra.mxu2 %v12927_v50  ;;  %v14833_v50 = vld [vmem:[%s16446_s16 + $0x730] sm:$0xf0]  ;;  %v13347_v39 = vor.u32 %v14785_v61, %v13346_v16 }
 0xa64   : > { %9185 = vmatpush.bf16.msra.mxu3 %v13431_v17  ;;  %9148 = vmatpush.bf16.msra.mxu0 %v13119_v29  ;;  %v14764_v17 = vld [vmem:[%s16446_s16 + $0x508] sm:$0xf0] }
 0xa65   : > { %v13263_v38 = vor.u32 %v14764_v17, %v13262_v36  ;;  %v14773_v36 = vld [vmem:[%s16446_s16 + $0x550] sm:$0xf0]  ;;  %v13503_v17 = vor.u32 %v14824_v52, %v13502_v13  ;;  %v13610_v13 = vld [vmem:[%s16446_s16 + $0x7b8] sm:$0xf]  ;;  %v14851_v52 = vld [vmem:[%s16446_s16 + $0x7c0] sm:$0xf0] }
 0xa66   : > { %9110 = vmatpush.bf16.msrb.mxu1 %v12819_v7  ;;  %v19295_v14 = vpop.f32.mrf.mxu3  ;;  %v19310_v41 = vpop.f32.mrf.mxu0  ;;  %v14755_v7 = vld [vmem:[%s16446_s16 + $0x4c0] sm:$0xf0] }
 0xa67   : > { %9123 = vmatpush.bf16.msra.mxu2 %v12915_v43  ;;  %v14779_v43 = vld [vmem:[%s16446_s16 + $0x580] sm:$0xf0] }
 0xa68   : > { %9186 = vmatpush.bf16.msra.mxu3 %v13419_v0  ;;  %9149 = vmatpush.bf16.msra.mxu0 %v13107_v33  ;;  %v14752_v33 = vld [vmem:[%s16446_s16 + $0x4a8] sm:$0xf0] }
 0xa69   : > { %9111 = vmatmul.bf16.vlgmr.msrb.gmra.mxu1 %v18458_v12  ;;  %v14836_v12 = vld [vmem:[%s16446_s16 + $0x748] sm:$0xf0] }
 0xa6a   : > { %9155 = vmatpush.bf16.msra.mxu1 %v13287_v5  ;;  %9124 = vmatmul.bf16.vlgmr.msra.gmra.mxu2 %v18460_v10  ;;  %v14761_v10 = vld [vmem:[%s16446_s16 + $0x4f0] sm:$0xf0]  ;;  %v13551_v34 = vor.u32 %v14836_v12, %v13550_v4  ;;  %v13227_v5 = vor.u32 %v14755_v7, %v13226_v27  ;;  %v14890_v12 = vld [vmem:[%s16446_s16 + $0x8f8] sm:$0xf0]  ;;  %v13634_v27 = vld [vmem:[%s16446_s16 + $0x7e8] sm:$0xf] }
 0xa6b   : > { %9168 = vmatpush.bf16.msrb.mxu2 %v13383_v9  ;;  %9150 = vmatmul.bf16.vlgmr.msra.gmra.mxu0 %v18631_v1  ;;  %v13538_v1 = vld [vmem:[%s16446_s16 + $0x728] sm:$0xf]  ;;  %v13251_v0 = vor.u32 %v14761_v10, %v13250_v55  ;;  %v13323_v9 = vor.u32 %v14779_v43, %v13322_v49  ;;  %v13767_v61 = vor.u32 %v14890_v12, %v13766_v48  ;;  %v14857_v7 = vld [vmem:[%s16446_s16 + $0x7f0] sm:$0xf0]  ;;  %v13694_v12 = vld [vmem:[%s16446_s16 + $0x860] sm:$0xf] }
 0xa6c   : > { %9187 = vmatpush.bf16.msra.mxu3 %v13407_v63  ;;  %9194 = vmatpush.bf16.msrb.mxu0 %v13575_v54  ;;  %v13539_v29 = vor.u32 %v14833_v50, %v13538_v1  ;;  %v14776_v54 = vld [vmem:[%s16446_s16 + $0x568] sm:$0xf0]  ;;  %v13658_v50 = vld [vmem:[%s16446_s16 + $0x818] sm:$0xf]  ;;  %v14881_v49 = vld [vmem:[%s16446_s16 + $0x8b0] sm:$0xf0]  ;;  %v8879_v43 = vadd.f32 %v19260_v45, %v19184_v59 }
 0xa6d   : > { %v13311_v6 = vor.u32 %v14776_v54, %v13310_v57 }
 0xa6e   : > { %9156 = vmatpush.bf16.msra.mxu1 %v13275_v51  ;;  %v8932_v3 = vpop.f32.mrf.mxu3  ;;  %v8893_v63 = vpop.f32.mrf.mxu0  ;;  %v14749_v51 = vld [vmem:[%s16446_s16 + $0x490] sm:$0xf0] }
 0xa6f   : > { %9169 = vmatpush.bf16.msrb.mxu2 %v13371_v62  ;;  %v13298_v62 = vld [vmem:[%s16446_s16 + $0x548] sm:$0xf]  ;;  %v13203_v55 = vor.u32 %v14749_v51, %v13202_v20  ;;  %v14887_v3 = vld [vmem:[%s16446_s16 + $0x8e0] sm:$0xf0]  ;;  %v13706_v20 = vld [vmem:[%s16446_s16 + $0x878] sm:$0xf] }
 0xa70   : > { %9188 = vmatpush.bf16.msra.mxu3 %v13395_v8  ;;  %9195 = vmatpush.bf16.msrb.mxu0 %v13563_v2  ;;  %v13215_v8 = vor.u32 %v14752_v33, %v13214_v44  ;;  %v13670_v2 = vld [vmem:[%s16446_s16 + $0x830] sm:$0xf]  ;;  %v13299_v10 = vor.u32 %v14773_v36, %v13298_v62  ;;  %v19365_v63 = vld [vmem:[%s19666_s25] sm:$0x7]  ;;  %v14878_v44 = vld [vmem:[%s16446_s16 + $0x898] sm:$0xf0]  ;;  %v13611_v62 = vor.u32 %v14851_v52, %v13610_v13 }
 0xa71   : > { %v9235_v45 = vperm.slane %v19365_v63, 0 }
 0xa72   : > { %9157 = vmatpush.bf16.msra.mxu1 %v13263_v38  ;;  %v13490_v38 = vld [vmem:[%s16446_s16 + $0x6c8] sm:$0xf] }
 0xa73   : > { %9189 = vmatmul.bf16.vlgmr.msra.gmra.mxu3 %v18839_v37  ;;  %9170 = vmatpush.bf16.msrb.mxu2 %v13359_v25  ;;  %v13238_v37 = vld [vmem:[%s16446_s16 + $0x4d0] sm:$0xf]  ;;  %v14821_v25 = vld [vmem:[%s16446_s16 + $0x6d0] sm:$0xf0] }
 0xa74   : > { %9196 = vmatpush.bf16.msrb.mxu0 %v13551_v34  ;;  %v13239_v15 = vor.u32 %v14758_v60, %v13238_v37  ;;  %v13671_v34 = vor.u32 %v14866_v53, %v13670_v2  ;;  %v13491_v1 = vor.u32 %v14821_v25, %v13490_v38  ;;  %v14848_v2 = vld [vmem:[%s16446_s16 + $0x7a8] sm:$0xf0] }
 0xa75   : > { %v14872_v38 = vld [vmem:[%s16446_s16 + $0x868] sm:$0xf0] }
 0xa76   : > { %9158 = vmatpush.bf16.msra.mxu1 %v13251_v0  ;;  %v19326_v42 = vpop.f32.mrf.mxu3  ;;  %v19341_v4 = vpop.f32.mrf.mxu0  ;;  %v14863_v0 = vld [vmem:[%s16446_s16 + $0x820] sm:$0xf0] }
 0xa77   : > { %9171 = vmatpush.bf16.msrb.mxu2 %v13347_v39  ;;  %v13754_v39 = vld [vmem:[%s16446_s16 + $0x8d8] sm:$0xf]  ;;  %v13659_v37 = vor.u32 %v14863_v0, %v13658_v50  ;;  %v14845_v50 = vld [vmem:[%s16446_s16 + $0x790] sm:$0xf0]  ;;  %v13682_v0 = vld [vmem:[%s16446_s16 + $0x848] sm:$0xf] }
 0xa78   : > { %9197 = vmatpush.bf16.msrb.mxu0 %v13539_v29  ;;  %v13755_v60 = vor.u32 %v14887_v3, %v13754_v39  ;;  %v13646_v29 = vld [vmem:[%s16446_s16 + $0x800] sm:$0xf]  ;;  %v14869_v39 = vld [vmem:[%s16446_s16 + $0x850] sm:$0xf0] }
 0xa7a   : > { %9159 = vmatpush.bf16.msra.mxu1 %v13239_v15  ;;  %v13647_v15 = vor.u32 %v14860_v58, %v13646_v29 }
 0xa7b   : > { %9172 = vmatpush.bf16.msrb.mxu2 %v13335_v31  ;;  %v13743_v31 = vor.u32 %v14884_v26, %v13742_v19 }
 0xa7c   : > { %9198 = vmatpush.bf16.msrb.mxu0 %v13527_v28 }
 0xa7e   : > { %9160 = vmatpush.bf16.msra.mxu1 %v13227_v5  ;;  %v8984_v16 = vpop.f32.mrf.mxu3  ;;  %v8945_v21 = vpop.f32.mrf.mxu0  ;;  %v8892_v5 = vadd.f32 %v19310_v41, %v8879_v43 }
 0xa7f   : > { %9173 = vmatpush.bf16.msrb.mxu2 %v13323_v9  ;;  %v13718_v9 = vld [vmem:[%s16446_s16 + $0x890] sm:$0xf] }
 0xa80   : > { %9199 = vmatpush.bf16.msrb.mxu0 %v13515_v30  ;;  %v13623_v30 = vor.u32 %v14854_v32, %v13622_v35  ;;  %v13719_v54 = vor.u32 %v14878_v44, %v13718_v9 }
 0xa82   : > { %9161 = vmatpush.bf16.msra.mxu1 %v13215_v8 }
 0xa83   : > { %9174 = vmatpush.bf16.msrb.mxu2 %v13311_v6  ;;  %v14875_v6 = vld [vmem:[%s16446_s16 + $0x880] sm:$0xf0] }
 0xa84   : > { %9200 = vmatpush.bf16.msrb.mxu0 %v13503_v17  ;;  %v13707_v36 = vor.u32 %v14875_v6, %v13706_v20  ;;  %v13598_v17 = vld [vmem:[%s16446_s16 + $0x7a0] sm:$0xf] }
 0xa86   : > { %9162 = vmatpush.bf16.msra.mxu1 %v13203_v55  ;;  %v8904_v28 = vpop.f32.mrf.mxu1  ;;  %v15258_v55 = vld [vmem:[%s1111_s15] sm:$0x7] }
 0xa87   : > { %9175 = vmatpush.bf16.msrb.mxu2 %v13299_v10  ;;  %v8905_v59 = vadd.f32 %v8904_v28, %v8892_v5  ;;  %v7224_v10 = vperm.slane %v15258_v55, 1  ;;  %v7225_v5 = vperm.slane %v15258_v55, 2 }
 0xa88   : > { %9201 = vmatpush.bf16.msrb.mxu0 %v13491_v1  ;;  %v13586_v1 = vld [vmem:[%s16446_s16 + $0x788] sm:$0xf] }
 0xa89   : > { %9163 = vmatmul.bf16.vlgmr.msra.gmra.mxu1 %v18710_v11  ;;  %v13730_v11 = vld [vmem:[%s16446_s16 + $0x8a8] sm:$0xf]  ;;  %v19372_v33 = vpop.f32.mrf.mxu0  ;;  %v8931_v3 = vadd.f32 %v19295_v14, %v7224_v10 }
 0xa8a   : > { %9207 = vmatpush.bf16.msrb.mxu1 %v13671_v34  ;;  %9176 = vmatmul.bf16.vlgmr.msrb.gmra.mxu2 %v18714_v46  ;;  %v13635_v46 = vor.u32 %v14857_v7, %v13634_v27  ;;  %v13599_v34 = vor.u32 %v14848_v2, %v13598_v17 }
 0xa8b   : > { %9220 = vmatpush.bf16.msra.mxu2 %v13767_v61  ;;  %9202 = vmatmul.bf16.vlgmr.msrb.gmra.mxu0 %v19001_v47  ;;  %v13731_v47 = vor.u32 %v14881_v49, %v13730_v11  ;;  %v13695_v61 = vor.u32 %v14872_v38, %v13694_v12  ;;  %v8944_v29 = vadd.f32 %v19341_v4, %v8931_v3 }
 0xa8d   : > { %v8917_v57 = vpop.f32.mrf.mxu2 }
 0xa8e   : > { %9208 = vmatpush.bf16.msrb.mxu1 %v13659_v37  ;;  %v8918_v41 = vadd.f32 %v8917_v57, %v8905_v59  ;;  %v8906_v8 = vpop.f32.mrf.mxu1  ;;  %v13587_v37 = vor.u32 %v14845_v50, %v13586_v1 }
 0xa8f   : > { %9221 = vmatpush.bf16.msra.mxu2 %v13755_v60  ;;  %v13683_v60 = vor.u32 %v14869_v39, %v13682_v0 }
 0xa90   : > { %v9241_v51 = vmul.f32 %v9235_v45, %v8918_v41 }
 0xa91   : > { %v8997_v25 = vpop.f32.mrf.mxu0 }
 0xa92   : > { %9209 = vmatpush.bf16.msrb.mxu1 %v13647_v15  ;;  %v19382_v53 = vadd.f32 %v9241_v51, %v17262_v18 }
 0xa93   : > { %9222 = vmatpush.bf16.msra.mxu2 %v13743_v31 }
 0xa94   : > { %9247 = vst [vmem:[#allocation2 + $0x10] sm:$0xff] %v19382_v53 }
 0xa95   : > { %v8919_v16 = vpop.f32.mrf.mxu2 }
 0xa96   : > { %9210 = vmatpush.bf16.msrb.mxu1 %v13635_v46  ;;  %v9034_v48 = vpop.f32.mrf.mxu3  ;;  %v8956_v18 = vpop.f32.mrf.mxu1 }
 0xa97   : > { %9223 = vmatpush.bf16.msra.mxu2 %v13731_v47  ;;  %v8957_v21 = vadd.f32 %v8956_v18, %v8944_v29 }
 0xa9a   : > { %9211 = vmatpush.bf16.msrb.mxu1 %v13623_v30  ;;  %v9236_v30 = vperm.slane %v19365_v63, 1 }
 0xa9b   : > { %9224 = vmatpush.bf16.msra.mxu2 %v13719_v54 }
 0xa9d   : > { %v8969_v19 = vpop.f32.mrf.mxu2 }
 0xa9e   : > { %9212 = vmatpush.bf16.msrb.mxu1 %v13611_v62  ;;  %v9036_v58 = vpop.f32.mrf.mxu3  ;;  %v8970_v26 = vadd.f32 %v8969_v19, %v8957_v21  ;;  %v8958_v15 = vpop.f32.mrf.mxu1 }
 0xa9f   : > { %9225 = vmatpush.bf16.msra.mxu2 %v13707_v36  ;;  %v9237_v58 = vperm.slane %v19365_v63, 2 }
 0xaa0   : > { %v8983_v31 = vadd.f32 %v19326_v42, %v8970_v26 }
 0xaa2   : > { %9213 = vmatpush.bf16.msrb.mxu1 %v13599_v34  ;;  %v8996_v47 = vadd.f32 %v19372_v33, %v8983_v31 }
 0xaa3   : > { %9226 = vmatpush.bf16.msra.mxu2 %v13695_v61 }
 0xaa5   : > { %v8971_v14 = vpop.f32.mrf.mxu2 }
 0xaa6   : > { %9214 = vmatpush.bf16.msrb.mxu1 %v13587_v37  ;;  %v9008_v27 = vpop.f32.mrf.mxu1 }
 0xaa7   : > { %9227 = vmatpush.bf16.msra.mxu2 %v13683_v60  ;;  %v9009_v35 = vadd.f32 %v9008_v27, %v8996_v47 }
 0xaa8   : > { %v9047_v7 = vpop.f32.mrf.mxu0 }
 0xaa9   : > { %9215 = vmatmul.bf16.vlgmr.msrb.gmra.mxu1 %v19072_v56 }
 0xaaa   : > { %9228 = vmatmul.bf16.vlgmr.msra.gmra.mxu2 %v19076_v40 }
 0xaad   : > { %v9021_v28 = vpop.f32.mrf.mxu2 }
 0xaae   : > { %v9010_v11 = vpop.f32.mrf.mxu1  ;;  %v9022_v32 = vadd.f32 %v9021_v28, %v9009_v35 }
 0xab0   : > { %v9049_v49 = vpop.f32.mrf.mxu0  ;;  %v9035_v9 = vadd.f32 %v9034_v48, %v9022_v32 }
 0xab2   : > { %v9048_v59 = vadd.f32 %v9047_v7, %v9035_v9 }
 0xab5   : > { %v9023_v43 = vpop.f32.mrf.mxu2 }
 0xab6   : > { %v9086_v4 = vpop.f32.mrf.mxu3 }
 0xab7   : > { %v9087_v44 = vadd.f32 %v9086_v4, %v7225_v5 }
 0xabe   : > { %v9088_v46 = vpop.f32.mrf.mxu3 }
 0xac6   : > { %v9060_v56 = vpop.f32.mrf.mxu1 }
 0xac7   : > { %v9061_v45 = vadd.f32 %v9060_v56, %v9048_v59 }
 0xac8   : > { %v9099_v42 = vpop.f32.mrf.mxu0 }
 0xac9   : > { %v9100_v40 = vadd.f32 %v9099_v42, %v9087_v44 }
 0xacd   : > { %v9073_v57 = vpop.f32.mrf.mxu2 }
 0xace   : > { %v9074_v54 = vadd.f32 %v9073_v57, %v9061_v45  ;;  %v9062_v13 = vpop.f32.mrf.mxu1 }
 0xad0   : > { %v9242_v52 = vmul.f32 %v9236_v30, %v9074_v54  ;;  %v9101_v41 = vpop.f32.mrf.mxu0 }
 0xad2   : > { %v19401_v33 = vadd.f32 %v9242_v52, %v17260_v23 }
 0xad4   : > { %9248 = vst [vmem:[#allocation2] sm:$0xff] %v19401_v33 }
 0xad5   : > { %v9075_v20 = vpop.f32.mrf.mxu2 }
 0xad6   : > { %v9138_v8 = vpop.f32.mrf.mxu3 }
 0xade   : > { %v9140_v6 = vpop.f32.mrf.mxu3 }
 0xae6   : > { %v9112_v51 = vpop.f32.mrf.mxu1 }
 0xae7   : > { %v9113_v36 = vadd.f32 %v9112_v51, %v9100_v40 }
 0xae8   : > { %v9151_v62 = vpop.f32.mrf.mxu0 }
 0xaed   : > { %v9125_v17 = vpop.f32.mrf.mxu2 }
 0xaee   : > { %v9126_v2 = vadd.f32 %v9125_v17, %v9113_v36  ;;  %v9114_v48 = vpop.f32.mrf.mxu1 }
 0xaf0   : > { %v9139_v12 = vadd.f32 %v9138_v8, %v9126_v2  ;;  %v9153_v38 = vpop.f32.mrf.mxu0 }
 0xaf2   : > { %v9152_v18 = vadd.f32 %v9151_v62, %v9139_v12 }
 0xaf5   : > { %v9127_v55 = vpop.f32.mrf.mxu2 }
 0xaf6   : > { %v9190_v25 = vpop.f32.mrf.mxu3 }
 0xafe   : > { %v9192_v10 = vpop.f32.mrf.mxu3 }
 0xb06   : > { %v9164_v34 = vpop.f32.mrf.mxu1 }
 0xb07   : > { %v9165_v0 = vadd.f32 %v9164_v34, %v9152_v18 }
 0xb08   : > { %v9203_v16 = vpop.f32.mrf.mxu0 }
 0xb0d   : > { %v9177_v61 = vpop.f32.mrf.mxu2 }
 0xb0e   : > { %v9166_v23 = vpop.f32.mrf.mxu1  ;;  %v9178_v39 = vadd.f32 %v9177_v61, %v9165_v0 }
 0xb10   : > { %v9205_v1 = vpop.f32.mrf.mxu0  ;;  %v9191_v3 = vadd.f32 %v9190_v25, %v9178_v39 }
 0xb12   : > { %v9204_v60 = vadd.f32 %v9203_v16, %v9191_v3 }
 0xb15   : > { %v9179_v50 = vpop.f32.mrf.mxu2 }
 0xb26   : > { %v9216_v37 = vpop.f32.mrf.mxu1 }
 0xb27   : > { %v9217_v29 = vadd.f32 %v9216_v37, %v9204_v60 }
 0xb2d   : > { %v9229_v21 = vpop.f32.mrf.mxu2 }
 0xb2e   : > { %v9230_v19 = vadd.f32 %v9229_v21, %v9217_v29  ;;  %v9218_v26 = vpop.f32.mrf.mxu1 }
 0xb30   : > { %v9243_v15 = vmul.f32 %v9237_v58, %v9230_v19 }
 0xb31   : > { %9253 = sbr.rel (%p13768_p7) target bundleno = 3439 (0xd6f), region = 188 }
 0xb32   : > { %v9246_v31 = vadd.f32 %v9243_v15, %v17264_v22 }
 0xb34   : > { %9249 = vst [vmem:[#allocation2 + $0x8] sm:$0xff] %v9246_v31 }
 0xb35   : > { %v9231_v14 = vpop.f32.mrf.mxu2 }
 0xb36   : > { %vm9256_vm7 = vcmask 1040384   ;;  %v13827_v49 = vld [vmem:[#allocation29 + $0x70] sm:$0xf]  ;;  %v14906_v4 = vld [vmem:[#allocation29 + $0x74] sm:$0xf0]  ;;  %vm9847_vm11 = vcmask 16384  }
 0xb37   : > { %v9257_v27 = vsel %vm9256_vm7, %v19382_v53, 0.0  ;;  %v9258_v7 = vsel %vm9256_vm7, %v19401_v33, 0.0  ;;  %v9260_v63 = vsel %vm9256_vm7, %v9246_v31, 0.0  ;;  %v13891_v22 = vld [vmem:[#allocation29 + $0xf0] sm:$0xf]  ;;  %v13828_v43 = vor.u32 %v14906_v4, %v13827_v49 }
 0xb38   : > { %v9259_v28 = vadd.f32 %v9258_v7, %v9257_v27  ;;  %v14922_v46 = vld [vmem:[#allocation29 + $0xf4] sm:$0xf0]  ;;  %v13819_v47 = vld [vmem:[#allocation29 + $0x60] sm:$0xf]  ;;  %v14904_v35 = vld [vmem:[#allocation29 + $0x64] sm:$0xf0] }
 0xb39   : > { %v13892_v32 = vor.u32 %v14922_v46, %v13891_v22  ;;  %v13883_v5 = vld [vmem:[#allocation29 + $0xe0] sm:$0xf]  ;;  %v14920_v9 = vld [vmem:[#allocation29 + $0xe4] sm:$0xf0]  ;;  %9610 = vmatpush.bf16.msra.mxu0 %v13828_v43  ;;  %v13820_v56 = vor.u32 %v14904_v35, %v13819_v47  ;;  %v13811_v42 = vld [vmem:[#allocation29 + $0x50] sm:$0xf] }
 0xb3a   : > { %v9261_v11 = vadd.f32 %v9260_v63, %v9259_v28  ;;  %v13884_v44 = vor.u32 %v14920_v9, %v13883_v5  ;;  %v14902_v59 = vld [vmem:[#allocation29 + $0x54] sm:$0xf0]  ;;  %v13875_v40 = vld [vmem:[#allocation29 + $0xd0] sm:$0xf]  ;;  %v14905_v13 = vld [vmem:[#allocation29 + $0x74] sm:$0xf] }
 0xb3b   : > { %9623 = vmatpush.bf16.msra.mxu1 %v13892_v32  ;;  %v14918_v45 = vld [vmem:[#allocation29 + $0xd4] sm:$0xf0]  ;;  %v13955_v30 = vld [vmem:[#allocation29 + $0x170] sm:$0xf]  ;;  %v13829_v52 = vld [vmem:[#allocation29 + $0x78] sm:$0xf0]  ;;  %v13812_v41 = vor.u32 %v14902_v59, %v13811_v42 }
 0xb3c   : > { %9262 = vadd.xlane.f32.xlu0 %v9261_v11  ;;  %v14938_v57 = vld [vmem:[#allocation29 + $0x174] sm:$0xf0]  ;;  %v13832_v8 = vor.u32 %v14905_v13, %v13829_v52  ;;  %v13876_v20 = vor.u32 %v14918_v45, %v13875_v40  ;;  %v13803_v6 = vld [vmem:[#allocation29 + $0x40] sm:$0xf]  ;;  %v14900_v51 = vld [vmem:[#allocation29 + $0x44] sm:$0xf0] }
 0xb3d   : > { %v13956_v54 = vor.u32 %v14938_v57, %v13955_v30  ;;  %9611 = vmatpush.bf16.msra.mxu0 %v13820_v56  ;;  %v13867_v62 = vld [vmem:[#allocation29 + $0xc0] sm:$0xf]  ;;  %v14916_v36 = vld [vmem:[#allocation29 + $0xc4] sm:$0xf0]  ;;  %v13804_v17 = vor.u32 %v14900_v51, %v13803_v6  ;;  %v13795_v50 = vld [vmem:[#allocation29 + $0x30] sm:$0xf] }
 0xb3e   : > { %9649 = vmatpush.bf16.msra.mxu3 %v13832_v8  ;;  %v13868_v2 = vor.u32 %v14916_v36, %v13867_v62  ;;  %v14898_v18 = vld [vmem:[#allocation29 + $0x34] sm:$0xf0]  ;;  %v13859_v0 = vld [vmem:[#allocation29 + $0xb0] sm:$0xf]  ;;  %v13947_v37 = vld [vmem:[#allocation29 + $0x160] sm:$0xf] }
 0xb3f   : > { %9624 = vmatpush.bf16.msra.mxu1 %v13884_v44  ;;  %9636 = vmatpush.bf16.msra.mxu2 %v13956_v54  ;;  %v13796_v39 = vor.u32 %v14898_v18, %v13795_v50  ;;  %v14914_v3 = vld [vmem:[#allocation29 + $0xb4] sm:$0xf0]  ;;  %v14936_v60 = vld [vmem:[#allocation29 + $0x164] sm:$0xf0]  ;;  %v14903_v21 = vld [vmem:[#allocation29 + $0x64] sm:$0xf] }
 0xb40   : > { %v13860_v29 = vor.u32 %v14914_v3, %v13859_v0  ;;  %v13948_v58 = vor.u32 %v14936_v60, %v13947_v37  ;;  %v13821_v19 = vld [vmem:[#allocation29 + $0x68] sm:$0xf0]  ;;  %v13787_v15 = vld [vmem:[#allocation29 + $0x20] sm:$0xf]  ;;  %v14912_v7 = vld [vmem:[#allocation29 + $0xa4] sm:$0xf0] }
 0xb41   : > { %9612 = vmatpush.bf16.msra.mxu0 %v13812_v41  ;;  %v13824_v26 = vor.u32 %v14903_v21, %v13821_v19  ;;  %v13851_v14 = vld [vmem:[#allocation29 + $0xa0] sm:$0xf]  ;;  %v13939_v63 = vld [vmem:[#allocation29 + $0x150] sm:$0xf]  ;;  %v14934_v28 = vld [vmem:[#allocation29 + $0x154] sm:$0xf0] }
 0xb42   : > { %v13852_v11 = vor.u32 %v14912_v7, %v13851_v14  ;;  %v13940_v49 = vor.u32 %v14934_v28, %v13939_v63  ;;  %v14901_v4 = vld [vmem:[#allocation29 + $0x54] sm:$0xf]  ;;  %v13813_v22 = vld [vmem:[#allocation29 + $0x58] sm:$0xf0]  ;;  %v13779_v46 = vld [vmem:[#allocation29 + $0x10] sm:$0xf] }
 0xb43   : > { %9625 = vmatpush.bf16.msra.mxu1 %v13876_v20  ;;  %9637 = vmatpush.bf16.msra.mxu2 %v13948_v58  ;;  %v13816_v43 = vor.u32 %v14901_v4, %v13813_v22  ;;  %v14894_v47 = vld [vmem:[#allocation29 + $0x14] sm:$0xf0]  ;;  %v13843_v35 = vld [vmem:[#allocation29 + $0x90] sm:$0xf]  ;;  %v13931_v9 = vld [vmem:[#allocation29 + $0x140] sm:$0xf] }
 0xb44   : > { %9650 = vmatpush.bf16.msra.mxu3 %v13824_v26  ;;  %v13780_v32 = vor.u32 %v14894_v47, %v13779_v46  ;;  %v14910_v5 = vld [vmem:[#allocation29 + $0x94] sm:$0xf0]  ;;  %v14932_v56 = vld [vmem:[#allocation29 + $0x144] sm:$0xf0]  ;;  %v14899_v59 = vld [vmem:[#allocation29 + $0x44] sm:$0xf] }
 0xb45   : > { %9613 = vmatpush.bf16.msra.mxu0 %v13804_v17  ;;  %v13844_v44 = vor.u32 %v14910_v5, %v13843_v35  ;;  %v13932_v42 = vor.u32 %v14932_v56, %v13931_v9  ;;  %v13805_v40 = vld [vmem:[#allocation29 + $0x48] sm:$0xf0]  ;;  %v13771_v30 = vld [vmem:[#allocation29] sm:$0xf]  ;;  %v14892_v57 = vld [vmem:[#allocation29 + $0x4] sm:$0xf0] }
 0xb46   : > { %v13808_v45 = vor.u32 %v14899_v59, %v13805_v40  ;;  %v13835_v54 = vld [vmem:[#allocation29 + $0x80] sm:$0xf]  ;;  %v13772_v13 = vor.u32 %v14892_v57, %v13771_v30  ;;  %v14908_v52 = vld [vmem:[#allocation29 + $0x84] sm:$0xf0]  ;;  %v13923_v41 = vld [vmem:[#allocation29 + $0x130] sm:$0xf] }
 0xb47   : > { %9626 = vmatpush.bf16.msra.mxu1 %v13868_v2  ;;  %9638 = vmatpush.bf16.msra.mxu2 %v13940_v49  ;;  %v14930_v8 = vld [vmem:[#allocation29 + $0x134] sm:$0xf0]  ;;  %v13836_v20 = vor.u32 %v14908_v52, %v13835_v54  ;;  %v14897_v51 = vld [vmem:[#allocation29 + $0x34] sm:$0xf]  ;;  %v13797_v62 = vld [vmem:[#allocation29 + $0x38] sm:$0xf0] }
 0xb48   : > { %9651 = vmatpush.bf16.msra.mxu3 %v13816_v43  ;;  %v13924_v6 = vor.u32 %v14930_v8, %v13923_v41  ;;  %v14921_v36 = vld [vmem:[#allocation29 + $0xf4] sm:$0xf]  ;;  %v13800_v17 = vor.u32 %v14897_v51, %v13797_v62  ;;  %v13893_v2 = vld [vmem:[#allocation29 + $0xf8] sm:$0xf0]  ;;  %v13885_v50 = vld [vmem:[#allocation29 + $0xe8] sm:$0xf0] }
 0xb49   : > { %9614 = vmatpush.bf16.msra.mxu0 %v13796_v39  ;;  %v14935_v39 = vld [vmem:[#allocation29 + $0x164] sm:$0xf]  ;;  %v13949_v3 = vld [vmem:[#allocation29 + $0x168] sm:$0xf0]  ;;  %v13907_v60 = vld [vmem:[#allocation29 + $0x110] sm:$0xf] }
 0xb4a   : > { %v13952_v37 = vor.u32 %v14935_v39, %v13949_v3  ;;  %v14893_v58 = vld [vmem:[#allocation29 + $0x14] sm:$0xf]  ;;  %v13781_v19 = vld [vmem:[#allocation29 + $0x18] sm:$0xf0]  ;;  %v13899_v63 = vld [vmem:[#allocation29 + $0x100] sm:$0xf] }
 0xb4b   : > { %9627 = vmatpush.bf16.msra.mxu1 %v13860_v29  ;;  %9639 = vmatpush.bf16.msra.mxu2 %v13932_v42  ;;  %v14926_v29 = vld [vmem:[#allocation29 + $0x114] sm:$0xf0]  ;;  %v14917_v26 = vld [vmem:[#allocation29 + $0xd4] sm:$0xf]  ;;  %v13941_v7 = vld [vmem:[#allocation29 + $0x158] sm:$0xf0] }
 0xb4c   : > { %9652 = vmatpush.bf16.msra.mxu3 %v13808_v45  ;;  %v13908_v21 = vor.u32 %v14926_v29, %v13907_v60  ;;  %v14891_v49 = vld [vmem:[#allocation29 + $0x4] sm:$0xf]  ;;  %v13773_v4 = vld [vmem:[#allocation29 + $0x8] sm:$0xf0]  ;;  %v14913_v56 = vld [vmem:[#allocation29 + $0xb4] sm:$0xf] }
 0xb4d   : > { %v13776_v43 = vor.u32 %v14891_v49, %v13773_v4  ;;  %v14915_v46 = vld [vmem:[#allocation29 + $0xc4] sm:$0xf]  ;;  %v13869_v47 = vld [vmem:[#allocation29 + $0xc8] sm:$0xf0]  ;;  %v14929_v42 = vld [vmem:[#allocation29 + $0x134] sm:$0xf] }
 0xb4e   : > { %v14931_v35 = vld [vmem:[#allocation29 + $0x144] sm:$0xf]  ;;  %v13933_v5 = vld [vmem:[#allocation29 + $0x148] sm:$0xf0]  ;;  %v13925_v40 = vld [vmem:[#allocation29 + $0x138] sm:$0xf0] }
 0xb4f   : > { %9628 = vmatpush.bf16.msra.mxu1 %v13852_v11  ;;  %9640 = vmatpush.bf16.msra.mxu2 %v13924_v6  ;;  %v14924_v11 = vld [vmem:[#allocation29 + $0x104] sm:$0xf0]  ;;  %v13936_v9 = vor.u32 %v14931_v35, %v13933_v5  ;;  %v13928_v30 = vor.u32 %v14929_v42, %v13925_v40  ;;  %v14911_v57 = vld [vmem:[#allocation29 + $0xa4] sm:$0xf]  ;;  %v13853_v54 = vld [vmem:[#allocation29 + $0xa8] sm:$0xf0] }
 0xb50   : > { %9653 = vmatpush.bf16.msra.mxu3 %v13800_v17  ;;  %v13900_v22 = vor.u32 %v14924_v11, %v13899_v63  ;;  %v13917_v41 = vld [vmem:[#allocation29 + $0x128] sm:$0xf0]  ;;  %v13856_v8 = vor.u32 %v14911_v57, %v13853_v54  ;;  %v14909_v6 = vld [vmem:[#allocation29 + $0x94] sm:$0xf]  ;;  %v13845_v51 = vld [vmem:[#allocation29 + $0x98] sm:$0xf0] }
 0xb51   : > { %v13909_v17 = vld [vmem:[#allocation29 + $0x118] sm:$0xf0]  ;;  %v9254_v3 = vld [vmem:[#allocation26] sm:$0x7]  ;;  %v14948_v40 = vld [vmem:[%s19669_s20 + $0x48] sm:$0xff] }
 0xb52   : > { %v9255_v60 = vld [vmem:[#allocation27] sm:$0x7] }
 0xb53   : > { %9629 = vmatpush.bf16.msra.mxu1 %v13844_v44  ;;  %v13861_v44 = vld [vmem:[#allocation29 + $0xb8] sm:$0xf0] }
 0xb54   : > { %v13864_v59 = vor.u32 %v14913_v56, %v13861_v44  ;;  %v14951_v56 = vld [vmem:[%s19669_s20 + $0x60] sm:$0xff]  ;;  %v14950_v42 = vld [vmem:[%s19669_s20 + $0x58] sm:$0xff] }
 0xb55   : > { %v14939_v44 = vld [vmem:[%s19669_s20] sm:$0xff] }
 0xb57   : > { %9630 = vmatpush.bf16.msra.mxu1 %v13836_v20 }
 0xbaf   : > { %v9263_v48 = vpop.xlane.xlu0 %9262 }
 0xbb0   : > { %v9264_v12 = vmul.f32 %v9263_v48, %v16546_v24  ;;  %v14937_v48 = vld [vmem:[#allocation29 + $0x174] sm:$0xf] }
 0xbb2   : > { %v19414_v38 = vsub.f32 %v19382_v53, %v9264_v12  ;;  %v19417_v25 = vsub.f32 %v19401_v33, %v9264_v12  ;;  %v19419_v55 = vsub.f32 %v9246_v31, %v9264_v12  ;;  %v14896_v31 = vld [vmem:[#allocation29 + $0x24] sm:$0xf0]  ;;  %v13957_v12 = vld [vmem:[#allocation29 + $0x178] sm:$0xf0] }
 0xbb3   : > { %v13788_v27 = vor.u32 %v14896_v31, %v13787_v15  ;;  %v13877_v15 = vld [vmem:[#allocation29 + $0xd8] sm:$0xf0]  ;;  %v13784_v31 = vor.u32 %v14893_v58, %v13781_v19  ;;  %v9294_v58 = vperm.slane %v9254_v3, 0  ;;  %v9296_v19 = vperm.slane %v9254_v3, 2 }
 0xbb4   : > { %v9268_v10 = vmul.f32 %v19414_v38, %v19414_v38  ;;  %v9269_v34 = vmul.f32 %v19417_v25, %v19417_v25  ;;  %v9270_v16 = vmul.f32 %v19419_v55, %v19419_v55  ;;  %v13880_v14 = vor.u32 %v14917_v26, %v13877_v15  ;;  %v14944_v26 = vld [vmem:[%s19669_s20 + $0x28] sm:$0xff] }
 0xbb5   : > { %9615 = vmatpush.bf16.msra.mxu0 %v13788_v27  ;;  %v14933_v27 = vld [vmem:[#allocation29 + $0x154] sm:$0xf] }
 0xbb6   : > { %v9271_v61 = vsel %vm9256_vm7, %v9268_v10, 0.0  ;;  %v9272_v23 = vsel %vm9256_vm7, %v9269_v34, 0.0  ;;  %v9274_v1 = vsel %vm9256_vm7, %v9270_v16, 0.0  ;;  %v13896_v10 = vor.u32 %v14921_v36, %v13893_v2  ;;  %v13915_v16 = vld [vmem:[#allocation29 + $0x120] sm:$0xf] }
 0xbb7   : > { %v9273_v53 = vadd.f32 %v9272_v23, %v9271_v61  ;;  %v13960_v34 = vor.u32 %v14937_v48, %v13957_v12  ;;  %v14928_v61 = vld [vmem:[#allocation29 + $0x124] sm:$0xf0]  ;;  %v14895_v23 = vld [vmem:[#allocation29 + $0x24] sm:$0xf]  ;;  %v13944_v28 = vor.u32 %v14933_v27, %v13941_v7  ;;  %v14925_v36 = vld [vmem:[#allocation29 + $0x114] sm:$0xf]  ;;  %v13848_v2 = vor.u32 %v14909_v6, %v13845_v51 }
 0xbb8   : > { %v13912_v48 = vor.u32 %v14925_v36, %v13909_v17  ;;  %v14907_v12 = vld [vmem:[#allocation29 + $0x84] sm:$0xf] }
 0xbb9   : > { %v9275_v33 = vadd.f32 %v9274_v1, %v9273_v53  ;;  %9616 = vmatpush.bf16.msra.mxu0 %v13780_v32  ;;  %9675 = vmatpush.bf16.msrb.mxu1 %v13960_v34  ;;  %v13916_v53 = vor.u32 %v14928_v61, %v13915_v16  ;;  %v13789_v1 = vld [vmem:[#allocation29 + $0x28] sm:$0xf0]  ;;  %v13872_v32 = vor.u32 %v14915_v46, %v13869_v47  ;;  %v14923_v34 = vld [vmem:[#allocation29 + $0x104] sm:$0xf] }
 0xbba   : > { %v13792_v18 = vor.u32 %v14895_v23, %v13789_v1  ;;  %v13901_v16 = vld [vmem:[#allocation29 + $0x108] sm:$0xf0] }
 0xbbb   : > { %9276 = vadd.xlane.f32.xlu0 %v9275_v33  ;;  %v14919_v33 = vld [vmem:[#allocation29 + $0xe4] sm:$0xf]  ;;  %9641 = vmatpush.bf16.msra.mxu2 %v13916_v53  ;;  %v13904_v61 = vor.u32 %v14923_v34, %v13901_v16 }
 0xbbc   : > { %v13888_v0 = vor.u32 %v14919_v33, %v13885_v50  ;;  %9654 = vmatpush.bf16.msra.mxu3 %v13792_v18  ;;  %v14946_v33 = vld [vmem:[%s19668_s30 + $0x38] sm:$0xff] }
 0xbbd   : > { %9617 = vmatpush.bf16.msra.mxu0 %v13772_v13  ;;  %9676 = vmatpush.bf16.msrb.mxu1 %v13952_v37  ;;  %v14927_v13 = vld [vmem:[#allocation29 + $0x124] sm:$0xf]  ;;  %v14953_v37 = vld [vmem:[%s19669_s20 + $0x70] sm:$0xff] }
 0xbbe   : > { %v13920_v20 = vor.u32 %v14927_v13, %v13917_v41  ;;  %v14954_v18 = vld [vmem:[%s19669_s20 + $0x78] sm:$0xff] }
 0xbbf   : > { %9642 = vmatpush.bf16.msra.mxu2 %v13908_v21  ;;  %v9295_v21 = vperm.slane %v9254_v3, 1 }
 0xbc0   : > { %9655 = vmatpush.bf16.msra.mxu3 %v13784_v31  ;;  %v9304_v31 = vperm.slane %v9255_v60, 0 }
 0xbc1   : > { %9662 = vmatpush.bf16.msrb.mxu0 %v13896_v10  ;;  %9677 = vmatpush.bf16.msrb.mxu1 %v13944_v28  ;;  %v13837_v10 = vld [vmem:[#allocation29 + $0x88] sm:$0xf0]  ;;  %v9306_v28 = vperm.slane %v9255_v60, 2 }
 0xbc3   : > { %9643 = vmatpush.bf16.msra.mxu2 %v13900_v22  ;;  %v14943_v22 = vld [vmem:[%s19669_s20 + $0x20] sm:$0xff] }
 0xbc4   : > { %9656 = vmatpush.bf16.msra.mxu3 %v13776_v43 }
 0xbc5   : > { %9663 = vmatpush.bf16.msrb.mxu0 %v13888_v0  ;;  %9678 = vmatpush.bf16.msrb.mxu1 %v13936_v9  ;;  %v14945_v0 = vld [vmem:[%s19669_s20 + $0x30] sm:$0xff]  ;;  %v14940_v9 = vld [vmem:[%s19669_s20 + $0x8] sm:$0xff] }
 0xbc7   : > { %9821 = vmatpush.bf16.msrb.mxu2 %v14946_v33 }
 0xbc8   : > { %9834 = vmatpush.bf16.msrb.mxu3 %v14954_v18  ;;  %v9724_v18 = vld [vmem:[#allocation32] sm:$0x1] }
 0xbc9   : > { %9664 = vmatpush.bf16.msrb.mxu0 %v13880_v14  ;;  %9679 = vmatpush.bf16.msrb.mxu1 %v13928_v30  ;;  %v9305_v14 = vperm.slane %v9255_v60, 1  ;;  %v9364_v30 = vld [vmem:[#allocation30] sm:$0x3] }
 0xbca   : > { %v9606_v57 = vperm.slane %v9364_v30, 0  ;;  %v9607_v17 = vperm.slane %v9364_v30, 1 }
 0xbcb   : > { %9822 = vmatpush.bf16.msrb.mxu2 %v14945_v0 }
 0xbcc   : > { %9835 = vmatpush.bf16.msrb.mxu3 %v14953_v37 }
 0xbcd   : > { %9665 = vmatpush.bf16.msrb.mxu0 %v13872_v32  ;;  %9680 = vmatpush.bf16.msrb.mxu1 %v13920_v20 }
 0xbcf   : > { %9823 = vmatpush.bf16.msrb.mxu2 %v14944_v26 }
 0xbd1   : > { %9666 = vmatpush.bf16.msrb.mxu0 %v13864_v59  ;;  %9681 = vmatpush.bf16.msrb.mxu1 %v13912_v48  ;;  %v14949_v59 = vld [vmem:[%s19669_s20 + $0x50] sm:$0xff] }
 0xbd3   : > { %9824 = vmatpush.bf16.msrb.mxu2 %v14943_v22 }
 0xbd5   : > { %9667 = vmatpush.bf16.msrb.mxu0 %v13856_v8  ;;  %9682 = vmatpush.bf16.msrb.mxu1 %v13904_v61 }
 0xbd9   : > { %9668 = vmatpush.bf16.msrb.mxu0 %v13848_v2 }
 0xc2e   : > { %v9277_v45 = vpop.xlane.xlu0 %9276 }
 0xc2f   : > { %v9278_v52 = vmul.f32 %v9277_v45, %v16546_v24  ;;  %v13840_v24 = vor.u32 %v14907_v12, %v13837_v10  ;;  %v14947_v45 = vld [vmem:[%s19669_s20 + $0x40] sm:$0xff] }
 0xc31   : > { %v9279_v62 = vadd.f32 1e-06, %v9278_v52  ;;  %9669 = vmatpush.bf16.msrb.mxu0 %v13840_v24 }
 0xc33   : > { %15259 = vrsqrt.f32 %v9279_v62  ;;  %vm9286_vm9 = vweird.f32 %v9279_v62 }
 0xc39   : > { %v15260_v23 = vpop.eup %15259 }
 0xc3a   : > { %v9281_v53 = vmul.f32 %v15260_v23, %v9279_v62  ;;  %vm9287_vm8 = vweird.f32 %v15260_v23 }
 0xc3b   : > { %vm9288_vm10 = vmor %vm9286_vm9, %vm9287_vm8 }
 0xc3c   : > { %v9282_v1 = vmul.f32 %v15260_v23, %v9281_v53 }
 0xc3e   : > { %v9283_v50 = vmul.f32 0.5, %v9282_v1 }
 0xc40   : > { %v9284_v39 = vsub.f32 1.5, %v9283_v50 }
 0xc42   : > { %v9285_v29 = vmul.f32 %v15260_v23, %v9284_v39 }
 0xc44   : > { %v9289_v15 = vsel %vm9288_vm10, %v15260_v23, %v9285_v29 }
 0xc45   : > { %v9290_v27 = vmul.f32 %v9289_v15, %v19414_v38  ;;  %v9291_v7 = vmul.f32 %v9289_v15, %v19417_v25  ;;  %v9292_v63 = vmul.f32 %v9289_v15, %v19419_v55  ;;  %v14942_v38 = vld [vmem:[%s19669_s20 + $0x18] sm:$0xff]  ;;  %v14941_v25 = vld [vmem:[%s19669_s20 + $0x10] sm:$0xff]  ;;  %v14952_v55 = vld [vmem:[%s19669_s20 + $0x68] sm:$0xff] }
 0xc46   : > { %9825 = vmatpush.bf16.msrb.mxu2 %v14942_v38  ;;  %9836 = vmatpush.bf16.msrb.mxu3 %v14952_v55 }
 0xc47   : > { %v9300_v11 = vmul.f32 %v9294_v58, %v9290_v27  ;;  %v9301_v49 = vmul.f32 %v9295_v21, %v9291_v7  ;;  %v9302_v4 = vmul.f32 %v9296_v19, %v9292_v63 }
 0xc49   : > { %v9310_v43 = vadd.f32 %v9304_v31, %v9300_v11  ;;  %v9311_v46 = vadd.f32 %v9305_v14, %v9301_v49  ;;  %v9312_v47 = vadd.f32 %v9306_v28, %v9302_v4 }
 0xc4a   : > { %9826 = vmatpush.bf16.msrb.mxu2 %v14941_v25  ;;  %9837 = vmatpush.bf16.msrb.mxu3 %v14951_v56 }
 0xc4b   : > { %v9313_v35 = vpack.c.bf16 %v9310_v43, %v9310_v43  ;;  %v9314_v32 = vpack.c.bf16 %v9311_v46, %v9311_v46  ;;  %v9315_v5 = vpack.c.bf16 %v9312_v47, %v9312_v47 }
 0xc4d   : > { %9618 = vmatmul.bf16.vlgmr.msra.gmra.mxu0 %v9313_v35  ;;  %9631 = vmatmul.bf16.vlgmr.msra.gmra.mxu1 %v9314_v32 }
 0xc4e   : > { %9644 = vmatmul.bf16.vlgmr.msra.gmra.mxu2 %v9315_v5  ;;  %9657 = vmatmul.bf16.vlgmr.msra.gmra.mxu3 %v9313_v35 }
 0xc4f   : > { %9827 = vmatpush.bf16.msrb.mxu2 %v14940_v9  ;;  %9838 = vmatpush.bf16.msrb.mxu3 %v14950_v42 }
 0xc53   : > { %9828 = vmatpush.bf16.msrb.mxu2 %v14939_v44  ;;  %9839 = vmatpush.bf16.msrb.mxu3 %v14949_v59 }
 0xc57   : > { %9840 = vmatpush.bf16.msrb.mxu3 %v14948_v40 }
 0xc5b   : > { %9841 = vmatpush.bf16.msrb.mxu3 %v14947_v45 }
 0xc5d   : > { %9670 = vmatmul.bf16.vlgmr.msrb.gmra.mxu0 %v9314_v32  ;;  %9683 = vmatmul.bf16.vlgmr.msrb.gmra.mxu1 %v9315_v5 }
 0xcca   : > { %v9619_v54 = vpop.f32.mrf.mxu0  ;;  %v9632_v13 = vpop.f32.mrf.mxu1 }
 0xccb   : > { %v9620_v52 = vadd.f32 %v9619_v54, %v9606_v57 }
 0xccd   : > { %v9633_v41 = vadd.f32 %v9632_v13, %v9620_v52 }
 0xcd1   : > { %v9645_v8 = vpop.f32.mrf.mxu2  ;;  %v9658_v20 = vpop.f32.mrf.mxu3 }
 0xcd2   : > { %v9646_v6 = vadd.f32 %v9645_v8, %v9633_v41  ;;  %v9621_v51 = vpop.f32.mrf.mxu0  ;;  %v9634_v62 = vpop.f32.mrf.mxu1  ;;  %v9659_v48 = vadd.f32 %v9658_v20, %v9607_v17 }
 0xcd4   : > { %v9688_v36 = vmax.f32 %v9646_v6, 0.0 }
 0xcd6   : > { %v9690_v2 = vpack.c.bf16 %v9688_v36, %v9688_v36 }
 0xcd8   : > { %9829 = vmatmul.bf16.vlgmr.msrb.gmra.mxu2 %v9690_v2 }
 0xcd9   : > { %v9647_v12 = vpop.f32.mrf.mxu2  ;;  %v9660_v10 = vpop.f32.mrf.mxu3 }
 0xcda   : > { %v9671_v34 = vpop.f32.mrf.mxu0  ;;  %v9684_v16 = vpop.f32.mrf.mxu1 }
 0xcdb   : > { %v9672_v24 = vadd.f32 %v9671_v34, %v9659_v48 }
 0xcdd   : > { %v9685_v61 = vadd.f32 %v9684_v16, %v9672_v24 }
 0xcdf   : > { %v9689_v23 = vmax.f32 %v9685_v61, 0.0 }
 0xce1   : > { %v9691_v53 = vpack.c.bf16 %v9689_v23, %v9689_v23 }
 0xce2   : > { %v9673_v1 = vpop.f32.mrf.mxu0  ;;  %v9686_v33 = vpop.f32.mrf.mxu1 }
 0xce3   : > { %9842 = vmatmul.bf16.vlgmr.msrb.gmra.mxu3 %v9691_v53 }
 0xd5b   : > { %v9830_v50 = vpop.f32.mrf.mxu2 }
 0xd5c   : > { %v9831_v39 = vadd.f32 %v9830_v50, %v9724_v18 }
 0xd63   : > { %v9832_v0 = vpop.f32.mrf.mxu2 }
 0xd66   : > { %v9843_v3 = vpop.f32.mrf.mxu3 }
 0xd67   : > { %v9844_v37 = vadd.f32 %v9843_v3, %v9831_v39 }
 0xd69   : > { %9848 = vst.msk [vmem:[%s16479_s8] sm:$0x1] %vm9847_vm11, %v9844_v37 }
 0xd6e   : > { %v9845_v60 = vpop.f32.mrf.mxu3 }
 0xd6f PF: > { %s19670_s26 = sld [smem:[#allocation51_spill]]  ;;  %s9860_s2 = sshll.u32 %s16479_s8, 4  ;;  %s9861_s2 = int_to_ptr.vmem [resolvable:$true] %s9860_s2 }
 0xd70   : > { %s19671_s14 = sld [smem:[#allocation77_spill]]  ;;  %s9850_s25 = scalar_lea.sflag [#allocation5], %s1273_s29 }
 0xd76   : > { %s9858_s21 = scalar_lea.hbm %s19671_s14, %s19670_s26  ;;  %s15823_s0 = scalar_lea.hbm %s19671_s14, 2 }
 0xd77   : > { %s9862_s22 = sshll.u32 %s9858_s21, 4  ;;  %s9863_s22 = int_to_ptr.hbm [resolvable:$true] %s9862_s22 }
 0xd78   : > { %s15817_s5 = sshra.s32 %s9863_s22, 4  ;;  %s15818_s5 = int_to_ptr.hbm [resolvable:$true] %s15817_s5 }
 0xd79   : > { %s15819_s27 = scalar_lea.hbm %s15818_s5, 1  ;;  %p15824_p1 = scmp.lt.s32.totalorder %s15818_s5, %s19671_s14 }
 0xd7a   : > { %p15820_p11 = scmp.ne.s32.totalorder %s15818_s5, %s15819_s27  ;;  %p15825_p2 = scmp.lt.s32.totalorder %s15823_s0, %s15819_s27 }
 0xd7c   : > { %p15821_p13 = pnand %p15820_p11, %p16187_p12  ;;  %p15826_p5 = por %p15825_p2, %p15824_p1 }
 0xd7e   : > { %p15822_p0 = pneg %p15821_p13 }
 0xd80   : > { %p15827_p6 = pnand %p15826_p5, %p15822_p0 }
 0xd82   : > { %15830 = shalt.err (!%p15827_p6)
}
 0xd83   : > { %15038 = dma.vmem_to_hbm [thread:$0]  (%p16187_p12), %s9861_s2, 16, %s9863_s22, %s9850_s25  }
 0xd84 PF: > { %s19674_s29 = sld [smem:[#allocation53_spill]] }
 0xd85   : > { %s19675_s8 = sld [smem:[#allocation46_spill]] }
 0xd8a   : > { %p15070_p9 = scmp.ge.s32.totalorder %s19674_s29, 2 }
 0xd8b   : > { %s9874_s24 = sand.u32 1, %s19675_s8  }
 0xd8c   : > { %p15057_p10 = pnand %p15070_p9, %p16195_p4  ;;  %s9875_s13 = scalar_lea.sflag [#allocation5], %s9874_s24 }
 0xd8e   : > { %p15058_p3 = pneg %p15057_p10 }
 0xd90   : > { %15920 = dma.done.wait (%p15058_p3), %s9875_s13, 16  }
 0xd91   : > { %15922 = vsyncadd (%p15058_p3), %s9875_s13, 4294967280  ;;  %s60_s5 = sadd.s32 1, %s19674_s29   ;;  %s19677_s2 = sld [smem:[#allocation47_spill]] }
 0xd92   : > { %p57_p8 = scmp.ge.s32.totalorder %s60_s5, 26   ;;  %s19678_s25 = sld [smem:[#allocation48_spill]] }
 0xd93   : > { %s19679_s26 = sld [smem:[#allocation57_spill]]  ;;  %s19685_s27 = smov %s15941_s3 }
 0xd94   : > { %s19680_s16 = sld [smem:[#allocation49_spill]]  ;;  %s19687_s29 = smov %s15957_s4 }
 0xd95   : > { %s19681_s28 = sld [smem:[#allocation56_spill]] }
 0xd96   : > { %s19682_s0 = sld [smem:[#allocation52_spill]] }
 0xd97   : > { %s19683_s15 = sld [smem:[#allocation54_spill]] }
 0xd98   : > { %s19684_s30 = sld [smem:[#allocation55_spill]] }
 0xd99   :  { %59 = sbr.rel (!%p57_p8) target bundleno = 44 (0x2c), region = 337 }
 0xd9a   : > { %s19686_s3 = smov %s19680_s16 }
 0xd9d   : > { %s19688_s4 = smov %s19683_s15 }
 0xd9e   :  { %9880 = vsyncpa [#allocation4], 1 }
 0xd9f   :  { %9882 = vsyncpa [#allocation4 + $0x1], 1 }
 0xda0   :  { %9883 = vsyncpa [#allocation7], 1 }
 0xda1   :  { %9885 = vsyncpa [#allocation7 + $0x1], 1 }
 0xda2   :  { %9886 = vsyncpa [#allocation10], 1 }
 0xda3   :  { %9888 = vsyncpa [#allocation10 + $0x1], 1 }
 0xda4   :  { %9889 = vsyncpa [#allocation13], 1 }
 0xda5   :  { %9891 = vsyncpa [#allocation13 + $0x1], 1 }
 0xda6   :  { %9892 = vsyncpa [#allocation16], 1 }
 0xda7   :  { %9894 = vsyncpa [#allocation16 + $0x1], 1 }
 0xda8   :  { %9895 = vsyncpa [#allocation19], 1 }
 0xda9   :  { %9897 = vsyncpa [#allocation19 + $0x1], 1 }
 0xdaa   :  { %9898 = vsyncpa [#allocation22], 1 }
 0xdab   :  { %9900 = vsyncpa [#allocation22 + $0x1], 1 }
 0xdac   :  { %9901 = vsyncpa [#allocation25], 1 }
 0xdad   :  { %9903 = vsyncpa [#allocation25 + $0x1], 1 }
 0xdae   :  { %9904 = vsyncpa [#allocation28], 1 }
 0xdaf   :  { %9905 = vsyncpa [#allocation31], 1 }
 0xdb0   :  { %9906 = vsyncpa [#allocation5], 1 }
 0xdb1   :  { %9908 = vsyncpa [#allocation5 + $0x1], 1 }

</bundles_post_ra>
